<compile_context>
chip_gen: v7x
topology: tpu7x:2x2x1
jax: 0.10.0
libtpu: 0.0.40
codegen_flags: <defaults>
</compile_context>

<pallas_src>
import functools
import math

import jax
import jax.numpy as jnp
from jax.experimental import pallas as pl
from jax.experimental.pallas import tpu as pltpu

BN_EPS = 1e-5
VMEM_LIMIT = 32 * 1024 * 1024


def _round_up(a, m):
    return (a + m - 1) // m * m


# ---------------------------------------------------------------------------
# Pallas kernels
# ---------------------------------------------------------------------------
def _conv3d_kernel(x_ref, w_ref, scale_ref, shift_ref, o_ref, acc_ref, *,
                   kt, kh, kw, pw, H, W, cin, act):
    """One (batch, output-frame) tile of a 'same' Conv3d + folded BN + act.

    x_ref block : (1, 1, R, cin)  -- row-flattened, (T,H)-padded input frame
    w_ref block : (1, kh*kw*cin, cout) -- weights for the current temporal tap
    o_ref block : (1, 1, H*W, cout)
    acc_ref     : (H*W, cout) f32 VMEM accumulator (persists across kt taps)
    """
    dt = pl.program_id(2)

    @pl.when(dt == 0)
    def _init():
        acc_ref[...] = jnp.zeros_like(acc_ref)

    HW = H * W
    if kw > 1:
        # column position of each flattened output row (for horizontal masking)
        col = jax.lax.broadcasted_iota(jnp.int32, (HW, 1), 0) % W

    for dh in range(kh):
        for dw in range(kw):
            lo = pw - dw            # tap valid iff lo <= col < hi
            hi = W + pw - dw
            if lo >= W or hi <= 0:  # tap lies entirely in horizontal padding
                continue
            off = dh * W + dw
            a = x_ref[0, 0, off:off + HW, :]                    # (HW, cin) bf16
            if lo > 0 or hi < W:
                mask = (col >= lo) & (col < hi)
                a = jnp.where(mask, a, 0)
            tap = dh * kw + dw
            wt = w_ref[0, tap * cin:(tap + 1) * cin, :]          # (cin, cout)
            acc_ref[...] += jnp.dot(a, wt, preferred_element_type=jnp.float32)

    @pl.when(dt == kt - 1)
    def _finish():
        y = acc_ref[...] * scale_ref[...] + shift_ref[...]
        if act == "relu":
            y = jnp.maximum(y, 0.0)
        elif act == "elu":
            y = jnp.where(y > 0.0, y, jnp.exp(jnp.minimum(y, 0.0)) - 1.0)
        o_ref[0, 0] = y.astype(o_ref.dtype)


def _maxpool_kernel(x_ref, o_ref, *, pt, ph, pw, C):
    """Window max.  x_ref block: (pt, Ho, ph, Wo, pw*C); o_ref: (1, Ho, Wo, C)."""
    m = None
    for dt in range(pt):
        for dh in range(ph):
            v = x_ref[dt, :, dh, :, :]                 # (Ho, Wo, pw*C)
            m = v if m is None else jnp.maximum(m, v)
    out = m[..., 0:C]
    for dw in range(1, pw):
        out = jnp.maximum(out, m[..., dw * C:(dw + 1) * C])
    o_ref[0] = out.astype(o_ref.dtype)


def _mm_bn_act_kernel(x_ref, w_ref, scale_ref, shift_ref, o_ref, *, act):
    """Fused (tm,K)x(K,N) matmul + scale/shift + activation (decoder path)."""
    y = jnp.dot(x_ref[0], w_ref[0], preferred_element_type=jnp.float32)
    y = y * scale_ref[...] + shift_ref[...]
    if act == "relu":
        y = jnp.maximum(y, 0.0)
    elif act == "elu":
        y = jnp.where(y > 0.0, y, jnp.exp(jnp.minimum(y, 0.0)) - 1.0)
    o_ref[0] = y.astype(o_ref.dtype)


# ---------------------------------------------------------------------------
# Pallas wrappers
# ---------------------------------------------------------------------------
def conv3d_bn_act(x, w, scale, shift, act, pad):
    """'same' Conv3d + folded BatchNorm3d + activation.

    x : (B, T, H, W, Cin) ; w : (kt, kh, kw, Cin, Cout) ; pad = (pt, ph, pw)
    with k = 2*pad + 1 on every axis (stride 1).
    """
    kt, kh, kw, cin, cout = w.shape
    pt, ph, pw = pad
    B, T, H, W, _ = x.shape
    assert kt == 2 * pt + 1 and kh == 2 * ph + 1 and kw == 2 * pw + 1

    # Zero-pad time + height, flatten (H, W) into rows and pad the row axis by
    # pw so every horizontal tap becomes a plain row offset (masked in-kernel).
    xp = jnp.pad(x, ((0, 0), (pt, pt), (ph, ph), (0, 0), (0, 0)))
    Tp, Hp = T + 2 * pt, H + 2 * ph
    xf = xp.reshape(B, Tp, Hp * W, cin)
    if pw:
        xf = jnp.pad(xf, ((0, 0), (0, 0), (pw, pw), (0, 0)))
    R = Hp * W + 2 * pw
    HW = H * W

    kernel = functools.partial(_conv3d_kernel, kt=kt, kh=kh, kw=kw, pw=pw,
                               H=H, W=W, cin=cin, act=act)
    out = pl.pallas_call(
        kernel,
        out_shape=jax.ShapeDtypeStruct((B, T, HW, cout), jnp.bfloat16),
        grid=(B, T, kt),
        in_specs=[
            pl.BlockSpec((1, 1, R, cin), lambda b, t, dt: (b, t + dt, 0, 0)),
            pl.BlockSpec((1, kh * kw * cin, cout), lambda b, t, dt: (dt, 0, 0)),
            pl.BlockSpec((1, cout), lambda b, t, dt: (0, 0)),
            pl.BlockSpec((1, cout), lambda b, t, dt: (0, 0)),
        ],
        out_specs=pl.BlockSpec((1, 1, HW, cout), lambda b, t, dt: (b, t, 0, 0)),
        scratch_shapes=[pltpu.VMEM((HW, cout), jnp.float32)],
        compiler_params=pltpu.CompilerParams(
            dimension_semantics=("parallel", "parallel", "arbitrary"),
            vmem_limit_bytes=VMEM_LIMIT),
    )(xf.astype(jnp.bfloat16),
      w.reshape(kt, kh * kw * cin, cout).astype(jnp.bfloat16),
      scale.reshape(1, cout).astype(jnp.float32),
      shift.reshape(1, cout).astype(jnp.float32))
    return out.reshape(B, T, H, W, cout)


def maxpool3d(x, pool):
    """nn.MaxPool3d(pool, stride=pool) without materializing window taps in HBM."""
    B, T, H, W, C = x.shape
    pt, ph, pw = pool
    assert T % pt == 0 and H % ph == 0 and W % pw == 0
    To, Ho, Wo = T // pt, H // ph, W // pw
    xv = x.reshape(B * T, Ho, ph, Wo, pw * C)          # free row-major view
    out = pl.pallas_call(
        functools.partial(_maxpool_kernel, pt=pt, ph=ph, pw=pw, C=C),
        out_shape=jax.ShapeDtypeStruct((B * To, Ho, Wo, C), x.dtype),
        grid=(B * To,),
        in_specs=[pl.BlockSpec((pt, Ho, ph, Wo, pw * C),
                               lambda i: (i, 0, 0, 0, 0))],
        out_specs=pl.BlockSpec((1, Ho, Wo, C), lambda i: (i, 0, 0, 0)),
        compiler_params=pltpu.CompilerParams(
            dimension_semantics=("parallel",),
            vmem_limit_bytes=VMEM_LIMIT),
    )(xv)
    return out.reshape(B, To, Ho, Wo, C)


def batched_matmul_bn_act(x, w, scale, shift, act, out_dtype=jnp.bfloat16):
    """(P, M, K) x (P, K, N) -> (P, M, N) fused with folded BN + activation."""
    P, M, K = x.shape
    N = w.shape[2]
    tm = 512 if M >= 512 else _round_up(M, 8)
    Mp = _round_up(M, tm)
    if Mp != M:
        x = jnp.pad(x, ((0, 0), (0, Mp - M), (0, 0)))
    out = pl.pallas_call(
        functools.partial(_mm_bn_act_kernel, act=act),
        out_shape=jax.ShapeDtypeStruct((P, Mp, N), out_dtype),
        grid=(P, Mp // tm),
        in_specs=[
            pl.BlockSpec((1, tm, K), lambda p, i: (p, i, 0)),
            pl.BlockSpec((1, K, N), lambda p, i: (p, 0, 0)),
            pl.BlockSpec((1, N), lambda p, i: (0, 0)),
            pl.BlockSpec((1, N), lambda p, i: (0, 0)),
        ],
        out_specs=pl.BlockSpec((1, tm, N), lambda p, i: (p, i, 0)),
        compiler_params=pltpu.CompilerParams(
            dimension_semantics=("parallel", "parallel"),
            vmem_limit_bytes=VMEM_LIMIT),
    )(x.astype(jnp.bfloat16), w.astype(jnp.bfloat16),
      scale.reshape(1, N).astype(jnp.float32),
      shift.reshape(1, N).astype(jnp.float32))
    return out[:, :M]


def conv_transpose_time_bn_elu(x, w, scale, shift):
    """ConvTranspose3d(k=[4,1,1], stride=[2,1,1], pad=[1,0,0]) + BN + ELU.

    Even/odd output phases each see only two non-zero taps:
      out[2t]   = x[t] @ w1 + x[t-1] @ w3
      out[2t+1] = x[t+1] @ w0 + x[t] @ w2
    Run as one phase-batched fused Pallas matmul (no zero-insertion pass).
    """
    B, T, H, W, cin = x.shape
    cout = w.shape[2]
    zero = jnp.zeros_like(x[:, :1])
    x_prev = jnp.concatenate([zero, x[:, :-1]], axis=1)
    x_next = jnp.concatenate([x[:, 1:], zero], axis=1)
    M = B * T * H * W
    xe = jnp.concatenate([x, x_prev], axis=-1).reshape(M, 2 * cin)
    xo = jnp.concatenate([x_next, x], axis=-1).reshape(M, 2 * cin)
    we = jnp.concatenate([w[1], w[3]], axis=0)                  # (2*cin, cout)
    wo = jnp.concatenate([w[0], w[2]], axis=0)
    y = batched_matmul_bn_act(jnp.stack([xe, xo], 0), jnp.stack([we, wo], 0),
                              scale, shift, "elu")              # (2, M, cout)
    y = y.reshape(2, B, T, H, W, cout)
    y = jnp.stack([y[0], y[1]], axis=2).reshape(B, 2 * T, H, W, cout)
    return y


# ---------------------------------------------------------------------------
# Deterministic synthetic parameters (eval-mode BN folded into scale/shift)
# ---------------------------------------------------------------------------
def _conv_bn_params(key, shape_w, cout, with_bn=True):
    k = jax.random.split(key, 6)
    fan_in = math.prod(shape_w[:-1])
    w = jax.random.normal(k[0], shape_w, jnp.float32) / math.sqrt(fan_in)
    b = 0.01 * jax.random.normal(k[1], (cout,), jnp.float32)
    if with_bn:
        gamma = 1.0 + 0.1 * jax.random.normal(k[2], (cout,), jnp.float32)
        beta = 0.1 * jax.random.normal(k[3], (cout,), jnp.float32)
        mean = 0.1 * jax.random.normal(k[4], (cout,), jnp.float32)
        var = 0.5 + jax.random.uniform(k[5], (cout,), jnp.float32)
        scale = gamma / jnp.sqrt(var + BN_EPS)
        shift = (b - mean) * scale + beta
    else:
        scale = jnp.ones((cout,), jnp.float32)
        shift = b
    return w, scale, shift


def init_params(key):
    keys = jax.random.split(key, 16)
    p = {}
    p["cb1"] = _conv_bn_params(keys[0], (1, 5, 5, 3, 16), 16)
    p["cb2"] = _conv_bn_params(keys[1], (3, 3, 3, 16, 32), 32)
    p["cb3"] = _conv_bn_params(keys[2], (3, 3, 3, 32, 64), 64)
    p["cb4"] = _conv_bn_params(keys[3], (3, 3, 3, 64, 64), 64)
    p["cb5"] = _conv_bn_params(keys[4], (3, 3, 3, 64, 64), 64)
    p["cb6"] = _conv_bn_params(keys[5], (3, 3, 3, 64, 64), 64)
    p["cb7"] = _conv_bn_params(keys[6], (3, 3, 3, 64, 64), 64)
    p["cb8"] = _conv_bn_params(keys[7], (3, 3, 3, 64, 64), 64)
    p["cb9"] = _conv_bn_params(keys[8], (3, 3, 3, 64, 64), 64)
    p["up1"] = _conv_bn_params(keys[9], (4, 64, 64), 64)
    p["up2"] = _conv_bn_params(keys[10], (4, 64, 64), 64)
    # tiny heads (run as plain XLA ops -- see perf notes)
    w10, _, b10 = _conv_bn_params(keys[11], (64, 1), 1, with_bn=False)
    p["cb10"] = (w10, b10)
    w11a, _, b11a = _conv_bn_params(keys[12], (3, 1, 16), 16, with_bn=False)
    p["c11a"] = (w11a, b11a)
    w11b, _, b11b = _conv_bn_params(keys[13], (3, 16, 32), 32, with_bn=False)
    p["c11b"] = (w11b, b11b)
    wl = jax.random.normal(keys[14], (128, 1), jnp.float32) / math.sqrt(128.0)
    bl = 0.01 * jax.random.normal(keys[15], (1,), jnp.float32)
    p["fc"] = (wl, bl)
    return p


# ---------------------------------------------------------------------------
# Forward pass (mirrors PhysNet_padding_Encoder_Decoder_MAX.forward)
# ---------------------------------------------------------------------------
def physnet_forward(x_ncdhw, params, frames):
    B, C, T, H, W = x_ncdhw.shape
    assert C == 3 and T == frames and T % 4 == 0 and H % 16 == 0 and W % 16 == 0
    x_visual = x_ncdhw
    x = jnp.transpose(x_ncdhw, (0, 2, 3, 4, 1)).astype(jnp.bfloat16)   # -> NDHWC

    # --- encoder ----------------------------------------------------------
    # ConvBlock1 (1x5x5, 3->16): with only 3 input channels, build the 25-tap
    # patch tensor in the wrapper (cheap: 75 channels) so the Pallas kernel
    # sees a dense contraction instead of 3-lane DMA rows.
    w, s, sh = params["cb1"]
    xp = jnp.pad(x, ((0, 0), (0, 0), (2, 2), (2, 2), (0, 0)))
    cols = [xp[:, :, dh:dh + H, dw:dw + W, :] for dh in range(5) for dw in range(5)]
    patches = jnp.concatenate(cols, axis=-1)                           # (B,T,H,W,75)
    x = conv3d_bn_act(patches, w.reshape(1, 1, 1, 75, 16), s, sh, "relu", (0, 0, 0))
    x = maxpool3d(x, (1, 2, 2))

    w, s, sh = params["cb2"]; x = conv3d_bn_act(x, w, s, sh, "relu", (1, 1, 1))
    w, s, sh = params["cb3"]; x_visual6464 = conv3d_bn_act(x, w, s, sh, "relu", (1, 1, 1))
    x = maxpool3d(x_visual6464, (2, 2, 2))
    w, s, sh = params["cb4"]; x = conv3d_bn_act(x, w, s, sh, "relu", (1, 1, 1))
    w, s, sh = params["cb5"]; x_visual3232 = conv3d_bn_act(x, w, s, sh, "relu", (1, 1, 1))
    x = maxpool3d(x_visual3232, (2, 2, 2))
    w, s, sh = params["cb6"]; x = conv3d_bn_act(x, w, s, sh, "relu", (1, 1, 1))
    w, s, sh = params["cb7"]; x_visual1616 = conv3d_bn_act(x, w, s, sh, "relu", (1, 1, 1))
    x = maxpool3d(x_visual1616, (1, 2, 2))
    w, s, sh = params["cb8"]; x = conv3d_bn_act(x, w, s, sh, "relu", (1, 1, 1))
    w, s, sh = params["cb9"]; x = conv3d_bn_act(x, w, s, sh, "relu", (1, 1, 1))

    # --- decoder (temporal transposed convs) -------------------------------
    w, s, sh = params["up1"]; x = conv_transpose_time_bn_elu(x, w, s, sh)
    w, s, sh = params["up2"]; x = conv_transpose_time_bn_elu(x, w, s, sh)

    # --- heads (tiny; plain XLA per perf review on degenerate matmuls) -----
    # poolspa = AdaptiveAvgPool3d((frames,1,1)); temporal length == frames here.
    # TODO(synk): general temporal adaptive resampling (T != frames) not implemented.
    pooled = jnp.mean(x.astype(jnp.float32), axis=(2, 3))              # (B, frames, 64)
    w10, b10 = params["cb10"]
    rppg = (pooled @ w10 + b10).reshape(B, frames)

    h = rppg[:, :, None]                                               # (B, T, 1)
    w1, b1 = params["c11a"]
    hp = jnp.pad(h, ((0, 0), (1, 1), (0, 0)))
    h1 = jax.nn.relu(sum(hp[:, k:k + frames] @ w1[k] for k in range(3)) + b1)
    w2, b2 = params["c11b"]
    h1p = jnp.pad(h1, ((0, 0), (1, 1), (0, 0)))
    h2 = jax.nn.relu(sum(h1p[:, k:k + frames] @ w2[k] for k in range(3)) + b2)
    pooled4 = h2.reshape(B, 4, frames // 4, 32).mean(axis=2)           # (B, 4, 32)
    feat = jnp.transpose(pooled4, (0, 2, 1)).reshape(B, 128)           # torch flatten order
    wl, bl = params["fc"]
    spo2 = jax.nn.sigmoid(feat @ wl + bl) * 15.0 + 85.0                # (B, 1)

    # Return "visual" tensors in PyTorch NCDHW layout (float32).
    x_v3232 = jnp.transpose(x_visual3232, (0, 4, 1, 2, 3)).astype(jnp.float32)
    x_v1616 = jnp.transpose(x_visual1616, (0, 4, 1, 2, 3)).astype(jnp.float32)
    return rppg, spo2, x_visual, x_v3232, x_v1616


# ---------------------------------------------------------------------------
if __name__ == "__main__":
    key = jax.random.PRNGKey(0)
    kx, kp = jax.random.split(key)
    B, C, T, H, W = 2, 3, 8, 16, 16            # small shapes, frames = T = 8
    x = jax.random.normal(kx, (B, C, T, H, W), jnp.float32)
    params = init_params(kp)

    fwd = jax.jit(functools.partial(physnet_forward, frames=T))
    rppg, spo2, xv, xv32, xv16 = fwd(x, params)
    jax.block_until_ready((rppg, spo2, xv, xv32, xv16))

    assert rppg.shape == (B, T)
    assert spo2.shape == (B, 1)
    assert xv.shape == (B, C, T, H, W)
    assert xv32.shape == (B, 64, T // 2, H // 4, W // 4)
    assert xv16.shape == (B, 64, T // 4, H // 8, W // 8)
    print("KERNEL_OK")
</pallas_src>

<mosaic_0001>
module attributes {stable_mosaic.version = 11 : i64} {
  func.func @_conv3d_kernel(%arg0: i32, %arg1: i32, %arg2: i32, %arg3: memref<1x1x256x75xbf16, #tpu.memory_space<vmem>>, %arg4: memref<1x75x16xbf16, #tpu.memory_space<vmem>>, %arg5: memref<1x16xf32, #tpu.memory_space<vmem>>, %arg6: memref<1x16xf32, #tpu.memory_space<vmem>>, %arg7: memref<1x1x256x16xbf16, #tpu.memory_space<vmem>>, %arg8: memref<256x16xf32, #tpu.memory_space<vmem>>) attributes {dimension_semantics = [#tpu.dimension_semantics<parallel>, #tpu.dimension_semantics<parallel>, #tpu.dimension_semantics<arbitrary>], iteration_bounds = array<i64: 2, 8, 1>, scalar_prefetch = 0 : i64, scratch_operands = 1 : i64, tpu.core_type = #tpu.core_type<tc>, window_params = [{transform_indices = @transform_0, window_bounds = array<i64: 1, 1, 256, 75>}, {transform_indices = @transform_1, window_bounds = array<i64: 1, 75, 16>}, {pipeline_mode = #tpu.pipeline_mode<synchronous>, transform_indices = @transform_2, window_bounds = array<i64: 1, 16>}, {pipeline_mode = #tpu.pipeline_mode<synchronous>, transform_indices = @transform_3, window_bounds = array<i64: 1, 16>}, {transform_indices = @transform_4, window_bounds = array<i64: 1, 1, 256, 16>}]} {
    %c0_i32 = arith.constant 0 : i32
    %0 = arith.cmpi eq, %arg2, %c0_i32 : i32
    %1 = arith.extui %0 : i1 to i32
    %c0_i32_0 = arith.constant 0 : i32
    %2 = arith.cmpi ne, %1, %c0_i32_0 : i32
    scf.if %2 {
      %cst_13 = arith.constant 0.000000e+00 : f32
      %14 = vector.broadcast %cst_13 : f32 to vector<256x16xf32>
      %c0_14 = arith.constant 0 : index
      %c0_15 = arith.constant 0 : index
      %15 = vector.load %arg8[%c0_14, %c0_15] : memref<256x16xf32, #tpu.memory_space<vmem>>, vector<256x16xf32>
      tpu.vector_store %arg8[%c0_14, %c0_15], %14 {strides = array<i32>} : memref<256x16xf32, #tpu.memory_space<vmem>>, vector<256x16xf32>,
    } else {
    }
    %c0 = arith.constant 0 : index
    %c0_1 = arith.constant 0 : index
    %c0_2 = arith.constant 0 : index
    %c0_3 = arith.constant 0 : index
    %3 = vector.load %arg3[%c0, %c0_1, %c0_2, %c0_3] : memref<1x1x256x75xbf16, #tpu.memory_space<vmem>>, vector<1x1x256x75xbf16>
    %4 = vector.shape_cast %3 : vector<1x1x256x75xbf16> to vector<256x75xbf16>
    %c0_4 = arith.constant 0 : index
    %c0_5 = arith.constant 0 : index
    %c0_6 = arith.constant 0 : index
    %5 = vector.load %arg4[%c0_4, %c0_5, %c0_6] : memref<1x75x16xbf16, #tpu.memory_space<vmem>>, vector<1x75x16xbf16>
    %6 = vector.shape_cast %5 : vector<1x75x16xbf16> to vector<75x16xbf16>
    %c0_7 = arith.constant 0 : index
    %c0_8 = arith.constant 0 : index
    %7 = vector.load %arg8[%c0_7, %c0_8] : memref<256x16xf32, #tpu.memory_space<vmem>>, vector<256x16xf32>
    %cst = arith.constant dense<0.000000e+00> : vector<256x16xf32>
    %8 = tpu.matmul %4, %6, %cst {dimension_numbers = #tpu.dot_dimension_numbers<[1], [0], [0], [1], [0, 0, 1, 1], [], []>} : vector<256x75xbf16>, vector<75x16xbf16>, vector<256x16xf32> -> vector<256x16xf32>
    %9 = arith.addf %7, %8 : vector<256x16xf32>
    %c0_9 = arith.constant 0 : index
    %c0_10 = arith.constant 0 : index
    %10 = vector.load %arg8[%c0_9, %c0_10] : memref<256x16xf32, #tpu.memory_space<vmem>>, vector<256x16xf32>
    tpu.vector_store %arg8[%c0_9, %c0_10], %9 {strides = array<i32>} : memref<256x16xf32, #tpu.memory_space<vmem>>, vector<256x16xf32>,
    %c0_i32_11 = arith.constant 0 : i32
    %11 = arith.cmpi eq, %arg2, %c0_i32_11 : i32
    %12 = arith.extui %11 : i1 to i32
    %c0_i32_12 = arith.constant 0 : i32
    %13 = arith.cmpi ne, %12, %c0_i32_12 : i32
    scf.if %13 {
      %c0_13 = arith.constant 0 : index
      %c0_14 = arith.constant 0 : index
      %14 = vector.load %arg8[%c0_13, %c0_14] : memref<256x16xf32, #tpu.memory_space<vmem>>, vector<256x16xf32>
      %c0_15 = arith.constant 0 : index
      %c0_16 = arith.constant 0 : index
      %15 = vector.load %arg5[%c0_15, %c0_16] : memref<1x16xf32, #tpu.memory_space<vmem>>, vector<1x16xf32>
      %16 = vector.broadcast %15 : vector<1x16xf32> to vector<256x16xf32>
      %17 = arith.mulf %14, %16 : vector<256x16xf32>
      %c0_17 = arith.constant 0 : index
      %c0_18 = arith.constant 0 : index
      %18 = vector.load %arg6[%c0_17, %c0_18] : memref<1x16xf32, #tpu.memory_space<vmem>>, vector<1x16xf32>
      %19 = vector.broadcast %18 : vector<1x16xf32> to vector<256x16xf32>
      %20 = arith.addf %17, %19 : vector<256x16xf32>
      %cst_19 = arith.constant 0.000000e+00 : f32
      %21 = vector.broadcast %cst_19 : f32 to vector<256x16xf32>
      %22 = arith.maximumf %20, %21 : vector<256x16xf32>
      %23 = arith.truncf %22 : vector<256x16xf32> to vector<256x16xbf16>
      %c0_20 = arith.constant 0 : index
      %c0_21 = arith.constant 0 : index
      %c0_22 = arith.constant 0 : index
      %c0_23 = arith.constant 0 : index
      %24 = vector.load %arg7[%c0_20, %c0_21, %c0_22, %c0_23] : memref<1x1x256x16xbf16, #tpu.memory_space<vmem>>, vector<1x1x256x16xbf16>
      %25 = vector.shape_cast %24 : vector<1x1x256x16xbf16> to vector<256x16xbf16>
      %26 = vector.shape_cast %23 : vector<256x16xbf16> to vector<1x1x256x16xbf16>
      tpu.vector_store %arg7[%c0_20, %c0_21, %c0_22, %c0_23], %26 {strides = array<i32>} : memref<1x1x256x16xbf16, #tpu.memory_space<vmem>>, vector<1x1x256x16xbf16>,
    } else {
    }
    return
  }
  func.func @transform_0(%arg0: i32, %arg1: i32, %arg2: i32) -> (i32, i32, i32, i32) {
    %0 = arith.addi %arg1, %arg2 : i32
    %c0_i32 = arith.constant 0 : i32
    %c0_i32_0 = arith.constant 0 : i32
    %c0_i32_1 = arith.constant 0 : i32
    return %arg0, %0, %c0_i32, %c0_i32_0 : i32, i32, i32, i32
  }
  func.func @transform_1(%arg0: i32, %arg1: i32, %arg2: i32) -> (i32, i32, i32) {
    %c0_i32 = arith.constant 0 : i32
    %c0_i32_0 = arith.constant 0 : i32
    %c0_i32_1 = arith.constant 0 : i32
    return %arg2, %c0_i32, %c0_i32_0 : i32, i32, i32
  }
  func.func @transform_2(%arg0: i32, %arg1: i32, %arg2: i32) -> (i32, i32) {
    %c0_i32 = arith.constant 0 : i32
    %c0_i32_0 = arith.constant 0 : i32
    %c0_i32_1 = arith.constant 0 : i32
    return %c0_i32, %c0_i32_0 : i32, i32
  }
  func.func @transform_3(%arg0: i32, %arg1: i32, %arg2: i32) -> (i32, i32) {
    %c0_i32 = arith.constant 0 : i32
    %c0_i32_0 = arith.constant 0 : i32
    %c0_i32_1 = arith.constant 0 : i32
    return %c0_i32, %c0_i32_0 : i32, i32
  }
  func.func @transform_4(%arg0: i32, %arg1: i32, %arg2: i32) -> (i32, i32, i32, i32) {
    %c0_i32 = arith.constant 0 : i32
    %c0_i32_0 = arith.constant 0 : i32
    %c0_i32_1 = arith.constant 0 : i32
    return %arg0, %arg1, %c0_i32, %c0_i32_0 : i32, i32, i32, i32
  }
}

module attributes {stable_mosaic.version = 11 : i64} {
  func.func @_maxpool_kernel(%arg0: i32, %arg1: memref<1x8x2x8x32xbf16, #tpu.memory_space<vmem>>, %arg2: memref<1x8x8x16xbf16, #tpu.memory_space<vmem>>) attributes {dimension_semantics = [#tpu.dimension_semantics<parallel>], iteration_bounds = array<i64: 16>, scalar_prefetch = 0 : i64, scratch_operands = 0 : i64, tpu.core_type = #tpu.core_type<tc>, window_params = [{transform_indices = @transform_0, window_bounds = array<i64: 1, 8, 2, 8, 32>}, {transform_indices = @transform_1, window_bounds = array<i64: 1, 8, 8, 16>}]} {
    %c0 = arith.constant 0 : index
    %c0_0 = arith.constant 0 : index
    %c0_1 = arith.constant 0 : index
    %c0_2 = arith.constant 0 : index
    %c0_3 = arith.constant 0 : index
    %0 = vector.load %arg1[%c0, %c0_0, %c0_1, %c0_2, %c0_3] : memref<1x8x2x8x32xbf16, #tpu.memory_space<vmem>>, vector<1x8x1x8x32xbf16>
    %1 = vector.shape_cast %0 : vector<1x8x1x8x32xbf16> to vector<8x8x32xbf16>
    %c0_4 = arith.constant 0 : index
    %c0_5 = arith.constant 0 : index
    %c1 = arith.constant 1 : index
    %c0_6 = arith.constant 0 : index
    %c0_7 = arith.constant 0 : index
    %2 = vector.load %arg1[%c0_4, %c0_5, %c1, %c0_6, %c0_7] : memref<1x8x2x8x32xbf16, #tpu.memory_space<vmem>>, vector<1x8x1x8x32xbf16>
    %3 = vector.shape_cast %2 : vector<1x8x1x8x32xbf16> to vector<8x8x32xbf16>
    %4 = arith.maximumf %1, %3 : vector<8x8x32xbf16>
    %5 = vector.extract_strided_slice %4 {offsets = [0, 0, 0], sizes = [8, 8, 16], strides = [1, 1, 1]} : vector<8x8x32xbf16> to vector<8x8x16xbf16>
    %6 = vector.extract_strided_slice %4 {offsets = [0, 0, 16], sizes = [8, 8, 16], strides = [1, 1, 1]} : vector<8x8x32xbf16> to vector<8x8x16xbf16>
    %7 = arith.maximumf %5, %6 : vector<8x8x16xbf16>
    %c0_8 = arith.constant 0 : index
    %c0_9 = arith.constant 0 : index
    %c0_10 = arith.constant 0 : index
    %c0_11 = arith.constant 0 : index
    %8 = vector.load %arg2[%c0_8, %c0_9, %c0_10, %c0_11] : memref<1x8x8x16xbf16, #tpu.memory_space<vmem>>, vector<1x8x8x16xbf16>
    %9 = vector.shape_cast %8 : vector<1x8x8x16xbf16> to vector<8x8x16xbf16>
    %10 = vector.shape_cast %7 : vector<8x8x16xbf16> to vector<1x8x8x16xbf16>
    tpu.vector_store %arg2[%c0_8, %c0_9, %c0_10, %c0_11], %10 {strides = array<i32>} : memref<1x8x8x16xbf16, #tpu.memory_space<vmem>>, vector<1x8x8x16xbf16>,
    return
  }
  func.func @transform_0(%arg0: i32) -> (i32, i32, i32, i32, i32) {
    %c0_i32 = arith.constant 0 : i32
    %c0_i32_0 = arith.constant 0 : i32
    %c0_i32_1 = arith.constant 0 : i32
    %c0_i32_2 = arith.constant 0 : i32
    %c0_i32_3 = arith.constant 0 : i32
    return %arg0, %c0_i32, %c0_i32_0, %c0_i32_1, %c0_i32_2 : i32, i32, i32, i32, i32
  }
  func.func @transform_1(%arg0: i32) -> (i32, i32, i32, i32) {
    %c0_i32 = arith.constant 0 : i32
    %c0_i32_0 = arith.constant 0 : i32
    %c0_i32_1 = arith.constant 0 : i32
    %c0_i32_2 = arith.constant 0 : i32
    return %arg0, %c0_i32, %c0_i32_0, %c0_i32_1 : i32, i32, i32, i32
  }
}

module attributes {stable_mosaic.version = 11 : i64} {
  func.func @_conv3d_kernel(%arg0: i32, %arg1: i32, %arg2: i32, %arg3: memref<1x1x82x16xbf16, #tpu.memory_space<vmem>>, %arg4: memref<1x144x32xbf16, #tpu.memory_space<vmem>>, %arg5: memref<1x32xf32, #tpu.memory_space<vmem>>, %arg6: memref<1x32xf32, #tpu.memory_space<vmem>>, %arg7: memref<1x1x64x32xbf16, #tpu.memory_space<vmem>>, %arg8: memref<64x32xf32, #tpu.memory_space<vmem>>) attributes {dimension_semantics = [#tpu.dimension_semantics<parallel>, #tpu.dimension_semantics<parallel>, #tpu.dimension_semantics<arbitrary>], iteration_bounds = array<i64: 2, 8, 3>, scalar_prefetch = 0 : i64, scratch_operands = 1 : i64, tpu.core_type = #tpu.core_type<tc>, window_params = [{transform_indices = @transform_0, window_bounds = array<i64: 1, 1, 82, 16>}, {transform_indices = @transform_1, window_bounds = array<i64: 1, 144, 32>}, {pipeline_mode = #tpu.pipeline_mode<synchronous>, transform_indices = @transform_2, window_bounds = array<i64: 1, 32>}, {pipeline_mode = #tpu.pipeline_mode<synchronous>, transform_indices = @transform_3, window_bounds = array<i64: 1, 32>}, {transform_indices = @transform_4, window_bounds = array<i64: 1, 1, 64, 32>}]} {
    %c0_i32 = arith.constant 0 : i32
    %0 = arith.cmpi eq, %arg2, %c0_i32 : i32
    %1 = arith.extui %0 : i1 to i32
    %c0_i32_0 = arith.constant 0 : i32
    %2 = arith.cmpi ne, %1, %c0_i32_0 : i32
    scf.if %2 {
      %cst_112 = arith.constant 0.000000e+00 : f32
      %155 = vector.broadcast %cst_112 : f32 to vector<64x32xf32>
      %c0_113 = arith.constant 0 : index
      %c0_114 = arith.constant 0 : index
      %156 = vector.load %arg8[%c0_113, %c0_114] : memref<64x32xf32, #tpu.memory_space<vmem>>, vector<64x32xf32>
      tpu.vector_store %arg8[%c0_113, %c0_114], %155 {strides = array<i32>} : memref<64x32xf32, #tpu.memory_space<vmem>>, vector<64x32xf32>,
    } else {
    }
    %3 = tpu.iota {dimensions = array<i32: 0>} : vector<64x1xi32>
    %c8_i32 = arith.constant 8 : i32
    %c0_i32_1 = arith.constant 0 : i32
    %4 = arith.cmpi eq, %c8_i32, %c0_i32_1 : i32
    %c1_i32 = arith.constant 1 : i32
    %5 = arith.select %4, %c1_i32, %c8_i32 : i32
    %6 = vector.broadcast %5 : i32 to vector<64x1xi32>
    %7 = arith.remsi %3, %6 : vector<64x1xi32>
    %c0_i32_2 = arith.constant 0 : i32
    %8 = vector.broadcast %c0_i32_2 : i32 to vector<64x1xi32>
    %9 = arith.cmpi ne, %7, %8 : vector<64x1xi32>
    %c0_i32_3 = arith.constant 0 : i32
    %10 = vector.broadcast %c0_i32_3 : i32 to vector<64x1xi32>
    %11 = arith.cmpi slt, %7, %10 : vector<64x1xi32>
    %c0_i32_4 = arith.constant 0 : i32
    %12 = arith.cmpi slt, %5, %c0_i32_4 : i32
    %13 = vector.broadcast %12 : i1 to vector<64x1xi1>
    %14 = vector.broadcast %13 : vector<64x1xi1> to vector<64x1xi1>
    %15 = arith.xori %11, %14 : vector<64x1xi1>
    %16 = arith.andi %15, %9 : vector<64x1xi1>
    %17 = vector.broadcast %5 : i32 to vector<64x1xi32>
    %18 = arith.addi %7, %17 : vector<64x1xi32>
    %19 = arith.select %16, %18, %7 : vector<64x1xi1>, vector<64x1xi32>
    %c0 = arith.constant 0 : index
    %c0_5 = arith.constant 0 : index
    %c0_6 = arith.constant 0 : index
    %c0_7 = arith.constant 0 : index
    %20 = vector.load %arg3[%c0, %c0_5, %c0_6, %c0_7] : memref<1x1x82x16xbf16, #tpu.memory_space<vmem>>, vector<1x1x64x16xbf16>
    %21 = vector.shape_cast %20 : vector<1x1x64x16xbf16> to vector<64x16xbf16>
    %c1_i32_8 = arith.constant 1 : i32
    %22 = vector.broadcast %c1_i32_8 : i32 to vector<64x1xi32>
    %23 = arith.cmpi sge, %19, %22 : vector<64x1xi32>
    %c9_i32 = arith.constant 9 : i32
    %24 = vector.broadcast %c9_i32 : i32 to vector<64x1xi32>
    %25 = arith.cmpi slt, %19, %24 : vector<64x1xi32>
    %26 = arith.andi %23, %25 : vector<64x1xi1>
    %c0_i32_9 = arith.constant 0 : i32
    %27 = arith.sitofp %c0_i32_9 : i32 to bf16
    %28 = vector.shape_cast %26 : vector<64x1xi1> to vector<64x1xi1>
    %29 = vector.broadcast %28 : vector<64x1xi1> to vector<64x16xi1>
    %30 = vector.broadcast %27 : bf16 to vector<64x16xbf16>
    %31 = arith.select %29, %21, %30 : vector<64x16xi1>, vector<64x16xbf16>
    %c0_10 = arith.constant 0 : index
    %c0_11 = arith.constant 0 : index
    %c0_12 = arith.constant 0 : index
    %32 = vector.load %arg4[%c0_10, %c0_11, %c0_12] : memref<1x144x32xbf16, #tpu.memory_space<vmem>>, vector<1x16x32xbf16>
    %33 = vector.shape_cast %32 : vector<1x16x32xbf16> to vector<16x32xbf16>
    %c0_13 = arith.constant 0 : index
    %c0_14 = arith.constant 0 : index
    %34 = vector.load %arg8[%c0_13, %c0_14] : memref<64x32xf32, #tpu.memory_space<vmem>>, vector<64x32xf32>
    %cst = arith.constant dense<0.000000e+00> : vector<64x32xf32>
    %35 = tpu.matmul %31, %33, %cst {dimension_numbers = #tpu.dot_dimension_numbers<[1], [0], [0], [1], [0, 0, 1, 1], [], []>} : vector<64x16xbf16>, vector<16x32xbf16>, vector<64x32xf32> -> vector<64x32xf32>
    %36 = arith.addf %34, %35 : vector<64x32xf32>
    %c0_15 = arith.constant 0 : index
    %c0_16 = arith.constant 0 : index
    %37 = vector.load %arg8[%c0_15, %c0_16] : memref<64x32xf32, #tpu.memory_space<vmem>>, vector<64x32xf32>
    tpu.vector_store %arg8[%c0_15, %c0_16], %36 {strides = array<i32>} : memref<64x32xf32, #tpu.memory_space<vmem>>, vector<64x32xf32>,
    %c0_17 = arith.constant 0 : index
    %c0_18 = arith.constant 0 : index
    %c1 = arith.constant 1 : index
    %c0_19 = arith.constant 0 : index
    %38 = vector.load %arg3[%c0_17, %c0_18, %c1, %c0_19] : memref<1x1x82x16xbf16, #tpu.memory_space<vmem>>, vector<1x1x64x16xbf16>
    %39 = vector.shape_cast %38 : vector<1x1x64x16xbf16> to vector<64x16xbf16>
    %c0_20 = arith.constant 0 : index
    %c16 = arith.constant 16 : index
    %c0_21 = arith.constant 0 : index
    %40 = vector.load %arg4[%c0_20, %c16, %c0_21] : memref<1x144x32xbf16, #tpu.memory_space<vmem>>, vector<1x16x32xbf16>
    %41 = vector.shape_cast %40 : vector<1x16x32xbf16> to vector<16x32xbf16>
    %c0_22 = arith.constant 0 : index
    %c0_23 = arith.constant 0 : index
    %42 = vector.load %arg8[%c0_22, %c0_23] : memref<64x32xf32, #tpu.memory_space<vmem>>, vector<64x32xf32>
    %cst_24 = arith.constant dense<0.000000e+00> : vector<64x32xf32>
    %43 = tpu.matmul %39, %41, %cst_24 {dimension_numbers = #tpu.dot_dimension_numbers<[1], [0], [0], [1], [0, 0, 1, 1], [], []>} : vector<64x16xbf16>, vector<16x32xbf16>, vector<64x32xf32> -> vector<64x32xf32>
    %44 = arith.addf %42, %43 : vector<64x32xf32>
    %c0_25 = arith.constant 0 : index
    %c0_26 = arith.constant 0 : index
    %45 = vector.load %arg8[%c0_25, %c0_26] : memref<64x32xf32, #tpu.memory_space<vmem>>, vector<64x32xf32>
    tpu.vector_store %arg8[%c0_25, %c0_26], %44 {strides = array<i32>} : memref<64x32xf32, #tpu.memory_space<vmem>>, vector<64x32xf32>,
    %c0_27 = arith.constant 0 : index
    %c0_28 = arith.constant 0 : index
    %c2 = arith.constant 2 : index
    %c0_29 = arith.constant 0 : index
    %46 = vector.load %arg3[%c0_27, %c0_28, %c2, %c0_29] : memref<1x1x82x16xbf16, #tpu.memory_space<vmem>>, vector<1x1x64x16xbf16>
    %47 = vector.shape_cast %46 : vector<1x1x64x16xbf16> to vector<64x16xbf16>
    %c-1_i32 = arith.constant -1 : i32
    %48 = vector.broadcast %c-1_i32 : i32 to vector<64x1xi32>
    %49 = arith.cmpi sge, %19, %48 : vector<64x1xi32>
    %c7_i32 = arith.constant 7 : i32
    %50 = vector.broadcast %c7_i32 : i32 to vector<64x1xi32>
    %51 = arith.cmpi slt, %19, %50 : vector<64x1xi32>
    %52 = arith.andi %49, %51 : vector<64x1xi1>
    %c0_i32_30 = arith.constant 0 : i32
    %53 = arith.sitofp %c0_i32_30 : i32 to bf16
    %54 = vector.shape_cast %52 : vector<64x1xi1> to vector<64x1xi1>
    %55 = vector.broadcast %54 : vector<64x1xi1> to vector<64x16xi1>
    %56 = vector.broadcast %53 : bf16 to vector<64x16xbf16>
    %57 = arith.select %55, %47, %56 : vector<64x16xi1>, vector<64x16xbf16>
    %c0_31 = arith.constant 0 : index
    %c32 = arith.constant 32 : index
    %c0_32 = arith.constant 0 : index
    %58 = vector.load %arg4[%c0_31, %c32, %c0_32] : memref<1x144x32xbf16, #tpu.memory_space<vmem>>, vector<1x16x32xbf16>
    %59 = vector.shape_cast %58 : vector<1x16x32xbf16> to vector<16x32xbf16>
    %c0_33 = arith.constant 0 : index
    %c0_34 = arith.constant 0 : index
    %60 = vector.load %arg8[%c0_33, %c0_34] : memref<64x32xf32, #tpu.memory_space<vmem>>, vector<64x32xf32>
    %cst_35 = arith.constant dense<0.000000e+00> : vector<64x32xf32>
    %61 = tpu.matmul %57, %59, %cst_35 {dimension_numbers = #tpu.dot_dimension_numbers<[1], [0], [0], [1], [0, 0, 1, 1], [], []>} : vector<64x16xbf16>, vector<16x32xbf16>, vector<64x32xf32> -> vector<64x32xf32>
    %62 = arith.addf %60, %61 : vector<64x32xf32>
    %c0_36 = arith.constant 0 : index
    %c0_37 = arith.constant 0 : index
    %63 = vector.load %arg8[%c0_36, %c0_37] : memref<64x32xf32, #tpu.memory_space<vmem>>, vector<64x32xf32>
    tpu.vector_store %arg8[%c0_36, %c0_37], %62 {strides = array<i32>} : memref<64x32xf32, #tpu.memory_space<vmem>>, vector<64x32xf32>,
    %c0_38 = arith.constant 0 : index
    %c0_39 = arith.constant 0 : index
    %c8 = arith.constant 8 : index
    %c0_40 = arith.constant 0 : index
    %64 = vector.load %arg3[%c0_38, %c0_39, %c8, %c0_40] : memref<1x1x82x16xbf16, #tpu.memory_space<vmem>>, vector<1x1x64x16xbf16>
    %65 = vector.shape_cast %64 : vector<1x1x64x16xbf16> to vector<64x16xbf16>
    %c1_i32_41 = arith.constant 1 : i32
    %66 = vector.broadcast %c1_i32_41 : i32 to vector<64x1xi32>
    %67 = arith.cmpi sge, %19, %66 : vector<64x1xi32>
    %c9_i32_42 = arith.constant 9 : i32
    %68 = vector.broadcast %c9_i32_42 : i32 to vector<64x1xi32>
    %69 = arith.cmpi slt, %19, %68 : vector<64x1xi32>
    %70 = arith.andi %67, %69 : vector<64x1xi1>
    %c0_i32_43 = arith.constant 0 : i32
    %71 = arith.sitofp %c0_i32_43 : i32 to bf16
    %72 = vector.shape_cast %70 : vector<64x1xi1> to vector<64x1xi1>
    %73 = vector.broadcast %72 : vector<64x1xi1> to vector<64x16xi1>
    %74 = vector.broadcast %71 : bf16 to vector<64x16xbf16>
    %75 = arith.select %73, %65, %74 : vector<64x16xi1>, vector<64x16xbf16>
    %c0_44 = arith.constant 0 : index
    %c48 = arith.constant 48 : index
    %c0_45 = arith.constant 0 : index
    %76 = vector.load %arg4[%c0_44, %c48, %c0_45] : memref<1x144x32xbf16, #tpu.memory_space<vmem>>, vector<1x16x32xbf16>
    %77 = vector.shape_cast %76 : vector<1x16x32xbf16> to vector<16x32xbf16>
    %c0_46 = arith.constant 0 : index
    %c0_47 = arith.constant 0 : index
    %78 = vector.load %arg8[%c0_46, %c0_47] : memref<64x32xf32, #tpu.memory_space<vmem>>, vector<64x32xf32>
    %cst_48 = arith.constant dense<0.000000e+00> : vector<64x32xf32>
    %79 = tpu.matmul %75, %77, %cst_48 {dimension_numbers = #tpu.dot_dimension_numbers<[1], [0], [0], [1], [0, 0, 1, 1], [], []>} : vector<64x16xbf16>, vector<16x32xbf16>, vector<64x32xf32> -> vector<64x32xf32>
    %80 = arith.addf %78, %79 : vector<64x32xf32>
    %c0_49 = arith.constant 0 : index
    %c0_50 = arith.constant 0 : index
    %81 = vector.load %arg8[%c0_49, %c0_50] : memref<64x32xf32, #tpu.memory_space<vmem>>, vector<64x32xf32>
    tpu.vector_store %arg8[%c0_49, %c0_50], %80 {strides = array<i32>} : memref<64x32xf32, #tpu.memory_space<vmem>>, vector<64x32xf32>,
    %c0_51 = arith.constant 0 : index
    %c0_52 = arith.constant 0 : index
    %c9 = arith.constant 9 : index
    %c0_53 = arith.constant 0 : index
    %82 = vector.load %arg3[%c0_51, %c0_52, %c9, %c0_53] : memref<1x1x82x16xbf16, #tpu.memory_space<vmem>>, vector<1x1x64x16xbf16>
    %83 = vector.shape_cast %82 : vector<1x1x64x16xbf16> to vector<64x16xbf16>
    %c0_54 = arith.constant 0 : index
    %c64 = arith.constant 64 : index
    %c0_55 = arith.constant 0 : index
    %84 = vector.load %arg4[%c0_54, %c64, %c0_55] : memref<1x144x32xbf16, #tpu.memory_space<vmem>>, vector<1x16x32xbf16>
    %85 = vector.shape_cast %84 : vector<1x16x32xbf16> to vector<16x32xbf16>
    %c0_56 = arith.constant 0 : index
    %c0_57 = arith.constant 0 : index
    %86 = vector.load %arg8[%c0_56, %c0_57] : memref<64x32xf32, #tpu.memory_space<vmem>>, vector<64x32xf32>
    %cst_58 = arith.constant dense<0.000000e+00> : vector<64x32xf32>
    %87 = tpu.matmul %83, %85, %cst_58 {dimension_numbers = #tpu.dot_dimension_numbers<[1], [0], [0], [1], [0, 0, 1, 1], [], []>} : vector<64x16xbf16>, vector<16x32xbf16>, vector<64x32xf32> -> vector<64x32xf32>
    %88 = arith.addf %86, %87 : vector<64x32xf32>
    %c0_59 = arith.constant 0 : index
    %c0_60 = arith.constant 0 : index
    %89 = vector.load %arg8[%c0_59, %c0_60] : memref<64x32xf32, #tpu.memory_space<vmem>>, vector<64x32xf32>
    tpu.vector_store %arg8[%c0_59, %c0_60], %88 {strides = array<i32>} : memref<64x32xf32, #tpu.memory_space<vmem>>, vector<64x32xf32>,
    %c0_61 = arith.constant 0 : index
    %c0_62 = arith.constant 0 : index
    %c10 = arith.constant 10 : index
    %c0_63 = arith.constant 0 : index
    %90 = vector.load %arg3[%c0_61, %c0_62, %c10, %c0_63] : memref<1x1x82x16xbf16, #tpu.memory_space<vmem>>, vector<1x1x64x16xbf16>
    %91 = vector.shape_cast %90 : vector<1x1x64x16xbf16> to vector<64x16xbf16>
    %c-1_i32_64 = arith.constant -1 : i32
    %92 = vector.broadcast %c-1_i32_64 : i32 to vector<64x1xi32>
    %93 = arith.cmpi sge, %19, %92 : vector<64x1xi32>
    %c7_i32_65 = arith.constant 7 : i32
    %94 = vector.broadcast %c7_i32_65 : i32 to vector<64x1xi32>
    %95 = arith.cmpi slt, %19, %94 : vector<64x1xi32>
    %96 = arith.andi %93, %95 : vector<64x1xi1>
    %c0_i32_66 = arith.constant 0 : i32
    %97 = arith.sitofp %c0_i32_66 : i32 to bf16
    %98 = vector.shape_cast %96 : vector<64x1xi1> to vector<64x1xi1>
    %99 = vector.broadcast %98 : vector<64x1xi1> to vector<64x16xi1>
    %100 = vector.broadcast %97 : bf16 to vector<64x16xbf16>
    %101 = arith.select %99, %91, %100 : vector<64x16xi1>, vector<64x16xbf16>
    %c0_67 = arith.constant 0 : index
    %c80 = arith.constant 80 : index
    %c0_68 = arith.constant 0 : index
    %102 = vector.load %arg4[%c0_67, %c80, %c0_68] : memref<1x144x32xbf16, #tpu.memory_space<vmem>>, vector<1x16x32xbf16>
    %103 = vector.shape_cast %102 : vector<1x16x32xbf16> to vector<16x32xbf16>
    %c0_69 = arith.constant 0 : index
    %c0_70 = arith.constant 0 : index
    %104 = vector.load %arg8[%c0_69, %c0_70] : memref<64x32xf32, #tpu.memory_space<vmem>>, vector<64x32xf32>
    %cst_71 = arith.constant dense<0.000000e+00> : vector<64x32xf32>
    %105 = tpu.matmul %101, %103, %cst_71 {dimension_numbers = #tpu.dot_dimension_numbers<[1], [0], [0], [1], [0, 0, 1, 1], [], []>} : vector<64x16xbf16>, vector<16x32xbf16>, vector<64x32xf32> -> vector<64x32xf32>
    %106 = arith.addf %104, %105 : vector<64x32xf32>
    %c0_72 = arith.constant 0 : index
    %c0_73 = arith.constant 0 : index
    %107 = vector.load %arg8[%c0_72, %c0_73] : memref<64x32xf32, #tpu.memory_space<vmem>>, vector<64x32xf32>
    tpu.vector_store %arg8[%c0_72, %c0_73], %106 {strides = array<i32>} : memref<64x32xf32, #tpu.memory_space<vmem>>, vector<64x32xf32>,
    %c0_74 = arith.constant 0 : index
    %c0_75 = arith.constant 0 : index
    %c16_76 = arith.constant 16 : index
    %c0_77 = arith.constant 0 : index
    %108 = vector.load %arg3[%c0_74, %c0_75, %c16_76, %c0_77] : memref<1x1x82x16xbf16, #tpu.memory_space<vmem>>, vector<1x1x64x16xbf16>
    %109 = vector.shape_cast %108 : vector<1x1x64x16xbf16> to vector<64x16xbf16>
    %c1_i32_78 = arith.constant 1 : i32
    %110 = vector.broadcast %c1_i32_78 : i32 to vector<64x1xi32>
    %111 = arith.cmpi sge, %19, %110 : vector<64x1xi32>
    %c9_i32_79 = arith.constant 9 : i32
    %112 = vector.broadcast %c9_i32_79 : i32 to vector<64x1xi32>
    %113 = arith.cmpi slt, %19, %112 : vector<64x1xi32>
    %114 = arith.andi %111, %113 : vector<64x1xi1>
    %c0_i32_80 = arith.constant 0 : i32
    %115 = arith.sitofp %c0_i32_80 : i32 to bf16
    %116 = vector.shape_cast %114 : vector<64x1xi1> to vector<64x1xi1>
    %117 = vector.broadcast %116 : vector<64x1xi1> to vector<64x16xi1>
    %118 = vector.broadcast %115 : bf16 to vector<64x16xbf16>
    %119 = arith.select %117, %109, %118 : vector<64x16xi1>, vector<64x16xbf16>
    %c0_81 = arith.constant 0 : index
    %c96 = arith.constant 96 : index
    %c0_82 = arith.constant 0 : index
    %120 = vector.load %arg4[%c0_81, %c96, %c0_82] : memref<1x144x32xbf16, #tpu.memory_space<vmem>>, vector<1x16x32xbf16>
    %121 = vector.shape_cast %120 : vector<1x16x32xbf16> to vector<16x32xbf16>
    %c0_83 = arith.constant 0 : index
    %c0_84 = arith.constant 0 : index
    %122 = vector.load %arg8[%c0_83, %c0_84] : memref<64x32xf32, #tpu.memory_space<vmem>>, vector<64x32xf32>
    %cst_85 = arith.constant dense<0.000000e+00> : vector<64x32xf32>
    %123 = tpu.matmul %119, %121, %cst_85 {dimension_numbers = #tpu.dot_dimension_numbers<[1], [0], [0], [1], [0, 0, 1, 1], [], []>} : vector<64x16xbf16>, vector<16x32xbf16>, vector<64x32xf32> -> vector<64x32xf32>
    %124 = arith.addf %122, %123 : vector<64x32xf32>
    %c0_86 = arith.constant 0 : index
    %c0_87 = arith.constant 0 : index
    %125 = vector.load %arg8[%c0_86, %c0_87] : memref<64x32xf32, #tpu.memory_space<vmem>>, vector<64x32xf32>
    tpu.vector_store %arg8[%c0_86, %c0_87], %124 {strides = array<i32>} : memref<64x32xf32, #tpu.memory_space<vmem>>, vector<64x32xf32>,
    %c0_88 = arith.constant 0 : index
    %c0_89 = arith.constant 0 : index
    %c17 = arith.constant 17 : index
    %c0_90 = arith.constant 0 : index
    %126 = vector.load %arg3[%c0_88, %c0_89, %c17, %c0_90] : memref<1x1x82x16xbf16, #tpu.memory_space<vmem>>, vector<1x1x64x16xbf16>
    %127 = vector.shape_cast %126 : vector<1x1x64x16xbf16> to vector<64x16xbf16>
    %c0_91 = arith.constant 0 : index
    %c112 = arith.constant 112 : index
    %c0_92 = arith.constant 0 : index
    %128 = vector.load %arg4[%c0_91, %c112, %c0_92] : memref<1x144x32xbf16, #tpu.memory_space<vmem>>, vector<1x16x32xbf16>
    %129 = vector.shape_cast %128 : vector<1x16x32xbf16> to vector<16x32xbf16>
    %c0_93 = arith.constant 0 : index
    %c0_94 = arith.constant 0 : index
    %130 = vector.load %arg8[%c0_93, %c0_94] : memref<64x32xf32, #tpu.memory_space<vmem>>, vector<64x32xf32>
    %cst_95 = arith.constant dense<0.000000e+00> : vector<64x32xf32>
    %131 = tpu.matmul %127, %129, %cst_95 {dimension_numbers = #tpu.dot_dimension_numbers<[1], [0], [0], [1], [0, 0, 1, 1], [], []>} : vector<64x16xbf16>, vector<16x32xbf16>, vector<64x32xf32> -> vector<64x32xf32>
    %132 = arith.addf %130, %131 : vector<64x32xf32>
    %c0_96 = arith.constant 0 : index
    %c0_97 = arith.constant 0 : index
    %133 = vector.load %arg8[%c0_96, %c0_97] : memref<64x32xf32, #tpu.memory_space<vmem>>, vector<64x32xf32>
    tpu.vector_store %arg8[%c0_96, %c0_97], %132 {strides = array<i32>} : memref<64x32xf32, #tpu.memory_space<vmem>>, vector<64x32xf32>,
    %c0_98 = arith.constant 0 : index
    %c0_99 = arith.constant 0 : index
    %c18 = arith.constant 18 : index
    %c0_100 = arith.constant 0 : index
    %134 = vector.load %arg3[%c0_98, %c0_99, %c18, %c0_100] : memref<1x1x82x16xbf16, #tpu.memory_space<vmem>>, vector<1x1x64x16xbf16>
    %135 = vector.shape_cast %134 : vector<1x1x64x16xbf16> to vector<64x16xbf16>
    %c-1_i32_101 = arith.constant -1 : i32
    %136 = vector.broadcast %c-1_i32_101 : i32 to vector<64x1xi32>
    %137 = arith.cmpi sge, %19, %136 : vector<64x1xi32>
    %c7_i32_102 = arith.constant 7 : i32
    %138 = vector.broadcast %c7_i32_102 : i32 to vector<64x1xi32>
    %139 = arith.cmpi slt, %19, %138 : vector<64x1xi32>
    %140 = arith.andi %137, %139 : vector<64x1xi1>
    %c0_i32_103 = arith.constant 0 : i32
    %141 = arith.sitofp %c0_i32_103 : i32 to bf16
    %142 = vector.shape_cast %140 : vector<64x1xi1> to vector<64x1xi1>
    %143 = vector.broadcast %142 : vector<64x1xi1> to vector<64x16xi1>
    %144 = vector.broadcast %141 : bf16 to vector<64x16xbf16>
    %145 = arith.select %143, %135, %144 : vector<64x16xi1>, vector<64x16xbf16>
    %c0_104 = arith.constant 0 : index
    %c128 = arith.constant 128 : index
    %c0_105 = arith.constant 0 : index
    %146 = vector.load %arg4[%c0_104, %c128, %c0_105] : memref<1x144x32xbf16, #tpu.memory_space<vmem>>, vector<1x16x32xbf16>
    %147 = vector.shape_cast %146 : vector<1x16x32xbf16> to vector<16x32xbf16>
    %c0_106 = arith.constant 0 : index
    %c0_107 = arith.constant 0 : index
    %148 = vector.load %arg8[%c0_106, %c0_107] : memref<64x32xf32, #tpu.memory_space<vmem>>, vector<64x32xf32>
    %cst_108 = arith.constant dense<0.000000e+00> : vector<64x32xf32>
    %149 = tpu.matmul %145, %147, %cst_108 {dimension_numbers = #tpu.dot_dimension_numbers<[1], [0], [0], [1], [0, 0, 1, 1], [], []>} : vector<64x16xbf16>, vector<16x32xbf16>, vector<64x32xf32> -> vector<64x32xf32>
    %150 = arith.addf %148, %149 : vector<64x32xf32>
    %c0_109 = arith.constant 0 : index
    %c0_110 = arith.constant 0 : index
    %151 = vector.load %arg8[%c0_109, %c0_110] : memref<64x32xf32, #tpu.memory_space<vmem>>, vector<64x32xf32>
    tpu.vector_store %arg8[%c0_109, %c0_110], %150 {strides = array<i32>} : memref<64x32xf32, #tpu.memory_space<vmem>>, vector<64x32xf32>,
    %c2_i32 = arith.constant 2 : i32
    %152 = arith.cmpi eq, %arg2, %c2_i32 : i32
    %153 = arith.extui %152 : i1 to i32
    %c0_i32_111 = arith.constant 0 : i32
    %154 = arith.cmpi ne, %153, %c0_i32_111 : i32
    scf.if %154 {
      %c0_112 = arith.constant 0 : index
      %c0_113 = arith.constant 0 : index
      %155 = vector.load %arg8[%c0_112, %c0_113] : memref<64x32xf32, #tpu.memory_space<vmem>>, vector<64x32xf32>
      %c0_114 = arith.constant 0 : index
      %c0_115 = arith.constant 0 : index
      %156 = vector.load %arg5[%c0_114, %c0_115] : memref<1x32xf32, #tpu.memory_space<vmem>>, vector<1x32xf32>
      %157 = vector.broadcast %156 : vector<1x32xf32> to vector<64x32xf32>
      %158 = arith.mulf %155, %157 : vector<64x32xf32>
      %c0_116 = arith.constant 0 : index
      %c0_117 = arith.constant 0 : index
      %159 = vector.load %arg6[%c0_116, %c0_117] : memref<1x32xf32, #tpu.memory_space<vmem>>, vector<1x32xf32>
      %160 = vector.broadcast %159 : vector<1x32xf32> to vector<64x32xf32>
      %161 = arith.addf %158, %160 : vector<64x32xf32>
      %cst_118 = arith.constant 0.000000e+00 : f32
      %162 = vector.broadcast %cst_118 : f32 to vector<64x32xf32>
      %163 = arith.maximumf %161, %162 : vector<64x32xf32>
      %164 = arith.truncf %163 : vector<64x32xf32> to vector<64x32xbf16>
      %c0_119 = arith.constant 0 : index
      %c0_120 = arith.constant 0 : index
      %c0_121 = arith.constant 0 : index
      %c0_122 = arith.constant 0 : index
      %165 = vector.load %arg7[%c0_119, %c0_120, %c0_121, %c0_122] : memref<1x1x64x32xbf16, #tpu.memory_space<vmem>>, vector<1x1x64x32xbf16>
      %166 = vector.shape_cast %165 : vector<1x1x64x32xbf16> to vector<64x32xbf16>
      %167 = vector.shape_cast %164 : vector<64x32xbf16> to vector<1x1x64x32xbf16>
      tpu.vector_store %arg7[%c0_119, %c0_120, %c0_121, %c0_122], %167 {strides = array<i32>} : memref<1x1x64x32xbf16, #tpu.memory_space<vmem>>, vector<1x1x64x32xbf16>,
    } else {
    }
    return
  }
  func.func @transform_0(%arg0: i32, %arg1: i32, %arg2: i32) -> (i32, i32, i32, i32) {
    %0 = arith.addi %arg1, %arg2 : i32
    %c0_i32 = arith.constant 0 : i32
    %c0_i32_0 = arith.constant 0 : i32
    %c0_i32_1 = arith.constant 0 : i32
    return %arg0, %0, %c0_i32, %c0_i32_0 : i32, i32, i32, i32
  }
  func.func @transform_1(%arg0: i32, %arg1: i32, %arg2: i32) -> (i32, i32, i32) {
    %c0_i32 = arith.constant 0 : i32
    %c0_i32_0 = arith.constant 0 : i32
    %c0_i32_1 = arith.constant 0 : i32
    return %arg2, %c0_i32, %c0_i32_0 : i32, i32, i32
  }
  func.func @transform_2(%arg0: i32, %arg1: i32, %arg2: i32) -> (i32, i32) {
    %c0_i32 = arith.constant 0 : i32
    %c0_i32_0 = arith.constant 0 : i32
    %c0_i32_1 = arith.constant 0 : i32
    return %c0_i32, %c0_i32_0 : i32, i32
  }
  func.func @transform_3(%arg0: i32, %arg1: i32, %arg2: i32) -> (i32, i32) {
    %c0_i32 = arith.constant 0 : i32
    %c0_i32_0 = arith.constant 0 : i32
    %c0_i32_1 = arith.constant 0 : i32
    return %c0_i32, %c0_i32_0 : i32, i32
  }
  func.func @transform_4(%arg0: i32, %arg1: i32, %arg2: i32) -> (i32, i32, i32, i32) {
    %c0_i32 = arith.constant 0 : i32
    %c0_i32_0 = arith.constant 0 : i32
    %c0_i32_1 = arith.constant 0 : i32
    return %arg0, %arg1, %c0_i32, %c0_i32_0 : i32, i32, i32, i32
  }
}

module attributes {stable_mosaic.version = 11 : i64} {
  func.func @_conv3d_kernel(%arg0: i32, %arg1: i32, %arg2: i32, %arg3: memref<1x1x82x32xbf16, #tpu.memory_space<vmem>>, %arg4: memref<1x288x64xbf16, #tpu.memory_space<vmem>>, %arg5: memref<1x64xf32, #tpu.memory_space<vmem>>, %arg6: memref<1x64xf32, #tpu.memory_space<vmem>>, %arg7: memref<1x1x64x64xbf16, #tpu.memory_space<vmem>>, %arg8: memref<64x64xf32, #tpu.memory_space<vmem>>) attributes {dimension_semantics = [#tpu.dimension_semantics<parallel>, #tpu.dimension_semantics<parallel>, #tpu.dimension_semantics<arbitrary>], iteration_bounds = array<i64: 2, 8, 3>, scalar_prefetch = 0 : i64, scratch_operands = 1 : i64, tpu.core_type = #tpu.core_type<tc>, window_params = [{transform_indices = @transform_0, window_bounds = array<i64: 1, 1, 82, 32>}, {transform_indices = @transform_1, window_bounds = array<i64: 1, 288, 64>}, {pipeline_mode = #tpu.pipeline_mode<synchronous>, transform_indices = @transform_2, window_bounds = array<i64: 1, 64>}, {pipeline_mode = #tpu.pipeline_mode<synchronous>, transform_indices = @transform_3, window_bounds = array<i64: 1, 64>}, {transform_indices = @transform_4, window_bounds = array<i64: 1, 1, 64, 64>}]} {
    %c0_i32 = arith.constant 0 : i32
    %0 = arith.cmpi eq, %arg2, %c0_i32 : i32
    %1 = arith.extui %0 : i1 to i32
    %c0_i32_0 = arith.constant 0 : i32
    %2 = arith.cmpi ne, %1, %c0_i32_0 : i32
    scf.if %2 {
      %cst_111 = arith.constant 0.000000e+00 : f32
      %155 = vector.broadcast %cst_111 : f32 to vector<64x64xf32>
      %c0_112 = arith.constant 0 : index
      %c0_113 = arith.constant 0 : index
      %156 = vector.load %arg8[%c0_112, %c0_113] : memref<64x64xf32, #tpu.memory_space<vmem>>, vector<64x64xf32>
      tpu.vector_store %arg8[%c0_112, %c0_113], %155 {strides = array<i32>} : memref<64x64xf32, #tpu.memory_space<vmem>>, vector<64x64xf32>,
    } else {
    }
    %3 = tpu.iota {dimensions = array<i32: 0>} : vector<64x1xi32>
    %c8_i32 = arith.constant 8 : i32
    %c0_i32_1 = arith.constant 0 : i32
    %4 = arith.cmpi eq, %c8_i32, %c0_i32_1 : i32
    %c1_i32 = arith.constant 1 : i32
    %5 = arith.select %4, %c1_i32, %c8_i32 : i32
    %6 = vector.broadcast %5 : i32 to vector<64x1xi32>
    %7 = arith.remsi %3, %6 : vector<64x1xi32>
    %c0_i32_2 = arith.constant 0 : i32
    %8 = vector.broadcast %c0_i32_2 : i32 to vector<64x1xi32>
    %9 = arith.cmpi ne, %7, %8 : vector<64x1xi32>
    %c0_i32_3 = arith.constant 0 : i32
    %10 = vector.broadcast %c0_i32_3 : i32 to vector<64x1xi32>
    %11 = arith.cmpi slt, %7, %10 : vector<64x1xi32>
    %c0_i32_4 = arith.constant 0 : i32
    %12 = arith.cmpi slt, %5, %c0_i32_4 : i32
    %13 = vector.broadcast %12 : i1 to vector<64x1xi1>
    %14 = vector.broadcast %13 : vector<64x1xi1> to vector<64x1xi1>
    %15 = arith.xori %11, %14 : vector<64x1xi1>
    %16 = arith.andi %15, %9 : vector<64x1xi1>
    %17 = vector.broadcast %5 : i32 to vector<64x1xi32>
    %18 = arith.addi %7, %17 : vector<64x1xi32>
    %19 = arith.select %16, %18, %7 : vector<64x1xi1>, vector<64x1xi32>
    %c0 = arith.constant 0 : index
    %c0_5 = arith.constant 0 : index
    %c0_6 = arith.constant 0 : index
    %c0_7 = arith.constant 0 : index
    %20 = vector.load %arg3[%c0, %c0_5, %c0_6, %c0_7] : memref<1x1x82x32xbf16, #tpu.memory_space<vmem>>, vector<1x1x64x32xbf16>
    %21 = vector.shape_cast %20 : vector<1x1x64x32xbf16> to vector<64x32xbf16>
    %c1_i32_8 = arith.constant 1 : i32
    %22 = vector.broadcast %c1_i32_8 : i32 to vector<64x1xi32>
    %23 = arith.cmpi sge, %19, %22 : vector<64x1xi32>
    %c9_i32 = arith.constant 9 : i32
    %24 = vector.broadcast %c9_i32 : i32 to vector<64x1xi32>
    %25 = arith.cmpi slt, %19, %24 : vector<64x1xi32>
    %26 = arith.andi %23, %25 : vector<64x1xi1>
    %c0_i32_9 = arith.constant 0 : i32
    %27 = arith.sitofp %c0_i32_9 : i32 to bf16
    %28 = vector.shape_cast %26 : vector<64x1xi1> to vector<64x1xi1>
    %29 = vector.broadcast %28 : vector<64x1xi1> to vector<64x32xi1>
    %30 = vector.broadcast %27 : bf16 to vector<64x32xbf16>
    %31 = arith.select %29, %21, %30 : vector<64x32xi1>, vector<64x32xbf16>
    %c0_10 = arith.constant 0 : index
    %c0_11 = arith.constant 0 : index
    %c0_12 = arith.constant 0 : index
    %32 = vector.load %arg4[%c0_10, %c0_11, %c0_12] : memref<1x288x64xbf16, #tpu.memory_space<vmem>>, vector<1x32x64xbf16>
    %33 = vector.shape_cast %32 : vector<1x32x64xbf16> to vector<32x64xbf16>
    %c0_13 = arith.constant 0 : index
    %c0_14 = arith.constant 0 : index
    %34 = vector.load %arg8[%c0_13, %c0_14] : memref<64x64xf32, #tpu.memory_space<vmem>>, vector<64x64xf32>
    %cst = arith.constant dense<0.000000e+00> : vector<64x64xf32>
    %35 = tpu.matmul %31, %33, %cst {dimension_numbers = #tpu.dot_dimension_numbers<[1], [0], [0], [1], [0, 0, 1, 1], [], []>} : vector<64x32xbf16>, vector<32x64xbf16>, vector<64x64xf32> -> vector<64x64xf32>
    %36 = arith.addf %34, %35 : vector<64x64xf32>
    %c0_15 = arith.constant 0 : index
    %c0_16 = arith.constant 0 : index
    %37 = vector.load %arg8[%c0_15, %c0_16] : memref<64x64xf32, #tpu.memory_space<vmem>>, vector<64x64xf32>
    tpu.vector_store %arg8[%c0_15, %c0_16], %36 {strides = array<i32>} : memref<64x64xf32, #tpu.memory_space<vmem>>, vector<64x64xf32>,
    %c0_17 = arith.constant 0 : index
    %c0_18 = arith.constant 0 : index
    %c1 = arith.constant 1 : index
    %c0_19 = arith.constant 0 : index
    %38 = vector.load %arg3[%c0_17, %c0_18, %c1, %c0_19] : memref<1x1x82x32xbf16, #tpu.memory_space<vmem>>, vector<1x1x64x32xbf16>
    %39 = vector.shape_cast %38 : vector<1x1x64x32xbf16> to vector<64x32xbf16>
    %c0_20 = arith.constant 0 : index
    %c32 = arith.constant 32 : index
    %c0_21 = arith.constant 0 : index
    %40 = vector.load %arg4[%c0_20, %c32, %c0_21] : memref<1x288x64xbf16, #tpu.memory_space<vmem>>, vector<1x32x64xbf16>
    %41 = vector.shape_cast %40 : vector<1x32x64xbf16> to vector<32x64xbf16>
    %c0_22 = arith.constant 0 : index
    %c0_23 = arith.constant 0 : index
    %42 = vector.load %arg8[%c0_22, %c0_23] : memref<64x64xf32, #tpu.memory_space<vmem>>, vector<64x64xf32>
    %cst_24 = arith.constant dense<0.000000e+00> : vector<64x64xf32>
    %43 = tpu.matmul %39, %41, %cst_24 {dimension_numbers = #tpu.dot_dimension_numbers<[1], [0], [0], [1], [0, 0, 1, 1], [], []>} : vector<64x32xbf16>, vector<32x64xbf16>, vector<64x64xf32> -> vector<64x64xf32>
    %44 = arith.addf %42, %43 : vector<64x64xf32>
    %c0_25 = arith.constant 0 : index
    %c0_26 = arith.constant 0 : index
    %45 = vector.load %arg8[%c0_25, %c0_26] : memref<64x64xf32, #tpu.memory_space<vmem>>, vector<64x64xf32>
    tpu.vector_store %arg8[%c0_25, %c0_26], %44 {strides = array<i32>} : memref<64x64xf32, #tpu.memory_space<vmem>>, vector<64x64xf32>,
    %c0_27 = arith.constant 0 : index
    %c0_28 = arith.constant 0 : index
    %c2 = arith.constant 2 : index
    %c0_29 = arith.constant 0 : index
    %46 = vector.load %arg3[%c0_27, %c0_28, %c2, %c0_29] : memref<1x1x82x32xbf16, #tpu.memory_space<vmem>>, vector<1x1x64x32xbf16>
    %47 = vector.shape_cast %46 : vector<1x1x64x32xbf16> to vector<64x32xbf16>
    %c-1_i32 = arith.constant -1 : i32
    %48 = vector.broadcast %c-1_i32 : i32 to vector<64x1xi32>
    %49 = arith.cmpi sge, %19, %48 : vector<64x1xi32>
    %c7_i32 = arith.constant 7 : i32
    %50 = vector.broadcast %c7_i32 : i32 to vector<64x1xi32>
    %51 = arith.cmpi slt, %19, %50 : vector<64x1xi32>
    %52 = arith.andi %49, %51 : vector<64x1xi1>
    %c0_i32_30 = arith.constant 0 : i32
    %53 = arith.sitofp %c0_i32_30 : i32 to bf16
    %54 = vector.shape_cast %52 : vector<64x1xi1> to vector<64x1xi1>
    %55 = vector.broadcast %54 : vector<64x1xi1> to vector<64x32xi1>
    %56 = vector.broadcast %53 : bf16 to vector<64x32xbf16>
    %57 = arith.select %55, %47, %56 : vector<64x32xi1>, vector<64x32xbf16>
    %c0_31 = arith.constant 0 : index
    %c64 = arith.constant 64 : index
    %c0_32 = arith.constant 0 : index
    %58 = vector.load %arg4[%c0_31, %c64, %c0_32] : memref<1x288x64xbf16, #tpu.memory_space<vmem>>, vector<1x32x64xbf16>
    %59 = vector.shape_cast %58 : vector<1x32x64xbf16> to vector<32x64xbf16>
    %c0_33 = arith.constant 0 : index
    %c0_34 = arith.constant 0 : index
    %60 = vector.load %arg8[%c0_33, %c0_34] : memref<64x64xf32, #tpu.memory_space<vmem>>, vector<64x64xf32>
    %cst_35 = arith.constant dense<0.000000e+00> : vector<64x64xf32>
    %61 = tpu.matmul %57, %59, %cst_35 {dimension_numbers = #tpu.dot_dimension_numbers<[1], [0], [0], [1], [0, 0, 1, 1], [], []>} : vector<64x32xbf16>, vector<32x64xbf16>, vector<64x64xf32> -> vector<64x64xf32>
    %62 = arith.addf %60, %61 : vector<64x64xf32>
    %c0_36 = arith.constant 0 : index
    %c0_37 = arith.constant 0 : index
    %63 = vector.load %arg8[%c0_36, %c0_37] : memref<64x64xf32, #tpu.memory_space<vmem>>, vector<64x64xf32>
    tpu.vector_store %arg8[%c0_36, %c0_37], %62 {strides = array<i32>} : memref<64x64xf32, #tpu.memory_space<vmem>>, vector<64x64xf32>,
    %c0_38 = arith.constant 0 : index
    %c0_39 = arith.constant 0 : index
    %c8 = arith.constant 8 : index
    %c0_40 = arith.constant 0 : index
    %64 = vector.load %arg3[%c0_38, %c0_39, %c8, %c0_40] : memref<1x1x82x32xbf16, #tpu.memory_space<vmem>>, vector<1x1x64x32xbf16>
    %65 = vector.shape_cast %64 : vector<1x1x64x32xbf16> to vector<64x32xbf16>
    %c1_i32_41 = arith.constant 1 : i32
    %66 = vector.broadcast %c1_i32_41 : i32 to vector<64x1xi32>
    %67 = arith.cmpi sge, %19, %66 : vector<64x1xi32>
    %c9_i32_42 = arith.constant 9 : i32
    %68 = vector.broadcast %c9_i32_42 : i32 to vector<64x1xi32>
    %69 = arith.cmpi slt, %19, %68 : vector<64x1xi32>
    %70 = arith.andi %67, %69 : vector<64x1xi1>
    %c0_i32_43 = arith.constant 0 : i32
    %71 = arith.sitofp %c0_i32_43 : i32 to bf16
    %72 = vector.shape_cast %70 : vector<64x1xi1> to vector<64x1xi1>
    %73 = vector.broadcast %72 : vector<64x1xi1> to vector<64x32xi1>
    %74 = vector.broadcast %71 : bf16 to vector<64x32xbf16>
    %75 = arith.select %73, %65, %74 : vector<64x32xi1>, vector<64x32xbf16>
    %c0_44 = arith.constant 0 : index
    %c96 = arith.constant 96 : index
    %c0_45 = arith.constant 0 : index
    %76 = vector.load %arg4[%c0_44, %c96, %c0_45] : memref<1x288x64xbf16, #tpu.memory_space<vmem>>, vector<1x32x64xbf16>
    %77 = vector.shape_cast %76 : vector<1x32x64xbf16> to vector<32x64xbf16>
    %c0_46 = arith.constant 0 : index
    %c0_47 = arith.constant 0 : index
    %78 = vector.load %arg8[%c0_46, %c0_47] : memref<64x64xf32, #tpu.memory_space<vmem>>, vector<64x64xf32>
    %cst_48 = arith.constant dense<0.000000e+00> : vector<64x64xf32>
    %79 = tpu.matmul %75, %77, %cst_48 {dimension_numbers = #tpu.dot_dimension_numbers<[1], [0], [0], [1], [0, 0, 1, 1], [], []>} : vector<64x32xbf16>, vector<32x64xbf16>, vector<64x64xf32> -> vector<64x64xf32>
    %80 = arith.addf %78, %79 : vector<64x64xf32>
    %c0_49 = arith.constant 0 : index
    %c0_50 = arith.constant 0 : index
    %81 = vector.load %arg8[%c0_49, %c0_50] : memref<64x64xf32, #tpu.memory_space<vmem>>, vector<64x64xf32>
    tpu.vector_store %arg8[%c0_49, %c0_50], %80 {strides = array<i32>} : memref<64x64xf32, #tpu.memory_space<vmem>>, vector<64x64xf32>,
    %c0_51 = arith.constant 0 : index
    %c0_52 = arith.constant 0 : index
    %c9 = arith.constant 9 : index
    %c0_53 = arith.constant 0 : index
    %82 = vector.load %arg3[%c0_51, %c0_52, %c9, %c0_53] : memref<1x1x82x32xbf16, #tpu.memory_space<vmem>>, vector<1x1x64x32xbf16>
    %83 = vector.shape_cast %82 : vector<1x1x64x32xbf16> to vector<64x32xbf16>
    %c0_54 = arith.constant 0 : index
    %c128 = arith.constant 128 : index
    %c0_55 = arith.constant 0 : index
    %84 = vector.load %arg4[%c0_54, %c128, %c0_55] : memref<1x288x64xbf16, #tpu.memory_space<vmem>>, vector<1x32x64xbf16>
    %85 = vector.shape_cast %84 : vector<1x32x64xbf16> to vector<32x64xbf16>
    %c0_56 = arith.constant 0 : index
    %c0_57 = arith.constant 0 : index
    %86 = vector.load %arg8[%c0_56, %c0_57] : memref<64x64xf32, #tpu.memory_space<vmem>>, vector<64x64xf32>
    %cst_58 = arith.constant dense<0.000000e+00> : vector<64x64xf32>
    %87 = tpu.matmul %83, %85, %cst_58 {dimension_numbers = #tpu.dot_dimension_numbers<[1], [0], [0], [1], [0, 0, 1, 1], [], []>} : vector<64x32xbf16>, vector<32x64xbf16>, vector<64x64xf32> -> vector<64x64xf32>
    %88 = arith.addf %86, %87 : vector<64x64xf32>
    %c0_59 = arith.constant 0 : index
    %c0_60 = arith.constant 0 : index
    %89 = vector.load %arg8[%c0_59, %c0_60] : memref<64x64xf32, #tpu.memory_space<vmem>>, vector<64x64xf32>
    tpu.vector_store %arg8[%c0_59, %c0_60], %88 {strides = array<i32>} : memref<64x64xf32, #tpu.memory_space<vmem>>, vector<64x64xf32>,
    %c0_61 = arith.constant 0 : index
    %c0_62 = arith.constant 0 : index
    %c10 = arith.constant 10 : index
    %c0_63 = arith.constant 0 : index
    %90 = vector.load %arg3[%c0_61, %c0_62, %c10, %c0_63] : memref<1x1x82x32xbf16, #tpu.memory_space<vmem>>, vector<1x1x64x32xbf16>
    %91 = vector.shape_cast %90 : vector<1x1x64x32xbf16> to vector<64x32xbf16>
    %c-1_i32_64 = arith.constant -1 : i32
    %92 = vector.broadcast %c-1_i32_64 : i32 to vector<64x1xi32>
    %93 = arith.cmpi sge, %19, %92 : vector<64x1xi32>
    %c7_i32_65 = arith.constant 7 : i32
    %94 = vector.broadcast %c7_i32_65 : i32 to vector<64x1xi32>
    %95 = arith.cmpi slt, %19, %94 : vector<64x1xi32>
    %96 = arith.andi %93, %95 : vector<64x1xi1>
    %c0_i32_66 = arith.constant 0 : i32
    %97 = arith.sitofp %c0_i32_66 : i32 to bf16
    %98 = vector.shape_cast %96 : vector<64x1xi1> to vector<64x1xi1>
    %99 = vector.broadcast %98 : vector<64x1xi1> to vector<64x32xi1>
    %100 = vector.broadcast %97 : bf16 to vector<64x32xbf16>
    %101 = arith.select %99, %91, %100 : vector<64x32xi1>, vector<64x32xbf16>
    %c0_67 = arith.constant 0 : index
    %c160 = arith.constant 160 : index
    %c0_68 = arith.constant 0 : index
    %102 = vector.load %arg4[%c0_67, %c160, %c0_68] : memref<1x288x64xbf16, #tpu.memory_space<vmem>>, vector<1x32x64xbf16>
    %103 = vector.shape_cast %102 : vector<1x32x64xbf16> to vector<32x64xbf16>
    %c0_69 = arith.constant 0 : index
    %c0_70 = arith.constant 0 : index
    %104 = vector.load %arg8[%c0_69, %c0_70] : memref<64x64xf32, #tpu.memory_space<vmem>>, vector<64x64xf32>
    %cst_71 = arith.constant dense<0.000000e+00> : vector<64x64xf32>
    %105 = tpu.matmul %101, %103, %cst_71 {dimension_numbers = #tpu.dot_dimension_numbers<[1], [0], [0], [1], [0, 0, 1, 1], [], []>} : vector<64x32xbf16>, vector<32x64xbf16>, vector<64x64xf32> -> vector<64x64xf32>
    %106 = arith.addf %104, %105 : vector<64x64xf32>
    %c0_72 = arith.constant 0 : index
    %c0_73 = arith.constant 0 : index
    %107 = vector.load %arg8[%c0_72, %c0_73] : memref<64x64xf32, #tpu.memory_space<vmem>>, vector<64x64xf32>
    tpu.vector_store %arg8[%c0_72, %c0_73], %106 {strides = array<i32>} : memref<64x64xf32, #tpu.memory_space<vmem>>, vector<64x64xf32>,
    %c0_74 = arith.constant 0 : index
    %c0_75 = arith.constant 0 : index
    %c16 = arith.constant 16 : index
    %c0_76 = arith.constant 0 : index
    %108 = vector.load %arg3[%c0_74, %c0_75, %c16, %c0_76] : memref<1x1x82x32xbf16, #tpu.memory_space<vmem>>, vector<1x1x64x32xbf16>
    %109 = vector.shape_cast %108 : vector<1x1x64x32xbf16> to vector<64x32xbf16>
    %c1_i32_77 = arith.constant 1 : i32
    %110 = vector.broadcast %c1_i32_77 : i32 to vector<64x1xi32>
    %111 = arith.cmpi sge, %19, %110 : vector<64x1xi32>
    %c9_i32_78 = arith.constant 9 : i32
    %112 = vector.broadcast %c9_i32_78 : i32 to vector<64x1xi32>
    %113 = arith.cmpi slt, %19, %112 : vector<64x1xi32>
    %114 = arith.andi %111, %113 : vector<64x1xi1>
    %c0_i32_79 = arith.constant 0 : i32
    %115 = arith.sitofp %c0_i32_79 : i32 to bf16
    %116 = vector.shape_cast %114 : vector<64x1xi1> to vector<64x1xi1>
    %117 = vector.broadcast %116 : vector<64x1xi1> to vector<64x32xi1>
    %118 = vector.broadcast %115 : bf16 to vector<64x32xbf16>
    %119 = arith.select %117, %109, %118 : vector<64x32xi1>, vector<64x32xbf16>
    %c0_80 = arith.constant 0 : index
    %c192 = arith.constant 192 : index
    %c0_81 = arith.constant 0 : index
    %120 = vector.load %arg4[%c0_80, %c192, %c0_81] : memref<1x288x64xbf16, #tpu.memory_space<vmem>>, vector<1x32x64xbf16>
    %121 = vector.shape_cast %120 : vector<1x32x64xbf16> to vector<32x64xbf16>
    %c0_82 = arith.constant 0 : index
    %c0_83 = arith.constant 0 : index
    %122 = vector.load %arg8[%c0_82, %c0_83] : memref<64x64xf32, #tpu.memory_space<vmem>>, vector<64x64xf32>
    %cst_84 = arith.constant dense<0.000000e+00> : vector<64x64xf32>
    %123 = tpu.matmul %119, %121, %cst_84 {dimension_numbers = #tpu.dot_dimension_numbers<[1], [0], [0], [1], [0, 0, 1, 1], [], []>} : vector<64x32xbf16>, vector<32x64xbf16>, vector<64x64xf32> -> vector<64x64xf32>
    %124 = arith.addf %122, %123 : vector<64x64xf32>
    %c0_85 = arith.constant 0 : index
    %c0_86 = arith.constant 0 : index
    %125 = vector.load %arg8[%c0_85, %c0_86] : memref<64x64xf32, #tpu.memory_space<vmem>>, vector<64x64xf32>
    tpu.vector_store %arg8[%c0_85, %c0_86], %124 {strides = array<i32>} : memref<64x64xf32, #tpu.memory_space<vmem>>, vector<64x64xf32>,
    %c0_87 = arith.constant 0 : index
    %c0_88 = arith.constant 0 : index
    %c17 = arith.constant 17 : index
    %c0_89 = arith.constant 0 : index
    %126 = vector.load %arg3[%c0_87, %c0_88, %c17, %c0_89] : memref<1x1x82x32xbf16, #tpu.memory_space<vmem>>, vector<1x1x64x32xbf16>
    %127 = vector.shape_cast %126 : vector<1x1x64x32xbf16> to vector<64x32xbf16>
    %c0_90 = arith.constant 0 : index
    %c224 = arith.constant 224 : index
    %c0_91 = arith.constant 0 : index
    %128 = vector.load %arg4[%c0_90, %c224, %c0_91] : memref<1x288x64xbf16, #tpu.memory_space<vmem>>, vector<1x32x64xbf16>
    %129 = vector.shape_cast %128 : vector<1x32x64xbf16> to vector<32x64xbf16>
    %c0_92 = arith.constant 0 : index
    %c0_93 = arith.constant 0 : index
    %130 = vector.load %arg8[%c0_92, %c0_93] : memref<64x64xf32, #tpu.memory_space<vmem>>, vector<64x64xf32>
    %cst_94 = arith.constant dense<0.000000e+00> : vector<64x64xf32>
    %131 = tpu.matmul %127, %129, %cst_94 {dimension_numbers = #tpu.dot_dimension_numbers<[1], [0], [0], [1], [0, 0, 1, 1], [], []>} : vector<64x32xbf16>, vector<32x64xbf16>, vector<64x64xf32> -> vector<64x64xf32>
    %132 = arith.addf %130, %131 : vector<64x64xf32>
    %c0_95 = arith.constant 0 : index
    %c0_96 = arith.constant 0 : index
    %133 = vector.load %arg8[%c0_95, %c0_96] : memref<64x64xf32, #tpu.memory_space<vmem>>, vector<64x64xf32>
    tpu.vector_store %arg8[%c0_95, %c0_96], %132 {strides = array<i32>} : memref<64x64xf32, #tpu.memory_space<vmem>>, vector<64x64xf32>,
    %c0_97 = arith.constant 0 : index
    %c0_98 = arith.constant 0 : index
    %c18 = arith.constant 18 : index
    %c0_99 = arith.constant 0 : index
    %134 = vector.load %arg3[%c0_97, %c0_98, %c18, %c0_99] : memref<1x1x82x32xbf16, #tpu.memory_space<vmem>>, vector<1x1x64x32xbf16>
    %135 = vector.shape_cast %134 : vector<1x1x64x32xbf16> to vector<64x32xbf16>
    %c-1_i32_100 = arith.constant -1 : i32
    %136 = vector.broadcast %c-1_i32_100 : i32 to vector<64x1xi32>
    %137 = arith.cmpi sge, %19, %136 : vector<64x1xi32>
    %c7_i32_101 = arith.constant 7 : i32
    %138 = vector.broadcast %c7_i32_101 : i32 to vector<64x1xi32>
    %139 = arith.cmpi slt, %19, %138 : vector<64x1xi32>
    %140 = arith.andi %137, %139 : vector<64x1xi1>
    %c0_i32_102 = arith.constant 0 : i32
    %141 = arith.sitofp %c0_i32_102 : i32 to bf16
    %142 = vector.shape_cast %140 : vector<64x1xi1> to vector<64x1xi1>
    %143 = vector.broadcast %142 : vector<64x1xi1> to vector<64x32xi1>
    %144 = vector.broadcast %141 : bf16 to vector<64x32xbf16>
    %145 = arith.select %143, %135, %144 : vector<64x32xi1>, vector<64x32xbf16>
    %c0_103 = arith.constant 0 : index
    %c256 = arith.constant 256 : index
    %c0_104 = arith.constant 0 : index
    %146 = vector.load %arg4[%c0_103, %c256, %c0_104] : memref<1x288x64xbf16, #tpu.memory_space<vmem>>, vector<1x32x64xbf16>
    %147 = vector.shape_cast %146 : vector<1x32x64xbf16> to vector<32x64xbf16>
    %c0_105 = arith.constant 0 : index
    %c0_106 = arith.constant 0 : index
    %148 = vector.load %arg8[%c0_105, %c0_106] : memref<64x64xf32, #tpu.memory_space<vmem>>, vector<64x64xf32>
    %cst_107 = arith.constant dense<0.000000e+00> : vector<64x64xf32>
    %149 = tpu.matmul %145, %147, %cst_107 {dimension_numbers = #tpu.dot_dimension_numbers<[1], [0], [0], [1], [0, 0, 1, 1], [], []>} : vector<64x32xbf16>, vector<32x64xbf16>, vector<64x64xf32> -> vector<64x64xf32>
    %150 = arith.addf %148, %149 : vector<64x64xf32>
    %c0_108 = arith.constant 0 : index
    %c0_109 = arith.constant 0 : index
    %151 = vector.load %arg8[%c0_108, %c0_109] : memref<64x64xf32, #tpu.memory_space<vmem>>, vector<64x64xf32>
    tpu.vector_store %arg8[%c0_108, %c0_109], %150 {strides = array<i32>} : memref<64x64xf32, #tpu.memory_space<vmem>>, vector<64x64xf32>,
    %c2_i32 = arith.constant 2 : i32
    %152 = arith.cmpi eq, %arg2, %c2_i32 : i32
    %153 = arith.extui %152 : i1 to i32
    %c0_i32_110 = arith.constant 0 : i32
    %154 = arith.cmpi ne, %153, %c0_i32_110 : i32
    scf.if %154 {
      %c0_111 = arith.constant 0 : index
      %c0_112 = arith.constant 0 : index
      %155 = vector.load %arg8[%c0_111, %c0_112] : memref<64x64xf32, #tpu.memory_space<vmem>>, vector<64x64xf32>
      %c0_113 = arith.constant 0 : index
      %c0_114 = arith.constant 0 : index
      %156 = vector.load %arg5[%c0_113, %c0_114] : memref<1x64xf32, #tpu.memory_space<vmem>>, vector<1x64xf32>
      %157 = vector.broadcast %156 : vector<1x64xf32> to vector<64x64xf32>
      %158 = arith.mulf %155, %157 : vector<64x64xf32>
      %c0_115 = arith.constant 0 : index
      %c0_116 = arith.constant 0 : index
      %159 = vector.load %arg6[%c0_115, %c0_116] : memref<1x64xf32, #tpu.memory_space<vmem>>, vector<1x64xf32>
      %160 = vector.broadcast %159 : vector<1x64xf32> to vector<64x64xf32>
      %161 = arith.addf %158, %160 : vector<64x64xf32>
      %cst_117 = arith.constant 0.000000e+00 : f32
      %162 = vector.broadcast %cst_117 : f32 to vector<64x64xf32>
      %163 = arith.maximumf %161, %162 : vector<64x64xf32>
      %164 = arith.truncf %163 : vector<64x64xf32> to vector<64x64xbf16>
      %c0_118 = arith.constant 0 : index
      %c0_119 = arith.constant 0 : index
      %c0_120 = arith.constant 0 : index
      %c0_121 = arith.constant 0 : index
      %165 = vector.load %arg7[%c0_118, %c0_119, %c0_120, %c0_121] : memref<1x1x64x64xbf16, #tpu.memory_space<vmem>>, vector<1x1x64x64xbf16>
      %166 = vector.shape_cast %165 : vector<1x1x64x64xbf16> to vector<64x64xbf16>
      %167 = vector.shape_cast %164 : vector<64x64xbf16> to vector<1x1x64x64xbf16>
      tpu.vector_store %arg7[%c0_118, %c0_119, %c0_120, %c0_121], %167 {strides = array<i32>} : memref<1x1x64x64xbf16, #tpu.memory_space<vmem>>, vector<1x1x64x64xbf16>,
    } else {
    }
    return
  }
  func.func @transform_0(%arg0: i32, %arg1: i32, %arg2: i32) -> (i32, i32, i32, i32) {
    %0 = arith.addi %arg1, %arg2 : i32
    %c0_i32 = arith.constant 0 : i32
    %c0_i32_0 = arith.constant 0 : i32
    %c0_i32_1 = arith.constant 0 : i32
    return %arg0, %0, %c0_i32, %c0_i32_0 : i32, i32, i32, i32
  }
  func.func @transform_1(%arg0: i32, %arg1: i32, %arg2: i32) -> (i32, i32, i32) {
    %c0_i32 = arith.constant 0 : i32
    %c0_i32_0 = arith.constant 0 : i32
    %c0_i32_1 = arith.constant 0 : i32
    return %arg2, %c0_i32, %c0_i32_0 : i32, i32, i32
  }
  func.func @transform_2(%arg0: i32, %arg1: i32, %arg2: i32) -> (i32, i32) {
    %c0_i32 = arith.constant 0 : i32
    %c0_i32_0 = arith.constant 0 : i32
    %c0_i32_1 = arith.constant 0 : i32
    return %c0_i32, %c0_i32_0 : i32, i32
  }
  func.func @transform_3(%arg0: i32, %arg1: i32, %arg2: i32) -> (i32, i32) {
    %c0_i32 = arith.constant 0 : i32
    %c0_i32_0 = arith.constant 0 : i32
    %c0_i32_1 = arith.constant 0 : i32
    return %c0_i32, %c0_i32_0 : i32, i32
  }
  func.func @transform_4(%arg0: i32, %arg1: i32, %arg2: i32) -> (i32, i32, i32, i32) {
    %c0_i32 = arith.constant 0 : i32
    %c0_i32_0 = arith.constant 0 : i32
    %c0_i32_1 = arith.constant 0 : i32
    return %arg0, %arg1, %c0_i32, %c0_i32_0 : i32, i32, i32, i32
  }
}

module attributes {stable_mosaic.version = 11 : i64} {
  func.func @_maxpool_kernel(%arg0: i32, %arg1: memref<2x4x2x4x128xbf16, #tpu.memory_space<vmem>>, %arg2: memref<1x4x4x64xbf16, #tpu.memory_space<vmem>>) attributes {dimension_semantics = [#tpu.dimension_semantics<parallel>], iteration_bounds = array<i64: 8>, scalar_prefetch = 0 : i64, scratch_operands = 0 : i64, tpu.core_type = #tpu.core_type<tc>, window_params = [{transform_indices = @transform_0, window_bounds = array<i64: 2, 4, 2, 4, 128>}, {transform_indices = @transform_1, window_bounds = array<i64: 1, 4, 4, 64>}]} {
    %c0 = arith.constant 0 : index
    %c0_0 = arith.constant 0 : index
    %c0_1 = arith.constant 0 : index
    %c0_2 = arith.constant 0 : index
    %c0_3 = arith.constant 0 : index
    %0 = vector.load %arg1[%c0, %c0_0, %c0_1, %c0_2, %c0_3] : memref<2x4x2x4x128xbf16, #tpu.memory_space<vmem>>, vector<1x4x1x4x128xbf16>
    %1 = vector.shape_cast %0 : vector<1x4x1x4x128xbf16> to vector<4x4x128xbf16>
    %c0_4 = arith.constant 0 : index
    %c0_5 = arith.constant 0 : index
    %c1 = arith.constant 1 : index
    %c0_6 = arith.constant 0 : index
    %c0_7 = arith.constant 0 : index
    %2 = vector.load %arg1[%c0_4, %c0_5, %c1, %c0_6, %c0_7] : memref<2x4x2x4x128xbf16, #tpu.memory_space<vmem>>, vector<1x4x1x4x128xbf16>
    %3 = vector.shape_cast %2 : vector<1x4x1x4x128xbf16> to vector<4x4x128xbf16>
    %4 = arith.maximumf %1, %3 : vector<4x4x128xbf16>
    %c1_8 = arith.constant 1 : index
    %c0_9 = arith.constant 0 : index
    %c0_10 = arith.constant 0 : index
    %c0_11 = arith.constant 0 : index
    %c0_12 = arith.constant 0 : index
    %5 = vector.load %arg1[%c1_8, %c0_9, %c0_10, %c0_11, %c0_12] : memref<2x4x2x4x128xbf16, #tpu.memory_space<vmem>>, vector<1x4x1x4x128xbf16>
    %6 = vector.shape_cast %5 : vector<1x4x1x4x128xbf16> to vector<4x4x128xbf16>
    %7 = arith.maximumf %4, %6 : vector<4x4x128xbf16>
    %c1_13 = arith.constant 1 : index
    %c0_14 = arith.constant 0 : index
    %c1_15 = arith.constant 1 : index
    %c0_16 = arith.constant 0 : index
    %c0_17 = arith.constant 0 : index
    %8 = vector.load %arg1[%c1_13, %c0_14, %c1_15, %c0_16, %c0_17] : memref<2x4x2x4x128xbf16, #tpu.memory_space<vmem>>, vector<1x4x1x4x128xbf16>
    %9 = vector.shape_cast %8 : vector<1x4x1x4x128xbf16> to vector<4x4x128xbf16>
    %10 = arith.maximumf %7, %9 : vector<4x4x128xbf16>
    %11 = vector.extract_strided_slice %10 {offsets = [0, 0, 0], sizes = [4, 4, 64], strides = [1, 1, 1]} : vector<4x4x128xbf16> to vector<4x4x64xbf16>
    %12 = vector.extract_strided_slice %10 {offsets = [0, 0, 64], sizes = [4, 4, 64], strides = [1, 1, 1]} : vector<4x4x128xbf16> to vector<4x4x64xbf16>
    %13 = arith.maximumf %11, %12 : vector<4x4x64xbf16>
    %c0_18 = arith.constant 0 : index
    %c0_19 = arith.constant 0 : index
    %c0_20 = arith.constant 0 : index
    %c0_21 = arith.constant 0 : index
    %14 = vector.load %arg2[%c0_18, %c0_19, %c0_20, %c0_21] : memref<1x4x4x64xbf16, #tpu.memory_space<vmem>>, vector<1x4x4x64xbf16>
    %15 = vector.shape_cast %14 : vector<1x4x4x64xbf16> to vector<4x4x64xbf16>
    %16 = vector.shape_cast %13 : vector<4x4x64xbf16> to vector<1x4x4x64xbf16>
    tpu.vector_store %arg2[%c0_18, %c0_19, %c0_20, %c0_21], %16 {strides = array<i32>} : memref<1x4x4x64xbf16, #tpu.memory_space<vmem>>, vector<1x4x4x64xbf16>,
    return
  }
  func.func @transform_0(%arg0: i32) -> (i32, i32, i32, i32, i32) {
    %c0_i32 = arith.constant 0 : i32
    %c0_i32_0 = arith.constant 0 : i32
    %c0_i32_1 = arith.constant 0 : i32
    %c0_i32_2 = arith.constant 0 : i32
    %c0_i32_3 = arith.constant 0 : i32
    return %arg0, %c0_i32, %c0_i32_0, %c0_i32_1, %c0_i32_2 : i32, i32, i32, i32, i32
  }
  func.func @transform_1(%arg0: i32) -> (i32, i32, i32, i32) {
    %c0_i32 = arith.constant 0 : i32
    %c0_i32_0 = arith.constant 0 : i32
    %c0_i32_1 = arith.constant 0 : i32
    %c0_i32_2 = arith.constant 0 : i32
    return %arg0, %c0_i32, %c0_i32_0, %c0_i32_1 : i32, i32, i32, i32
  }
}

module attributes {stable_mosaic.version = 11 : i64} {
  func.func @_conv3d_kernel(%arg0: i32, %arg1: i32, %arg2: i32, %arg3: memref<1x1x26x64xbf16, #tpu.memory_space<vmem>>, %arg4: memref<1x576x64xbf16, #tpu.memory_space<vmem>>, %arg5: memref<1x64xf32, #tpu.memory_space<vmem>>, %arg6: memref<1x64xf32, #tpu.memory_space<vmem>>, %arg7: memref<1x1x16x64xbf16, #tpu.memory_space<vmem>>, %arg8: memref<16x64xf32, #tpu.memory_space<vmem>>) attributes {dimension_semantics = [#tpu.dimension_semantics<parallel>, #tpu.dimension_semantics<parallel>, #tpu.dimension_semantics<arbitrary>], iteration_bounds = array<i64: 2, 4, 3>, scalar_prefetch = 0 : i64, scratch_operands = 1 : i64, tpu.core_type = #tpu.core_type<tc>, window_params = [{transform_indices = @transform_0, window_bounds = array<i64: 1, 1, 26, 64>}, {transform_indices = @transform_1, window_bounds = array<i64: 1, 576, 64>}, {pipeline_mode = #tpu.pipeline_mode<synchronous>, transform_indices = @transform_2, window_bounds = array<i64: 1, 64>}, {pipeline_mode = #tpu.pipeline_mode<synchronous>, transform_indices = @transform_3, window_bounds = array<i64: 1, 64>}, {transform_indices = @transform_4, window_bounds = array<i64: 1, 1, 16, 64>}]} {
    %c0_i32 = arith.constant 0 : i32
    %0 = arith.cmpi eq, %arg2, %c0_i32 : i32
    %1 = arith.extui %0 : i1 to i32
    %c0_i32_0 = arith.constant 0 : i32
    %2 = arith.cmpi ne, %1, %c0_i32_0 : i32
    scf.if %2 {
      %cst_111 = arith.constant 0.000000e+00 : f32
      %155 = vector.broadcast %cst_111 : f32 to vector<16x64xf32>
      %c0_112 = arith.constant 0 : index
      %c0_113 = arith.constant 0 : index
      %156 = vector.load %arg8[%c0_112, %c0_113] : memref<16x64xf32, #tpu.memory_space<vmem>>, vector<16x64xf32>
      tpu.vector_store %arg8[%c0_112, %c0_113], %155 {strides = array<i32>} : memref<16x64xf32, #tpu.memory_space<vmem>>, vector<16x64xf32>,
    } else {
    }
    %3 = tpu.iota {dimensions = array<i32: 0>} : vector<16x1xi32>
    %c4_i32 = arith.constant 4 : i32
    %c0_i32_1 = arith.constant 0 : i32
    %4 = arith.cmpi eq, %c4_i32, %c0_i32_1 : i32
    %c1_i32 = arith.constant 1 : i32
    %5 = arith.select %4, %c1_i32, %c4_i32 : i32
    %6 = vector.broadcast %5 : i32 to vector<16x1xi32>
    %7 = arith.remsi %3, %6 : vector<16x1xi32>
    %c0_i32_2 = arith.constant 0 : i32
    %8 = vector.broadcast %c0_i32_2 : i32 to vector<16x1xi32>
    %9 = arith.cmpi ne, %7, %8 : vector<16x1xi32>
    %c0_i32_3 = arith.constant 0 : i32
    %10 = vector.broadcast %c0_i32_3 : i32 to vector<16x1xi32>
    %11 = arith.cmpi slt, %7, %10 : vector<16x1xi32>
    %c0_i32_4 = arith.constant 0 : i32
    %12 = arith.cmpi slt, %5, %c0_i32_4 : i32
    %13 = vector.broadcast %12 : i1 to vector<16x1xi1>
    %14 = vector.broadcast %13 : vector<16x1xi1> to vector<16x1xi1>
    %15 = arith.xori %11, %14 : vector<16x1xi1>
    %16 = arith.andi %15, %9 : vector<16x1xi1>
    %17 = vector.broadcast %5 : i32 to vector<16x1xi32>
    %18 = arith.addi %7, %17 : vector<16x1xi32>
    %19 = arith.select %16, %18, %7 : vector<16x1xi1>, vector<16x1xi32>
    %c0 = arith.constant 0 : index
    %c0_5 = arith.constant 0 : index
    %c0_6 = arith.constant 0 : index
    %c0_7 = arith.constant 0 : index
    %20 = vector.load %arg3[%c0, %c0_5, %c0_6, %c0_7] : memref<1x1x26x64xbf16, #tpu.memory_space<vmem>>, vector<1x1x16x64xbf16>
    %21 = vector.shape_cast %20 : vector<1x1x16x64xbf16> to vector<16x64xbf16>
    %c1_i32_8 = arith.constant 1 : i32
    %22 = vector.broadcast %c1_i32_8 : i32 to vector<16x1xi32>
    %23 = arith.cmpi sge, %19, %22 : vector<16x1xi32>
    %c5_i32 = arith.constant 5 : i32
    %24 = vector.broadcast %c5_i32 : i32 to vector<16x1xi32>
    %25 = arith.cmpi slt, %19, %24 : vector<16x1xi32>
    %26 = arith.andi %23, %25 : vector<16x1xi1>
    %c0_i32_9 = arith.constant 0 : i32
    %27 = arith.sitofp %c0_i32_9 : i32 to bf16
    %28 = vector.shape_cast %26 : vector<16x1xi1> to vector<16x1xi1>
    %29 = vector.broadcast %28 : vector<16x1xi1> to vector<16x64xi1>
    %30 = vector.broadcast %27 : bf16 to vector<16x64xbf16>
    %31 = arith.select %29, %21, %30 : vector<16x64xi1>, vector<16x64xbf16>
    %c0_10 = arith.constant 0 : index
    %c0_11 = arith.constant 0 : index
    %c0_12 = arith.constant 0 : index
    %32 = vector.load %arg4[%c0_10, %c0_11, %c0_12] : memref<1x576x64xbf16, #tpu.memory_space<vmem>>, vector<1x64x64xbf16>
    %33 = vector.shape_cast %32 : vector<1x64x64xbf16> to vector<64x64xbf16>
    %c0_13 = arith.constant 0 : index
    %c0_14 = arith.constant 0 : index
    %34 = vector.load %arg8[%c0_13, %c0_14] : memref<16x64xf32, #tpu.memory_space<vmem>>, vector<16x64xf32>
    %cst = arith.constant dense<0.000000e+00> : vector<16x64xf32>
    %35 = tpu.matmul %31, %33, %cst {dimension_numbers = #tpu.dot_dimension_numbers<[1], [0], [0], [1], [0, 0, 1, 1], [], []>} : vector<16x64xbf16>, vector<64x64xbf16>, vector<16x64xf32> -> vector<16x64xf32>
    %36 = arith.addf %34, %35 : vector<16x64xf32>
    %c0_15 = arith.constant 0 : index
    %c0_16 = arith.constant 0 : index
    %37 = vector.load %arg8[%c0_15, %c0_16] : memref<16x64xf32, #tpu.memory_space<vmem>>, vector<16x64xf32>
    tpu.vector_store %arg8[%c0_15, %c0_16], %36 {strides = array<i32>} : memref<16x64xf32, #tpu.memory_space<vmem>>, vector<16x64xf32>,
    %c0_17 = arith.constant 0 : index
    %c0_18 = arith.constant 0 : index
    %c1 = arith.constant 1 : index
    %c0_19 = arith.constant 0 : index
    %38 = vector.load %arg3[%c0_17, %c0_18, %c1, %c0_19] : memref<1x1x26x64xbf16, #tpu.memory_space<vmem>>, vector<1x1x16x64xbf16>
    %39 = vector.shape_cast %38 : vector<1x1x16x64xbf16> to vector<16x64xbf16>
    %c0_20 = arith.constant 0 : index
    %c64 = arith.constant 64 : index
    %c0_21 = arith.constant 0 : index
    %40 = vector.load %arg4[%c0_20, %c64, %c0_21] : memref<1x576x64xbf16, #tpu.memory_space<vmem>>, vector<1x64x64xbf16>
    %41 = vector.shape_cast %40 : vector<1x64x64xbf16> to vector<64x64xbf16>
    %c0_22 = arith.constant 0 : index
    %c0_23 = arith.constant 0 : index
    %42 = vector.load %arg8[%c0_22, %c0_23] : memref<16x64xf32, #tpu.memory_space<vmem>>, vector<16x64xf32>
    %cst_24 = arith.constant dense<0.000000e+00> : vector<16x64xf32>
    %43 = tpu.matmul %39, %41, %cst_24 {dimension_numbers = #tpu.dot_dimension_numbers<[1], [0], [0], [1], [0, 0, 1, 1], [], []>} : vector<16x64xbf16>, vector<64x64xbf16>, vector<16x64xf32> -> vector<16x64xf32>
    %44 = arith.addf %42, %43 : vector<16x64xf32>
    %c0_25 = arith.constant 0 : index
    %c0_26 = arith.constant 0 : index
    %45 = vector.load %arg8[%c0_25, %c0_26] : memref<16x64xf32, #tpu.memory_space<vmem>>, vector<16x64xf32>
    tpu.vector_store %arg8[%c0_25, %c0_26], %44 {strides = array<i32>} : memref<16x64xf32, #tpu.memory_space<vmem>>, vector<16x64xf32>,
    %c0_27 = arith.constant 0 : index
    %c0_28 = arith.constant 0 : index
    %c2 = arith.constant 2 : index
    %c0_29 = arith.constant 0 : index
    %46 = vector.load %arg3[%c0_27, %c0_28, %c2, %c0_29] : memref<1x1x26x64xbf16, #tpu.memory_space<vmem>>, vector<1x1x16x64xbf16>
    %47 = vector.shape_cast %46 : vector<1x1x16x64xbf16> to vector<16x64xbf16>
    %c-1_i32 = arith.constant -1 : i32
    %48 = vector.broadcast %c-1_i32 : i32 to vector<16x1xi32>
    %49 = arith.cmpi sge, %19, %48 : vector<16x1xi32>
    %c3_i32 = arith.constant 3 : i32
    %50 = vector.broadcast %c3_i32 : i32 to vector<16x1xi32>
    %51 = arith.cmpi slt, %19, %50 : vector<16x1xi32>
    %52 = arith.andi %49, %51 : vector<16x1xi1>
    %c0_i32_30 = arith.constant 0 : i32
    %53 = arith.sitofp %c0_i32_30 : i32 to bf16
    %54 = vector.shape_cast %52 : vector<16x1xi1> to vector<16x1xi1>
    %55 = vector.broadcast %54 : vector<16x1xi1> to vector<16x64xi1>
    %56 = vector.broadcast %53 : bf16 to vector<16x64xbf16>
    %57 = arith.select %55, %47, %56 : vector<16x64xi1>, vector<16x64xbf16>
    %c0_31 = arith.constant 0 : index
    %c128 = arith.constant 128 : index
    %c0_32 = arith.constant 0 : index
    %58 = vector.load %arg4[%c0_31, %c128, %c0_32] : memref<1x576x64xbf16, #tpu.memory_space<vmem>>, vector<1x64x64xbf16>
    %59 = vector.shape_cast %58 : vector<1x64x64xbf16> to vector<64x64xbf16>
    %c0_33 = arith.constant 0 : index
    %c0_34 = arith.constant 0 : index
    %60 = vector.load %arg8[%c0_33, %c0_34] : memref<16x64xf32, #tpu.memory_space<vmem>>, vector<16x64xf32>
    %cst_35 = arith.constant dense<0.000000e+00> : vector<16x64xf32>
    %61 = tpu.matmul %57, %59, %cst_35 {dimension_numbers = #tpu.dot_dimension_numbers<[1], [0], [0], [1], [0, 0, 1, 1], [], []>} : vector<16x64xbf16>, vector<64x64xbf16>, vector<16x64xf32> -> vector<16x64xf32>
    %62 = arith.addf %60, %61 : vector<16x64xf32>
    %c0_36 = arith.constant 0 : index
    %c0_37 = arith.constant 0 : index
    %63 = vector.load %arg8[%c0_36, %c0_37] : memref<16x64xf32, #tpu.memory_space<vmem>>, vector<16x64xf32>
    tpu.vector_store %arg8[%c0_36, %c0_37], %62 {strides = array<i32>} : memref<16x64xf32, #tpu.memory_space<vmem>>, vector<16x64xf32>,
    %c0_38 = arith.constant 0 : index
    %c0_39 = arith.constant 0 : index
    %c4 = arith.constant 4 : index
    %c0_40 = arith.constant 0 : index
    %64 = vector.load %arg3[%c0_38, %c0_39, %c4, %c0_40] : memref<1x1x26x64xbf16, #tpu.memory_space<vmem>>, vector<1x1x16x64xbf16>
    %65 = vector.shape_cast %64 : vector<1x1x16x64xbf16> to vector<16x64xbf16>
    %c1_i32_41 = arith.constant 1 : i32
    %66 = vector.broadcast %c1_i32_41 : i32 to vector<16x1xi32>
    %67 = arith.cmpi sge, %19, %66 : vector<16x1xi32>
    %c5_i32_42 = arith.constant 5 : i32
    %68 = vector.broadcast %c5_i32_42 : i32 to vector<16x1xi32>
    %69 = arith.cmpi slt, %19, %68 : vector<16x1xi32>
    %70 = arith.andi %67, %69 : vector<16x1xi1>
    %c0_i32_43 = arith.constant 0 : i32
    %71 = arith.sitofp %c0_i32_43 : i32 to bf16
    %72 = vector.shape_cast %70 : vector<16x1xi1> to vector<16x1xi1>
    %73 = vector.broadcast %72 : vector<16x1xi1> to vector<16x64xi1>
    %74 = vector.broadcast %71 : bf16 to vector<16x64xbf16>
    %75 = arith.select %73, %65, %74 : vector<16x64xi1>, vector<16x64xbf16>
    %c0_44 = arith.constant 0 : index
    %c192 = arith.constant 192 : index
    %c0_45 = arith.constant 0 : index
    %76 = vector.load %arg4[%c0_44, %c192, %c0_45] : memref<1x576x64xbf16, #tpu.memory_space<vmem>>, vector<1x64x64xbf16>
    %77 = vector.shape_cast %76 : vector<1x64x64xbf16> to vector<64x64xbf16>
    %c0_46 = arith.constant 0 : index
    %c0_47 = arith.constant 0 : index
    %78 = vector.load %arg8[%c0_46, %c0_47] : memref<16x64xf32, #tpu.memory_space<vmem>>, vector<16x64xf32>
    %cst_48 = arith.constant dense<0.000000e+00> : vector<16x64xf32>
    %79 = tpu.matmul %75, %77, %cst_48 {dimension_numbers = #tpu.dot_dimension_numbers<[1], [0], [0], [1], [0, 0, 1, 1], [], []>} : vector<16x64xbf16>, vector<64x64xbf16>, vector<16x64xf32> -> vector<16x64xf32>
    %80 = arith.addf %78, %79 : vector<16x64xf32>
    %c0_49 = arith.constant 0 : index
    %c0_50 = arith.constant 0 : index
    %81 = vector.load %arg8[%c0_49, %c0_50] : memref<16x64xf32, #tpu.memory_space<vmem>>, vector<16x64xf32>
    tpu.vector_store %arg8[%c0_49, %c0_50], %80 {strides = array<i32>} : memref<16x64xf32, #tpu.memory_space<vmem>>, vector<16x64xf32>,
    %c0_51 = arith.constant 0 : index
    %c0_52 = arith.constant 0 : index
    %c5 = arith.constant 5 : index
    %c0_53 = arith.constant 0 : index
    %82 = vector.load %arg3[%c0_51, %c0_52, %c5, %c0_53] : memref<1x1x26x64xbf16, #tpu.memory_space<vmem>>, vector<1x1x16x64xbf16>
    %83 = vector.shape_cast %82 : vector<1x1x16x64xbf16> to vector<16x64xbf16>
    %c0_54 = arith.constant 0 : index
    %c256 = arith.constant 256 : index
    %c0_55 = arith.constant 0 : index
    %84 = vector.load %arg4[%c0_54, %c256, %c0_55] : memref<1x576x64xbf16, #tpu.memory_space<vmem>>, vector<1x64x64xbf16>
    %85 = vector.shape_cast %84 : vector<1x64x64xbf16> to vector<64x64xbf16>
    %c0_56 = arith.constant 0 : index
    %c0_57 = arith.constant 0 : index
    %86 = vector.load %arg8[%c0_56, %c0_57] : memref<16x64xf32, #tpu.memory_space<vmem>>, vector<16x64xf32>
    %cst_58 = arith.constant dense<0.000000e+00> : vector<16x64xf32>
    %87 = tpu.matmul %83, %85, %cst_58 {dimension_numbers = #tpu.dot_dimension_numbers<[1], [0], [0], [1], [0, 0, 1, 1], [], []>} : vector<16x64xbf16>, vector<64x64xbf16>, vector<16x64xf32> -> vector<16x64xf32>
    %88 = arith.addf %86, %87 : vector<16x64xf32>
    %c0_59 = arith.constant 0 : index
    %c0_60 = arith.constant 0 : index
    %89 = vector.load %arg8[%c0_59, %c0_60] : memref<16x64xf32, #tpu.memory_space<vmem>>, vector<16x64xf32>
    tpu.vector_store %arg8[%c0_59, %c0_60], %88 {strides = array<i32>} : memref<16x64xf32, #tpu.memory_space<vmem>>, vector<16x64xf32>,
    %c0_61 = arith.constant 0 : index
    %c0_62 = arith.constant 0 : index
    %c6 = arith.constant 6 : index
    %c0_63 = arith.constant 0 : index
    %90 = vector.load %arg3[%c0_61, %c0_62, %c6, %c0_63] : memref<1x1x26x64xbf16, #tpu.memory_space<vmem>>, vector<1x1x16x64xbf16>
    %91 = vector.shape_cast %90 : vector<1x1x16x64xbf16> to vector<16x64xbf16>
    %c-1_i32_64 = arith.constant -1 : i32
    %92 = vector.broadcast %c-1_i32_64 : i32 to vector<16x1xi32>
    %93 = arith.cmpi sge, %19, %92 : vector<16x1xi32>
    %c3_i32_65 = arith.constant 3 : i32
    %94 = vector.broadcast %c3_i32_65 : i32 to vector<16x1xi32>
    %95 = arith.cmpi slt, %19, %94 : vector<16x1xi32>
    %96 = arith.andi %93, %95 : vector<16x1xi1>
    %c0_i32_66 = arith.constant 0 : i32
    %97 = arith.sitofp %c0_i32_66 : i32 to bf16
    %98 = vector.shape_cast %96 : vector<16x1xi1> to vector<16x1xi1>
    %99 = vector.broadcast %98 : vector<16x1xi1> to vector<16x64xi1>
    %100 = vector.broadcast %97 : bf16 to vector<16x64xbf16>
    %101 = arith.select %99, %91, %100 : vector<16x64xi1>, vector<16x64xbf16>
    %c0_67 = arith.constant 0 : index
    %c320 = arith.constant 320 : index
    %c0_68 = arith.constant 0 : index
    %102 = vector.load %arg4[%c0_67, %c320, %c0_68] : memref<1x576x64xbf16, #tpu.memory_space<vmem>>, vector<1x64x64xbf16>
    %103 = vector.shape_cast %102 : vector<1x64x64xbf16> to vector<64x64xbf16>
    %c0_69 = arith.constant 0 : index
    %c0_70 = arith.constant 0 : index
    %104 = vector.load %arg8[%c0_69, %c0_70] : memref<16x64xf32, #tpu.memory_space<vmem>>, vector<16x64xf32>
    %cst_71 = arith.constant dense<0.000000e+00> : vector<16x64xf32>
    %105 = tpu.matmul %101, %103, %cst_71 {dimension_numbers = #tpu.dot_dimension_numbers<[1], [0], [0], [1], [0, 0, 1, 1], [], []>} : vector<16x64xbf16>, vector<64x64xbf16>, vector<16x64xf32> -> vector<16x64xf32>
    %106 = arith.addf %104, %105 : vector<16x64xf32>
    %c0_72 = arith.constant 0 : index
    %c0_73 = arith.constant 0 : index
    %107 = vector.load %arg8[%c0_72, %c0_73] : memref<16x64xf32, #tpu.memory_space<vmem>>, vector<16x64xf32>
    tpu.vector_store %arg8[%c0_72, %c0_73], %106 {strides = array<i32>} : memref<16x64xf32, #tpu.memory_space<vmem>>, vector<16x64xf32>,
    %c0_74 = arith.constant 0 : index
    %c0_75 = arith.constant 0 : index
    %c8 = arith.constant 8 : index
    %c0_76 = arith.constant 0 : index
    %108 = vector.load %arg3[%c0_74, %c0_75, %c8, %c0_76] : memref<1x1x26x64xbf16, #tpu.memory_space<vmem>>, vector<1x1x16x64xbf16>
    %109 = vector.shape_cast %108 : vector<1x1x16x64xbf16> to vector<16x64xbf16>
    %c1_i32_77 = arith.constant 1 : i32
    %110 = vector.broadcast %c1_i32_77 : i32 to vector<16x1xi32>
    %111 = arith.cmpi sge, %19, %110 : vector<16x1xi32>
    %c5_i32_78 = arith.constant 5 : i32
    %112 = vector.broadcast %c5_i32_78 : i32 to vector<16x1xi32>
    %113 = arith.cmpi slt, %19, %112 : vector<16x1xi32>
    %114 = arith.andi %111, %113 : vector<16x1xi1>
    %c0_i32_79 = arith.constant 0 : i32
    %115 = arith.sitofp %c0_i32_79 : i32 to bf16
    %116 = vector.shape_cast %114 : vector<16x1xi1> to vector<16x1xi1>
    %117 = vector.broadcast %116 : vector<16x1xi1> to vector<16x64xi1>
    %118 = vector.broadcast %115 : bf16 to vector<16x64xbf16>
    %119 = arith.select %117, %109, %118 : vector<16x64xi1>, vector<16x64xbf16>
    %c0_80 = arith.constant 0 : index
    %c384 = arith.constant 384 : index
    %c0_81 = arith.constant 0 : index
    %120 = vector.load %arg4[%c0_80, %c384, %c0_81] : memref<1x576x64xbf16, #tpu.memory_space<vmem>>, vector<1x64x64xbf16>
    %121 = vector.shape_cast %120 : vector<1x64x64xbf16> to vector<64x64xbf16>
    %c0_82 = arith.constant 0 : index
    %c0_83 = arith.constant 0 : index
    %122 = vector.load %arg8[%c0_82, %c0_83] : memref<16x64xf32, #tpu.memory_space<vmem>>, vector<16x64xf32>
    %cst_84 = arith.constant dense<0.000000e+00> : vector<16x64xf32>
    %123 = tpu.matmul %119, %121, %cst_84 {dimension_numbers = #tpu.dot_dimension_numbers<[1], [0], [0], [1], [0, 0, 1, 1], [], []>} : vector<16x64xbf16>, vector<64x64xbf16>, vector<16x64xf32> -> vector<16x64xf32>
    %124 = arith.addf %122, %123 : vector<16x64xf32>
    %c0_85 = arith.constant 0 : index
    %c0_86 = arith.constant 0 : index
    %125 = vector.load %arg8[%c0_85, %c0_86] : memref<16x64xf32, #tpu.memory_space<vmem>>, vector<16x64xf32>
    tpu.vector_store %arg8[%c0_85, %c0_86], %124 {strides = array<i32>} : memref<16x64xf32, #tpu.memory_space<vmem>>, vector<16x64xf32>,
    %c0_87 = arith.constant 0 : index
    %c0_88 = arith.constant 0 : index
    %c9 = arith.constant 9 : index
    %c0_89 = arith.constant 0 : index
    %126 = vector.load %arg3[%c0_87, %c0_88, %c9, %c0_89] : memref<1x1x26x64xbf16, #tpu.memory_space<vmem>>, vector<1x1x16x64xbf16>
    %127 = vector.shape_cast %126 : vector<1x1x16x64xbf16> to vector<16x64xbf16>
    %c0_90 = arith.constant 0 : index
    %c448 = arith.constant 448 : index
    %c0_91 = arith.constant 0 : index
    %128 = vector.load %arg4[%c0_90, %c448, %c0_91] : memref<1x576x64xbf16, #tpu.memory_space<vmem>>, vector<1x64x64xbf16>
    %129 = vector.shape_cast %128 : vector<1x64x64xbf16> to vector<64x64xbf16>
    %c0_92 = arith.constant 0 : index
    %c0_93 = arith.constant 0 : index
    %130 = vector.load %arg8[%c0_92, %c0_93] : memref<16x64xf32, #tpu.memory_space<vmem>>, vector<16x64xf32>
    %cst_94 = arith.constant dense<0.000000e+00> : vector<16x64xf32>
    %131 = tpu.matmul %127, %129, %cst_94 {dimension_numbers = #tpu.dot_dimension_numbers<[1], [0], [0], [1], [0, 0, 1, 1], [], []>} : vector<16x64xbf16>, vector<64x64xbf16>, vector<16x64xf32> -> vector<16x64xf32>
    %132 = arith.addf %130, %131 : vector<16x64xf32>
    %c0_95 = arith.constant 0 : index
    %c0_96 = arith.constant 0 : index
    %133 = vector.load %arg8[%c0_95, %c0_96] : memref<16x64xf32, #tpu.memory_space<vmem>>, vector<16x64xf32>
    tpu.vector_store %arg8[%c0_95, %c0_96], %132 {strides = array<i32>} : memref<16x64xf32, #tpu.memory_space<vmem>>, vector<16x64xf32>,
    %c0_97 = arith.constant 0 : index
    %c0_98 = arith.constant 0 : index
    %c10 = arith.constant 10 : index
    %c0_99 = arith.constant 0 : index
    %134 = vector.load %arg3[%c0_97, %c0_98, %c10, %c0_99] : memref<1x1x26x64xbf16, #tpu.memory_space<vmem>>, vector<1x1x16x64xbf16>
    %135 = vector.shape_cast %134 : vector<1x1x16x64xbf16> to vector<16x64xbf16>
    %c-1_i32_100 = arith.constant -1 : i32
    %136 = vector.broadcast %c-1_i32_100 : i32 to vector<16x1xi32>
    %137 = arith.cmpi sge, %19, %136 : vector<16x1xi32>
    %c3_i32_101 = arith.constant 3 : i32
    %138 = vector.broadcast %c3_i32_101 : i32 to vector<16x1xi32>
    %139 = arith.cmpi slt, %19, %138 : vector<16x1xi32>
    %140 = arith.andi %137, %139 : vector<16x1xi1>
    %c0_i32_102 = arith.constant 0 : i32
    %141 = arith.sitofp %c0_i32_102 : i32 to bf16
    %142 = vector.shape_cast %140 : vector<16x1xi1> to vector<16x1xi1>
    %143 = vector.broadcast %142 : vector<16x1xi1> to vector<16x64xi1>
    %144 = vector.broadcast %141 : bf16 to vector<16x64xbf16>
    %145 = arith.select %143, %135, %144 : vector<16x64xi1>, vector<16x64xbf16>
    %c0_103 = arith.constant 0 : index
    %c512 = arith.constant 512 : index
    %c0_104 = arith.constant 0 : index
    %146 = vector.load %arg4[%c0_103, %c512, %c0_104] : memref<1x576x64xbf16, #tpu.memory_space<vmem>>, vector<1x64x64xbf16>
    %147 = vector.shape_cast %146 : vector<1x64x64xbf16> to vector<64x64xbf16>
    %c0_105 = arith.constant 0 : index
    %c0_106 = arith.constant 0 : index
    %148 = vector.load %arg8[%c0_105, %c0_106] : memref<16x64xf32, #tpu.memory_space<vmem>>, vector<16x64xf32>
    %cst_107 = arith.constant dense<0.000000e+00> : vector<16x64xf32>
    %149 = tpu.matmul %145, %147, %cst_107 {dimension_numbers = #tpu.dot_dimension_numbers<[1], [0], [0], [1], [0, 0, 1, 1], [], []>} : vector<16x64xbf16>, vector<64x64xbf16>, vector<16x64xf32> -> vector<16x64xf32>
    %150 = arith.addf %148, %149 : vector<16x64xf32>
    %c0_108 = arith.constant 0 : index
    %c0_109 = arith.constant 0 : index
    %151 = vector.load %arg8[%c0_108, %c0_109] : memref<16x64xf32, #tpu.memory_space<vmem>>, vector<16x64xf32>
    tpu.vector_store %arg8[%c0_108, %c0_109], %150 {strides = array<i32>} : memref<16x64xf32, #tpu.memory_space<vmem>>, vector<16x64xf32>,
    %c2_i32 = arith.constant 2 : i32
    %152 = arith.cmpi eq, %arg2, %c2_i32 : i32
    %153 = arith.extui %152 : i1 to i32
    %c0_i32_110 = arith.constant 0 : i32
    %154 = arith.cmpi ne, %153, %c0_i32_110 : i32
    scf.if %154 {
      %c0_111 = arith.constant 0 : index
      %c0_112 = arith.constant 0 : index
      %155 = vector.load %arg8[%c0_111, %c0_112] : memref<16x64xf32, #tpu.memory_space<vmem>>, vector<16x64xf32>
      %c0_113 = arith.constant 0 : index
      %c0_114 = arith.constant 0 : index
      %156 = vector.load %arg5[%c0_113, %c0_114] : memref<1x64xf32, #tpu.memory_space<vmem>>, vector<1x64xf32>
      %157 = vector.broadcast %156 : vector<1x64xf32> to vector<16x64xf32>
      %158 = arith.mulf %155, %157 : vector<16x64xf32>
      %c0_115 = arith.constant 0 : index
      %c0_116 = arith.constant 0 : index
      %159 = vector.load %arg6[%c0_115, %c0_116] : memref<1x64xf32, #tpu.memory_space<vmem>>, vector<1x64xf32>
      %160 = vector.broadcast %159 : vector<1x64xf32> to vector<16x64xf32>
      %161 = arith.addf %158, %160 : vector<16x64xf32>
      %cst_117 = arith.constant 0.000000e+00 : f32
      %162 = vector.broadcast %cst_117 : f32 to vector<16x64xf32>
      %163 = arith.maximumf %161, %162 : vector<16x64xf32>
      %164 = arith.truncf %163 : vector<16x64xf32> to vector<16x64xbf16>
      %c0_118 = arith.constant 0 : index
      %c0_119 = arith.constant 0 : index
      %c0_120 = arith.constant 0 : index
      %c0_121 = arith.constant 0 : index
      %165 = vector.load %arg7[%c0_118, %c0_119, %c0_120, %c0_121] : memref<1x1x16x64xbf16, #tpu.memory_space<vmem>>, vector<1x1x16x64xbf16>
      %166 = vector.shape_cast %165 : vector<1x1x16x64xbf16> to vector<16x64xbf16>
      %167 = vector.shape_cast %164 : vector<16x64xbf16> to vector<1x1x16x64xbf16>
      tpu.vector_store %arg7[%c0_118, %c0_119, %c0_120, %c0_121], %167 {strides = array<i32>} : memref<1x1x16x64xbf16, #tpu.memory_space<vmem>>, vector<1x1x16x64xbf16>,
    } else {
    }
    return
  }
  func.func @transform_0(%arg0: i32, %arg1: i32, %arg2: i32) -> (i32, i32, i32, i32) {
    %0 = arith.addi %arg1, %arg2 : i32
    %c0_i32 = arith.constant 0 : i32
    %c0_i32_0 = arith.constant 0 : i32
    %c0_i32_1 = arith.constant 0 : i32
    return %arg0, %0, %c0_i32, %c0_i32_0 : i32, i32, i32, i32
  }
  func.func @transform_1(%arg0: i32, %arg1: i32, %arg2: i32) -> (i32, i32, i32) {
    %c0_i32 = arith.constant 0 : i32
    %c0_i32_0 = arith.constant 0 : i32
    %c0_i32_1 = arith.constant 0 : i32
    return %arg2, %c0_i32, %c0_i32_0 : i32, i32, i32
  }
  func.func @transform_2(%arg0: i32, %arg1: i32, %arg2: i32) -> (i32, i32) {
    %c0_i32 = arith.constant 0 : i32
    %c0_i32_0 = arith.constant 0 : i32
    %c0_i32_1 = arith.constant 0 : i32
    return %c0_i32, %c0_i32_0 : i32, i32
  }
  func.func @transform_3(%arg0: i32, %arg1: i32, %arg2: i32) -> (i32, i32) {
    %c0_i32 = arith.constant 0 : i32
    %c0_i32_0 = arith.constant 0 : i32
    %c0_i32_1 = arith.constant 0 : i32
    return %c0_i32, %c0_i32_0 : i32, i32
  }
  func.func @transform_4(%arg0: i32, %arg1: i32, %arg2: i32) -> (i32, i32, i32, i32) {
    %c0_i32 = arith.constant 0 : i32
    %c0_i32_0 = arith.constant 0 : i32
    %c0_i32_1 = arith.constant 0 : i32
    return %arg0, %arg1, %c0_i32, %c0_i32_0 : i32, i32, i32, i32
  }
}

module attributes {stable_mosaic.version = 11 : i64} {
  func.func @_maxpool_kernel(%arg0: i32, %arg1: memref<2x2x2x2x128xbf16, #tpu.memory_space<vmem>>, %arg2: memref<1x2x2x64xbf16, #tpu.memory_space<vmem>>) attributes {dimension_semantics = [#tpu.dimension_semantics<parallel>], iteration_bounds = array<i64: 4>, scalar_prefetch = 0 : i64, scratch_operands = 0 : i64, tpu.core_type = #tpu.core_type<tc>, window_params = [{transform_indices = @transform_0, window_bounds = array<i64: 2, 2, 2, 2, 128>}, {transform_indices = @transform_1, window_bounds = array<i64: 1, 2, 2, 64>}]} {
    %c0 = arith.constant 0 : index
    %c0_0 = arith.constant 0 : index
    %c0_1 = arith.constant 0 : index
    %c0_2 = arith.constant 0 : index
    %c0_3 = arith.constant 0 : index
    %0 = vector.load %arg1[%c0, %c0_0, %c0_1, %c0_2, %c0_3] : memref<2x2x2x2x128xbf16, #tpu.memory_space<vmem>>, vector<1x2x1x2x128xbf16>
    %1 = vector.shape_cast %0 : vector<1x2x1x2x128xbf16> to vector<2x2x128xbf16>
    %c0_4 = arith.constant 0 : index
    %c0_5 = arith.constant 0 : index
    %c1 = arith.constant 1 : index
    %c0_6 = arith.constant 0 : index
    %c0_7 = arith.constant 0 : index
    %2 = vector.load %arg1[%c0_4, %c0_5, %c1, %c0_6, %c0_7] : memref<2x2x2x2x128xbf16, #tpu.memory_space<vmem>>, vector<1x2x1x2x128xbf16>
    %3 = vector.shape_cast %2 : vector<1x2x1x2x128xbf16> to vector<2x2x128xbf16>
    %4 = arith.maximumf %1, %3 : vector<2x2x128xbf16>
    %c1_8 = arith.constant 1 : index
    %c0_9 = arith.constant 0 : index
    %c0_10 = arith.constant 0 : index
    %c0_11 = arith.constant 0 : index
    %c0_12 = arith.constant 0 : index
    %5 = vector.load %arg1[%c1_8, %c0_9, %c0_10, %c0_11, %c0_12] : memref<2x2x2x2x128xbf16, #tpu.memory_space<vmem>>, vector<1x2x1x2x128xbf16>
    %6 = vector.shape_cast %5 : vector<1x2x1x2x128xbf16> to vector<2x2x128xbf16>
    %7 = arith.maximumf %4, %6 : vector<2x2x128xbf16>
    %c1_13 = arith.constant 1 : index
    %c0_14 = arith.constant 0 : index
    %c1_15 = arith.constant 1 : index
    %c0_16 = arith.constant 0 : index
    %c0_17 = arith.constant 0 : index
    %8 = vector.load %arg1[%c1_13, %c0_14, %c1_15, %c0_16, %c0_17] : memref<2x2x2x2x128xbf16, #tpu.memory_space<vmem>>, vector<1x2x1x2x128xbf16>
    %9 = vector.shape_cast %8 : vector<1x2x1x2x128xbf16> to vector<2x2x128xbf16>
    %10 = arith.maximumf %7, %9 : vector<2x2x128xbf16>
    %11 = vector.extract_strided_slice %10 {offsets = [0, 0, 0], sizes = [2, 2, 64], strides = [1, 1, 1]} : vector<2x2x128xbf16> to vector<2x2x64xbf16>
    %12 = vector.extract_strided_slice %10 {offsets = [0, 0, 64], sizes = [2, 2, 64], strides = [1, 1, 1]} : vector<2x2x128xbf16> to vector<2x2x64xbf16>
    %13 = arith.maximumf %11, %12 : vector<2x2x64xbf16>
    %c0_18 = arith.constant 0 : index
    %c0_19 = arith.constant 0 : index
    %c0_20 = arith.constant 0 : index
    %c0_21 = arith.constant 0 : index
    %14 = vector.load %arg2[%c0_18, %c0_19, %c0_20, %c0_21] : memref<1x2x2x64xbf16, #tpu.memory_space<vmem>>, vector<1x2x2x64xbf16>
    %15 = vector.shape_cast %14 : vector<1x2x2x64xbf16> to vector<2x2x64xbf16>
    %16 = vector.shape_cast %13 : vector<2x2x64xbf16> to vector<1x2x2x64xbf16>
    tpu.vector_store %arg2[%c0_18, %c0_19, %c0_20, %c0_21], %16 {strides = array<i32>} : memref<1x2x2x64xbf16, #tpu.memory_space<vmem>>, vector<1x2x2x64xbf16>,
    return
  }
  func.func @transform_0(%arg0: i32) -> (i32, i32, i32, i32, i32) {
    %c0_i32 = arith.constant 0 : i32
    %c0_i32_0 = arith.constant 0 : i32
    %c0_i32_1 = arith.constant 0 : i32
    %c0_i32_2 = arith.constant 0 : i32
    %c0_i32_3 = arith.constant 0 : i32
    return %arg0, %c0_i32, %c0_i32_0, %c0_i32_1, %c0_i32_2 : i32, i32, i32, i32, i32
  }
  func.func @transform_1(%arg0: i32) -> (i32, i32, i32, i32) {
    %c0_i32 = arith.constant 0 : i32
    %c0_i32_0 = arith.constant 0 : i32
    %c0_i32_1 = arith.constant 0 : i32
    %c0_i32_2 = arith.constant 0 : i32
    return %arg0, %c0_i32, %c0_i32_0, %c0_i32_1 : i32, i32, i32, i32
  }
}

module attributes {stable_mosaic.version = 11 : i64} {
  func.func @_conv3d_kernel(%arg0: i32, %arg1: i32, %arg2: i32, %arg3: memref<1x1x10x64xbf16, #tpu.memory_space<vmem>>, %arg4: memref<1x576x64xbf16, #tpu.memory_space<vmem>>, %arg5: memref<1x64xf32, #tpu.memory_space<vmem>>, %arg6: memref<1x64xf32, #tpu.memory_space<vmem>>, %arg7: memref<1x1x4x64xbf16, #tpu.memory_space<vmem>>, %arg8: memref<4x64xf32, #tpu.memory_space<vmem>>) attributes {dimension_semantics = [#tpu.dimension_semantics<parallel>, #tpu.dimension_semantics<parallel>, #tpu.dimension_semantics<arbitrary>], iteration_bounds = array<i64: 2, 2, 3>, scalar_prefetch = 0 : i64, scratch_operands = 1 : i64, tpu.core_type = #tpu.core_type<tc>, window_params = [{transform_indices = @transform_0, window_bounds = array<i64: 1, 1, 10, 64>}, {transform_indices = @transform_1, window_bounds = array<i64: 1, 576, 64>}, {pipeline_mode = #tpu.pipeline_mode<synchronous>, transform_indices = @transform_2, window_bounds = array<i64: 1, 64>}, {pipeline_mode = #tpu.pipeline_mode<synchronous>, transform_indices = @transform_3, window_bounds = array<i64: 1, 64>}, {transform_indices = @transform_4, window_bounds = array<i64: 1, 1, 4, 64>}]} {
    %c0_i32 = arith.constant 0 : i32
    %0 = arith.cmpi eq, %arg2, %c0_i32 : i32
    %1 = arith.extui %0 : i1 to i32
    %c0_i32_0 = arith.constant 0 : i32
    %2 = arith.cmpi ne, %1, %c0_i32_0 : i32
    scf.if %2 {
      %cst_115 = arith.constant 0.000000e+00 : f32
      %155 = vector.broadcast %cst_115 : f32 to vector<4x64xf32>
      %c0_116 = arith.constant 0 : index
      %c0_117 = arith.constant 0 : index
      %156 = vector.load %arg8[%c0_116, %c0_117] : memref<4x64xf32, #tpu.memory_space<vmem>>, vector<4x64xf32>
      tpu.vector_store %arg8[%c0_116, %c0_117], %155 {strides = array<i32>} : memref<4x64xf32, #tpu.memory_space<vmem>>, vector<4x64xf32>,
    } else {
    }
    %3 = tpu.iota {dimensions = array<i32: 0>} : vector<4x1xi32>
    %c2_i32 = arith.constant 2 : i32
    %c0_i32_1 = arith.constant 0 : i32
    %4 = arith.cmpi eq, %c2_i32, %c0_i32_1 : i32
    %c1_i32 = arith.constant 1 : i32
    %5 = arith.select %4, %c1_i32, %c2_i32 : i32
    %6 = vector.broadcast %5 : i32 to vector<4x1xi32>
    %7 = arith.remsi %3, %6 : vector<4x1xi32>
    %c0_i32_2 = arith.constant 0 : i32
    %8 = vector.broadcast %c0_i32_2 : i32 to vector<4x1xi32>
    %9 = arith.cmpi ne, %7, %8 : vector<4x1xi32>
    %c0_i32_3 = arith.constant 0 : i32
    %10 = vector.broadcast %c0_i32_3 : i32 to vector<4x1xi32>
    %11 = arith.cmpi slt, %7, %10 : vector<4x1xi32>
    %c0_i32_4 = arith.constant 0 : i32
    %12 = arith.cmpi slt, %5, %c0_i32_4 : i32
    %13 = vector.broadcast %12 : i1 to vector<4x1xi1>
    %14 = vector.broadcast %13 : vector<4x1xi1> to vector<4x1xi1>
    %15 = arith.xori %11, %14 : vector<4x1xi1>
    %16 = arith.andi %15, %9 : vector<4x1xi1>
    %17 = vector.broadcast %5 : i32 to vector<4x1xi32>
    %18 = arith.addi %7, %17 : vector<4x1xi32>
    %19 = arith.select %16, %18, %7 : vector<4x1xi1>, vector<4x1xi32>
    %c0 = arith.constant 0 : index
    %c0_5 = arith.constant 0 : index
    %c0_6 = arith.constant 0 : index
    %c0_7 = arith.constant 0 : index
    %20 = vector.load %arg3[%c0, %c0_5, %c0_6, %c0_7] : memref<1x1x10x64xbf16, #tpu.memory_space<vmem>>, vector<1x1x4x64xbf16>
    %21 = vector.shape_cast %20 : vector<1x1x4x64xbf16> to vector<4x64xbf16>
    %c1_i32_8 = arith.constant 1 : i32
    %22 = vector.broadcast %c1_i32_8 : i32 to vector<4x1xi32>
    %23 = arith.cmpi sge, %19, %22 : vector<4x1xi32>
    %c3_i32 = arith.constant 3 : i32
    %24 = vector.broadcast %c3_i32 : i32 to vector<4x1xi32>
    %25 = arith.cmpi slt, %19, %24 : vector<4x1xi32>
    %26 = arith.andi %23, %25 : vector<4x1xi1>
    %c0_i32_9 = arith.constant 0 : i32
    %27 = arith.sitofp %c0_i32_9 : i32 to bf16
    %28 = vector.shape_cast %26 : vector<4x1xi1> to vector<4x1xi1>
    %29 = vector.broadcast %28 : vector<4x1xi1> to vector<4x64xi1>
    %30 = vector.broadcast %27 : bf16 to vector<4x64xbf16>
    %31 = arith.select %29, %21, %30 : vector<4x64xi1>, vector<4x64xbf16>
    %c0_10 = arith.constant 0 : index
    %c0_11 = arith.constant 0 : index
    %c0_12 = arith.constant 0 : index
    %32 = vector.load %arg4[%c0_10, %c0_11, %c0_12] : memref<1x576x64xbf16, #tpu.memory_space<vmem>>, vector<1x64x64xbf16>
    %33 = vector.shape_cast %32 : vector<1x64x64xbf16> to vector<64x64xbf16>
    %c0_13 = arith.constant 0 : index
    %c0_14 = arith.constant 0 : index
    %34 = vector.load %arg8[%c0_13, %c0_14] : memref<4x64xf32, #tpu.memory_space<vmem>>, vector<4x64xf32>
    %cst = arith.constant dense<0.000000e+00> : vector<4x64xf32>
    %35 = tpu.matmul %31, %33, %cst {dimension_numbers = #tpu.dot_dimension_numbers<[1], [0], [0], [1], [0, 0, 1, 1], [], []>} : vector<4x64xbf16>, vector<64x64xbf16>, vector<4x64xf32> -> vector<4x64xf32>
    %36 = arith.addf %34, %35 : vector<4x64xf32>
    %c0_15 = arith.constant 0 : index
    %c0_16 = arith.constant 0 : index
    %37 = vector.load %arg8[%c0_15, %c0_16] : memref<4x64xf32, #tpu.memory_space<vmem>>, vector<4x64xf32>
    tpu.vector_store %arg8[%c0_15, %c0_16], %36 {strides = array<i32>} : memref<4x64xf32, #tpu.memory_space<vmem>>, vector<4x64xf32>,
    %c0_17 = arith.constant 0 : index
    %c0_18 = arith.constant 0 : index
    %c1 = arith.constant 1 : index
    %c0_19 = arith.constant 0 : index
    %38 = vector.load %arg3[%c0_17, %c0_18, %c1, %c0_19] : memref<1x1x10x64xbf16, #tpu.memory_space<vmem>>, vector<1x1x4x64xbf16>
    %39 = vector.shape_cast %38 : vector<1x1x4x64xbf16> to vector<4x64xbf16>
    %c0_20 = arith.constant 0 : index
    %c64 = arith.constant 64 : index
    %c0_21 = arith.constant 0 : index
    %40 = vector.load %arg4[%c0_20, %c64, %c0_21] : memref<1x576x64xbf16, #tpu.memory_space<vmem>>, vector<1x64x64xbf16>
    %41 = vector.shape_cast %40 : vector<1x64x64xbf16> to vector<64x64xbf16>
    %c0_22 = arith.constant 0 : index
    %c0_23 = arith.constant 0 : index
    %42 = vector.load %arg8[%c0_22, %c0_23] : memref<4x64xf32, #tpu.memory_space<vmem>>, vector<4x64xf32>
    %cst_24 = arith.constant dense<0.000000e+00> : vector<4x64xf32>
    %43 = tpu.matmul %39, %41, %cst_24 {dimension_numbers = #tpu.dot_dimension_numbers<[1], [0], [0], [1], [0, 0, 1, 1], [], []>} : vector<4x64xbf16>, vector<64x64xbf16>, vector<4x64xf32> -> vector<4x64xf32>
    %44 = arith.addf %42, %43 : vector<4x64xf32>
    %c0_25 = arith.constant 0 : index
    %c0_26 = arith.constant 0 : index
    %45 = vector.load %arg8[%c0_25, %c0_26] : memref<4x64xf32, #tpu.memory_space<vmem>>, vector<4x64xf32>
    tpu.vector_store %arg8[%c0_25, %c0_26], %44 {strides = array<i32>} : memref<4x64xf32, #tpu.memory_space<vmem>>, vector<4x64xf32>,
    %c0_27 = arith.constant 0 : index
    %c0_28 = arith.constant 0 : index
    %c2 = arith.constant 2 : index
    %c0_29 = arith.constant 0 : index
    %46 = vector.load %arg3[%c0_27, %c0_28, %c2, %c0_29] : memref<1x1x10x64xbf16, #tpu.memory_space<vmem>>, vector<1x1x4x64xbf16>
    %47 = vector.shape_cast %46 : vector<1x1x4x64xbf16> to vector<4x64xbf16>
    %c-1_i32 = arith.constant -1 : i32
    %48 = vector.broadcast %c-1_i32 : i32 to vector<4x1xi32>
    %49 = arith.cmpi sge, %19, %48 : vector<4x1xi32>
    %c1_i32_30 = arith.constant 1 : i32
    %50 = vector.broadcast %c1_i32_30 : i32 to vector<4x1xi32>
    %51 = arith.cmpi slt, %19, %50 : vector<4x1xi32>
    %52 = arith.andi %49, %51 : vector<4x1xi1>
    %c0_i32_31 = arith.constant 0 : i32
    %53 = arith.sitofp %c0_i32_31 : i32 to bf16
    %54 = vector.shape_cast %52 : vector<4x1xi1> to vector<4x1xi1>
    %55 = vector.broadcast %54 : vector<4x1xi1> to vector<4x64xi1>
    %56 = vector.broadcast %53 : bf16 to vector<4x64xbf16>
    %57 = arith.select %55, %47, %56 : vector<4x64xi1>, vector<4x64xbf16>
    %c0_32 = arith.constant 0 : index
    %c128 = arith.constant 128 : index
    %c0_33 = arith.constant 0 : index
    %58 = vector.load %arg4[%c0_32, %c128, %c0_33] : memref<1x576x64xbf16, #tpu.memory_space<vmem>>, vector<1x64x64xbf16>
    %59 = vector.shape_cast %58 : vector<1x64x64xbf16> to vector<64x64xbf16>
    %c0_34 = arith.constant 0 : index
    %c0_35 = arith.constant 0 : index
    %60 = vector.load %arg8[%c0_34, %c0_35] : memref<4x64xf32, #tpu.memory_space<vmem>>, vector<4x64xf32>
    %cst_36 = arith.constant dense<0.000000e+00> : vector<4x64xf32>
    %61 = tpu.matmul %57, %59, %cst_36 {dimension_numbers = #tpu.dot_dimension_numbers<[1], [0], [0], [1], [0, 0, 1, 1], [], []>} : vector<4x64xbf16>, vector<64x64xbf16>, vector<4x64xf32> -> vector<4x64xf32>
    %62 = arith.addf %60, %61 : vector<4x64xf32>
    %c0_37 = arith.constant 0 : index
    %c0_38 = arith.constant 0 : index
    %63 = vector.load %arg8[%c0_37, %c0_38] : memref<4x64xf32, #tpu.memory_space<vmem>>, vector<4x64xf32>
    tpu.vector_store %arg8[%c0_37, %c0_38], %62 {strides = array<i32>} : memref<4x64xf32, #tpu.memory_space<vmem>>, vector<4x64xf32>,
    %c0_39 = arith.constant 0 : index
    %c0_40 = arith.constant 0 : index
    %c2_41 = arith.constant 2 : index
    %c0_42 = arith.constant 0 : index
    %64 = vector.load %arg3[%c0_39, %c0_40, %c2_41, %c0_42] : memref<1x1x10x64xbf16, #tpu.memory_space<vmem>>, vector<1x1x4x64xbf16>
    %65 = vector.shape_cast %64 : vector<1x1x4x64xbf16> to vector<4x64xbf16>
    %c1_i32_43 = arith.constant 1 : i32
    %66 = vector.broadcast %c1_i32_43 : i32 to vector<4x1xi32>
    %67 = arith.cmpi sge, %19, %66 : vector<4x1xi32>
    %c3_i32_44 = arith.constant 3 : i32
    %68 = vector.broadcast %c3_i32_44 : i32 to vector<4x1xi32>
    %69 = arith.cmpi slt, %19, %68 : vector<4x1xi32>
    %70 = arith.andi %67, %69 : vector<4x1xi1>
    %c0_i32_45 = arith.constant 0 : i32
    %71 = arith.sitofp %c0_i32_45 : i32 to bf16
    %72 = vector.shape_cast %70 : vector<4x1xi1> to vector<4x1xi1>
    %73 = vector.broadcast %72 : vector<4x1xi1> to vector<4x64xi1>
    %74 = vector.broadcast %71 : bf16 to vector<4x64xbf16>
    %75 = arith.select %73, %65, %74 : vector<4x64xi1>, vector<4x64xbf16>
    %c0_46 = arith.constant 0 : index
    %c192 = arith.constant 192 : index
    %c0_47 = arith.constant 0 : index
    %76 = vector.load %arg4[%c0_46, %c192, %c0_47] : memref<1x576x64xbf16, #tpu.memory_space<vmem>>, vector<1x64x64xbf16>
    %77 = vector.shape_cast %76 : vector<1x64x64xbf16> to vector<64x64xbf16>
    %c0_48 = arith.constant 0 : index
    %c0_49 = arith.constant 0 : index
    %78 = vector.load %arg8[%c0_48, %c0_49] : memref<4x64xf32, #tpu.memory_space<vmem>>, vector<4x64xf32>
    %cst_50 = arith.constant dense<0.000000e+00> : vector<4x64xf32>
    %79 = tpu.matmul %75, %77, %cst_50 {dimension_numbers = #tpu.dot_dimension_numbers<[1], [0], [0], [1], [0, 0, 1, 1], [], []>} : vector<4x64xbf16>, vector<64x64xbf16>, vector<4x64xf32> -> vector<4x64xf32>
    %80 = arith.addf %78, %79 : vector<4x64xf32>
    %c0_51 = arith.constant 0 : index
    %c0_52 = arith.constant 0 : index
    %81 = vector.load %arg8[%c0_51, %c0_52] : memref<4x64xf32, #tpu.memory_space<vmem>>, vector<4x64xf32>
    tpu.vector_store %arg8[%c0_51, %c0_52], %80 {strides = array<i32>} : memref<4x64xf32, #tpu.memory_space<vmem>>, vector<4x64xf32>,
    %c0_53 = arith.constant 0 : index
    %c0_54 = arith.constant 0 : index
    %c3 = arith.constant 3 : index
    %c0_55 = arith.constant 0 : index
    %82 = vector.load %arg3[%c0_53, %c0_54, %c3, %c0_55] : memref<1x1x10x64xbf16, #tpu.memory_space<vmem>>, vector<1x1x4x64xbf16>
    %83 = vector.shape_cast %82 : vector<1x1x4x64xbf16> to vector<4x64xbf16>
    %c0_56 = arith.constant 0 : index
    %c256 = arith.constant 256 : index
    %c0_57 = arith.constant 0 : index
    %84 = vector.load %arg4[%c0_56, %c256, %c0_57] : memref<1x576x64xbf16, #tpu.memory_space<vmem>>, vector<1x64x64xbf16>
    %85 = vector.shape_cast %84 : vector<1x64x64xbf16> to vector<64x64xbf16>
    %c0_58 = arith.constant 0 : index
    %c0_59 = arith.constant 0 : index
    %86 = vector.load %arg8[%c0_58, %c0_59] : memref<4x64xf32, #tpu.memory_space<vmem>>, vector<4x64xf32>
    %cst_60 = arith.constant dense<0.000000e+00> : vector<4x64xf32>
    %87 = tpu.matmul %83, %85, %cst_60 {dimension_numbers = #tpu.dot_dimension_numbers<[1], [0], [0], [1], [0, 0, 1, 1], [], []>} : vector<4x64xbf16>, vector<64x64xbf16>, vector<4x64xf32> -> vector<4x64xf32>
    %88 = arith.addf %86, %87 : vector<4x64xf32>
    %c0_61 = arith.constant 0 : index
    %c0_62 = arith.constant 0 : index
    %89 = vector.load %arg8[%c0_61, %c0_62] : memref<4x64xf32, #tpu.memory_space<vmem>>, vector<4x64xf32>
    tpu.vector_store %arg8[%c0_61, %c0_62], %88 {strides = array<i32>} : memref<4x64xf32, #tpu.memory_space<vmem>>, vector<4x64xf32>,
    %c0_63 = arith.constant 0 : index
    %c0_64 = arith.constant 0 : index
    %c4 = arith.constant 4 : index
    %c0_65 = arith.constant 0 : index
    %90 = vector.load %arg3[%c0_63, %c0_64, %c4, %c0_65] : memref<1x1x10x64xbf16, #tpu.memory_space<vmem>>, vector<1x1x4x64xbf16>
    %91 = vector.shape_cast %90 : vector<1x1x4x64xbf16> to vector<4x64xbf16>
    %c-1_i32_66 = arith.constant -1 : i32
    %92 = vector.broadcast %c-1_i32_66 : i32 to vector<4x1xi32>
    %93 = arith.cmpi sge, %19, %92 : vector<4x1xi32>
    %c1_i32_67 = arith.constant 1 : i32
    %94 = vector.broadcast %c1_i32_67 : i32 to vector<4x1xi32>
    %95 = arith.cmpi slt, %19, %94 : vector<4x1xi32>
    %96 = arith.andi %93, %95 : vector<4x1xi1>
    %c0_i32_68 = arith.constant 0 : i32
    %97 = arith.sitofp %c0_i32_68 : i32 to bf16
    %98 = vector.shape_cast %96 : vector<4x1xi1> to vector<4x1xi1>
    %99 = vector.broadcast %98 : vector<4x1xi1> to vector<4x64xi1>
    %100 = vector.broadcast %97 : bf16 to vector<4x64xbf16>
    %101 = arith.select %99, %91, %100 : vector<4x64xi1>, vector<4x64xbf16>
    %c0_69 = arith.constant 0 : index
    %c320 = arith.constant 320 : index
    %c0_70 = arith.constant 0 : index
    %102 = vector.load %arg4[%c0_69, %c320, %c0_70] : memref<1x576x64xbf16, #tpu.memory_space<vmem>>, vector<1x64x64xbf16>
    %103 = vector.shape_cast %102 : vector<1x64x64xbf16> to vector<64x64xbf16>
    %c0_71 = arith.constant 0 : index
    %c0_72 = arith.constant 0 : index
    %104 = vector.load %arg8[%c0_71, %c0_72] : memref<4x64xf32, #tpu.memory_space<vmem>>, vector<4x64xf32>
    %cst_73 = arith.constant dense<0.000000e+00> : vector<4x64xf32>
    %105 = tpu.matmul %101, %103, %cst_73 {dimension_numbers = #tpu.dot_dimension_numbers<[1], [0], [0], [1], [0, 0, 1, 1], [], []>} : vector<4x64xbf16>, vector<64x64xbf16>, vector<4x64xf32> -> vector<4x64xf32>
    %106 = arith.addf %104, %105 : vector<4x64xf32>
    %c0_74 = arith.constant 0 : index
    %c0_75 = arith.constant 0 : index
    %107 = vector.load %arg8[%c0_74, %c0_75] : memref<4x64xf32, #tpu.memory_space<vmem>>, vector<4x64xf32>
    tpu.vector_store %arg8[%c0_74, %c0_75], %106 {strides = array<i32>} : memref<4x64xf32, #tpu.memory_space<vmem>>, vector<4x64xf32>,
    %c0_76 = arith.constant 0 : index
    %c0_77 = arith.constant 0 : index
    %c4_78 = arith.constant 4 : index
    %c0_79 = arith.constant 0 : index
    %108 = vector.load %arg3[%c0_76, %c0_77, %c4_78, %c0_79] : memref<1x1x10x64xbf16, #tpu.memory_space<vmem>>, vector<1x1x4x64xbf16>
    %109 = vector.shape_cast %108 : vector<1x1x4x64xbf16> to vector<4x64xbf16>
    %c1_i32_80 = arith.constant 1 : i32
    %110 = vector.broadcast %c1_i32_80 : i32 to vector<4x1xi32>
    %111 = arith.cmpi sge, %19, %110 : vector<4x1xi32>
    %c3_i32_81 = arith.constant 3 : i32
    %112 = vector.broadcast %c3_i32_81 : i32 to vector<4x1xi32>
    %113 = arith.cmpi slt, %19, %112 : vector<4x1xi32>
    %114 = arith.andi %111, %113 : vector<4x1xi1>
    %c0_i32_82 = arith.constant 0 : i32
    %115 = arith.sitofp %c0_i32_82 : i32 to bf16
    %116 = vector.shape_cast %114 : vector<4x1xi1> to vector<4x1xi1>
    %117 = vector.broadcast %116 : vector<4x1xi1> to vector<4x64xi1>
    %118 = vector.broadcast %115 : bf16 to vector<4x64xbf16>
    %119 = arith.select %117, %109, %118 : vector<4x64xi1>, vector<4x64xbf16>
    %c0_83 = arith.constant 0 : index
    %c384 = arith.constant 384 : index
    %c0_84 = arith.constant 0 : index
    %120 = vector.load %arg4[%c0_83, %c384, %c0_84] : memref<1x576x64xbf16, #tpu.memory_space<vmem>>, vector<1x64x64xbf16>
    %121 = vector.shape_cast %120 : vector<1x64x64xbf16> to vector<64x64xbf16>
    %c0_85 = arith.constant 0 : index
    %c0_86 = arith.constant 0 : index
    %122 = vector.load %arg8[%c0_85, %c0_86] : memref<4x64xf32, #tpu.memory_space<vmem>>, vector<4x64xf32>
    %cst_87 = arith.constant dense<0.000000e+00> : vector<4x64xf32>
    %123 = tpu.matmul %119, %121, %cst_87 {dimension_numbers = #tpu.dot_dimension_numbers<[1], [0], [0], [1], [0, 0, 1, 1], [], []>} : vector<4x64xbf16>, vector<64x64xbf16>, vector<4x64xf32> -> vector<4x64xf32>
    %124 = arith.addf %122, %123 : vector<4x64xf32>
    %c0_88 = arith.constant 0 : index
    %c0_89 = arith.constant 0 : index
    %125 = vector.load %arg8[%c0_88, %c0_89] : memref<4x64xf32, #tpu.memory_space<vmem>>, vector<4x64xf32>
    tpu.vector_store %arg8[%c0_88, %c0_89], %124 {strides = array<i32>} : memref<4x64xf32, #tpu.memory_space<vmem>>, vector<4x64xf32>,
    %c0_90 = arith.constant 0 : index
    %c0_91 = arith.constant 0 : index
    %c5 = arith.constant 5 : index
    %c0_92 = arith.constant 0 : index
    %126 = vector.load %arg3[%c0_90, %c0_91, %c5, %c0_92] : memref<1x1x10x64xbf16, #tpu.memory_space<vmem>>, vector<1x1x4x64xbf16>
    %127 = vector.shape_cast %126 : vector<1x1x4x64xbf16> to vector<4x64xbf16>
    %c0_93 = arith.constant 0 : index
    %c448 = arith.constant 448 : index
    %c0_94 = arith.constant 0 : index
    %128 = vector.load %arg4[%c0_93, %c448, %c0_94] : memref<1x576x64xbf16, #tpu.memory_space<vmem>>, vector<1x64x64xbf16>
    %129 = vector.shape_cast %128 : vector<1x64x64xbf16> to vector<64x64xbf16>
    %c0_95 = arith.constant 0 : index
    %c0_96 = arith.constant 0 : index
    %130 = vector.load %arg8[%c0_95, %c0_96] : memref<4x64xf32, #tpu.memory_space<vmem>>, vector<4x64xf32>
    %cst_97 = arith.constant dense<0.000000e+00> : vector<4x64xf32>
    %131 = tpu.matmul %127, %129, %cst_97 {dimension_numbers = #tpu.dot_dimension_numbers<[1], [0], [0], [1], [0, 0, 1, 1], [], []>} : vector<4x64xbf16>, vector<64x64xbf16>, vector<4x64xf32> -> vector<4x64xf32>
    %132 = arith.addf %130, %131 : vector<4x64xf32>
    %c0_98 = arith.constant 0 : index
    %c0_99 = arith.constant 0 : index
    %133 = vector.load %arg8[%c0_98, %c0_99] : memref<4x64xf32, #tpu.memory_space<vmem>>, vector<4x64xf32>
    tpu.vector_store %arg8[%c0_98, %c0_99], %132 {strides = array<i32>} : memref<4x64xf32, #tpu.memory_space<vmem>>, vector<4x64xf32>,
    %c0_100 = arith.constant 0 : index
    %c0_101 = arith.constant 0 : index
    %c6 = arith.constant 6 : index
    %c0_102 = arith.constant 0 : index
    %134 = vector.load %arg3[%c0_100, %c0_101, %c6, %c0_102] : memref<1x1x10x64xbf16, #tpu.memory_space<vmem>>, vector<1x1x4x64xbf16>
    %135 = vector.shape_cast %134 : vector<1x1x4x64xbf16> to vector<4x64xbf16>
    %c-1_i32_103 = arith.constant -1 : i32
    %136 = vector.broadcast %c-1_i32_103 : i32 to vector<4x1xi32>
    %137 = arith.cmpi sge, %19, %136 : vector<4x1xi32>
    %c1_i32_104 = arith.constant 1 : i32
    %138 = vector.broadcast %c1_i32_104 : i32 to vector<4x1xi32>
    %139 = arith.cmpi slt, %19, %138 : vector<4x1xi32>
    %140 = arith.andi %137, %139 : vector<4x1xi1>
    %c0_i32_105 = arith.constant 0 : i32
    %141 = arith.sitofp %c0_i32_105 : i32 to bf16
    %142 = vector.shape_cast %140 : vector<4x1xi1> to vector<4x1xi1>
    %143 = vector.broadcast %142 : vector<4x1xi1> to vector<4x64xi1>
    %144 = vector.broadcast %141 : bf16 to vector<4x64xbf16>
    %145 = arith.select %143, %135, %144 : vector<4x64xi1>, vector<4x64xbf16>
    %c0_106 = arith.constant 0 : index
    %c512 = arith.constant 512 : index
    %c0_107 = arith.constant 0 : index
    %146 = vector.load %arg4[%c0_106, %c512, %c0_107] : memref<1x576x64xbf16, #tpu.memory_space<vmem>>, vector<1x64x64xbf16>
    %147 = vector.shape_cast %146 : vector<1x64x64xbf16> to vector<64x64xbf16>
    %c0_108 = arith.constant 0 : index
    %c0_109 = arith.constant 0 : index
    %148 = vector.load %arg8[%c0_108, %c0_109] : memref<4x64xf32, #tpu.memory_space<vmem>>, vector<4x64xf32>
    %cst_110 = arith.constant dense<0.000000e+00> : vector<4x64xf32>
    %149 = tpu.matmul %145, %147, %cst_110 {dimension_numbers = #tpu.dot_dimension_numbers<[1], [0], [0], [1], [0, 0, 1, 1], [], []>} : vector<4x64xbf16>, vector<64x64xbf16>, vector<4x64xf32> -> vector<4x64xf32>
    %150 = arith.addf %148, %149 : vector<4x64xf32>
    %c0_111 = arith.constant 0 : index
    %c0_112 = arith.constant 0 : index
    %151 = vector.load %arg8[%c0_111, %c0_112] : memref<4x64xf32, #tpu.memory_space<vmem>>, vector<4x64xf32>
    tpu.vector_store %arg8[%c0_111, %c0_112], %150 {strides = array<i32>} : memref<4x64xf32, #tpu.memory_space<vmem>>, vector<4x64xf32>,
    %c2_i32_113 = arith.constant 2 : i32
    %152 = arith.cmpi eq, %arg2, %c2_i32_113 : i32
    %153 = arith.extui %152 : i1 to i32
    %c0_i32_114 = arith.constant 0 : i32
    %154 = arith.cmpi ne, %153, %c0_i32_114 : i32
    scf.if %154 {
      %c0_115 = arith.constant 0 : index
      %c0_116 = arith.constant 0 : index
      %155 = vector.load %arg8[%c0_115, %c0_116] : memref<4x64xf32, #tpu.memory_space<vmem>>, vector<4x64xf32>
      %c0_117 = arith.constant 0 : index
      %c0_118 = arith.constant 0 : index
      %156 = vector.load %arg5[%c0_117, %c0_118] : memref<1x64xf32, #tpu.memory_space<vmem>>, vector<1x64xf32>
      %157 = vector.broadcast %156 : vector<1x64xf32> to vector<4x64xf32>
      %158 = arith.mulf %155, %157 : vector<4x64xf32>
      %c0_119 = arith.constant 0 : index
      %c0_120 = arith.constant 0 : index
      %159 = vector.load %arg6[%c0_119, %c0_120] : memref<1x64xf32, #tpu.memory_space<vmem>>, vector<1x64xf32>
      %160 = vector.broadcast %159 : vector<1x64xf32> to vector<4x64xf32>
      %161 = arith.addf %158, %160 : vector<4x64xf32>
      %cst_121 = arith.constant 0.000000e+00 : f32
      %162 = vector.broadcast %cst_121 : f32 to vector<4x64xf32>
      %163 = arith.maximumf %161, %162 : vector<4x64xf32>
      %164 = arith.truncf %163 : vector<4x64xf32> to vector<4x64xbf16>
      %c0_122 = arith.constant 0 : index
      %c0_123 = arith.constant 0 : index
      %c0_124 = arith.constant 0 : index
      %c0_125 = arith.constant 0 : index
      %165 = vector.load %arg7[%c0_122, %c0_123, %c0_124, %c0_125] : memref<1x1x4x64xbf16, #tpu.memory_space<vmem>>, vector<1x1x4x64xbf16>
      %166 = vector.shape_cast %165 : vector<1x1x4x64xbf16> to vector<4x64xbf16>
      %167 = vector.shape_cast %164 : vector<4x64xbf16> to vector<1x1x4x64xbf16>
      tpu.vector_store %arg7[%c0_122, %c0_123, %c0_124, %c0_125], %167 {strides = array<i32>} : memref<1x1x4x64xbf16, #tpu.memory_space<vmem>>, vector<1x1x4x64xbf16>,
    } else {
    }
    return
  }
  func.func @transform_0(%arg0: i32, %arg1: i32, %arg2: i32) -> (i32, i32, i32, i32) {
    %0 = arith.addi %arg1, %arg2 : i32
    %c0_i32 = arith.constant 0 : i32
    %c0_i32_0 = arith.constant 0 : i32
    %c0_i32_1 = arith.constant 0 : i32
    return %arg0, %0, %c0_i32, %c0_i32_0 : i32, i32, i32, i32
  }
  func.func @transform_1(%arg0: i32, %arg1: i32, %arg2: i32) -> (i32, i32, i32) {
    %c0_i32 = arith.constant 0 : i32
    %c0_i32_0 = arith.constant 0 : i32
    %c0_i32_1 = arith.constant 0 : i32
    return %arg2, %c0_i32, %c0_i32_0 : i32, i32, i32
  }
  func.func @transform_2(%arg0: i32, %arg1: i32, %arg2: i32) -> (i32, i32) {
    %c0_i32 = arith.constant 0 : i32
    %c0_i32_0 = arith.constant 0 : i32
    %c0_i32_1 = arith.constant 0 : i32
    return %c0_i32, %c0_i32_0 : i32, i32
  }
  func.func @transform_3(%arg0: i32, %arg1: i32, %arg2: i32) -> (i32, i32) {
    %c0_i32 = arith.constant 0 : i32
    %c0_i32_0 = arith.constant 0 : i32
    %c0_i32_1 = arith.constant 0 : i32
    return %c0_i32, %c0_i32_0 : i32, i32
  }
  func.func @transform_4(%arg0: i32, %arg1: i32, %arg2: i32) -> (i32, i32, i32, i32) {
    %c0_i32 = arith.constant 0 : i32
    %c0_i32_0 = arith.constant 0 : i32
    %c0_i32_1 = arith.constant 0 : i32
    return %arg0, %arg1, %c0_i32, %c0_i32_0 : i32, i32, i32, i32
  }
}

module attributes {stable_mosaic.version = 11 : i64} {
  func.func @_maxpool_kernel(%arg0: i32, %arg1: memref<1x1x2x1x128xbf16, #tpu.memory_space<vmem>>, %arg2: memref<1x1x1x64xbf16, #tpu.memory_space<vmem>>) attributes {dimension_semantics = [#tpu.dimension_semantics<parallel>], iteration_bounds = array<i64: 4>, scalar_prefetch = 0 : i64, scratch_operands = 0 : i64, tpu.core_type = #tpu.core_type<tc>, window_params = [{transform_indices = @transform_0, window_bounds = array<i64: 1, 1, 2, 1, 128>}, {transform_indices = @transform_1, window_bounds = array<i64: 1, 1, 1, 64>}]} {
    %c0 = arith.constant 0 : index
    %c0_0 = arith.constant 0 : index
    %c0_1 = arith.constant 0 : index
    %c0_2 = arith.constant 0 : index
    %c0_3 = arith.constant 0 : index
    %0 = vector.load %arg1[%c0, %c0_0, %c0_1, %c0_2, %c0_3] : memref<1x1x2x1x128xbf16, #tpu.memory_space<vmem>>, vector<1x1x1x1x128xbf16>
    %1 = vector.shape_cast %0 : vector<1x1x1x1x128xbf16> to vector<1x1x128xbf16>
    %c0_4 = arith.constant 0 : index
    %c0_5 = arith.constant 0 : index
    %c1 = arith.constant 1 : index
    %c0_6 = arith.constant 0 : index
    %c0_7 = arith.constant 0 : index
    %2 = vector.load %arg1[%c0_4, %c0_5, %c1, %c0_6, %c0_7] : memref<1x1x2x1x128xbf16, #tpu.memory_space<vmem>>, vector<1x1x1x1x128xbf16>
    %3 = vector.shape_cast %2 : vector<1x1x1x1x128xbf16> to vector<1x1x128xbf16>
    %4 = arith.maximumf %1, %3 : vector<1x1x128xbf16>
    %5 = vector.extract_strided_slice %4 {offsets = [0, 0, 0], sizes = [1, 1, 64], strides = [1, 1, 1]} : vector<1x1x128xbf16> to vector<1x1x64xbf16>
    %6 = vector.extract_strided_slice %4 {offsets = [0, 0, 64], sizes = [1, 1, 64], strides = [1, 1, 1]} : vector<1x1x128xbf16> to vector<1x1x64xbf16>
    %7 = arith.maximumf %5, %6 : vector<1x1x64xbf16>
    %c0_8 = arith.constant 0 : index
    %c0_9 = arith.constant 0 : index
    %c0_10 = arith.constant 0 : index
    %c0_11 = arith.constant 0 : index
    %8 = vector.load %arg2[%c0_8, %c0_9, %c0_10, %c0_11] : memref<1x1x1x64xbf16, #tpu.memory_space<vmem>>, vector<1x1x1x64xbf16>
    %9 = vector.shape_cast %8 : vector<1x1x1x64xbf16> to vector<1x1x64xbf16>
    %10 = vector.shape_cast %7 : vector<1x1x64xbf16> to vector<1x1x1x64xbf16>
    tpu.vector_store %arg2[%c0_8, %c0_9, %c0_10, %c0_11], %10 {strides = array<i32>} : memref<1x1x1x64xbf16, #tpu.memory_space<vmem>>, vector<1x1x1x64xbf16>,
    return
  }
  func.func @transform_0(%arg0: i32) -> (i32, i32, i32, i32, i32) {
    %c0_i32 = arith.constant 0 : i32
    %c0_i32_0 = arith.constant 0 : i32
    %c0_i32_1 = arith.constant 0 : i32
    %c0_i32_2 = arith.constant 0 : i32
    %c0_i32_3 = arith.constant 0 : i32
    return %arg0, %c0_i32, %c0_i32_0, %c0_i32_1, %c0_i32_2 : i32, i32, i32, i32, i32
  }
  func.func @transform_1(%arg0: i32) -> (i32, i32, i32, i32) {
    %c0_i32 = arith.constant 0 : i32
    %c0_i32_0 = arith.constant 0 : i32
    %c0_i32_1 = arith.constant 0 : i32
    %c0_i32_2 = arith.constant 0 : i32
    return %arg0, %c0_i32, %c0_i32_0, %c0_i32_1 : i32, i32, i32, i32
  }
}

module attributes {stable_mosaic.version = 11 : i64} {
  func.func @_conv3d_kernel(%arg0: i32, %arg1: i32, %arg2: i32, %arg3: memref<1x1x5x64xbf16, #tpu.memory_space<vmem>>, %arg4: memref<1x576x64xbf16, #tpu.memory_space<vmem>>, %arg5: memref<1x64xf32, #tpu.memory_space<vmem>>, %arg6: memref<1x64xf32, #tpu.memory_space<vmem>>, %arg7: memref<1x1x1x64xbf16, #tpu.memory_space<vmem>>, %arg8: memref<1x64xf32, #tpu.memory_space<vmem>>) attributes {dimension_semantics = [#tpu.dimension_semantics<parallel>, #tpu.dimension_semantics<parallel>, #tpu.dimension_semantics<arbitrary>], iteration_bounds = array<i64: 2, 2, 3>, scalar_prefetch = 0 : i64, scratch_operands = 1 : i64, tpu.core_type = #tpu.core_type<tc>, window_params = [{transform_indices = @transform_0, window_bounds = array<i64: 1, 1, 5, 64>}, {transform_indices = @transform_1, window_bounds = array<i64: 1, 576, 64>}, {pipeline_mode = #tpu.pipeline_mode<synchronous>, transform_indices = @transform_2, window_bounds = array<i64: 1, 64>}, {pipeline_mode = #tpu.pipeline_mode<synchronous>, transform_indices = @transform_3, window_bounds = array<i64: 1, 64>}, {transform_indices = @transform_4, window_bounds = array<i64: 1, 1, 1, 64>}]} {
    %c0_i32 = arith.constant 0 : i32
    %0 = arith.cmpi eq, %arg2, %c0_i32 : i32
    %1 = arith.extui %0 : i1 to i32
    %c0_i32_0 = arith.constant 0 : i32
    %2 = arith.cmpi ne, %1, %c0_i32_0 : i32
    scf.if %2 {
      %cst_30 = arith.constant 0.000000e+00 : f32
      %30 = vector.broadcast %cst_30 : f32 to vector<1x64xf32>
      %c0_31 = arith.constant 0 : index
      %c0_32 = arith.constant 0 : index
      %31 = vector.load %arg8[%c0_31, %c0_32] : memref<1x64xf32, #tpu.memory_space<vmem>>, vector<1x64xf32>
      tpu.vector_store %arg8[%c0_31, %c0_32], %30 {strides = array<i32>} : memref<1x64xf32, #tpu.memory_space<vmem>>, vector<1x64xf32>,
    } else {
    }
    %c0 = arith.constant 0 : index
    %c0_1 = arith.constant 0 : index
    %c1 = arith.constant 1 : index
    %c0_2 = arith.constant 0 : index
    %3 = vector.load %arg3[%c0, %c0_1, %c1, %c0_2] : memref<1x1x5x64xbf16, #tpu.memory_space<vmem>>, vector<1x1x1x64xbf16>
    %4 = vector.shape_cast %3 : vector<1x1x1x64xbf16> to vector<1x64xbf16>
    %c0_3 = arith.constant 0 : index
    %c64 = arith.constant 64 : index
    %c0_4 = arith.constant 0 : index
    %5 = vector.load %arg4[%c0_3, %c64, %c0_4] : memref<1x576x64xbf16, #tpu.memory_space<vmem>>, vector<1x64x64xbf16>
    %6 = vector.shape_cast %5 : vector<1x64x64xbf16> to vector<64x64xbf16>
    %c0_5 = arith.constant 0 : index
    %c0_6 = arith.constant 0 : index
    %7 = vector.load %arg8[%c0_5, %c0_6] : memref<1x64xf32, #tpu.memory_space<vmem>>, vector<1x64xf32>
    %cst = arith.constant dense<0.000000e+00> : vector<1x64xf32>
    %8 = tpu.matmul %4, %6, %cst {dimension_numbers = #tpu.dot_dimension_numbers<[1], [0], [0], [1], [0, 0, 1, 1], [], []>} : vector<1x64xbf16>, vector<64x64xbf16>, vector<1x64xf32> -> vector<1x64xf32>
    %9 = arith.addf %7, %8 : vector<1x64xf32>
    %c0_7 = arith.constant 0 : index
    %c0_8 = arith.constant 0 : index
    %10 = vector.load %arg8[%c0_7, %c0_8] : memref<1x64xf32, #tpu.memory_space<vmem>>, vector<1x64xf32>
    tpu.vector_store %arg8[%c0_7, %c0_8], %9 {strides = array<i32>} : memref<1x64xf32, #tpu.memory_space<vmem>>, vector<1x64xf32>,
    %c0_9 = arith.constant 0 : index
    %c0_10 = arith.constant 0 : index
    %c2 = arith.constant 2 : index
    %c0_11 = arith.constant 0 : index
    %11 = vector.load %arg3[%c0_9, %c0_10, %c2, %c0_11] : memref<1x1x5x64xbf16, #tpu.memory_space<vmem>>, vector<1x1x1x64xbf16>
    %12 = vector.shape_cast %11 : vector<1x1x1x64xbf16> to vector<1x64xbf16>
    %c0_12 = arith.constant 0 : index
    %c256 = arith.constant 256 : index
    %c0_13 = arith.constant 0 : index
    %13 = vector.load %arg4[%c0_12, %c256, %c0_13] : memref<1x576x64xbf16, #tpu.memory_space<vmem>>, vector<1x64x64xbf16>
    %14 = vector.shape_cast %13 : vector<1x64x64xbf16> to vector<64x64xbf16>
    %c0_14 = arith.constant 0 : index
    %c0_15 = arith.constant 0 : index
    %15 = vector.load %arg8[%c0_14, %c0_15] : memref<1x64xf32, #tpu.memory_space<vmem>>, vector<1x64xf32>
    %cst_16 = arith.constant dense<0.000000e+00> : vector<1x64xf32>
    %16 = tpu.matmul %12, %14, %cst_16 {dimension_numbers = #tpu.dot_dimension_numbers<[1], [0], [0], [1], [0, 0, 1, 1], [], []>} : vector<1x64xbf16>, vector<64x64xbf16>, vector<1x64xf32> -> vector<1x64xf32>
    %17 = arith.addf %15, %16 : vector<1x64xf32>
    %c0_17 = arith.constant 0 : index
    %c0_18 = arith.constant 0 : index
    %18 = vector.load %arg8[%c0_17, %c0_18] : memref<1x64xf32, #tpu.memory_space<vmem>>, vector<1x64xf32>
    tpu.vector_store %arg8[%c0_17, %c0_18], %17 {strides = array<i32>} : memref<1x64xf32, #tpu.memory_space<vmem>>, vector<1x64xf32>,
    %c0_19 = arith.constant 0 : index
    %c0_20 = arith.constant 0 : index
    %c3 = arith.constant 3 : index
    %c0_21 = arith.constant 0 : index
    %19 = vector.load %arg3[%c0_19, %c0_20, %c3, %c0_21] : memref<1x1x5x64xbf16, #tpu.memory_space<vmem>>, vector<1x1x1x64xbf16>
    %20 = vector.shape_cast %19 : vector<1x1x1x64xbf16> to vector<1x64xbf16>
    %c0_22 = arith.constant 0 : index
    %c448 = arith.constant 448 : index
    %c0_23 = arith.constant 0 : index
    %21 = vector.load %arg4[%c0_22, %c448, %c0_23] : memref<1x576x64xbf16, #tpu.memory_space<vmem>>, vector<1x64x64xbf16>
    %22 = vector.shape_cast %21 : vector<1x64x64xbf16> to vector<64x64xbf16>
    %c0_24 = arith.constant 0 : index
    %c0_25 = arith.constant 0 : index
    %23 = vector.load %arg8[%c0_24, %c0_25] : memref<1x64xf32, #tpu.memory_space<vmem>>, vector<1x64xf32>
    %cst_26 = arith.constant dense<0.000000e+00> : vector<1x64xf32>
    %24 = tpu.matmul %20, %22, %cst_26 {dimension_numbers = #tpu.dot_dimension_numbers<[1], [0], [0], [1], [0, 0, 1, 1], [], []>} : vector<1x64xbf16>, vector<64x64xbf16>, vector<1x64xf32> -> vector<1x64xf32>
    %25 = arith.addf %23, %24 : vector<1x64xf32>
    %c0_27 = arith.constant 0 : index
    %c0_28 = arith.constant 0 : index
    %26 = vector.load %arg8[%c0_27, %c0_28] : memref<1x64xf32, #tpu.memory_space<vmem>>, vector<1x64xf32>
    tpu.vector_store %arg8[%c0_27, %c0_28], %25 {strides = array<i32>} : memref<1x64xf32, #tpu.memory_space<vmem>>, vector<1x64xf32>,
    %c2_i32 = arith.constant 2 : i32
    %27 = arith.cmpi eq, %arg2, %c2_i32 : i32
    %28 = arith.extui %27 : i1 to i32
    %c0_i32_29 = arith.constant 0 : i32
    %29 = arith.cmpi ne, %28, %c0_i32_29 : i32
    scf.if %29 {
      %c0_30 = arith.constant 0 : index
      %c0_31 = arith.constant 0 : index
      %30 = vector.load %arg8[%c0_30, %c0_31] : memref<1x64xf32, #tpu.memory_space<vmem>>, vector<1x64xf32>
      %c0_32 = arith.constant 0 : index
      %c0_33 = arith.constant 0 : index
      %31 = vector.load %arg5[%c0_32, %c0_33] : memref<1x64xf32, #tpu.memory_space<vmem>>, vector<1x64xf32>
      %32 = arith.mulf %30, %31 : vector<1x64xf32>
      %c0_34 = arith.constant 0 : index
      %c0_35 = arith.constant 0 : index
      %33 = vector.load %arg6[%c0_34, %c0_35] : memref<1x64xf32, #tpu.memory_space<vmem>>, vector<1x64xf32>
      %34 = arith.addf %32, %33 : vector<1x64xf32>
      %cst_36 = arith.constant 0.000000e+00 : f32
      %35 = vector.broadcast %cst_36 : f32 to vector<1x64xf32>
      %36 = arith.maximumf %34, %35 : vector<1x64xf32>
      %37 = arith.truncf %36 : vector<1x64xf32> to vector<1x64xbf16>
      %c0_37 = arith.constant 0 : index
      %c0_38 = arith.constant 0 : index
      %c0_39 = arith.constant 0 : index
      %c0_40 = arith.constant 0 : index
      %38 = vector.load %arg7[%c0_37, %c0_38, %c0_39, %c0_40] : memref<1x1x1x64xbf16, #tpu.memory_space<vmem>>, vector<1x1x1x64xbf16>
      %39 = vector.shape_cast %38 : vector<1x1x1x64xbf16> to vector<1x64xbf16>
      %40 = vector.shape_cast %37 : vector<1x64xbf16> to vector<1x1x1x64xbf16>
      tpu.vector_store %arg7[%c0_37, %c0_38, %c0_39, %c0_40], %40 {strides = array<i32>} : memref<1x1x1x64xbf16, #tpu.memory_space<vmem>>, vector<1x1x1x64xbf16>,
    } else {
    }
    return
  }
  func.func @transform_0(%arg0: i32, %arg1: i32, %arg2: i32) -> (i32, i32, i32, i32) {
    %0 = arith.addi %arg1, %arg2 : i32
    %c0_i32 = arith.constant 0 : i32
    %c0_i32_0 = arith.constant 0 : i32
    %c0_i32_1 = arith.constant 0 : i32
    return %arg0, %0, %c0_i32, %c0_i32_0 : i32, i32, i32, i32
  }
  func.func @transform_1(%arg0: i32, %arg1: i32, %arg2: i32) -> (i32, i32, i32) {
    %c0_i32 = arith.constant 0 : i32
    %c0_i32_0 = arith.constant 0 : i32
    %c0_i32_1 = arith.constant 0 : i32
    return %arg2, %c0_i32, %c0_i32_0 : i32, i32, i32
  }
  func.func @transform_2(%arg0: i32, %arg1: i32, %arg2: i32) -> (i32, i32) {
    %c0_i32 = arith.constant 0 : i32
    %c0_i32_0 = arith.constant 0 : i32
    %c0_i32_1 = arith.constant 0 : i32
    return %c0_i32, %c0_i32_0 : i32, i32
  }
  func.func @transform_3(%arg0: i32, %arg1: i32, %arg2: i32) -> (i32, i32) {
    %c0_i32 = arith.constant 0 : i32
    %c0_i32_0 = arith.constant 0 : i32
    %c0_i32_1 = arith.constant 0 : i32
    return %c0_i32, %c0_i32_0 : i32, i32
  }
  func.func @transform_4(%arg0: i32, %arg1: i32, %arg2: i32) -> (i32, i32, i32, i32) {
    %c0_i32 = arith.constant 0 : i32
    %c0_i32_0 = arith.constant 0 : i32
    %c0_i32_1 = arith.constant 0 : i32
    return %arg0, %arg1, %c0_i32, %c0_i32_0 : i32, i32, i32, i32
  }
}

module attributes {stable_mosaic.version = 11 : i64} {
  func.func @_mm_bn_act_kernel(%arg0: i32, %arg1: i32, %arg2: memref<1x8x128xbf16, #tpu.memory_space<vmem>>, %arg3: memref<1x128x64xbf16, #tpu.memory_space<vmem>>, %arg4: memref<1x64xf32, #tpu.memory_space<vmem>>, %arg5: memref<1x64xf32, #tpu.memory_space<vmem>>, %arg6: memref<1x8x64xbf16, #tpu.memory_space<vmem>>) attributes {dimension_semantics = [#tpu.dimension_semantics<parallel>, #tpu.dimension_semantics<parallel>], iteration_bounds = array<i64: 2, 1>, scalar_prefetch = 0 : i64, scratch_operands = 0 : i64, tpu.core_type = #tpu.core_type<tc>, window_params = [{transform_indices = @transform_0, window_bounds = array<i64: 1, 8, 128>}, {transform_indices = @transform_1, window_bounds = array<i64: 1, 128, 64>}, {pipeline_mode = #tpu.pipeline_mode<synchronous>, transform_indices = @transform_2, window_bounds = array<i64: 1, 64>}, {pipeline_mode = #tpu.pipeline_mode<synchronous>, transform_indices = @transform_3, window_bounds = array<i64: 1, 64>}, {transform_indices = @transform_4, window_bounds = array<i64: 1, 8, 64>}]} {
    %c0 = arith.constant 0 : index
    %c0_0 = arith.constant 0 : index
    %c0_1 = arith.constant 0 : index
    %0 = vector.load %arg2[%c0, %c0_0, %c0_1] : memref<1x8x128xbf16, #tpu.memory_space<vmem>>, vector<1x8x128xbf16>
    %1 = vector.shape_cast %0 : vector<1x8x128xbf16> to vector<8x128xbf16>
    %c0_2 = arith.constant 0 : index
    %c0_3 = arith.constant 0 : index
    %c0_4 = arith.constant 0 : index
    %2 = vector.load %arg3[%c0_2, %c0_3, %c0_4] : memref<1x128x64xbf16, #tpu.memory_space<vmem>>, vector<1x128x64xbf16>
    %3 = vector.shape_cast %2 : vector<1x128x64xbf16> to vector<128x64xbf16>
    %cst = arith.constant dense<0.000000e+00> : vector<8x64xf32>
    %4 = tpu.matmul %1, %3, %cst {dimension_numbers = #tpu.dot_dimension_numbers<[1], [0], [0], [1], [0, 0, 1, 1], [], []>} : vector<8x128xbf16>, vector<128x64xbf16>, vector<8x64xf32> -> vector<8x64xf32>
    %c0_5 = arith.constant 0 : index
    %c0_6 = arith.constant 0 : index
    %5 = vector.load %arg4[%c0_5, %c0_6] : memref<1x64xf32, #tpu.memory_space<vmem>>, vector<1x64xf32>
    %6 = vector.broadcast %5 : vector<1x64xf32> to vector<8x64xf32>
    %7 = arith.mulf %4, %6 : vector<8x64xf32>
    %c0_7 = arith.constant 0 : index
    %c0_8 = arith.constant 0 : index
    %8 = vector.load %arg5[%c0_7, %c0_8] : memref<1x64xf32, #tpu.memory_space<vmem>>, vector<1x64xf32>
    %9 = vector.broadcast %8 : vector<1x64xf32> to vector<8x64xf32>
    %10 = arith.addf %7, %9 : vector<8x64xf32>
    %cst_9 = arith.constant 0.000000e+00 : f32
    %11 = vector.broadcast %cst_9 : f32 to vector<8x64xf32>
    %12 = arith.cmpf ogt, %10, %11 : vector<8x64xf32>
    %cst_10 = arith.constant 0.000000e+00 : f32
    %13 = vector.broadcast %cst_10 : f32 to vector<8x64xf32>
    %14 = arith.minimumf %10, %13 : vector<8x64xf32>
    %15 = math.exp %14 : vector<8x64xf32>
    %cst_11 = arith.constant 1.000000e+00 : f32
    %16 = vector.broadcast %cst_11 : f32 to vector<8x64xf32>
    %17 = arith.subf %15, %16 : vector<8x64xf32>
    %18 = arith.select %12, %10, %17 : vector<8x64xi1>, vector<8x64xf32>
    %19 = arith.truncf %18 : vector<8x64xf32> to vector<8x64xbf16>
    %c0_12 = arith.constant 0 : index
    %c0_13 = arith.constant 0 : index
    %c0_14 = arith.constant 0 : index
    %20 = vector.load %arg6[%c0_12, %c0_13, %c0_14] : memref<1x8x64xbf16, #tpu.memory_space<vmem>>, vector<1x8x64xbf16>
    %21 = vector.shape_cast %20 : vector<1x8x64xbf16> to vector<8x64xbf16>
    %22 = vector.shape_cast %19 : vector<8x64xbf16> to vector<1x8x64xbf16>
    tpu.vector_store %arg6[%c0_12, %c0_13, %c0_14], %22 {strides = array<i32>} : memref<1x8x64xbf16, #tpu.memory_space<vmem>>, vector<1x8x64xbf16>,
    return
  }
  func.func @transform_0(%arg0: i32, %arg1: i32) -> (i32, i32, i32) {
    %c0_i32 = arith.constant 0 : i32
    %c0_i32_0 = arith.constant 0 : i32
    return %arg0, %arg1, %c0_i32 : i32, i32, i32
  }
  func.func @transform_1(%arg0: i32, %arg1: i32) -> (i32, i32, i32) {
    %c0_i32 = arith.constant 0 : i32
    %c0_i32_0 = arith.constant 0 : i32
    %c0_i32_1 = arith.constant 0 : i32
    return %arg0, %c0_i32, %c0_i32_0 : i32, i32, i32
  }
  func.func @transform_2(%arg0: i32, %arg1: i32) -> (i32, i32) {
    %c0_i32 = arith.constant 0 : i32
    %c0_i32_0 = arith.constant 0 : i32
    %c0_i32_1 = arith.constant 0 : i32
    return %c0_i32, %c0_i32_0 : i32, i32
  }
  func.func @transform_3(%arg0: i32, %arg1: i32) -> (i32, i32) {
    %c0_i32 = arith.constant 0 : i32
    %c0_i32_0 = arith.constant 0 : i32
    %c0_i32_1 = arith.constant 0 : i32
    return %c0_i32, %c0_i32_0 : i32, i32
  }
  func.func @transform_4(%arg0: i32, %arg1: i32) -> (i32, i32, i32) {
    %c0_i32 = arith.constant 0 : i32
    %c0_i32_0 = arith.constant 0 : i32
    return %arg0, %arg1, %c0_i32 : i32, i32, i32
  }
}

</mosaic_0001>

<bundles_post_ra>
// kernel: physnet_forward.15
= control target key start
LH: loop header
LB: loop body
LE: loop exit
PB: predicated region body
PF: predicated region fallthrough
CT: control target
= control target key end

     0   :  { %s1511_s15 = smov 0   ;;  %s1513_s16 = smov 0   ;;  %s1859_s0 = inlined_call_operand.vmem [shape: bf16[2,8,256,75], index: 0, kind: input, shape index: {}]   ;;  %s1860_s1 = inlined_call_operand.vmem [shape: bf16[1,75,16], index: 1, kind: input, shape index: {}]   ;;  %s1861_s2 = inlined_call_operand.vmem [shape: f32[1,16], index: 2, kind: input, shape index: {}]   ;;  %s1862_s3 = inlined_call_operand.vmem [shape: f32[1,16], index: 3, kind: input, shape index: {}]   ;;  %s1863_s4 = inlined_call_operand.vmem [shape: bf16[2,8,256,16], index: 4, kind: output, shape index: {}]  }
   0x1   :  { %s1515_s17 = smov 0   ;;  %s1517_s18 = smov 0  }
   0x2   :  { %s1519_s19 = smov 0  }
   0x3 LB: > { %s29_s20 = sadd.s32 1, %s1474_s17  ;;  %s33_s21 = sadd.s32 1, %s1478_s18  ;;  %s1482_s19 = sphi %s1519_s19, %s14_s19   ;;  %s1478_s18 = sphi %s1517_s18, %s1867_s18   ;;  %s1474_s17 = sphi %s1515_s17, %s1866_s17   ;;  %s1470_s16 = sphi %s1513_s16, %s1865_s16   ;;  %s1466_s15 = sphi %s1511_s15, %s1864_s15  }
   0x4   : > { %p31_p0 = scmp.ge.s32.totalorder %s29_s20, 8  ;;  %p1196_p1 = scmp.ge.s32.totalorder %s1482_s19, 1 }
   0x5   : > { %p203_p2 = scmp.lt.s32.totalorder %s1482_s19, 17 }
   0x6   : > { %s1869_s20 = smov (%p31_p0, %s29_s20), 0  ;;  %s1871_s21 = smov (!%p31_p0, %s33_s21), %s1478_s18 }
   0x7   : > { %p204_p3 = pnand %p1196_p1, %p203_p2  ;;  %p35_p4 = scmp.ge.s32.totalorder %s1871_s21, 2 }
   0x8   : > { %v1423_v0 = vld [vmem:[%s1860_s1] sm:$0xff] (!%p204_p3)   ;;  %v1424_v1 = vld [vmem:[%s1860_s1 + $0x8] sm:$0xff] (!%p204_p3)   ;;  %vm538_vm0 = vcmask (!%p204_p3), 1044480   ;;  %v1425_v2 = vld [vmem:[%s1860_s1 + $0x10] sm:$0xff] (!%p204_p3)   ;;  %p244_p5 = scmp.lt.s32.totalorder (!%p204_p3), %s1470_s16, 1  ;;  %p246_p6 = scmp.lt.s32.totalorder (!%p204_p3), %s1466_s15, 7 }
   0x9   : > { %s1873_s21 = smov (%p35_p4, %s1871_s21), 0  ;;  %207 = sbr.rel (%p204_p3) target bundleno = 303 (0x12f), region = 36 }
   0xa   : > { %1329 = vmatprep.subr.bf16.mxu0 (!%p204_p3), %v1423_v0  ;;  %1371 = vmatprep.subr.bf16.mxu1 (!%p204_p3), %v1423_v0  ;;  %vm273_vm1 = vcmask (!%p204_p3), 130048   ;;  %vm539_vm2 = vcmask (!%p204_p3), 1045504   ;;  %v1484_v3 = vmov (!%p204_p3), 65535   ;;  %v1485_v5 = vmov (!%p204_p3), 0.0   ;;  %v1426_v6 = vld [vmem:[%s1860_s1 + $0x18] sm:$0xff] (!%p204_p3)  }
   0xb   : > { %1330 = vmatpush3.bf16.msra.mxu0 (!%p204_p3), %v1423_v0  ;;  %1376 = vmatpush3.bf16.msra.mxu1 (!%p204_p3), %v1423_v0  ;;  %v540_v4 = vsel (!%p204_p3), %vm538_vm0, 4294967295, %v1484_v3  ;;  %276 = vst.msk [vmem:[#allocation2 + $0x10] sm:$0xff] (!%p204_p3), %vm273_vm1, %v1485_v5  ;;  %274 = vst.msk [vmem:[#allocation2] sm:$0xff] (!%p204_p3), %vm273_vm1, %v1485_v5  ;;  %v1427_v7 = vld [vmem:[%s1860_s1 + $0x20] sm:$0x3f] (!%p204_p3)   ;;  %vm489_vm3 = vcmask (!%p204_p3), 613376  }
   0xc   : > { %1331 = vmatprep.subr.bf16.mxu0 (!%p204_p3), %v1424_v1  ;;  %1372 = vmatprep.subr.bf16.mxu1 (!%p204_p3), %v1424_v1  ;;  %275 = vst.msk [vmem:[#allocation2 + $0x8] sm:$0xff] (!%p204_p3), %vm273_vm1, %v1485_v5  ;;  %277 = vst.msk [vmem:[#allocation2 + $0x18] sm:$0xff] (!%p204_p3), %vm273_vm1, %v1485_v5  ;;  %v541_v8 = vsel (!%p204_p3), %vm539_vm2, %v540_v4, 0  ;;  %v1654_v54 = vld [vmem:[%s1861_s2] ss:$0 sm:$0xff] (!%p204_p3)  ;;  %vm1044_vm4 = vcmask (!%p204_p3), 125952  }
   0xd   : > { %278 = vst.msk [vmem:[#allocation2 + $0x20] sm:$0xff] (!%p204_p3), %vm273_vm1, %v1485_v5  ;;  %279 = vst.msk [vmem:[#allocation2 + $0x28] sm:$0xff] (!%p204_p3), %vm273_vm1, %v1485_v5  ;;  %v543_v9 = vand.u32 (!%p204_p3), %v1427_v7, %v541_v8  ;;  %v1659_v59 = vld [vmem:[%s1862_s3] ss:$0 sm:$0xff] (!%p204_p3) }
   0xe   : > { %280 = vst.msk [vmem:[#allocation2 + $0x30] sm:$0xff] (!%p204_p3), %vm273_vm1, %v1485_v5  ;;  %281 = vst.msk [vmem:[#allocation2 + $0x38] sm:$0xff] (!%p204_p3), %vm273_vm1, %v1485_v5 }
   0xf   : > { %282 = vst.msk [vmem:[#allocation2 + $0x40] sm:$0xff] (!%p204_p3), %vm273_vm1, %v1485_v5  ;;  %283 = vst.msk [vmem:[#allocation2 + $0x48] sm:$0xff] (!%p204_p3), %vm273_vm1, %v1485_v5  ;;  %1332 = vmatpush3.bf16.msra.mxu0 (!%p204_p3), %v1424_v1  ;;  %1377 = vmatpush3.bf16.msra.mxu1 (!%p204_p3), %v1424_v1 }
  0x10   : > { %284 = vst.msk [vmem:[#allocation2 + $0x50] sm:$0xff] %vm273_vm1, %v1485_v5  ;;  %285 = vst.msk [vmem:[#allocation2 + $0x58] sm:$0xff] %vm273_vm1, %v1485_v5  ;;  %s1875_s16 = smov (!%p244_p5, %s1470_s16), 1  ;;  %1333 = vmatprep.subr.bf16.mxu0 %v1425_v2  ;;  %1373 = vmatprep.subr.bf16.mxu1 %v1425_v2  ;;  %s1877_s15 = smov (!%p246_p6, %s1466_s15), 7 }
  0x11   : > { %286 = vst.msk [vmem:[#allocation2 + $0x60] sm:$0xff] %vm273_vm1, %v1485_v5  ;;  %287 = vst.msk [vmem:[#allocation2 + $0x68] sm:$0xff] %vm273_vm1, %v1485_v5  ;;  %s1198_s6 = sshll.u32 %s1875_s16, 8  ;;  %s1197_s7 = sshll.u32 %s1877_s15, 5 }
  0x12   : > { %288 = vst.msk [vmem:[#allocation2 + $0x70] sm:$0xff] %vm273_vm1, %v1485_v5  ;;  %289 = vst.msk [vmem:[#allocation2 + $0x78] sm:$0xff] %vm273_vm1, %v1485_v5  ;;  %s1601_s8 = sadd.s32 %s1198_s6, %s1197_s7  ;;  %v350_v26 = vld [vmem:[#allocation2 + $0x10] sm:$0xff]  ;;  %v348_v28 = vld [vmem:[#allocation2] sm:$0xff] }
  0x13   : > { %290 = vst.msk [vmem:[#allocation2 + $0x80] sm:$0xff] %vm273_vm1, %v1485_v5  ;;  %291 = vst.msk [vmem:[#allocation2 + $0x88] sm:$0xff] %vm273_vm1, %v1485_v5  ;;  %1334 = vmatpush3.bf16.msra.mxu0 %v1425_v2  ;;  %1378 = vmatpush3.bf16.msra.mxu1 %v1425_v2  ;;  %s1199_s9 = sshll.u32 %s1601_s8, 2  ;;  %v351_v32 = vld [vmem:[#allocation2 + $0x18] sm:$0xff]  ;;  %v349_v38 = vld [vmem:[#allocation2 + $0x8] sm:$0xff] }
  0x14   : > { %292 = vst.msk [vmem:[#allocation2 + $0x90] sm:$0xff] %vm273_vm1, %v1485_v5  ;;  %293 = vst.msk [vmem:[#allocation2 + $0x98] sm:$0xff] %vm273_vm1, %v1485_v5  ;;  %1335 = vmatprep.subr.bf16.mxu0 %v1426_v6  ;;  %1374 = vmatprep.subr.bf16.mxu1 %v1426_v6  ;;  %s1609_s12 = scalar_lea.vmem %s1859_s0, %s1199_s9  ;;  %v352_v52 = vld [vmem:[#allocation2 + $0x20] sm:$0xff]  ;;  %v353_v0 = vld [vmem:[#allocation2 + $0x28] sm:$0xff]  ;;  %s1688_s24 = scalar_lea.vmem %s1863_s4, %s1199_s9 }
  0x15   : > { %294 = vst.msk [vmem:[#allocation2 + $0xa0] sm:$0xff] %vm273_vm1, %v1485_v5  ;;  %295 = vst.msk [vmem:[#allocation2 + $0xa8] sm:$0xff] %vm273_vm1, %v1485_v5  ;;  %v1428_v10 = vld [vmem:[%s1609_s12] sm:$0xff]   ;;  %v1430_v12 = vld [vmem:[%s1609_s12 + $0x8] sm:$0xff]  }
  0x16   : > { %296 = vst.msk [vmem:[#allocation2 + $0xb0] sm:$0xff] %vm273_vm1, %v1485_v5  ;;  %297 = vst.msk [vmem:[#allocation2 + $0xb8] sm:$0xff] %vm273_vm1, %v1485_v5  ;;  %v1429_v11 = vld [vmem:[%s1609_s12 + $0x40] sm:$0xff]   ;;  %1339 = vmatprep.mubr.msk.bf16.mxu0 %vm489_vm3, %v1428_v10  ;;  %v1431_v13 = vld [vmem:[%s1609_s12 + $0x48] sm:$0xff]  }
  0x17   : > { %298 = vst.msk [vmem:[#allocation2 + $0xc0] sm:$0xff] %vm273_vm1, %v1485_v5  ;;  %299 = vst.msk [vmem:[#allocation2 + $0xc8] sm:$0xff] %vm273_vm1, %v1485_v5  ;;  %1336 = vmatpush3.bf16.msra.mxu0 %v1426_v6  ;;  %1379 = vmatpush3.bf16.msra.mxu1 %v1426_v6  ;;  %v1432_v14 = vld [vmem:[%s1609_s12 + $0x10] sm:$0xff]   ;;  %v1434_v16 = vld [vmem:[%s1609_s12 + $0x18] sm:$0xff]  }
  0x18   : > { %300 = vst.msk [vmem:[#allocation2 + $0xd0] sm:$0xff] %vm273_vm1, %v1485_v5  ;;  %301 = vst.msk [vmem:[#allocation2 + $0xd8] sm:$0xff] %vm273_vm1, %v1485_v5  ;;  %1337 = vmatprep.subr.bf16.mxu0 %v543_v9  ;;  %1375 = vmatprep.subr.bf16.mxu1 %v543_v9  ;;  %v1433_v15 = vld [vmem:[%s1609_s12 + $0x50] sm:$0xff]   ;;  %v1435_v17 = vld [vmem:[%s1609_s12 + $0x58] sm:$0xff]  }
  0x19   : > { %302 = vst.msk [vmem:[#allocation2 + $0xe0] sm:$0xff] %vm273_vm1, %v1485_v5  ;;  %303 = vst.msk [vmem:[#allocation2 + $0xe8] sm:$0xff] %vm273_vm1, %v1485_v5  ;;  %1355 = vmatprep.mubr.msk.bf16.mxu1 %vm489_vm3, %v1429_v11  ;;  %v1436_v18 = vld [vmem:[%s1609_s12 + $0x20] sm:$0xff]   ;;  %v1438_v20 = vld [vmem:[%s1609_s12 + $0x28] sm:$0xff]  }
  0x1a   : > { %304 = vst.msk [vmem:[#allocation2 + $0xf0] sm:$0xff] %vm273_vm1, %v1485_v5  ;;  %305 = vst.msk [vmem:[#allocation2 + $0xf8] sm:$0xff] %vm273_vm1, %v1485_v5  ;;  %v1437_v19 = vld [vmem:[%s1609_s12 + $0x60] sm:$0xff]   ;;  %v1439_v21 = vld [vmem:[%s1609_s12 + $0x68] sm:$0xff]  }
  0x1b   : > { %1338 = vmatpush3.bf16.msra.mxu0 %v543_v9  ;;  %1380 = vmatpush3.bf16.msra.mxu1 %v543_v9  ;;  %v1440_v22 = vld [vmem:[%s1609_s12 + $0x30] sm:$0xff]   ;;  %v1442_v24 = vld [vmem:[%s1609_s12 + $0x38] sm:$0xff]   ;;  %v364_v29 = vld [vmem:[#allocation2 + $0x80] sm:$0xff] }
  0x1c   : > { %v1441_v23 = vld [vmem:[%s1609_s12 + $0x70] sm:$0xff]   ;;  %v1443_v25 = vld [vmem:[%s1609_s12 + $0x78] sm:$0xff]   ;;  %v365_v39 = vld [vmem:[#allocation2 + $0x88] sm:$0xff] }
  0x1d   : > { %v366_v27 = vld [vmem:[#allocation2 + $0x90] sm:$0xff]  ;;  %v367_v33 = vld [vmem:[#allocation2 + $0x98] sm:$0xff]  ;;  %v368_v53 = vld [vmem:[#allocation2 + $0xa0] sm:$0xff] }
  0x1e   : > { %1340 = vmatmul.mubr.msk.bf16.vlgmr.msra.gmra.mrb[0].mxu0 %vm489_vm3, %v1430_v12  ;;  %1356 = vmatmul.mubr.msk.bf16.vlgmr.msra.gmra.mrb[0].mxu1 %vm489_vm3, %v1431_v13  ;;  %v354_v50 = vld [vmem:[#allocation2 + $0x30] sm:$0xff]  ;;  %v355_v57 = vld [vmem:[#allocation2 + $0x38] sm:$0xff]  ;;  %v369_v1 = vld [vmem:[#allocation2 + $0xa8] sm:$0xff] }
  0x1f   : > { %1343 = vmatprep.mubr.msk.bf16.mxu0 %vm489_vm3, %v1432_v14  ;;  %1359 = vmatprep.mubr.msk.bf16.mxu1 %vm489_vm3, %v1433_v15  ;;  %v370_v51 = vld [vmem:[#allocation2 + $0xb0] sm:$0xff]  ;;  %v371_v58 = vld [vmem:[#allocation2 + $0xb8] sm:$0xff] }
  0x26   : > { %1344 = vmatmul.mubr.msk.bf16.gmra.mrb[4].mxu0 %vm489_vm3, %v1434_v16  ;;  %1360 = vmatmul.mubr.msk.bf16.gmra.mrb[4].mxu1 %vm489_vm3, %v1435_v17 }
  0x27   : > { %1347 = vmatprep.mubr.msk.bf16.mxu0 %vm489_vm3, %v1436_v18  ;;  %1363 = vmatprep.mubr.msk.bf16.mxu1 %vm489_vm3, %v1437_v19 }
  0x2e   : > { %1348 = vmatmul.mubr.msk.bf16.gmra.mrb[8].mxu0 %vm489_vm3, %v1438_v20  ;;  %1364 = vmatmul.mubr.msk.bf16.gmra.mrb[8].mxu1 %vm489_vm3, %v1439_v21 }
  0x2f   : > { %1351 = vmatprep.mubr.msk.bf16.mxu0 %vm489_vm3, %v1440_v22  ;;  %1367 = vmatprep.mubr.msk.bf16.mxu1 %vm489_vm3, %v1441_v23 }
  0x36   : > { %1352 = vmatmul.mubr.msk.bf16.gmra.mrb[12].mxu0 %vm489_vm3, %v1442_v24  ;;  %1368 = vmatmul.mubr.msk.bf16.gmra.mrb[12].mxu1 %vm489_vm3, %v1443_v25 }
  0xf1   : > { %v1341_v30 = vpop.f32.mrb[0].mxu0  ;;  %v1357_v31 = vpop.f32.mrb[0].mxu1 }
  0xf2   : > { %v708_v34 = vadd.f32 %v1341_v30, %v350_v26  ;;  %v724_v35 = vadd.f32 %v1357_v31, %v366_v27  ;;  %v579_v36 = vpop.f32.mrb[1].mxu0  ;;  %v643_v37 = vpop.f32.mrb[1].mxu1 }
  0xf3   : > { %v706_v40 = vadd.f32 %v579_v36, %v348_v28  ;;  %v722_v41 = vadd.f32 %v643_v37, %v364_v29  ;;  %v1342_v42 = vpop.f32.mrb[2].mxu0  ;;  %v1358_v43 = vpop.f32.mrb[2].mxu1 }
  0xf4   : > { %741 = vst.msk [vmem:[#allocation2 + $0x10] sm:$0xff] %vm273_vm1, %v708_v34  ;;  %757 = vst.msk [vmem:[#allocation2 + $0x90] sm:$0xff] %vm273_vm1, %v724_v35  ;;  %v709_v44 = vadd.f32 %v1342_v42, %v351_v32  ;;  %v725_v45 = vadd.f32 %v1358_v43, %v367_v33  ;;  %v582_v46 = vpop.f32.mrb[3].mxu0  ;;  %v646_v47 = vpop.f32.mrb[3].mxu1 }
  0xf5   : > { %739 = vst.msk [vmem:[#allocation2] sm:$0xff] %vm273_vm1, %v706_v40  ;;  %755 = vst.msk [vmem:[#allocation2 + $0x80] sm:$0xff] %vm273_vm1, %v722_v41  ;;  %v707_v48 = vadd.f32 %v582_v46, %v349_v38  ;;  %v723_v49 = vadd.f32 %v646_v47, %v365_v39 }
  0xf6   : > { %742 = vst.msk [vmem:[#allocation2 + $0x18] sm:$0xff] %vm273_vm1, %v709_v44  ;;  %758 = vst.msk [vmem:[#allocation2 + $0x98] sm:$0xff] %vm273_vm1, %v725_v45 }
  0xf7   : > { %740 = vst.msk [vmem:[#allocation2 + $0x8] sm:$0xff] %vm273_vm1, %v707_v48  ;;  %756 = vst.msk [vmem:[#allocation2 + $0x88] sm:$0xff] %vm273_vm1, %v723_v49 }
  0xf9   : > { %v1345_v55 = vpop.f32.mrb[4].mxu0  ;;  %v1361_v56 = vpop.f32.mrb[4].mxu1 }
  0xfa   : > { %v712_v60 = vadd.f32 %v1345_v55, %v354_v50  ;;  %v728_v61 = vadd.f32 %v1361_v56, %v370_v51  ;;  %v595_v62 = vpop.f32.mrb[5].mxu0  ;;  %v659_v63 = vpop.f32.mrb[5].mxu1 }
  0xfb   : > { %v776_v2 = vld [vmem:[#allocation2 + $0x10] sm:$0xff]  ;;  %v710_v4 = vadd.f32 %v595_v62, %v352_v52  ;;  %v726_v5 = vadd.f32 %v659_v63, %v368_v53  ;;  %v1346_v6 = vpop.f32.mrb[6].mxu0  ;;  %v1362_v7 = vpop.f32.mrb[6].mxu1 }
  0xfc   : > { %v792_v3 = vld [vmem:[#allocation2 + $0x90] sm:$0xff]  ;;  %v815_v8 = vmul.f32 %v1654_v54, %v776_v2  ;;  %v774_v10 = vld [vmem:[#allocation2] sm:$0xff]  ;;  %745 = vst.msk [vmem:[#allocation2 + $0x30] sm:$0xff] %vm273_vm1, %v712_v60  ;;  %761 = vst.msk [vmem:[#allocation2 + $0xb0] sm:$0xff] %vm273_vm1, %v728_v61  ;;  %v713_v12 = vadd.f32 %v1346_v6, %v355_v57  ;;  %v729_v13 = vadd.f32 %v1362_v7, %v371_v58  ;;  %v598_v14 = vpop.f32.mrb[7].mxu0  ;;  %v662_v15 = vpop.f32.mrb[7].mxu1 }
  0xfd   : > { %v831_v9 = vmul.f32 %v1654_v54, %v792_v3  ;;  %v790_v11 = vld [vmem:[#allocation2 + $0x80] sm:$0xff]  ;;  %v813_v16 = vmul.f32 %v1654_v54, %v774_v10  ;;  %v777_v18 = vld [vmem:[#allocation2 + $0x18] sm:$0xff]  ;;  %743 = vst.msk [vmem:[#allocation2 + $0x20] sm:$0xff] %vm273_vm1, %v710_v4  ;;  %759 = vst.msk [vmem:[#allocation2 + $0xa0] sm:$0xff] %vm273_vm1, %v726_v5  ;;  %v711_v20 = vadd.f32 %v598_v14, %v353_v0 }
  0xfe   : > { %v829_v17 = vmul.f32 %v1654_v54, %v790_v11  ;;  %v793_v19 = vld [vmem:[#allocation2 + $0x98] sm:$0xff]  ;;  %v727_v21 = vadd.f32 %v662_v15, %v369_v1  ;;  %v854_v22 = vadd.f32 %v1659_v59, %v815_v8  ;;  %v816_v24 = vmul.f32 %v1654_v54, %v777_v18  ;;  %v775_v26 = vld [vmem:[#allocation2 + $0x8] sm:$0xff]  ;;  %746 = vst.msk [vmem:[#allocation2 + $0x38] sm:$0xff] %vm273_vm1, %v713_v12  ;;  %v358_v18 = vld [vmem:[#allocation2 + $0x50] sm:$0xff] }
  0xff   : > { %v870_v23 = vadd.f32 %v1659_v59, %v831_v9  ;;  %v832_v25 = vmul.f32 %v1654_v54, %v793_v19  ;;  %v791_v27 = vld [vmem:[#allocation2 + $0x88] sm:$0xff]  ;;  %762 = vst.msk [vmem:[#allocation2 + $0xb8] sm:$0xff] %vm273_vm1, %v729_v13  ;;  %v852_v28 = vadd.f32 %v1659_v59, %v813_v16  ;;  %v814_v30 = vmul.f32 %v1654_v54, %v775_v26 }
 0x100   : > { %v868_v29 = vadd.f32 %v1659_v59, %v829_v17  ;;  %v830_v31 = vmul.f32 %v1654_v54, %v791_v27  ;;  %744 = vst.msk [vmem:[#allocation2 + $0x28] sm:$0xff] %vm273_vm1, %v711_v20  ;;  %760 = vst.msk [vmem:[#allocation2 + $0xa8] sm:$0xff] %vm273_vm1, %v727_v21  ;;  %v886_v32 = vmax.f32 %v854_v22, 0.0  ;;  %v855_v34 = vadd.f32 %v1659_v59, %v816_v24  ;;  %v356_v24 = vld [vmem:[#allocation2 + $0x40] sm:$0xff] }
 0x101   : > { %v902_v33 = vmax.f32 %v870_v23, 0.0  ;;  %v871_v35 = vadd.f32 %v1659_v59, %v832_v25  ;;  %v884_v36 = vmax.f32 %v852_v28, 0.0  ;;  %v853_v38 = vadd.f32 %v1659_v59, %v814_v30  ;;  %v1692_v40 = vpop.f32.mrb[8].mxu0  ;;  %v1694_v41 = vpop.f32.mrb[8].mxu1  ;;  %v374_v23 = vld [vmem:[#allocation2 + $0xd0] sm:$0xff]  ;;  %v372_v25 = vld [vmem:[#allocation2 + $0xc0] sm:$0xff] }
 0x102   : > { %v900_v37 = vmax.f32 %v868_v29, 0.0  ;;  %v869_v39 = vadd.f32 %v1659_v59, %v830_v31  ;;  %v1278_v42 = vpack.c.bf16 %v886_v32, %v886_v32  ;;  %v887_v44 = vmax.f32 %v855_v34, 0.0  ;;  %v1696_v46 = vpop.f32.mrb[9].mxu0  ;;  %v1698_v47 = vpop.f32.mrb[9].mxu1  ;;  %v359_v30 = vld [vmem:[#allocation2 + $0x58] sm:$0xff] }
 0x103   : > { %v1294_v43 = vpack.c.bf16 %v902_v33, %v902_v33  ;;  %v903_v45 = vmax.f32 %v871_v35, 0.0  ;;  %v1276_v48 = vpack.c.bf16 %v884_v36, %v884_v36  ;;  %v885_v50 = vmax.f32 %v853_v38, 0.0  ;;  %v780_v52 = vld [vmem:[#allocation2 + $0x30] sm:$0xff]  ;;  %v1700_v55 = vpop.f32.mrb[10].mxu0  ;;  %v1702_v56 = vpop.f32.mrb[10].mxu1  ;;  %v375_v31 = vld [vmem:[#allocation2 + $0xd8] sm:$0xff] }
 0x104   : > { %v1292_v49 = vpack.c.bf16 %v900_v37, %v900_v37  ;;  %v901_v51 = vmax.f32 %v869_v39, 0.0  ;;  %v796_v53 = vld [vmem:[#allocation2 + $0xb0] sm:$0xff]  ;;  %1047 = vst.msk [vmem:[%s1688_s24 + $0x8] sm:$0xf] %vm1044_vm4, %v1278_v42  ;;  %v1279_v57 = vpack.c.bf16 %v887_v44, %v887_v44  ;;  %v819_v60 = vmul.f32 %v1654_v54, %v780_v52  ;;  %v778_v62 = vld [vmem:[#allocation2 + $0x20] sm:$0xff]  ;;  %v1710_v0 = vpop.f32.mrb[11].mxu0 }
 0x105   : > { %1063 = vst.msk [vmem:[%s1688_s24 + $0x48] sm:$0xf] %vm1044_vm4, %v1294_v43  ;;  %v1295_v58 = vpack.c.bf16 %v903_v45, %v903_v45  ;;  %v835_v61 = vmul.f32 %v1654_v54, %v796_v53  ;;  %v794_v63 = vld [vmem:[#allocation2 + $0xa0] sm:$0xff]  ;;  %v1712_v1 = vpop.f32.mrb[11].mxu1  ;;  %1045 = vst.msk [vmem:[%s1688_s24] sm:$0xf] %vm1044_vm4, %v1276_v48  ;;  %v1277_v2 = vpack.c.bf16 %v885_v50, %v885_v50 }
 0x106   : > { %1061 = vst.msk [vmem:[%s1688_s24 + $0x40] sm:$0xf] %vm1044_vm4, %v1292_v49  ;;  %v1293_v3 = vpack.c.bf16 %v901_v51, %v901_v51  ;;  %v817_v4 = vmul.f32 %v1654_v54, %v778_v62  ;;  %v833_v5 = vmul.f32 %v1654_v54, %v794_v63  ;;  %v781_v6 = vld [vmem:[#allocation2 + $0x38] sm:$0xff]  ;;  %1048 = vst.msk [vmem:[%s1688_s24 + $0xc] sm:$0xf] %vm1044_vm4, %v1279_v57  ;;  %v357_v38 = vld [vmem:[#allocation2 + $0x48] sm:$0xff] }
 0x107   : > { %v797_v7 = vld [vmem:[#allocation2 + $0xb8] sm:$0xff]  ;;  %1064 = vst.msk [vmem:[%s1688_s24 + $0x4c] sm:$0xf] %vm1044_vm4, %v1295_v58  ;;  %v858_v8 = vadd.f32 %v1659_v59, %v819_v60  ;;  %v874_v9 = vadd.f32 %v1659_v59, %v835_v61  ;;  %v820_v10 = vmul.f32 %v1654_v54, %v781_v6  ;;  %v779_v12 = vld [vmem:[#allocation2 + $0x28] sm:$0xff]  ;;  %1046 = vst.msk [vmem:[%s1688_s24 + $0x4] sm:$0xf] %vm1044_vm4, %v1277_v2 }
 0x108   : > { %v836_v11 = vmul.f32 %v1654_v54, %v797_v7  ;;  %v795_v13 = vld [vmem:[#allocation2 + $0xa8] sm:$0xff]  ;;  %1062 = vst.msk [vmem:[%s1688_s24 + $0x44] sm:$0xf] %vm1044_vm4, %v1293_v3  ;;  %v856_v14 = vadd.f32 %v1659_v59, %v817_v4  ;;  %v872_v15 = vadd.f32 %v1659_v59, %v833_v5  ;;  %v818_v16 = vmul.f32 %v1654_v54, %v779_v12  ;;  %v362_v50 = vld [vmem:[#allocation2 + $0x70] sm:$0xff]  ;;  %v360_v62 = vld [vmem:[#allocation2 + $0x60] sm:$0xff] }
 0x109   : > { %v834_v17 = vmul.f32 %v1654_v54, %v795_v13  ;;  %v890_v19 = vmax.f32 %v858_v8, 0.0  ;;  %v906_v20 = vmax.f32 %v874_v9, 0.0  ;;  %v859_v21 = vadd.f32 %v1659_v59, %v820_v10  ;;  %v1353_v32 = vpop.f32.mrb[12].mxu0  ;;  %v1369_v33 = vpop.f32.mrb[12].mxu1  ;;  %v373_v39 = vld [vmem:[#allocation2 + $0xc8] sm:$0xff]  ;;  %v378_v51 = vld [vmem:[#allocation2 + $0xf0] sm:$0xff] }
 0x10a   : > { %v875_v22 = vadd.f32 %v1659_v59, %v836_v11  ;;  %v888_v26 = vmax.f32 %v856_v14, 0.0  ;;  %v904_v27 = vmax.f32 %v872_v15, 0.0  ;;  %v857_v28 = vadd.f32 %v1659_v59, %v818_v16  ;;  %v627_v42 = vpop.f32.mrb[13].mxu0  ;;  %v691_v43 = vpop.f32.mrb[13].mxu1  ;;  %v376_v63 = vld [vmem:[#allocation2 + $0xe0] sm:$0xff]  ;;  %v363_v2 = vld [vmem:[#allocation2 + $0x78] sm:$0xff] }
 0x10b   : > { %v873_v29 = vadd.f32 %v1659_v59, %v834_v17  ;;  %v1282_v34 = vpack.c.bf16 %v890_v19, %v890_v19  ;;  %v1298_v35 = vpack.c.bf16 %v906_v20, %v906_v20  ;;  %v891_v36 = vmax.f32 %v859_v21, 0.0  ;;  %v1354_v52 = vpop.f32.mrb[14].mxu0  ;;  %v1370_v53 = vpop.f32.mrb[14].mxu1  ;;  %v379_v8 = vld [vmem:[#allocation2 + $0xf8] sm:$0xff]  ;;  %v377_v9 = vld [vmem:[#allocation2 + $0xe8] sm:$0xff] }
 0x10c   : > { %v907_v37 = vmax.f32 %v875_v22, 0.0  ;;  %v1280_v44 = vpack.c.bf16 %v888_v26, %v888_v26  ;;  %v1296_v45 = vpack.c.bf16 %v904_v27, %v904_v27  ;;  %v889_v48 = vmax.f32 %v857_v28, 0.0  ;;  %v630_v3 = vpop.f32.mrb[15].mxu0  ;;  %v694_v4 = vpop.f32.mrb[15].mxu1 }
 0x10d   : > { %v905_v49 = vmax.f32 %v873_v29, 0.0  ;;  %1051 = vst.msk [vmem:[%s1688_s24 + $0x18] sm:$0xf] %vm1044_vm4, %v1282_v34  ;;  %1067 = vst.msk [vmem:[%s1688_s24 + $0x58] sm:$0xf] %vm1044_vm4, %v1298_v35  ;;  %v1283_v57 = vpack.c.bf16 %v891_v36, %v891_v36  ;;  %v716_v60 = vadd.f32 %v1692_v40, %v358_v18  ;;  %v732_v61 = vadd.f32 %v1694_v41, %v374_v23  ;;  %v361_v41 = vld [vmem:[#allocation2 + $0x68] sm:$0xff] }
 0x10e   : > { %v1299_v58 = vpack.c.bf16 %v907_v37, %v907_v37  ;;  %1049 = vst.msk [vmem:[%s1688_s24 + $0x10] sm:$0xf] %vm1044_vm4, %v1280_v44  ;;  %1065 = vst.msk [vmem:[%s1688_s24 + $0x50] sm:$0xf] %vm1044_vm4, %v1296_v45  ;;  %v1281_v5 = vpack.c.bf16 %v889_v48, %v889_v48  ;;  %v714_v7 = vadd.f32 %v1696_v46, %v356_v24 }
 0x10f   : > { %v1297_v6 = vpack.c.bf16 %v905_v49, %v905_v49  ;;  %v730_v40 = vadd.f32 %v1698_v47, %v372_v25  ;;  %1052 = vst.msk [vmem:[%s1688_s24 + $0x1c] sm:$0xf] %vm1044_vm4, %v1283_v57  ;;  %v717_v10 = vadd.f32 %v1700_v55, %v359_v30  ;;  %v733_v11 = vadd.f32 %v1702_v56, %v375_v31 }
 0x110   : > { %1068 = vst.msk [vmem:[%s1688_s24 + $0x5c] sm:$0xf] %vm1044_vm4, %v1299_v58  ;;  %v715_v12 = vadd.f32 %v1710_v0, %v357_v38  ;;  %v731_v46 = vadd.f32 %v1712_v1, %v373_v39  ;;  %1050 = vst.msk [vmem:[%s1688_s24 + $0x14] sm:$0xf] %vm1044_vm4, %v1281_v5  ;;  %v720_v47 = vadd.f32 %v1353_v32, %v362_v50 }
 0x111   : > { %749 = vst.msk [vmem:[#allocation2 + $0x50] sm:$0xff] %vm273_vm1, %v716_v60  ;;  %765 = vst.msk [vmem:[#allocation2 + $0xd0] sm:$0xff] %vm273_vm1, %v732_v61  ;;  %v736_v13 = vadd.f32 %v1369_v33, %v378_v51  ;;  %v718_v14 = vadd.f32 %v627_v42, %v360_v62  ;;  %v734_v15 = vadd.f32 %v691_v43, %v376_v63 }
 0x112   : > { %1066 = vst.msk [vmem:[%s1688_s24 + $0x54] sm:$0xf] %vm1044_vm4, %v1297_v6  ;;  %v721_v55 = vadd.f32 %v1354_v52, %v363_v2  ;;  %v737_v56 = vadd.f32 %v1370_v53, %v379_v8  ;;  %v719_v0 = vadd.f32 %v630_v3, %v361_v41  ;;  %v735_v1 = vadd.f32 %v694_v4, %v377_v9 }
 0x113   : > { %747 = vst.msk [vmem:[#allocation2 + $0x40] sm:$0xff] %vm273_vm1, %v714_v7  ;;  %763 = vst.msk [vmem:[#allocation2 + $0xc0] sm:$0xff] %vm273_vm1, %v730_v40 }
 0x114   : > { %750 = vst.msk [vmem:[#allocation2 + $0x58] sm:$0xff] %vm273_vm1, %v717_v10  ;;  %766 = vst.msk [vmem:[#allocation2 + $0xd8] sm:$0xff] %vm273_vm1, %v733_v11 }
 0x115   : > { %748 = vst.msk [vmem:[#allocation2 + $0x48] sm:$0xff] %vm273_vm1, %v715_v12  ;;  %764 = vst.msk [vmem:[#allocation2 + $0xc8] sm:$0xff] %vm273_vm1, %v731_v46 }
 0x116   : > { %753 = vst.msk [vmem:[#allocation2 + $0x70] sm:$0xff] %vm273_vm1, %v720_v47  ;;  %769 = vst.msk [vmem:[#allocation2 + $0xf0] sm:$0xff] %vm273_vm1, %v736_v13 }
 0x117   : > { %751 = vst.msk [vmem:[#allocation2 + $0x60] sm:$0xff] %vm273_vm1, %v718_v14  ;;  %767 = vst.msk [vmem:[#allocation2 + $0xe0] sm:$0xff] %vm273_vm1, %v734_v15 }
 0x118   : > { %754 = vst.msk [vmem:[#allocation2 + $0x78] sm:$0xff] %vm273_vm1, %v721_v55  ;;  %770 = vst.msk [vmem:[#allocation2 + $0xf8] sm:$0xff] %vm273_vm1, %v737_v56  ;;  %v784_v16 = vld [vmem:[#allocation2 + $0x50] sm:$0xff] }
 0x119   : > { %752 = vst.msk [vmem:[#allocation2 + $0x68] sm:$0xff] %vm273_vm1, %v719_v0  ;;  %768 = vst.msk [vmem:[#allocation2 + $0xe8] sm:$0xff] %vm273_vm1, %v735_v1  ;;  %v800_v17 = vld [vmem:[#allocation2 + $0xd0] sm:$0xff]  ;;  %v823_v18 = vmul.f32 %v1654_v54, %v784_v16 }
 0x11a   : > { %v839_v19 = vmul.f32 %v1654_v54, %v800_v17  ;;  %v782_v20 = vld [vmem:[#allocation2 + $0x40] sm:$0xff] }
 0x11b   : > { %v798_v21 = vld [vmem:[#allocation2 + $0xc0] sm:$0xff]  ;;  %v821_v22 = vmul.f32 %v1654_v54, %v782_v20  ;;  %v785_v24 = vld [vmem:[#allocation2 + $0x58] sm:$0xff]  ;;  %v862_v27 = vadd.f32 %v1659_v59, %v823_v18 }
 0x11c   : > { %v837_v23 = vmul.f32 %v1654_v54, %v798_v21  ;;  %v801_v25 = vld [vmem:[#allocation2 + $0xd8] sm:$0xff]  ;;  %v783_v26 = vld [vmem:[#allocation2 + $0x48] sm:$0xff]  ;;  %v878_v28 = vadd.f32 %v1659_v59, %v839_v19  ;;  %v824_v29 = vmul.f32 %v1654_v54, %v785_v24 }
 0x11d   : > { %v840_v30 = vmul.f32 %v1654_v54, %v801_v25  ;;  %v799_v31 = vld [vmem:[#allocation2 + $0xc8] sm:$0xff]  ;;  %v860_v32 = vadd.f32 %v1659_v59, %v821_v22  ;;  %v822_v34 = vmul.f32 %v1654_v54, %v783_v26  ;;  %v894_v36 = vmax.f32 %v862_v27, 0.0  ;;  %v788_v48 = vld [vmem:[#allocation2 + $0x70] sm:$0xff] }
 0x11e   : > { %v876_v33 = vadd.f32 %v1659_v59, %v837_v23  ;;  %v838_v35 = vmul.f32 %v1654_v54, %v799_v31  ;;  %v910_v37 = vmax.f32 %v878_v28, 0.0  ;;  %v863_v38 = vadd.f32 %v1659_v59, %v824_v29  ;;  %v804_v49 = vld [vmem:[#allocation2 + $0xf0] sm:$0xff]  ;;  %v786_v57 = vld [vmem:[#allocation2 + $0x60] sm:$0xff] }
 0x11f   : > { %v879_v39 = vadd.f32 %v1659_v59, %v840_v30  ;;  %v892_v42 = vmax.f32 %v860_v32, 0.0  ;;  %v861_v44 = vadd.f32 %v1659_v59, %v822_v34  ;;  %v1286_v50 = vpack.c.bf16 %v894_v36, %v894_v36  ;;  %v802_v58 = vld [vmem:[#allocation2 + $0xe0] sm:$0xff]  ;;  %v789_v2 = vld [vmem:[#allocation2 + $0x78] sm:$0xff] }
 0x120   : > { %v908_v43 = vmax.f32 %v876_v33, 0.0  ;;  %v877_v45 = vadd.f32 %v1659_v59, %v838_v35  ;;  %v1302_v51 = vpack.c.bf16 %v910_v37, %v910_v37  ;;  %v895_v52 = vmax.f32 %v863_v38, 0.0  ;;  %v805_v3 = vld [vmem:[#allocation2 + $0xf8] sm:$0xff]  ;;  %v787_v40 = vld [vmem:[#allocation2 + $0x68] sm:$0xff] }
 0x121   : > { %v911_v53 = vmax.f32 %v879_v39, 0.0  ;;  %v1284_v60 = vpack.c.bf16 %v892_v42, %v892_v42  ;;  %v893_v62 = vmax.f32 %v861_v44, 0.0  ;;  %1055 = vst.msk [vmem:[%s1688_s24 + $0x28] sm:$0xf] %vm1044_vm4, %v1286_v50  ;;  %v827_v6 = vmul.f32 %v1654_v54, %v788_v48  ;;  %v803_v8 = vld [vmem:[#allocation2 + $0xe8] sm:$0xff] }
 0x122   : > { %v1300_v61 = vpack.c.bf16 %v908_v43, %v908_v43  ;;  %v909_v63 = vmax.f32 %v877_v45, 0.0  ;;  %1071 = vst.msk [vmem:[%s1688_s24 + $0x68] sm:$0xf] %vm1044_vm4, %v1302_v51  ;;  %v1287_v4 = vpack.c.bf16 %v895_v52, %v895_v52  ;;  %v843_v7 = vmul.f32 %v1654_v54, %v804_v49 }
 0x123   : > { %v1303_v5 = vpack.c.bf16 %v911_v53, %v911_v53  ;;  %1053 = vst.msk [vmem:[%s1688_s24 + $0x20] sm:$0xf] %vm1044_vm4, %v1284_v60  ;;  %v1285_v41 = vpack.c.bf16 %v893_v62, %v893_v62  ;;  %v825_v10 = vmul.f32 %v1654_v54, %v786_v57  ;;  %v841_v11 = vmul.f32 %v1654_v54, %v802_v58 }
 0x124   : > { %1069 = vst.msk [vmem:[%s1688_s24 + $0x60] sm:$0xf] %vm1044_vm4, %v1300_v61  ;;  %v1301_v9 = vpack.c.bf16 %v909_v63, %v909_v63  ;;  %1056 = vst.msk [vmem:[%s1688_s24 + $0x2c] sm:$0xf] %vm1044_vm4, %v1287_v4  ;;  %v866_v12 = vadd.f32 %v1659_v59, %v827_v6  ;;  %v882_v46 = vadd.f32 %v1659_v59, %v843_v7 }
 0x125   : > { %1072 = vst.msk [vmem:[%s1688_s24 + $0x6c] sm:$0xf] %vm1044_vm4, %v1303_v5  ;;  %v828_v47 = vmul.f32 %v1654_v54, %v789_v2  ;;  %v844_v13 = vmul.f32 %v1654_v54, %v805_v3  ;;  %1054 = vst.msk [vmem:[%s1688_s24 + $0x24] sm:$0xf] %vm1044_vm4, %v1285_v41  ;;  %v864_v14 = vadd.f32 %v1659_v59, %v825_v10 }
 0x126   : > { %1070 = vst.msk [vmem:[%s1688_s24 + $0x64] sm:$0xf] %vm1044_vm4, %v1301_v9  ;;  %v880_v15 = vadd.f32 %v1659_v59, %v841_v11  ;;  %v826_v55 = vmul.f32 %v1654_v54, %v787_v40  ;;  %v842_v56 = vmul.f32 %v1654_v54, %v803_v8  ;;  %v898_v0 = vmax.f32 %v866_v12, 0.0 }
 0x127   : > { %v914_v1 = vmax.f32 %v882_v46, 0.0  ;;  %v867_v16 = vadd.f32 %v1659_v59, %v828_v47  ;;  %v883_v17 = vadd.f32 %v1659_v59, %v844_v13  ;;  %v896_v18 = vmax.f32 %v864_v14, 0.0 }
 0x128   : > { %v912_v19 = vmax.f32 %v880_v15, 0.0  ;;  %v865_v20 = vadd.f32 %v1659_v59, %v826_v55  ;;  %v881_v21 = vadd.f32 %v1659_v59, %v842_v56  ;;  %v1290_v22 = vpack.c.bf16 %v898_v0, %v898_v0 }
 0x129   : > { %v1306_v23 = vpack.c.bf16 %v914_v1, %v914_v1  ;;  %v899_v54 = vmax.f32 %v867_v16, 0.0  ;;  %v915_v24 = vmax.f32 %v883_v17, 0.0  ;;  %v1288_v25 = vpack.c.bf16 %v896_v18, %v896_v18 }
 0x12a   : > { %v1304_v26 = vpack.c.bf16 %v912_v19, %v912_v19  ;;  %v897_v27 = vmax.f32 %v865_v20, 0.0  ;;  %v913_v28 = vmax.f32 %v881_v21, 0.0  ;;  %1059 = vst.msk [vmem:[%s1688_s24 + $0x38] sm:$0xf] %vm1044_vm4, %v1290_v22 }
 0x12b   : > { %1075 = vst.msk [vmem:[%s1688_s24 + $0x78] sm:$0xf] %vm1044_vm4, %v1306_v23  ;;  %v1291_v29 = vpack.c.bf16 %v899_v54, %v899_v54  ;;  %v1307_v30 = vpack.c.bf16 %v915_v24, %v915_v24  ;;  %1057 = vst.msk [vmem:[%s1688_s24 + $0x30] sm:$0xf] %vm1044_vm4, %v1288_v25 }
 0x12c   : > { %1073 = vst.msk [vmem:[%s1688_s24 + $0x70] sm:$0xf] %vm1044_vm4, %v1304_v26  ;;  %v1289_v59 = vpack.c.bf16 %v897_v27, %v897_v27  ;;  %v1305_v31 = vpack.c.bf16 %v913_v28, %v913_v28 }
 0x12d   : > { %1060 = vst.msk [vmem:[%s1688_s24 + $0x3c] sm:$0xf] %vm1044_vm4, %v1291_v29  ;;  %1076 = vst.msk [vmem:[%s1688_s24 + $0x7c] sm:$0xf] %vm1044_vm4, %v1307_v30 }
 0x12e   : > { %1058 = vst.msk [vmem:[%s1688_s24 + $0x34] sm:$0xf] %vm1044_vm4, %v1289_v59  ;;  %1074 = vst.msk [vmem:[%s1688_s24 + $0x74] sm:$0xf] %vm1044_vm4, %v1305_v31 }
 0x12f PF: > { %s14_s19 = sadd.s32 1, %s1482_s19   ;;  %s1864_s15 = smov %s1474_s17 }
 0x130   : > { %p11_p7 = scmp.ge.s32.totalorder %s14_s19, 18   ;;  %s1865_s16 = smov %s1478_s18 }
 0x131   : > { %s1866_s17 = smov %s1869_s20  ;;  %s1867_s18 = smov %s1873_s21 }
 0x132   :  { %13 = sbr.rel (!%p11_p7) target bundleno = 3 (0x3), region = 77 }

// kernel: physnet_forward.16
= control target key start
LH: loop header
LB: loop body
LE: loop exit
PB: predicated region body
PF: predicated region fallthrough
CT: control target
= control target key end

     0   :  { %s295_s6 = smov 0   ;;  %s324_s0 = inlined_call_operand.vmem [shape: bf16[16,8,2,8,32], index: 0, kind: input, shape index: {}]   ;;  %s325_s1 = inlined_call_operand.vmem [shape: bf16[16,8,8,16], index: 1, kind: output, shape index: {}]  }
   0x1 LB: > { %s246_s7 = sadd.s32 4294967295, %s282_s6   ;;  %p250_p0 = scmp.ge.s32.totalorder %s282_s6, 1  ;;  %s282_s6 = sphi %s295_s6, %s11_s6  }
   0x2   : > { %p87_p1 = scmp.lt.s32.totalorder %s282_s6, 17 }
   0x4   : > { %p88_p2 = pnand %p250_p0, %p87_p1 }
   0x5   : > { %p107_p3 = scmp.lt.s32.totalorder (!%p88_p2), %s246_s7, 15  ;;  %s284_s12 = smov (!%p88_p2), 112   ;;  %vm182_vm0 = vcmask (!%p88_p2), 125952  }
   0x6   : > { %91 = sbr.rel (%p88_p2) target bundleno = 150 (0x96), region = 24 }
   0xd   : > { %s327_s7 = smov (!%p107_p3, %s246_s7), 15 }
   0xe   : > { %s265_s8 = sshll.u32 %s327_s7, 6  ;;  %s266_s13 = sshll.u32 %s327_s7, 5 }
   0xf   : > { %s111_s11 = scalar_lea.vmem %s324_s0, %s265_s8  ;;  %s116_s16 = scalar_lea.vmem %s325_s1, %s266_s13 }
  0x10   : > { %v119_v0 = vld [vmem:[%s111_s11 + $0x10] sm:$0xf]  ;;  %v257_v1 = vld [vmem:[%s111_s11 + $0x14] sm:$0xf]  ;;  %v117_v2 = vld [vmem:[%s111_s11] sm:$0xf] }
  0x11   : > { %v136_v3 = vmax.bf16 %v257_v1, %v119_v0  ;;  %v255_v4 = vld [vmem:[%s111_s11 + $0x4] sm:$0xf]  ;;  %v120_v5 = vld [vmem:[%s111_s11 + $0x18] sm:$0xf]  ;;  %v258_v6 = vld [vmem:[%s111_s11 + $0x1c] sm:$0xf] }
  0x12   : > { %v134_v7 = vmax.bf16 %v255_v4, %v117_v2  ;;  %v118_v8 = vld [vmem:[%s111_s11 + $0x8] sm:$0xf]  ;;  %v256_v9 = vld [vmem:[%s111_s11 + $0xc] sm:$0xf]  ;;  %v137_v10 = vmax.bf16 %v258_v6, %v120_v5  ;;  %v121_v14 = vld [vmem:[%s111_s11 + $0x20] sm:$0xf] }
  0x13   : > { %154 = vrot.lane.b32.xlu1 %v136_v3, %s284_s12  ;;  %v135_v11 = vmax.bf16 %v256_v9, %v118_v8  ;;  %v122_v12 = vld [vmem:[%s111_s11 + $0x28] sm:$0xf]  ;;  %v260_v13 = vld [vmem:[%s111_s11 + $0x2c] sm:$0xf]  ;;  %v259_v15 = vld [vmem:[%s111_s11 + $0x24] sm:$0xf] }
  0x14   : > { %150 = vrot.lane.b32.xlu0 %v134_v7, %s284_s12  ;;  %v139_v16 = vmax.bf16 %v260_v13, %v122_v12  ;;  %v138_v17 = vmax.bf16 %v259_v15, %v121_v14  ;;  %v124_v18 = vld [vmem:[%s111_s11 + $0x38] sm:$0xf]  ;;  %v262_v19 = vld [vmem:[%s111_s11 + $0x3c] sm:$0xf]  ;;  %v123_v20 = vld [vmem:[%s111_s11 + $0x30] sm:$0xf] }
  0x15   : > { %v261_v21 = vld [vmem:[%s111_s11 + $0x34] sm:$0xf]  ;;  %v141_v22 = vmax.bf16 %v262_v19, %v124_v18 }
  0x16   : > { %v140_v23 = vmax.bf16 %v261_v21, %v123_v20 }
  0x17   : > { %156 = vrot.lane.b32.xlu1 %v137_v10, %s284_s12 }
  0x18   : > { %152 = vrot.lane.b32.xlu0 %v135_v11, %s284_s12 }
  0x1b   : > { %160 = vrot.lane.b32.xlu1 %v139_v16, %s284_s12 }
  0x1c   : > { %158 = vrot.lane.b32.xlu0 %v138_v17, %s284_s12 }
  0x1f   : > { %164 = vrot.lane.b32.xlu1 %v141_v22, %s284_s12 }
  0x20   : > { %162 = vrot.lane.b32.xlu0 %v140_v23, %s284_s12 }
  0x85   : > { %v155_v24 = vpop.permute.xlu1 %154 }
  0x86   : > { %v176_v25 = vmax.bf16 %v155_v24, %v136_v3  ;;  %v151_v26 = vpop.permute.xlu0 %150 }
  0x87   : > { %v174_v27 = vmax.bf16 %v151_v26, %v134_v7 }
  0x88   : > { %185 = vst.msk [vmem:[%s116_s16 + $0x8] sm:$0xf] %vm182_vm0, %v176_v25 }
  0x89   : > { %183 = vst.msk [vmem:[%s116_s16] sm:$0xf] %vm182_vm0, %v174_v27  ;;  %v157_v28 = vpop.permute.xlu1 %156 }
  0x8a   : > { %v177_v29 = vmax.bf16 %v157_v28, %v137_v10  ;;  %v153_v30 = vpop.permute.xlu0 %152 }
  0x8b   : > { %v175_v31 = vmax.bf16 %v153_v30, %v135_v11 }
  0x8c   : > { %186 = vst.msk [vmem:[%s116_s16 + $0xc] sm:$0xf] %vm182_vm0, %v177_v29 }
  0x8d   : > { %184 = vst.msk [vmem:[%s116_s16 + $0x4] sm:$0xf] %vm182_vm0, %v175_v31  ;;  %v161_v32 = vpop.permute.xlu1 %160 }
  0x8e   : > { %v179_v33 = vmax.bf16 %v161_v32, %v139_v16  ;;  %v159_v34 = vpop.permute.xlu0 %158 }
  0x8f   : > { %v178_v35 = vmax.bf16 %v159_v34, %v138_v17 }
  0x90   : > { %188 = vst.msk [vmem:[%s116_s16 + $0x14] sm:$0xf] %vm182_vm0, %v179_v33 }
  0x91   : > { %187 = vst.msk [vmem:[%s116_s16 + $0x10] sm:$0xf] %vm182_vm0, %v178_v35  ;;  %v165_v36 = vpop.permute.xlu1 %164 }
  0x92   : > { %v181_v37 = vmax.bf16 %v165_v36, %v141_v22  ;;  %v163_v38 = vpop.permute.xlu0 %162 }
  0x93   : > { %v180_v39 = vmax.bf16 %v163_v38, %v140_v23 }
  0x94   : > { %190 = vst.msk [vmem:[%s116_s16 + $0x1c] sm:$0xf] %vm182_vm0, %v181_v37 }
  0x95   : > { %189 = vst.msk [vmem:[%s116_s16 + $0x18] sm:$0xf] %vm182_vm0, %v180_v39 }
  0x96 PF: > { %s11_s6 = sadd.s32 1, %s282_s6  }
  0x97   : > { %p8_p4 = scmp.ge.s32.totalorder %s11_s6, 18  }
  0x99   :  { %10 = sbr.rel (!%p8_p4) target bundleno = 1 (0x1), region = 55 }

// kernel: physnet_forward.17
= control target key start
LH: loop header
LB: loop body
LE: loop exit
PB: predicated region body
PF: predicated region fallthrough
CT: control target
= control target key end

     0   :  { %s2603_s15 = smov 0   ;;  %s2605_s16 = smov 0   ;;  %s3241_s0 = inlined_call_operand.vmem [shape: bf16[2,10,82,16], index: 0, kind: input, shape index: {}]   ;;  %s3242_s1 = inlined_call_operand.vmem [shape: bf16[3,144,32], index: 1, kind: input, shape index: {}]   ;;  %s3243_s2 = inlined_call_operand.vmem [shape: f32[1,32], index: 2, kind: input, shape index: {}]   ;;  %s3244_s3 = inlined_call_operand.vmem [shape: f32[1,32], index: 3, kind: input, shape index: {}]   ;;  %s3245_s4 = inlined_call_operand.vmem [shape: bf16[2,8,64,32], index: 4, kind: output, shape index: {}]  }
   0x1   :  { %s2607_s17 = smov 0   ;;  %s2609_s18 = smov 0  }
   0x2   :  { %s2611_s19 = smov 0   ;;  %s2613_s20 = smov 0  }
   0x3   :  { %s2615_s21 = smov 0  }
   0x4 LB: > { %s26_s22 = sadd.s32 1, %s2562_s18  ;;  %s29_s23 = sadd.s32 1, %s2566_s19  ;;  %s2574_s21 = sphi %s2615_s21, %s14_s21   ;;  %s2570_s20 = sphi %s2613_s20, %s3305_s20   ;;  %s2566_s19 = sphi %s2611_s19, %s3304_s19   ;;  %s2562_s18 = sphi %s2609_s18, %s3303_s18   ;;  %s2558_s17 = sphi %s2607_s17, %s3302_s17   ;;  %s2554_s16 = sphi %s2605_s16, %s3301_s16   ;;  %s2550_s15 = sphi %s2603_s15, %s3300_s15  }
   0x5   : > { %p27_p0 = scmp.ge.s32.totalorder %s26_s22, 3  ;;  %p2183_p1 = scmp.ge.s32.totalorder %s2574_s21, 1 }
   0x6   : > { %p203_p2 = scmp.lt.s32.totalorder %s2574_s21, 49  ;;  %s33_s24 = sadd.s32 1, %s2570_s20 }
   0x7   : > { %s3307_s22 = smov (%p27_p0, %s26_s22), 0  ;;  %s3309_s23 = smov (!%p27_p0, %s29_s23), %s2566_s19 }
   0x8   : > { %p204_p3 = pnand %p2183_p1, %p203_p2  ;;  %p31_p4 = scmp.ge.s32.totalorder %s3309_s23, 8 }
   0x9   : > { %s243_s25 = sadd.s32 (!%p204_p3), %s2550_s15, %s2554_s16  ;;  %p244_p6 = scmp.lt.s32.totalorder (!%p204_p3), %s2558_s17, 1 }
   0xa   : > { %s3311_s23 = smov (%p31_p4, %s3309_s23), 0  ;;  %s3313_s24 = smov (!%p31_p4, %s33_s24), %s2570_s20 }
   0xb   : > { %p35_p5 = scmp.ge.s32.totalorder %s3313_s24, 2  ;;  %207 = sbr.rel (%p204_p3) target bundleno = 377 (0x179), region = 36 }
   0xc   : > { %p246_p7 = scmp.lt.s32.totalorder (!%p204_p3), %s243_s25, 9  ;;  %p254_p8 = scmp.lt.s32.totalorder (!%p204_p3), %s2550_s15, 2 }
   0xd   : > { %s3315_s24 = smov (%p35_p5, %s3313_s24), 0  ;;  %p261_p9 = scmp.lt.s32.totalorder (!%p204_p3), %s2554_s16, 7 }
   0xe   : > { %3253 = sst [smem:[#allocation3_spill]] %s3315_s24  ;;  %p2189_p10 = scmp.ne.s32.totalorder (!%p204_p3), %s2550_s15, 0 }
  0x12   : > { %s3317_s17 = smov (!%p244_p6, %s2558_s17), 1  ;;  %s3319_s25 = smov (!%p246_p7, %s243_s25), 9 }
  0x13   : > { %s2436_s26 = smul.u32 110, %s3317_s17  ;;  %s2187_s12 = sshll.u32 %s3317_s17, 6  ;;  %vm275_vm0 = vcmask (!%p2189_p10), 261120   ;;  %v2576_v0 = vmov (!%p2189_p10), 0.0  }
  0x14   : > { %s2435_s27 = smul.u32 11, %s3319_s25  ;;  %s3321_s16 = smov (!%p261_p9, %s2554_s16), 7  ;;  %276 = vst.msk [vmem:[#allocation2] sm:$0xff] (!%p2189_p10), %vm275_vm0, %v2576_v0  ;;  %277 = vst.msk [vmem:[#allocation2 + $0x8] sm:$0xff] (!%p2189_p10), %vm275_vm0, %v2576_v0 }
  0x15   : > { %s255_s28 = scalar_select %p254_p8, %s2550_s15, 2 }
  0x16   : > { %s250_s29 = sadd.s32 %s2436_s26, %s2435_s27  ;;  %s2186_s13 = sshll.u32 %s3321_s16, 3  ;;  %278 = vst.msk [vmem:[#allocation2 + $0x10] sm:$0xff] (!%p2189_p10), %vm275_vm0, %v2576_v0  ;;  %279 = vst.msk [vmem:[#allocation2 + $0x18] sm:$0xff] (!%p2189_p10), %vm275_vm0, %v2576_v0 }
  0x17   : > { %s2184_s30 = sshll.u32 %s250_s29, 2  ;;  %s2437_s5 = smul.u32 72, %s255_s28  ;;  %280 = vst.msk [vmem:[#allocation2 + $0x20] sm:$0xff] (!%p2189_p10), %vm275_vm0, %v2576_v0  ;;  %281 = vst.msk [vmem:[#allocation2 + $0x28] sm:$0xff] (!%p2189_p10), %vm275_vm0, %v2576_v0 }
  0x18   : > { %s2657_s8 = scalar_lea.vmem %s3241_s0, %s2184_s30  ;;  %s265_s14 = sadd.s32 %s2187_s12, %s2186_s13  ;;  %282 = vst.msk [vmem:[#allocation2 + $0x30] sm:$0xff] (!%p2189_p10), %vm275_vm0, %v2576_v0  ;;  %283 = vst.msk [vmem:[#allocation2 + $0x38] sm:$0xff] (!%p2189_p10), %vm275_vm0, %v2576_v0 }
  0x19   : > { %s2662_s11 = scalar_lea.vmem %s3242_s1, %s2437_s5  ;;  %s2188_s25 = sshll.u32 %s265_s14, 2 }
  0x1a   : > { %s2668_s27 = scalar_lea.vmem %s3245_s4, %s2188_s25  ;;  %274 = sbr.rel (%p2189_p10) target bundleno = 33 (0x21), region = 40 }
  0x21 PF: > { %v2496_v1 = vld [vmem:[%s2662_s11] sm:$0xff]   ;;  %v284_v2 = vlaneseq  ;;  %v2673_v3 = vld [vmem:[%s2662_s11 + $0x8] sm:$0xff]   ;;  %vm489_vm8 = vcmask 130048   ;;  %v2577_v18 = vmov 0   ;;  %v393_v20 = vld [vmem:[%s2657_s8 + $0x10] sm:$0xf] }
  0x22   : > { %2433 = vmatprep.subr.bf16.mxu1 %v2496_v1  ;;  %2343 = vmatprep.subr.bf16.mxu0 %v2496_v1  ;;  %v389_v9 = vld [vmem:[%s2657_s8] sm:$0xf]  ;;  %v390_v11 = vld [vmem:[%s2657_s8 + $0x4] sm:$0xf]  ;;  %v394_v23 = vld [vmem:[%s2657_s8 + $0x14] sm:$0xf] }
  0x23   : > { %v285_v4 = vshrl.u32 %v284_v2, 7  ;;  %2434 = vmatpush3.bf16.msra.mxu1 %v2496_v1  ;;  %2344 = vmatpush3.bf16.msra.mxu0 %v2496_v1  ;;  %v2702_v22 = vld [vmem:[%s2657_s8 + $0x4] sm:$0xf]  ;;  %v391_v39 = vld [vmem:[%s2657_s8 + $0x8] sm:$0xf]  ;;  %v2780_v61 = vld [vmem:[%s2657_s8 + $0x10] sm:$0xff]  }
  0x24   : > { %2353 = vmatprep.subr.bf16.mxu1 %v2673_v3  ;;  %v392_v40 = vld [vmem:[%s2657_s8 + $0xc] sm:$0xf]  ;;  %v2498_v49 = vld [vmem:[%s2657_s8] sm:$0xff]   ;;  %v395_v55 = vld [vmem:[%s2657_s8 + $0x18] sm:$0xf]  ;;  %p2277_p11 = scmp.ne.s32.totalorder %s2550_s15, 2 }
  0x25   : > { %v286_v5 = vadd.s32 8, %v285_v4  ;;  %v297_v6 = vand.u32 7, %v285_v4  ;;  %v289_v7 = vadd.s32 32, %v285_v4  ;;  %v290_v8 = vadd.s32 40, %v285_v4  ;;  %v2499_v50 = vld [vmem:[%s2657_s8 + $0x8] sm:$0xff]  }
  0x26   : > { %v287_v24 = vadd.s32 16, %v285_v4  ;;  %v288_v37 = vadd.s32 24, %v285_v4  ;;  %v291_v41 = vadd.s32 48, %v285_v4  ;;  %v292_v45 = vadd.s32 56, %v285_v4  ;;  %v396_v58 = vld [vmem:[%s2657_s8 + $0x1c] sm:$0xf] }
  0x27   : > { %v304_v10 = vand.u32 7, %v286_v5  ;;  %vm397_vm1 = vcmp.ge.s32.totalorder %v297_v6, 1  ;;  %vm779_vm2 = vcmp.lt.s32.totalorder %v297_v6, 7  ;;  %v325_v12 = vand.u32 7, %v289_v7  ;;  %v2501_v7 = vld [vmem:[%s2662_s11 + $0x10] sm:$0xff]  }
  0x28   : > { %vm2678_vm3 = vmpackc.low %vm397_vm1, %vm397_vm1  ;;  %v332_v14 = vand.u32 7, %v290_v8  ;;  %v311_v38 = vand.u32 7, %v287_v24  ;;  %v318_v44 = vand.u32 7, %v288_v37  ;;  %v339_v48 = vand.u32 7, %v291_v41  ;;  %2363 = vmatprep.subr.bf16.mxu0 %v2501_v7  ;;  %v765_v47 = vld [vmem:[%s2657_s8 + $0xc] sm:$0xf] }
  0x29   : > { %vm398_vm4 = vcmp.ge.s32.totalorder %v304_v10, 1  ;;  %v445_v15 = vsel %vm2678_vm3, %v389_v9, 0  ;;  %vm2684_vm5 = vcmp.lt.s32.totalorder %v304_v10, 7  ;;  %vm811_vm6 = vmpackc.low %vm779_vm2, %vm779_vm2  ;;  %vm401_vm9 = vcmp.ge.s32.totalorder %v325_v12, 1  ;;  %v1496_v17 = vld [vmem:[%s2657_s8 + $0x10] sm:$0xf] }
  0x2a   : > { %vm2688_vm7 = vmpackc.low %vm398_vm4, %vm398_vm4  ;;  %v2693_v19 = vsel %vm811_vm6, 65537, %v2577_v18  ;;  %vm402_vm10 = vcmp.ge.s32.totalorder %v332_v14, 1  ;;  %vm783_vm13 = vcmp.lt.s32.totalorder %v325_v12, 7  ;;  %vm2712_vm14 = vcmp.lt.s32.totalorder %v332_v14, 7 }
  0x2b   : > { %v446_v21 = vsel %vm2688_vm7, %v390_v11, 0  ;;  %vm812_vm11 = vmpackc.low %vm2684_vm5, %vm2684_vm5  ;;  %v830_v29 = vrot.slane %v2693_v19, 7  ;;  %v1021_v32 = vsel %vm2678_vm3, %v2702_v22, 0  ;;  %vm399_vm2 = vcmp.ge.s32.totalorder %v311_v38, 1 }
  0x2c   : > { %v2190_v25 = vcombine.low %v445_v15, %v446_v21  ;;  %v2706_v26 = vsel %vm812_vm11, 65537, %v2577_v18  ;;  %vm2708_vm12 = vmpackc.low %vm401_vm9, %vm401_vm9  ;;  %vm2747_vm4 = vcmp.lt.s32.totalorder %v311_v38, 7  ;;  %vm400_vm5 = vcmp.ge.s32.totalorder %v318_v44, 1  ;;  %v763_v38 = vld [vmem:[%s2657_s8 + $0x4] sm:$0xf] }
  0x2d   : > { %vm2717_vm15 = vmpackc.low %vm402_vm10, %vm402_vm10  ;;  %v449_v31 = vsel %vm2708_vm12, %v393_v20, 0  ;;  %v832_v34 = vrot.slane %v2706_v26, 7  ;;  %v2740_v42 = vrot.slane %v830_v29, 4  ;;  %vm2761_vm9 = vcmp.lt.s32.totalorder %v318_v44, 7  ;;  %v766_v26 = vld [vmem:[%s2657_s8 + $0x10] sm:$0xf] }
  0x2e   : > { %2345 = vmatprep.mubr.msk.bf16.mxu0 %vm489_vm8, %v2190_v25  ;;  %v450_v33 = vsel %vm2717_vm15, %v394_v23, 0  ;;  %vm815_vm0 = vmpackc.low %vm783_vm13, %vm783_vm13  ;;  %v346_v54 = vand.u32 7, %v292_v45  ;;  %vm403_vm11 = vcmp.ge.s32.totalorder %v339_v48, 1  ;;  %v628_v0 = vshrl.u32 %v2498_v49, 16  ;;  %v2502_v23 = vld [vmem:[%s2662_s11 + $0x18] sm:$0xff]  }
  0x2f   : > { %v2192_v35 = vcombine.low %v449_v31, %v450_v33  ;;  %vm816_vm1 = vmpackc.low %vm2712_vm14, %vm2712_vm14  ;;  %v2734_v36 = vsel %vm815_vm0, 65537, %v2577_v18  ;;  %v2755_v51 = vrot.slane %v832_v34, 4  ;;  %v630_v10 = vshll.u32 %v2498_v49, 16  ;;  %v762_v33 = vld [vmem:[%s2657_s8] sm:$0xe] }
  0x30   : > { %v2744_v43 = vsel %vm816_vm1, 65537, %v2577_v18  ;;  %v841_v46 = vrot.slane %v2734_v36, 7  ;;  %vm2757_vm6 = vmpackc.low %vm399_vm2, %vm399_vm2  ;;  %vm404_vm14 = vcmp.ge.s32.totalorder %v346_v54, 1  ;;  %vm2795_vm2 = vcmp.lt.s32.totalorder %v339_v48, 7  ;;  %v764_v45 = vld [vmem:[%s2657_s8 + $0x8] sm:$0xf] }
  0x31   : > { %2349 = vmatprep.mubr.msk.bf16.mxu1 %vm489_vm8, %v2192_v35  ;;  %vm2766_vm10 = vmpackc.low %vm400_vm5, %vm400_vm5  ;;  %v447_v57 = vsel %vm2757_vm6, %v391_v39, 0  ;;  %v844_v59 = vrot.slane %v2744_v43, 7  ;;  %v635_v11 = vshll.u32 %v2499_v50, 16  ;;  %v639_v12 = vshrl.u32 %v2499_v50, 16  ;;  %v2503_v48 = vld [vmem:[%s2657_s8 + $0x18] sm:$0xff]  }
  0x32   : > { %v448_v60 = vsel %vm2766_vm10, %v392_v40, 0  ;;  %vm813_vm13 = vmpackc.low %vm2747_vm4, %vm2747_vm4  ;;  %v2784_v62 = vrot.slane %v841_v46, 4  ;;  %vm2799_vm4 = vcmp.lt.s32.totalorder %v346_v54, 7  ;;  %v643_v15 = vshll.u32 %v2780_v61, 16  ;;  %v767_v54 = vld [vmem:[%s2657_s8 + $0x14] sm:$0xf] }
  0x33   : > { %v2191_v63 = vcombine.low %v447_v57, %v448_v60  ;;  %vm814_vm0 = vmpackc.low %vm2761_vm9, %vm2761_vm9  ;;  %v821_v1 = vsel %vm813_vm13, 65537, %v2577_v18  ;;  %vm626_vm13 = vsmask.f32 7424  ;;  %v632_v20 = vrot.slane %v630_v10, 1  ;;  %v1014_v36 = vld [vmem:[%s2657_s8 + $0x8] sm:$0xf] }
  0x34   : > { %v822_v2 = vsel %vm814_vm0, 65537, %v2577_v18  ;;  %vm2791_vm1 = vmpackc.low %vm403_vm11, %vm403_vm11  ;;  %v637_v21 = vrot.slane %v635_v11, 1  ;;  %v2823_v24 = vrot.slane %v844_v59, 4  ;;  %v645_v31 = vrot.slane %v643_v15, 1  ;;  %v768_v11 = vld [vmem:[%s2657_s8 + $0x18] sm:$0xf] }
  0x35   : > { %2346 = vmatmul.mubr.msk.bf16.vlgmr.msra.gmra.mrb[0].mxu0 %vm489_vm8, %v2191_v63  ;;  %vm2805_vm5 = vmpackc.low %vm404_vm14, %vm404_vm14  ;;  %v451_v9 = vsel %vm2791_vm1, %v395_v55, 0  ;;  %v633_v35 = vor.u32 %v632_v20, %v628_v0  ;;  %vm827_vm14 = vcmask 1040384   ;;  %vm828_vm0 = vcmask 1044484   ;;  %v2504_v0 = vld [vmem:[%s2657_s8 + $0x20] ss:$0 sps:$4 sm:$0x11]  }
  0x36   : > { %v452_v14 = vsel %vm2805_vm5, %v396_v58, 0  ;;  %vm817_vm9 = vmpackc.low %vm2795_vm2, %vm2795_vm2  ;;  %2364 = vmatpush3.bf16.msra.mxu0 %v2501_v7  ;;  %v641_v37 = vor.u32 %v639_v12, %v637_v21  ;;  %v838_v40 = vrot.slane %v822_v2, 7  ;;  %v647_v55 = vshrl.u32 %v2780_v61, 16 }
  0x37   : > { %v2193_v16 = vcombine.low %v451_v9, %v452_v14  ;;  %vm818_vm11 = vmpackc.low %vm2799_vm4, %vm2799_vm4  ;;  %v2826_v25 = vsel %vm817_vm9, 65537, %v2577_v18  ;;  %vm2841_vm4 = vcmp.ne.s16.totalorder %v830_v29, 0  ;;  %vm904_vm9 = vcmask 1046528   ;;  %v2912_v14 = vld [vmem:[%s2662_s11 + $0x28] sm:$0xff]  }
  0x38   : > { %v2829_v28 = vsel %vm818_vm11, 65537, %v2577_v18  ;;  %vm2835_vm2 = vmor %vm827_vm14, %vm828_vm0  ;;  %v835_v18 = vrot.slane %v821_v1, 7  ;;  %v638_v44 = vsel %vm626_vm13, %v633_v35, %v637_v21  ;;  %v862_v29 = vsel %vm2841_vm4, %v762_v33, 0  ;;  %v770_v21 = vld [vmem:[%s2657_s8 + $0x20] sm:$0x1] }
  0x39   : > { %2350 = vmatmul.mubr.msk.bf16.vlgmr.msra.gmra.mrb[0].mxu1 %vm489_vm8, %v2193_v16  ;;  %v2854_v19 = vsel %vm2835_vm2, %v2740_v42, %v832_v34  ;;  %v840_v53 = vrot.slane %v838_v40, 4  ;;  %v2869_v34 = vld [vmem:[%s2662_s11 + $0x20] sm:$0xff]   ;;  %v651_v57 = vshll.u32 %v2503_v48, 16  ;;  %v649_v61 = vor.u32 %v647_v55, %v645_v31  ;;  %v1016_v33 = vld [vmem:[%s2657_s8 + $0x10] sm:$0xf] }
  0x3a   : > { %2354 = vmatpush3.bf16.msra.mxu1 %v2673_v3  ;;  %v646_v3 = vsel %vm626_vm13, %v641_v37, %v645_v31  ;;  %2355 = vmatprep.mubr.msk.bf16.mxu1 %vm489_vm8, %v638_v44  ;;  %v2863_v49 = vsel %vm2835_vm2, %v2755_v51, %v835_v18  ;;  %v837_v50 = vrot.slane %v835_v18, 4  ;;  %vm3247_vm11 = vcmp.ne.s16.totalorder %v2854_v19, 0  ;;  %v1015_v31 = vld [vmem:[%s2657_s8 + $0xc] sm:$0xf]  ;;  %v769_v18 = vld [vmem:[%s2657_s8 + $0x1c] sm:$0xf] }
  0x3b   : > { %2373 = vmatprep.subr.bf16.mxu1 %v2502_v23  ;;  %vm3246_vm14 = vcmp.ne.s16.totalorder %v2863_v49, 0  ;;  %v863_v42 = vsel %vm3247_vm11, %v763_v38, 0  ;;  %v2885_v63 = vsel %vm2835_vm2, %v840_v53, %v841_v46  ;;  %2383 = vmatprep.subr.bf16.mxu0 %v2869_v34  ;;  %v653_v1 = vrot.slane %v651_v57, 1 }
  0x3c   : > { %v2877_v51 = vsel %vm2835_vm2, %v837_v50, %v838_v40  ;;  %v864_v58 = vsel %vm3246_vm14, %v764_v45, 0  ;;  %v2209_v60 = vcombine.low %v862_v29, %v863_v42  ;;  %v2895_v2 = vsel %vm2835_vm2, %v2784_v62, %v844_v59  ;;  %v1017_v45 = vld [vmem:[%s2657_s8 + $0x14] sm:$0xf] }
  0x3d   : > { %vm3252_vm0 = vcmp.ne.s16.totalorder %v2877_v51, 0  ;;  %vm3249_vm14 = vcmp.ne.s16.totalorder %v2885_v63, 0  ;;  %vm3248_vm11 = vcmp.ne.s16.totalorder %v2895_v2, 0  ;;  %v654_v6 = vsel %vm626_vm13, %v649_v61, %v653_v1  ;;  %v2954_v42 = vld [vmem:[%s2662_s11 + $0x30] sm:$0xff]  }
  0x3e   : > { %v865_v46 = vsel %vm3252_vm0, %v765_v47, 0  ;;  %v905_v5 = vrot.slane %v2209_v60, 1  ;;  %v866_v59 = vsel %vm3249_vm14, %v766_v26, 0  ;;  %v867_v62 = vsel %vm3248_vm11, %v767_v54, 0  ;;  %v1018_v47 = vld [vmem:[%s2657_s8 + $0x18] sm:$0xf] }
  0x3f   : > { %v2210_v43 = vcombine.low %v864_v58, %v865_v46  ;;  %v2211_v7 = vcombine.low %v866_v59, %v867_v62  ;;  %v655_v9 = vshrl.u32 %v2503_v48, 16  ;;  %v659_v10 = vshll.u32 %v2504_v0, 16  ;;  %v2509_v54 = vld [vmem:[%s2657_s8 + $0x14] sm:$0xff]  }
  0x40   : > { %v847_v12 = vrot.slane %v2826_v25, 7  ;;  %v1022_v15 = vsel %vm2688_vm7, %v1014_v36, 0  ;;  %v850_v20 = vrot.slane %v2829_v28, 7  ;;  %v1023_v39 = vsel %vm2757_vm6, %v1015_v31, 0 }
  0x41   : > { %2356 = vmatmul.mubr.msk.bf16.vlgmr.msra.gmra.mrb[4].mxu1 %vm489_vm8, %v646_v3  ;;  %v906_v16 = vrot.slane %v2210_v43, 1  ;;  %v908_v35 = vrot.slane %v2211_v7, 1  ;;  %v657_v37 = vor.u32 %v655_v9, %v653_v1  ;;  %v661_v38 = vrot.slane %v659_v10, 1  ;;  %v2933_v3 = vld [vmem:[%s2657_s8 + $0xc] sm:$0xff]   ;;  %v1019_v9 = vld [vmem:[%s2657_s8 + $0x1c] sm:$0xf] }
  0x42   : > { %2374 = vmatpush3.bf16.msra.mxu1 %v2502_v23  ;;  %2359 = vmatprep.mubr.msk.bf16.mxu1 %vm489_vm8, %v654_v6  ;;  %v2507_v23 = vld [vmem:[%s2657_s8 + $0x4] sm:$0xff]   ;;  %v2925_v25 = vsel %vm2835_vm2, %v2823_v24, %v847_v12  ;;  %v849_v28 = vrot.slane %v847_v12, 4  ;;  %v2930_v44 = vrot.slane %v850_v20, 4  ;;  %v2219_v50 = vcombine.low %v1021_v32, %v1022_v15  ;;  %v1020_v10 = vld [vmem:[%s2657_s8 + $0x20] sm:$0xf] }
  0x43   : > { %2393 = vmatprep.subr.bf16.mxu1 %v2912_v14  ;;  %v907_v40 = vsel %vm904_vm9, %v905_v5, %v906_v16  ;;  %vm3250_vm11 = vcmp.ne.s16.totalorder %v2925_v25, 0  ;;  %v909_v24 = vsel %vm904_vm9, %v906_v16, %v908_v35  ;;  %v662_v29 = vsel %vm626_vm13, %v657_v37, %v661_v38  ;;  %v1335_v15 = vld [vmem:[%s2657_s8 + $0x4] sm:$0xe]  ;;  %v1336_v16 = vld [vmem:[%s2657_s8 + $0x8] sm:$0xf] }
  0x44   : > { %2365 = vmatprep.mubr.msk.bf16.mxu0 %vm489_vm8, %v907_v40  ;;  %v868_v48 = vsel %vm3250_vm11, %v768_v11, 0  ;;  %v2949_v53 = vsel %vm2835_vm2, %v849_v28, %v850_v20  ;;  %vm3251_vm14 = vcmp.ne.s16.totalorder %v2930_v44, 0  ;;  %v1201_v26 = vshrl.u32 %v2507_v23, 16  ;;  %v1338_v37 = vld [vmem:[%s2657_s8 + $0x10] sm:$0xf] }
  0x45   : > { %2366 = vmatmul.mubr.msk.bf16.vlgmr.msra.gmra.mrb[4].mxu0 %vm489_vm8, %v909_v24  ;;  %vm860_vm11 = vcmp.ne.s16.totalorder %v2949_v53, 0  ;;  %v870_v22 = vsel %vm3251_vm14, %v770_v21, 0  ;;  %v1203_v32 = vshll.u32 %v2507_v23, 16  ;;  %v1208_v55 = vshll.u32 %v2933_v3, 16  ;;  %v1339_v38 = vld [vmem:[%s2657_s8 + $0x14] sm:$0xf] }
  0x46   : > { %2384 = vmatpush3.bf16.msra.mxu0 %v2869_v34  ;;  %v1024_v57 = vsel %vm2766_vm10, %v1016_v33, 0  ;;  %v869_v58 = vsel %vm860_vm11, %v769_v18, 0  ;;  %v2213_v60 = vcombine.low %v870_v22, %v870_v22  ;;  %v2970_v34 = vld [vmem:[%s2657_s8 + $0x1c] sm:$0xff]   ;;  %v1025_v36 = vsel %vm2708_vm12, %v1017_v45, 0  ;;  %v1337_v33 = vld [vmem:[%s2657_s8 + $0xc] sm:$0xf] }
  0x47   : > { %2403 = vmatprep.subr.bf16.mxu0 %v2954_v42  ;;  %v2212_v0 = vcombine.low %v868_v48, %v869_v58  ;;  %v1205_v61 = vrot.slane %v1203_v32, 1  ;;  %v1210_v1 = vrot.slane %v1208_v55, 1  ;;  %v1026_v46 = vsel %vm2717_vm15, %v1018_v47, 0  ;;  %v2512_v18 = vld [vmem:[%s2657_s8 + $0x24] ss:$0 sps:$4 sm:$0x11]  }
  0x48   : > { %v912_v5 = vrot.slane %v2213_v60, 1  ;;  %v1212_v59 = vshrl.u32 %v2933_v3, 16  ;;  %v1216_v62 = vshll.u32 %v2509_v54, 16  ;;  %v2220_v7 = vcombine.low %v1023_v39, %v1024_v57  ;;  %v1340_v28 = vld [vmem:[%s2657_s8 + $0x18] sm:$0xf] }
  0x49   : > { %2360 = vmatmul.mubr.msk.bf16.gmra.mrb[8].mxu1 %vm489_vm8, %v662_v29  ;;  %v910_v43 = vrot.slane %v2212_v0, 1  ;;  %v1206_v6 = vor.u32 %v1205_v61, %v1201_v26  ;;  %v1220_v11 = vshrl.u32 %v2509_v54, 16  ;;  %v1224_v12 = vshll.u32 %v2970_v34, 16  ;;  %v2995_v3 = vld [vmem:[%s2662_s11 + $0x38] sm:$0xff]   ;;  %v1342_v54 = vld [vmem:[%s2657_s8 + $0x20] sm:$0xf] }
  0x4a   : > { %2375 = vmatprep.mubr.msk.bf16.mxu1 %vm489_vm8, %v2219_v50  ;;  %v2221_v23 = vcombine.low %v1025_v36, %v1026_v46  ;;  %v1344_v40 = vsel %vm2841_vm4, %v1335_v15, 0  ;;  %vm3286_vm2 = vcmp.ne.s16.totalorder %v2854_v19, 0  ;;  %vm3287_vm14 = vcmp.ne.s16.totalorder %v2863_v49, 0  ;;  %v1341_v26 = vld [vmem:[%s2657_s8 + $0x1c] sm:$0xf] }
  0x4b   : > { %v911_v20 = vsel %vm904_vm9, %v908_v35, %v910_v43  ;;  %v913_v21 = vsel %vm904_vm9, %v910_v43, %v912_v5  ;;  %v1211_v31 = vsel %vm626_vm13, %v1206_v6, %v1210_v1  ;;  %v1218_v35 = vrot.slane %v1216_v62, 1  ;;  %v1495_v46 = vld [vmem:[%s2657_s8 + $0xc] sm:$0xf] }
  0x4c   : > { %2369 = vmatprep.mubr.msk.bf16.mxu0 %vm489_vm8, %v911_v20  ;;  %v1345_v45 = vsel %vm3286_vm2, %v1336_v16, 0  ;;  %v1346_v47 = vsel %vm3287_vm14, %v1337_v33, 0  ;;  %v1347_v24 = vsel %vm3252_vm0, %v1338_v37, 0  ;;  %v1214_v29 = vor.u32 %v1212_v59, %v1210_v1  ;;  %v3028_v59 = vld [vmem:[%s2662_s11 + $0x40] sm:$0xff]   ;;  %v1498_v37 = vld [vmem:[%s2657_s8 + $0x18] sm:$0xf] }
  0x4d   : > { %2370 = vmatmul.mubr.msk.bf16.gmra.mrb[8].mxu0 %vm489_vm8, %v913_v21  ;;  %v2238_v48 = vcombine.low %v1344_v40, %v1345_v45  ;;  %v2239_v50 = vcombine.low %v1346_v47, %v1347_v24  ;;  %v1027_v22 = vsel %vm2791_vm1, %v1019_v9, 0  ;;  %v1028_v32 = vsel %vm2805_vm5, %v1020_v10, 0  ;;  %v2515_v9 = vld [vmem:[%s2657_s8 + $0x8] sm:$0xff]   ;;  %v1497_v40 = vld [vmem:[%s2657_s8 + $0x14] sm:$0xf] }
  0x4e   : > { %2385 = vmatprep.mubr.msk.bf16.mxu0 %vm489_vm8, %v1211_v31  ;;  %v1222_v55 = vor.u32 %v1220_v11, %v1218_v35  ;;  %v1226_v39 = vrot.slane %v1224_v12, 1  ;;  %vm3288_vm14 = vcmp.ne.s16.totalorder %v2885_v63, 0  ;;  %vm3289_vm2 = vcmp.ne.s16.totalorder %v2895_v2, 0  ;;  %v1343_v11 = vld [vmem:[%s2657_s8 + $0x24] sm:$0x1] }
  0x4f   : > { %v1386_v57 = vrot.slane %v2238_v48, 1  ;;  %v1387_v58 = vrot.slane %v2239_v50, 1  ;;  %v1348_v60 = vsel %vm3288_vm14, %v1339_v38, 0  ;;  %v1349_v0 = vsel %vm3289_vm2, %v1340_v28, 0  ;;  %v1499_v24 = vld [vmem:[%s2657_s8 + $0x1c] sm:$0xf] }
  0x50   : > { %v1228_v61 = vshrl.u32 %v2970_v34, 16  ;;  %vm3290_vm0 = vcmp.ne.s16.totalorder %v2925_v25, 0  ;;  %v1351_v36 = vsel %vm860_vm11, %v1342_v54, 0  ;;  %v2222_v5 = vcombine.low %v1027_v22, %v1028_v32  ;;  %v1816_v48 = vld [vmem:[%s2657_s8 + $0x8] sm:$0xe] }
  0x51   : > { %2376 = vmatmul.mubr.msk.bf16.vlgmr.msra.gmra.mrb[12].mxu1 %vm489_vm8, %v2220_v7  ;;  %v1350_v1 = vsel %vm3290_vm0, %v1341_v26, 0  ;;  %v1219_v43 = vsel %vm626_vm13, %v1214_v29, %v1218_v35  ;;  %v1232_v6 = vshll.u32 %v2512_v18, 16  ;;  %v1227_v62 = vsel %vm626_vm13, %v1222_v55, %v1226_v39  ;;  %v1817_v50 = vld [vmem:[%s2657_s8 + $0xc] sm:$0xf]  ;;  %v1818_v26 = vld [vmem:[%s2657_s8 + $0x10] sm:$0xf] }
  0x52   : > { %2379 = vmatprep.mubr.msk.bf16.mxu1 %vm489_vm8, %v2221_v23  ;;  %2394 = vmatpush3.bf16.msra.mxu1 %v2912_v14  ;;  %v1494_v14 = vld [vmem:[%s2657_s8 + $0x8] sm:$0xf]  ;;  %v2240_v7 = vcombine.low %v1348_v60, %v1349_v0  ;;  %v1388_v34 = vsel %vm904_vm9, %v1386_v57, %v1387_v58  ;;  %v2241_v10 = vcombine.low %v1350_v1, %v1351_v36  ;;  %v1503_v20 = vsel %vm2688_vm7, %v1495_v46, 0  ;;  %v2516_v23 = vld [vmem:[%s2657_s8 + $0x10] sm:$0xff]   ;;  %v2518_v60 = vld [vmem:[%s2657_s8 + $0x20] sm:$0xff]  }
  0x53   : > { %2413 = vmatprep.subr.bf16.mxu1 %v2995_v3  ;;  %v1502_v12 = vsel %vm2678_vm3, %v1494_v14, 0  ;;  %v1230_v15 = vor.u32 %v1228_v61, %v1226_v39  ;;  %v1234_v16 = vrot.slane %v1232_v6, 1  ;;  %vm3291_vm0 = vcmp.ne.s16.totalorder %v2930_v44, 0  ;;  %v1819_v54 = vld [vmem:[%s2657_s8 + $0x14] sm:$0xf]  ;;  %v2517_v39 = vld [vmem:[%s2657_s8 + $0x18] sm:$0xff]  }
  0x54   : > { %v1389_v21 = vrot.slane %v2240_v7, 1  ;;  %v1352_v13 = vsel %vm3291_vm0, %v1343_v11, 0  ;;  %v1684_v31 = vshll.u32 %v2515_v9, 16  ;;  %v1391_v33 = vrot.slane %v2241_v10, 1  ;;  %v1500_v46 = vld [vmem:[%s2657_s8 + $0x20] sm:$0xf] }
  0x55   : > { %2386 = vmatmul.mubr.msk.bf16.vlgmr.msra.gmra.mrb[12].mxu0 %vm489_vm8, %v1219_v43  ;;  %v2242_v38 = vcombine.low %v1352_v13, %v1352_v13  ;;  %v2248_v18 = vcombine.low %v1502_v12, %v1503_v20  ;;  %v1682_v35 = vshrl.u32 %v2515_v9, 16  ;;  %v1689_v47 = vshll.u32 %v2516_v23, 16  ;;  %v1820_v7 = vld [vmem:[%s2657_s8 + $0x18] sm:$0xf]  ;;  %v1822_v9 = vld [vmem:[%s2657_s8 + $0x20] sm:$0xf] }
  0x56   : > { %2389 = vmatprep.mubr.msk.bf16.mxu0 %vm489_vm8, %v1227_v62  ;;  %2404 = vmatpush3.bf16.msra.mxu0 %v2954_v42  ;;  %v1235_v42 = vsel %vm626_vm13, %v1230_v15, %v1234_v16  ;;  %v1390_v28 = vsel %vm904_vm9, %v1387_v58, %v1389_v21  ;;  %v1686_v45 = vrot.slane %v1684_v31, 1  ;;  %v1392_v29 = vsel %vm904_vm9, %v1389_v21, %v1391_v33  ;;  %v2519_v16 = vld [vmem:[%s2657_s8 + $0x28] ss:$0 sps:$4 sm:$0x11]   ;;  %v457_v44 = vld [vmem:[#allocation2 + $0x10] sm:$0xff] }
  0x57   : > { %2423 = vmatprep.subr.bf16.mxu0 %v3028_v59  ;;  %v1506_v22 = vsel %vm2708_vm12, %v1498_v37, 0  ;;  %v1504_v32 = vsel %vm2757_vm6, %v1496_v17, 0  ;;  %v1505_v55 = vsel %vm2766_vm10, %v1497_v40, 0  ;;  %v1507_v57 = vsel %vm2717_vm15, %v1499_v24, 0  ;;  %vm3295_vm15 = vmmov %vm3288_vm14  ;;  %v1824_v40 = vld [vmem:[%s2657_s8 + $0x28] sm:$0x1] }
  0x58   : > { %v1393_v27 = vrot.slane %v2242_v38, 1  ;;  %v1687_v52 = vor.u32 %v1686_v45, %v1682_v35  ;;  %v1691_v58 = vrot.slane %v1689_v47, 1  ;;  %v1825_v56 = vsel %vm2841_vm4, %v1816_v48, 0  ;;  %vm3296_vm6 = vmmov %vm3289_vm2 }
  0x59   : > { %2380 = vmatmul.mubr.msk.bf16.gmra.mrb[16].mxu1 %vm489_vm8, %v2222_v5  ;;  %vm3292_vm3 = vcmp.ne.s16.totalorder %v2854_v19, 0  ;;  %vm3293_vm7 = vcmp.ne.s16.totalorder %v2863_v49, 0  ;;  %vm3294_vm12 = vcmp.ne.s16.totalorder %v2877_v51, 0  ;;  %v2250_v61 = vcombine.low %v1506_v22, %v1507_v57  ;;  %v1501_v5 = vld [vmem:[%s2657_s8 + $0x24] sm:$0xf]  ;;  %v456_v57 = vld [vmem:[#allocation2 + $0x8] sm:$0xff] }
  0x5a   : > { %2395 = vmatprep.mubr.msk.bf16.mxu1 %vm489_vm8, %v1388_v34  ;;  %v1826_v0 = vsel %vm3292_vm3, %v1817_v50, 0  ;;  %v1827_v30 = vsel %vm3293_vm7, %v1818_v26, 0  ;;  %v1828_v14 = vsel %vm3294_vm12, %v1819_v54, 0  ;;  %v1693_v1 = vshrl.u32 %v2516_v23, 16  ;;  %v1821_v51 = vld [vmem:[%s2657_s8 + $0x1c] sm:$0xf] }
  0x5b   : > { %v1697_v36 = vshll.u32 %v2517_v39, 16  ;;  %v1394_v41 = vsel %vm904_vm9, %v1391_v33, %v1393_v27  ;;  %v2267_v19 = vcombine.low %v1825_v56, %v1826_v0  ;;  %v2268_v43 = vcombine.low %v1827_v30, %v1828_v14  ;;  %v1823_v34 = vld [vmem:[%s2657_s8 + $0x24] sm:$0xf]  ;;  %v461_v27 = vld [vmem:[#allocation2 + $0x30] sm:$0xff]  ;;  %v462_v14 = vld [vmem:[#allocation2 + $0x38] sm:$0xff] }
  0x5c   : > { %v1692_v49 = vsel %vm626_vm13, %v1687_v52, %v1691_v58  ;;  %v1701_v6 = vshrl.u32 %v2517_v39, 16  ;;  %v1705_v62 = vshll.u32 %v2518_v60, 16  ;;  %v1508_v10 = vsel %vm2791_vm1, %v1500_v46, 0  ;;  %vm3298_vm1 = vmmov %vm3291_vm0  ;;  %v455_v54 = vld [vmem:[#allocation2] sm:$0xff] }
  0x5d   : > { %2390 = vmatmul.mubr.msk.bf16.gmra.mrb[16].mxu0 %vm489_vm8, %v1235_v42  ;;  %v1509_v11 = vsel %vm2805_vm5, %v1501_v5, 0  ;;  %v1695_v12 = vor.u32 %v1693_v1, %v1691_v58  ;;  %v1699_v15 = vrot.slane %v1697_v36, 1  ;;  %v1867_v20 = vrot.slane %v2267_v19, 1  ;;  %v460_v36 = vld [vmem:[#allocation2 + $0x28] sm:$0xff] }
  0x5e   : > { %2405 = vmatprep.mubr.msk.bf16.mxu0 %vm489_vm8, %v2248_v18  ;;  %v1868_v21 = vrot.slane %v2268_v43, 1  ;;  %v1829_v13 = vsel %vm3295_vm15, %v1820_v7, 0  ;;  %v1830_v4 = vsel %vm3296_vm6, %v1821_v51, 0  ;;  %v1707_v31 = vrot.slane %v1705_v62, 1 }
  0x5f   : > { %v1703_v23 = vor.u32 %v1701_v6, %v1699_v15  ;;  %vm3297_vm10 = vcmp.ne.s16.totalorder %v2925_v25, 0  ;;  %v1832_v33 = vsel %vm860_vm11, %v1823_v34, 0  ;;  %v1709_v37 = vshrl.u32 %v2518_v60, 16  ;;  %v459_v60 = vld [vmem:[#allocation2 + $0x20] sm:$0xff] }
  0x60   : > { %v1831_v8 = vsel %vm3297_vm10, %v1822_v9, 0  ;;  %v2269_v17 = vcombine.low %v1829_v13, %v1830_v4  ;;  %v1700_v42 = vsel %vm626_vm13, %v1695_v12, %v1699_v15  ;;  %v1713_v38 = vshll.u32 %v2519_v16, 16 }
  0x61   : > { %2396 = vmatmul.mubr.msk.bf16.vlgmr.msra.gmra.mrb[20].mxu1 %vm489_vm8, %v1390_v28  ;;  %v1869_v63 = vsel %vm904_vm9, %v1867_v20, %v1868_v21  ;;  %v2270_v18 = vcombine.low %v1831_v8, %v1832_v33  ;;  %v1708_v2 = vsel %vm626_vm13, %v1703_v23, %v1707_v31  ;;  %v1711_v53 = vor.u32 %v1709_v37, %v1707_v31 }
  0x62   : > { %2399 = vmatprep.mubr.msk.bf16.mxu1 %vm489_vm8, %v1392_v29  ;;  %2414 = vmatpush3.bf16.msra.mxu1 %v2995_v3  ;;  %v2249_v3 = vcombine.low %v1504_v32, %v1505_v55  ;;  %v1870_v25 = vrot.slane %v2269_v17, 1  ;;  %v1715_v28 = vrot.slane %v1713_v38, 1  ;;  %v1833_v45 = vsel %vm3298_vm1, %v1824_v40, 0  ;;  %v458_v32 = vld [vmem:[#allocation2 + $0x18] sm:$0xff] }
  0x63   : > { %v1872_v35 = vrot.slane %v2270_v18, 1  ;;  %v2271_v24 = vcombine.low %v1833_v45, %v1833_v45  ;;  %vm575_vm5 = vcmask 261120  }
  0x64   : > { %v1871_v47 = vsel %vm904_vm9, %v1868_v21, %v1870_v25  ;;  %v1716_v29 = vsel %vm626_vm13, %v1711_v53, %v1715_v28 }
  0x65   : > { %2406 = vmatmul.mubr.msk.bf16.vlgmr.msra.gmra.mrb[20].mxu0 %vm489_vm8, %v2249_v3  ;;  %v1873_v48 = vsel %vm904_vm9, %v1870_v25, %v1872_v35  ;;  %v1874_v50 = vrot.slane %v2271_v24, 1 }
  0x66   : > { %2409 = vmatprep.mubr.msk.bf16.mxu0 %vm489_vm8, %v2250_v61  ;;  %2424 = vmatpush3.bf16.msra.mxu0 %v3028_v59  ;;  %v2251_v59 = vcombine.low %v1508_v10, %v1509_v11 }
  0x67   : > { %v1875_v26 = vsel %vm904_vm9, %v1872_v35, %v1874_v50 }
  0x69   : > { %2400 = vmatmul.mubr.msk.bf16.gmra.mrb[24].mxu1 %vm489_vm8, %v1394_v41 }
  0x6a   : > { %2415 = vmatprep.mubr.msk.bf16.mxu1 %vm489_vm8, %v1692_v49 }
  0x6d   : > { %2410 = vmatmul.mubr.msk.bf16.gmra.mrb[24].mxu0 %vm489_vm8, %v2251_v59 }
  0x6e   : > { %2425 = vmatprep.mubr.msk.bf16.mxu0 %vm489_vm8, %v1869_v63 }
  0x71   : > { %2416 = vmatmul.mubr.msk.bf16.vlgmr.msra.gmra.mrb[28].mxu1 %vm489_vm8, %v1700_v42 }
  0x72   : > { %2419 = vmatprep.mubr.msk.bf16.mxu1 %vm489_vm8, %v1708_v2 }
  0x75   : > { %2426 = vmatmul.mubr.msk.bf16.vlgmr.msra.gmra.mrb[28].mxu0 %vm489_vm8, %v1871_v47 }
  0x76   : > { %2429 = vmatprep.mubr.msk.bf16.mxu0 %vm489_vm8, %v1873_v48 }
  0x79   : > { %2420 = vmatmul.mubr.msk.bf16.gmra.mrb[32].mxu1 %vm489_vm8, %v1716_v29 }
  0x7d   : > { %2430 = vmatmul.mubr.msk.bf16.gmra.mrb[32].mxu0 %vm489_vm8, %v1875_v26  ;;  %vm2057_vm8 = vcmask (!%p2277_p11), 257024  }
 0x108   : > { %v2347_v22 = vpop.f32.mrb[0].mxu0 }
 0x109   : > { %v569_v55 = vadd.f32 %v2347_v22, %v457_v44  ;;  %v536_v39 = vpop.f32.mrb[1].mxu0 }
 0x10a   : > { %v567_v52 = vadd.f32 %v536_v39, %v455_v54  ;;  %v2348_v58 = vpop.f32.mrb[2].mxu0 }
 0x10b   : > { %578 = vst.msk [vmem:[#allocation2 + $0x10] sm:$0xff] %vm575_vm5, %v569_v55  ;;  %v570_v56 = vadd.f32 %v2348_v58, %v458_v32  ;;  %v539_v0 = vpop.f32.mrb[3].mxu0 }
 0x10c   : > { %v2351_v30 = vpop.f32.mrb[0].mxu1  ;;  %576 = vst.msk [vmem:[#allocation2] sm:$0xff] %vm575_vm5, %v567_v52  ;;  %v568_v3 = vadd.f32 %v539_v0, %v456_v57 }
 0x10d   : > { %v573_v61 = vadd.f32 %v2351_v30, %v461_v27  ;;  %v552_v1 = vpop.f32.mrb[1].mxu1  ;;  %579 = vst.msk [vmem:[#allocation2 + $0x18] sm:$0xff] %vm575_vm5, %v570_v56 }
 0x10e   : > { %v571_v41 = vadd.f32 %v552_v1, %v459_v60  ;;  %v2352_v46 = vpop.f32.mrb[2].mxu1  ;;  %577 = vst.msk [vmem:[#allocation2 + $0x8] sm:$0xff] %vm575_vm5, %v568_v3 }
 0x10f   : > { %582 = vst.msk [vmem:[#allocation2 + $0x30] sm:$0xff] %vm575_vm5, %v573_v61  ;;  %v574_v5 = vadd.f32 %v2352_v46, %v462_v14  ;;  %v555_v19 = vpop.f32.mrb[3].mxu1 }
 0x110   : > { %580 = vst.msk [vmem:[#allocation2 + $0x20] sm:$0xff] %vm575_vm5, %v571_v41  ;;  %v572_v43 = vadd.f32 %v555_v19, %v460_v36 }
 0x111   : > { %583 = vst.msk [vmem:[#allocation2 + $0x38] sm:$0xff] %vm575_vm5, %v574_v5 }
 0x112   : > { %581 = vst.msk [vmem:[#allocation2 + $0x28] sm:$0xff] %vm575_vm5, %v572_v43  ;;  %v597_v49 = vld [vmem:[#allocation2 + $0x10] sm:$0xff] }
 0x113   : > { %v595_v6 = vld [vmem:[#allocation2] sm:$0xff] }
 0x114   : > { %v2357_v62 = vpop.f32.mrb[4].mxu1  ;;  %v598_v7 = vld [vmem:[#allocation2 + $0x18] sm:$0xff] }
 0x115   : > { %v748_v51 = vadd.f32 %v2357_v62, %v597_v49  ;;  %v715_v9 = vpop.f32.mrb[5].mxu1  ;;  %v596_v34 = vld [vmem:[#allocation2 + $0x8] sm:$0xff] }
 0x116   : > { %v746_v10 = vadd.f32 %v715_v9, %v595_v6  ;;  %v2358_v11 = vpop.f32.mrb[6].mxu1  ;;  %v601_v13 = vld [vmem:[#allocation2 + $0x30] sm:$0xff] }
 0x117   : > { %756 = vst.msk [vmem:[#allocation2 + $0x10] sm:$0xff] %vm575_vm5, %v748_v51  ;;  %v749_v12 = vadd.f32 %v2358_v11, %v598_v7  ;;  %v718_v15 = vpop.f32.mrb[7].mxu1  ;;  %v599_v8 = vld [vmem:[#allocation2 + $0x20] sm:$0xff] }
 0x118   : > { %754 = vst.msk [vmem:[#allocation2] sm:$0xff] %vm575_vm5, %v746_v10  ;;  %v747_v16 = vadd.f32 %v718_v15, %v596_v34  ;;  %v2367_v20 = vpop.f32.mrb[4].mxu0  ;;  %v602_v42 = vld [vmem:[#allocation2 + $0x38] sm:$0xff] }
 0x119   : > { %757 = vst.msk [vmem:[#allocation2 + $0x18] sm:$0xff] %vm575_vm5, %v749_v12  ;;  %v966_v21 = vpop.f32.mrb[5].mxu0  ;;  %v600_v40 = vld [vmem:[#allocation2 + $0x28] sm:$0xff] }
 0x11a   : > { %755 = vst.msk [vmem:[#allocation2 + $0x8] sm:$0xff] %vm575_vm5, %v747_v16  ;;  %v2368_v23 = vpop.f32.mrb[6].mxu0 }
 0x11b   : > { %v969_v59 = vpop.f32.mrb[7].mxu0 }
 0x11c   : > { %v2361_v4 = vpop.f32.mrb[8].mxu1 }
 0x11d   : > { %v752_v31 = vadd.f32 %v2361_v4, %v601_v13  ;;  %v731_v33 = vpop.f32.mrb[9].mxu1 }
 0x11e   : > { %v875_v37 = vld [vmem:[#allocation2 + $0x10] sm:$0xff]  ;;  %v750_v17 = vadd.f32 %v731_v33, %v599_v8  ;;  %v2362_v38 = vpop.f32.mrb[10].mxu1 }
 0x11f   : > { %v999_v63 = vadd.f32 %v2367_v20, %v875_v37  ;;  %760 = vst.msk [vmem:[#allocation2 + $0x30] sm:$0xff] %vm575_vm5, %v752_v31  ;;  %v873_v18 = vld [vmem:[#allocation2] sm:$0xff]  ;;  %v753_v2 = vadd.f32 %v2362_v38, %v602_v42  ;;  %v734_v25 = vpop.f32.mrb[11].mxu1 }
 0x120   : > { %v997_v53 = vadd.f32 %v966_v21, %v873_v18  ;;  %758 = vst.msk [vmem:[#allocation2 + $0x20] sm:$0xff] %vm575_vm5, %v750_v17  ;;  %v876_v28 = vld [vmem:[#allocation2 + $0x18] sm:$0xff]  ;;  %v751_v35 = vadd.f32 %v734_v25, %v600_v40  ;;  %v2371_v29 = vpop.f32.mrb[8].mxu0 }
 0x121   : > { %1007 = vst.msk [vmem:[#allocation2 + $0x10] sm:$0xff] %vm575_vm5, %v999_v63  ;;  %v1000_v45 = vadd.f32 %v2368_v23, %v876_v28  ;;  %761 = vst.msk [vmem:[#allocation2 + $0x38] sm:$0xff] %vm575_vm5, %v753_v2  ;;  %v874_v47 = vld [vmem:[#allocation2 + $0x8] sm:$0xff]  ;;  %v982_v48 = vpop.f32.mrb[9].mxu0 }
 0x122   : > { %1005 = vst.msk [vmem:[#allocation2] sm:$0xff] %vm575_vm5, %v997_v53  ;;  %v998_v24 = vadd.f32 %v969_v59, %v874_v47  ;;  %759 = vst.msk [vmem:[#allocation2 + $0x28] sm:$0xff] %vm575_vm5, %v751_v35  ;;  %v2372_v26 = vpop.f32.mrb[10].mxu0 }
 0x123   : > { %1008 = vst.msk [vmem:[#allocation2 + $0x18] sm:$0xff] %vm575_vm5, %v1000_v45  ;;  %v985_v22 = vpop.f32.mrb[11].mxu0 }
 0x124   : > { %1006 = vst.msk [vmem:[#allocation2 + $0x8] sm:$0xff] %vm575_vm5, %v998_v24  ;;  %v2377_v50 = vpop.f32.mrb[12].mxu1 }
 0x125   : > { %v1111_v44 = vpop.f32.mrb[13].mxu1 }
 0x126   : > { %v879_v54 = vld [vmem:[#allocation2 + $0x30] sm:$0xff]  ;;  %v2378_v32 = vpop.f32.mrb[14].mxu1 }
 0x127   : > { %v1003_v55 = vadd.f32 %v2371_v29, %v879_v54  ;;  %v877_v39 = vld [vmem:[#allocation2 + $0x20] sm:$0xff]  ;;  %v1114_v57 = vpop.f32.mrb[15].mxu1 }
 0x128   : > { %v1001_v27 = vadd.f32 %v982_v48, %v877_v39  ;;  %v880_v52 = vld [vmem:[#allocation2 + $0x38] sm:$0xff]  ;;  %v1033_v58 = vld [vmem:[#allocation2 + $0x10] sm:$0xff]  ;;  %v2387_v41 = vpop.f32.mrb[12].mxu0 }
 0x129   : > { %1011 = vst.msk [vmem:[#allocation2 + $0x30] sm:$0xff] %vm575_vm5, %v1003_v55  ;;  %v1004_v60 = vadd.f32 %v2372_v26, %v880_v52  ;;  %v1144_v56 = vadd.f32 %v2377_v50, %v1033_v58  ;;  %v878_v0 = vld [vmem:[#allocation2 + $0x28] sm:$0xff]  ;;  %v1031_v30 = vld [vmem:[#allocation2] sm:$0xff]  ;;  %v1288_v19 = vpop.f32.mrb[13].mxu0 }
 0x12a   : > { %1009 = vst.msk [vmem:[#allocation2 + $0x20] sm:$0xff] %vm575_vm5, %v1001_v27  ;;  %v1002_v14 = vadd.f32 %v985_v22, %v878_v0  ;;  %v1142_v3 = vadd.f32 %v1111_v44, %v1031_v30  ;;  %v1034_v61 = vld [vmem:[#allocation2 + $0x18] sm:$0xff]  ;;  %v2388_v49 = vpop.f32.mrb[14].mxu0 }
 0x12b   : > { %1012 = vst.msk [vmem:[#allocation2 + $0x38] sm:$0xff] %vm575_vm5, %v1004_v60  ;;  %1152 = vst.msk [vmem:[#allocation2 + $0x10] sm:$0xff] %vm575_vm5, %v1144_v56  ;;  %v1145_v1 = vadd.f32 %v2378_v32, %v1034_v61  ;;  %v1032_v36 = vld [vmem:[#allocation2 + $0x8] sm:$0xff]  ;;  %v1291_v62 = vpop.f32.mrb[15].mxu0 }
 0x12c   : > { %1010 = vst.msk [vmem:[#allocation2 + $0x28] sm:$0xff] %vm575_vm5, %v1002_v14  ;;  %1150 = vst.msk [vmem:[#allocation2] sm:$0xff] %vm575_vm5, %v1142_v3  ;;  %v1143_v46 = vadd.f32 %v1114_v57, %v1032_v36  ;;  %v2381_v5 = vpop.f32.mrb[16].mxu1 }
 0x12d   : > { %1153 = vst.msk [vmem:[#allocation2 + $0x18] sm:$0xff] %vm575_vm5, %v1145_v1  ;;  %v1127_v43 = vpop.f32.mrb[17].mxu1 }
 0x12e   : > { %1151 = vst.msk [vmem:[#allocation2 + $0x8] sm:$0xff] %vm575_vm5, %v1143_v46  ;;  %v2382_v6 = vpop.f32.mrb[18].mxu1 }
 0x12f   : > { %v1130_v7 = vpop.f32.mrb[19].mxu1 }
 0x130   : > { %v1037_v51 = vld [vmem:[#allocation2 + $0x30] sm:$0xff]  ;;  %v2391_v13 = vpop.f32.mrb[16].mxu0 }
 0x131   : > { %v1148_v9 = vadd.f32 %v2381_v5, %v1037_v51  ;;  %v1035_v34 = vld [vmem:[#allocation2 + $0x20] sm:$0xff]  ;;  %v1304_v8 = vpop.f32.mrb[17].mxu0 }
 0x132   : > { %v1146_v10 = vadd.f32 %v1127_v43, %v1035_v34  ;;  %v1038_v11 = vld [vmem:[#allocation2 + $0x38] sm:$0xff]  ;;  %v1171_v12 = vld [vmem:[#allocation2 + $0x10] sm:$0xff]  ;;  %v2392_v17 = vpop.f32.mrb[18].mxu0 }
 0x133   : > { %1156 = vst.msk [vmem:[#allocation2 + $0x30] sm:$0xff] %vm575_vm5, %v1148_v9  ;;  %v1149_v15 = vadd.f32 %v2382_v6, %v1038_v11  ;;  %v1321_v16 = vadd.f32 %v2387_v41, %v1171_v12  ;;  %v1036_v20 = vld [vmem:[#allocation2 + $0x28] sm:$0xff]  ;;  %v1169_v21 = vld [vmem:[#allocation2] sm:$0xff]  ;;  %v1307_v63 = vpop.f32.mrb[19].mxu0 }
 0x134   : > { %1154 = vst.msk [vmem:[#allocation2 + $0x20] sm:$0xff] %vm575_vm5, %v1146_v10  ;;  %v1147_v4 = vadd.f32 %v1130_v7, %v1036_v20  ;;  %v1319_v23 = vadd.f32 %v1288_v19, %v1169_v21  ;;  %v1172_v31 = vld [vmem:[#allocation2 + $0x18] sm:$0xff]  ;;  %v2397_v33 = vpop.f32.mrb[20].mxu1 }
 0x135   : > { %1157 = vst.msk [vmem:[#allocation2 + $0x38] sm:$0xff] %vm575_vm5, %v1149_v15  ;;  %1329 = vst.msk [vmem:[#allocation2 + $0x10] sm:$0xff] %vm575_vm5, %v1321_v16  ;;  %v1322_v59 = vadd.f32 %v2388_v49, %v1172_v31  ;;  %v1170_v37 = vld [vmem:[#allocation2 + $0x8] sm:$0xff]  ;;  %v1447_v42 = vpop.f32.mrb[21].mxu1 }
 0x136   : > { %1155 = vst.msk [vmem:[#allocation2 + $0x28] sm:$0xff] %vm575_vm5, %v1147_v4  ;;  %1327 = vst.msk [vmem:[#allocation2] sm:$0xff] %vm575_vm5, %v1319_v23  ;;  %v1320_v38 = vadd.f32 %v1291_v62, %v1170_v37  ;;  %v2398_v18 = vpop.f32.mrb[22].mxu1 }
 0x137   : > { %1330 = vst.msk [vmem:[#allocation2 + $0x18] sm:$0xff] %vm575_vm5, %v1322_v59  ;;  %v1450_v2 = vpop.f32.mrb[23].mxu1 }
 0x138   : > { %1328 = vst.msk [vmem:[#allocation2 + $0x8] sm:$0xff] %vm575_vm5, %v1320_v38  ;;  %v2407_v28 = vpop.f32.mrb[20].mxu0 }
 0x139   : > { %v1592_v29 = vpop.f32.mrb[21].mxu0 }
 0x13a   : > { %v1175_v40 = vld [vmem:[#allocation2 + $0x30] sm:$0xff]  ;;  %v2408_v22 = vpop.f32.mrb[22].mxu0 }
 0x13b   : > { %v1325_v25 = vadd.f32 %v2391_v13, %v1175_v40  ;;  %v1173_v53 = vld [vmem:[#allocation2 + $0x20] sm:$0xff]  ;;  %v1595_v27 = vpop.f32.mrb[23].mxu0 }
 0x13c   : > { %v1323_v35 = vadd.f32 %v1304_v8, %v1173_v53  ;;  %v1176_v45 = vld [vmem:[#allocation2 + $0x38] sm:$0xff]  ;;  %v1357_v47 = vld [vmem:[#allocation2 + $0x10] sm:$0xff]  ;;  %v2401_v24 = vpop.f32.mrb[24].mxu1 }
 0x13d   : > { %1333 = vst.msk [vmem:[#allocation2 + $0x30] sm:$0xff] %vm575_vm5, %v1325_v25  ;;  %v1326_v48 = vadd.f32 %v2392_v17, %v1176_v45  ;;  %v1480_v50 = vadd.f32 %v2397_v33, %v1357_v47  ;;  %v1174_v26 = vld [vmem:[#allocation2 + $0x28] sm:$0xff]  ;;  %v1355_v44 = vld [vmem:[#allocation2] sm:$0xff]  ;;  %v1463_v54 = vpop.f32.mrb[25].mxu1 }
 0x13e   : > { %1331 = vst.msk [vmem:[#allocation2 + $0x20] sm:$0xff] %vm575_vm5, %v1323_v35  ;;  %v1324_v32 = vadd.f32 %v1307_v63, %v1174_v26  ;;  %v1478_v55 = vadd.f32 %v1447_v42, %v1355_v44  ;;  %v1358_v39 = vld [vmem:[#allocation2 + $0x18] sm:$0xff]  ;;  %v2402_v57 = vpop.f32.mrb[26].mxu1 }
 0x13f   : > { %1334 = vst.msk [vmem:[#allocation2 + $0x38] sm:$0xff] %vm575_vm5, %v1326_v48  ;;  %1488 = vst.msk [vmem:[#allocation2 + $0x10] sm:$0xff] %vm575_vm5, %v1480_v50  ;;  %v1481_v52 = vadd.f32 %v2398_v18, %v1358_v39  ;;  %v1356_v58 = vld [vmem:[#allocation2 + $0x8] sm:$0xff]  ;;  %v1466_v60 = vpop.f32.mrb[27].mxu1 }
 0x140   : > { %1332 = vst.msk [vmem:[#allocation2 + $0x28] sm:$0xff] %vm575_vm5, %v1324_v32  ;;  %1486 = vst.msk [vmem:[#allocation2] sm:$0xff] %vm575_vm5, %v1478_v55  ;;  %v1479_v56 = vadd.f32 %v1450_v2, %v1356_v58  ;;  %v2411_v0 = vpop.f32.mrb[24].mxu0 }
 0x141   : > { %1489 = vst.msk [vmem:[#allocation2 + $0x18] sm:$0xff] %vm575_vm5, %v1481_v52  ;;  %v1608_v14 = vpop.f32.mrb[25].mxu0 }
 0x142   : > { %1487 = vst.msk [vmem:[#allocation2 + $0x8] sm:$0xff] %vm575_vm5, %v1479_v56  ;;  %v2412_v36 = vpop.f32.mrb[26].mxu0 }
 0x143   : > { %v1611_v43 = vpop.f32.mrb[27].mxu0 }
 0x144   : > { %v1361_v30 = vld [vmem:[#allocation2 + $0x30] sm:$0xff]  ;;  %v2417_v3 = vpop.f32.mrb[28].mxu1 }
 0x145   : > { %v1484_v61 = vadd.f32 %v2401_v24, %v1361_v30  ;;  %v1359_v1 = vld [vmem:[#allocation2 + $0x20] sm:$0xff]  ;;  %v1769_v41 = vpop.f32.mrb[29].mxu1 }
 0x146   : > { %v1482_v46 = vadd.f32 %v1463_v54, %v1359_v1  ;;  %v1362_v5 = vld [vmem:[#allocation2 + $0x38] sm:$0xff]  ;;  %v1514_v19 = vld [vmem:[#allocation2 + $0x10] sm:$0xff]  ;;  %v2418_v49 = vpop.f32.mrb[30].mxu1 }
 0x147   : > { %1492 = vst.msk [vmem:[#allocation2 + $0x30] sm:$0xff] %vm575_vm5, %v1484_v61  ;;  %v1485_v6 = vadd.f32 %v2402_v57, %v1362_v5  ;;  %v1625_v62 = vadd.f32 %v2407_v28, %v1514_v19  ;;  %v1360_v7 = vld [vmem:[#allocation2 + $0x28] sm:$0xff]  ;;  %v1512_v51 = vld [vmem:[#allocation2] sm:$0xff]  ;;  %v1772_v9 = vpop.f32.mrb[31].mxu1 }
 0x148   : > { %1490 = vst.msk [vmem:[#allocation2 + $0x20] sm:$0xff] %vm575_vm5, %v1482_v46  ;;  %v1483_v34 = vadd.f32 %v1466_v60, %v1360_v7  ;;  %v1623_v10 = vadd.f32 %v1592_v29, %v1512_v51  ;;  %v1515_v11 = vld [vmem:[#allocation2 + $0x18] sm:$0xff]  ;;  %v2427_v20 = vpop.f32.mrb[28].mxu0 }
 0x149   : > { %1493 = vst.msk [vmem:[#allocation2 + $0x38] sm:$0xff] %vm575_vm5, %v1485_v6  ;;  %1633 = vst.msk [vmem:[#allocation2 + $0x10] sm:$0xff] %vm575_vm5, %v1625_v62  ;;  %v1626_v12 = vadd.f32 %v2408_v22, %v1515_v11  ;;  %v1513_v15 = vld [vmem:[#allocation2 + $0x8] sm:$0xff]  ;;  %v1928_v13 = vpop.f32.mrb[29].mxu0  ;;  %v2278_v6 = vld [vmem:[%s3243_s2] ss:$0 sm:$0xff] (!%p2277_p11) }
 0x14a   : > { %1491 = vst.msk [vmem:[#allocation2 + $0x28] sm:$0xff] %vm575_vm5, %v1483_v34  ;;  %1631 = vst.msk [vmem:[#allocation2] sm:$0xff] %vm575_vm5, %v1623_v10  ;;  %v1624_v16 = vadd.f32 %v1595_v27, %v1513_v15  ;;  %v2428_v23 = vpop.f32.mrb[30].mxu0  ;;  %v2279_v62 = vld [vmem:[%s3244_s3] ss:$0 sm:$0xff] (!%p2277_p11) }
 0x14b   : > { %1634 = vst.msk [vmem:[#allocation2 + $0x18] sm:$0xff] %vm575_vm5, %v1626_v12  ;;  %v1931_v33 = vpop.f32.mrb[31].mxu0 }
 0x14c   : > { %1632 = vst.msk [vmem:[#allocation2 + $0x8] sm:$0xff] %vm575_vm5, %v1624_v16  ;;  %v2421_v21 = vpop.f32.mrb[32].mxu1 }
 0x14d   : > { %v1785_v4 = vpop.f32.mrb[33].mxu1 }
 0x14e   : > { %v1518_v31 = vld [vmem:[#allocation2 + $0x30] sm:$0xff]  ;;  %v2422_v8 = vpop.f32.mrb[34].mxu1 }
 0x14f   : > { %v1629_v59 = vadd.f32 %v2411_v0, %v1518_v31  ;;  %v1516_v37 = vld [vmem:[#allocation2 + $0x20] sm:$0xff]  ;;  %v1788_v17 = vpop.f32.mrb[35].mxu1 }
 0x150   : > { %v1627_v42 = vadd.f32 %v1608_v14, %v1516_v37  ;;  %v1519_v38 = vld [vmem:[#allocation2 + $0x38] sm:$0xff]  ;;  %v1652_v63 = vld [vmem:[#allocation2 + $0x10] sm:$0xff]  ;;  %v2431_v24 = vpop.f32.mrb[32].mxu0 }
 0x151   : > { %1637 = vst.msk [vmem:[#allocation2 + $0x30] sm:$0xff] %vm575_vm5, %v1629_v59  ;;  %v1630_v18 = vadd.f32 %v2412_v36, %v1519_v38  ;;  %v1802_v2 = vadd.f32 %v2417_v3, %v1652_v63  ;;  %v1517_v40 = vld [vmem:[#allocation2 + $0x28] sm:$0xff]  ;;  %v1650_v25 = vld [vmem:[#allocation2] sm:$0xff]  ;;  %v1944_v48 = vpop.f32.mrb[33].mxu0 }
 0x152   : > { %1635 = vst.msk [vmem:[#allocation2 + $0x20] sm:$0xff] %vm575_vm5, %v1627_v42  ;;  %v1628_v53 = vadd.f32 %v1611_v43, %v1517_v40  ;;  %v1800_v28 = vadd.f32 %v1769_v41, %v1650_v25  ;;  %v1653_v35 = vld [vmem:[#allocation2 + $0x18] sm:$0xff]  ;;  %v2432_v50 = vpop.f32.mrb[34].mxu0 }
 0x153   : > { %1638 = vst.msk [vmem:[#allocation2 + $0x38] sm:$0xff] %vm575_vm5, %v1630_v18  ;;  %1810 = vst.msk [vmem:[#allocation2 + $0x10] sm:$0xff] %vm575_vm5, %v1802_v2  ;;  %v1803_v45 = vadd.f32 %v2418_v49, %v1653_v35  ;;  %v1651_v47 = vld [vmem:[#allocation2 + $0x8] sm:$0xff]  ;;  %v1947_v26 = vpop.f32.mrb[35].mxu0 }
 0x154   : > { %1636 = vst.msk [vmem:[#allocation2 + $0x28] sm:$0xff] %vm575_vm5, %v1628_v53  ;;  %1808 = vst.msk [vmem:[#allocation2] sm:$0xff] %vm575_vm5, %v1800_v28  ;;  %v1801_v29 = vadd.f32 %v1772_v9, %v1651_v47 }
 0x155   : > { %1811 = vst.msk [vmem:[#allocation2 + $0x18] sm:$0xff] %vm575_vm5, %v1803_v45 }
 0x156   : > { %1809 = vst.msk [vmem:[#allocation2 + $0x8] sm:$0xff] %vm575_vm5, %v1801_v29 }
 0x158   : > { %v1656_v44 = vld [vmem:[#allocation2 + $0x30] sm:$0xff] }
 0x159   : > { %v1806_v54 = vadd.f32 %v2421_v21, %v1656_v44  ;;  %v1654_v22 = vld [vmem:[#allocation2 + $0x20] sm:$0xff] }
 0x15a   : > { %v1804_v32 = vadd.f32 %v1785_v4, %v1654_v22  ;;  %v1657_v55 = vld [vmem:[#allocation2 + $0x38] sm:$0xff]  ;;  %v1838_v39 = vld [vmem:[#allocation2 + $0x10] sm:$0xff] }
 0x15b   : > { %1814 = vst.msk [vmem:[#allocation2 + $0x30] sm:$0xff] %vm575_vm5, %v1806_v54  ;;  %v1807_v57 = vadd.f32 %v2422_v8, %v1657_v55  ;;  %v1961_v27 = vadd.f32 %v2427_v20, %v1838_v39  ;;  %v1655_v52 = vld [vmem:[#allocation2 + $0x28] sm:$0xff]  ;;  %v1836_v58 = vld [vmem:[#allocation2] sm:$0xff] }
 0x15c   : > { %1812 = vst.msk [vmem:[#allocation2 + $0x20] sm:$0xff] %vm575_vm5, %v1804_v32  ;;  %v1805_v60 = vadd.f32 %v1788_v17, %v1655_v52  ;;  %v1959_v56 = vadd.f32 %v1928_v13, %v1836_v58  ;;  %v1839_v0 = vld [vmem:[#allocation2 + $0x18] sm:$0xff] }
 0x15d   : > { %1815 = vst.msk [vmem:[#allocation2 + $0x38] sm:$0xff] %vm575_vm5, %v1807_v57  ;;  %1969 = vst.msk [vmem:[#allocation2 + $0x10] sm:$0xff] %vm575_vm5, %v1961_v27  ;;  %v1962_v30 = vadd.f32 %v2428_v23, %v1839_v0  ;;  %v1837_v14 = vld [vmem:[#allocation2 + $0x8] sm:$0xff] }
 0x15e   : > { %1813 = vst.msk [vmem:[#allocation2 + $0x28] sm:$0xff] %vm575_vm5, %v1805_v60  ;;  %1967 = vst.msk [vmem:[#allocation2] sm:$0xff] %vm575_vm5, %v1959_v56  ;;  %v1960_v3 = vadd.f32 %v1931_v33, %v1837_v14 }
 0x15f   : > { %1970 = vst.msk [vmem:[#allocation2 + $0x18] sm:$0xff] %vm575_vm5, %v1962_v30 }
 0x160   : > { %1968 = vst.msk [vmem:[#allocation2 + $0x8] sm:$0xff] %vm575_vm5, %v1960_v3 }
 0x162   : > { %v1842_v61 = vld [vmem:[#allocation2 + $0x30] sm:$0xff]  ;;  %1978 = sbr.rel (%p2277_p11) target bundleno = 377 (0x179), region = 44 }
 0x163   : > { %v1965_v1 = vadd.f32 %v2431_v24, %v1842_v61  ;;  %v1840_v36 = vld [vmem:[#allocation2 + $0x20] sm:$0xff] }
 0x164   : > { %v1963_v41 = vadd.f32 %v1944_v48, %v1840_v36  ;;  %v1843_v46 = vld [vmem:[#allocation2 + $0x38] sm:$0xff]  ;;  %v1981_v9 = vld [vmem:[#allocation2 + $0x10] sm:$0xff] (!%p2277_p11) }
 0x165   : > { %1973 = vst.msk [vmem:[#allocation2 + $0x30] sm:$0xff] %vm575_vm5, %v1965_v1  ;;  %v1966_v5 = vadd.f32 %v2432_v50, %v1843_v46  ;;  %v1841_v19 = vld [vmem:[#allocation2 + $0x28] sm:$0xff]  ;;  %v1979_v49 = vld [vmem:[#allocation2] sm:$0xff] (!%p2277_p11)  ;;  %v1996_v11 = vmul.f32 (!%p2277_p11), %v2278_v6, %v1981_v9 }
 0x166   : > { %1971 = vst.msk [vmem:[#allocation2 + $0x20] sm:$0xff] %vm575_vm5, %v1963_v41  ;;  %v1964_v43 = vadd.f32 %v1947_v26, %v1841_v19  ;;  %v1994_v7 = vmul.f32 (!%p2277_p11), %v2278_v6, %v1979_v49  ;;  %v1982_v34 = vld [vmem:[#allocation2 + $0x18] sm:$0xff] (!%p2277_p11) }
 0x167   : > { %1974 = vst.msk [vmem:[#allocation2 + $0x38] sm:$0xff] %vm575_vm5, %v1966_v5  ;;  %v1980_v51 = vld [vmem:[#allocation2 + $0x8] sm:$0xff] (!%p2277_p11)  ;;  %v1997_v12 = vmul.f32 (!%p2277_p11), %v2278_v6, %v1982_v34  ;;  %v2011_v33 = vadd.f32 (!%p2277_p11), %v2279_v62, %v1996_v11 }
 0x168   : > { %1972 = vst.msk [vmem:[#allocation2 + $0x28] sm:$0xff] %vm575_vm5, %v1964_v43  ;;  %v1995_v10 = vmul.f32 (!%p2277_p11), %v2278_v6, %v1980_v51  ;;  %v2009_v21 = vadd.f32 (!%p2277_p11), %v2279_v62, %v1994_v7 }
 0x169   : > { %v2012_v59 = vadd.f32 %v2279_v62, %v1997_v12  ;;  %v2019_v2 = vmax.f32 %v2011_v33, 0.0 }
 0x16a   : > { %v2010_v8 = vadd.f32 %v2279_v62, %v1995_v10  ;;  %v2017_v17 = vmax.f32 %v2009_v21, 0.0 }
 0x16b   : > { %v2020_v40 = vmax.f32 %v2012_v59, 0.0  ;;  %v2292_v24 = vpack.c.bf16 %v2019_v2, %v2019_v2 }
 0x16c   : > { %v1985_v20 = vld [vmem:[#allocation2 + $0x30] sm:$0xff]  ;;  %v2018_v18 = vmax.f32 %v2010_v8, 0.0  ;;  %v2290_v53 = vpack.c.bf16 %v2017_v17, %v2017_v17 }
 0x16d   : > { %v1983_v15 = vld [vmem:[#allocation2 + $0x20] sm:$0xff]  ;;  %v2000_v23 = vmul.f32 %v2278_v6, %v1985_v20  ;;  %v2293_v29 = vpack.c.bf16 %v2020_v40, %v2020_v40  ;;  %2060 = vst.msk [vmem:[%s2668_s27 + $0x8] sm:$0xf] %vm2057_vm8, %v2292_v24 }
 0x16e   : > { %v1998_v13 = vmul.f32 %v2278_v6, %v1983_v15  ;;  %v1986_v31 = vld [vmem:[#allocation2 + $0x38] sm:$0xff]  ;;  %v2291_v47 = vpack.c.bf16 %v2018_v18, %v2018_v18  ;;  %2058 = vst.msk [vmem:[%s2668_s27] sm:$0xf] %vm2057_vm8, %v2290_v53 }
 0x16f   : > { %v1984_v16 = vld [vmem:[#allocation2 + $0x28] sm:$0xff]  ;;  %v2001_v37 = vmul.f32 %v2278_v6, %v1986_v31  ;;  %v2015_v63 = vadd.f32 %v2279_v62, %v2000_v23  ;;  %2061 = vst.msk [vmem:[%s2668_s27 + $0xc] sm:$0xf] %vm2057_vm8, %v2293_v29 }
 0x170   : > { %v1999_v4 = vmul.f32 %v2278_v6, %v1984_v16  ;;  %v2013_v42 = vadd.f32 %v2279_v62, %v1998_v13  ;;  %2059 = vst.msk [vmem:[%s2668_s27 + $0x4] sm:$0xf] %vm2057_vm8, %v2291_v47 }
 0x171   : > { %v2016_v25 = vadd.f32 %v2279_v62, %v2001_v37  ;;  %v2023_v45 = vmax.f32 %v2015_v63, 0.0 }
 0x172   : > { %v2014_v38 = vadd.f32 %v2279_v62, %v1999_v4  ;;  %v2021_v28 = vmax.f32 %v2013_v42, 0.0 }
 0x173   : > { %v2024_v48 = vmax.f32 %v2016_v25, 0.0  ;;  %v2296_v44 = vpack.c.bf16 %v2023_v45, %v2023_v45 }
 0x174   : > { %v2022_v35 = vmax.f32 %v2014_v38, 0.0  ;;  %v2294_v50 = vpack.c.bf16 %v2021_v28, %v2021_v28 }
 0x175   : > { %v2297_v54 = vpack.c.bf16 %v2024_v48, %v2024_v48  ;;  %2064 = vst.msk [vmem:[%s2668_s27 + $0x18] sm:$0xf] %vm2057_vm8, %v2296_v44 }
 0x176   : > { %v2295_v26 = vpack.c.bf16 %v2022_v35, %v2022_v35  ;;  %2062 = vst.msk [vmem:[%s2668_s27 + $0x10] sm:$0xf] %vm2057_vm8, %v2294_v50 }
 0x177   : > { %2065 = vst.msk [vmem:[%s2668_s27 + $0x1c] sm:$0xf] %vm2057_vm8, %v2297_v54 }
 0x178   : > { %2063 = vst.msk [vmem:[%s2668_s27 + $0x14] sm:$0xf] %vm2057_vm8, %v2295_v26 }
 0x179 PF: > { %s14_s21 = sadd.s32 1, %s2574_s21   ;;  %s3299_s29 = sld [smem:[#allocation3_spill]] }
 0x17a   : > { %p11_p12 = scmp.ge.s32.totalorder %s14_s21, 50   ;;  %s3300_s15 = smov %s2562_s18 }
 0x17b   : > { %s3301_s16 = smov %s2566_s19  ;;  %s3302_s17 = smov %s2570_s20 }
 0x17c   : > { %s3303_s18 = smov %s3307_s22  ;;  %s3304_s19 = smov %s3311_s23 }
 0x17d   :  { %13 = sbr.rel (!%p11_p12) target bundleno = 4 (0x4), region = 77 }
 0x17f   : > { %s3305_s20 = smov %s3299_s29 }

// kernel: physnet_forward.19
= control target key start
LH: loop header
LB: loop body
LE: loop exit
PB: predicated region body
PF: predicated region fallthrough
CT: control target
= control target key end

     0   :  { %s287_s6 = smov 0   ;;  %s309_s0 = inlined_call_operand.vmem [shape: bf16[16,4,2,4,128], index: 0, kind: input, shape index: {}]   ;;  %s310_s1 = inlined_call_operand.vmem [shape: bf16[8,4,4,64], index: 1, kind: output, shape index: {}]  }
   0x1 LB: > { %s293_s7 = sadd.s32 4294967295, %s274_s6   ;;  %p237_p0 = scmp.ge.s32.totalorder %s274_s6, 1  ;;  %s274_s6 = sphi %s287_s6, %s11_s6  }
   0x2   : > { %p89_p1 = scmp.lt.s32.totalorder %s274_s6, 9 }
   0x4   : > { %p90_p2 = pnand %p237_p0, %p89_p1 }
   0x5   : > { %s238_s8 = sshll.u32 (!%p90_p2), %s293_s7, 1  ;;  %s276_s13 = smov (!%p90_p2), 64   ;;  %vm173_vm0 = vcmask (!%p90_p2), 517120  }
   0x6   : > { %93 = sbr.rel (%p90_p2) target bundleno = 146 (0x92), region = 24  ;;  %p111_p3 = scmp.lt.s32.totalorder (!%p90_p2), %s238_s8, 15 }
   0x7   : > { %p117_p4 = scmp.lt.s32.totalorder (!%p90_p2), %s293_s7, 7 }
   0xd   : > { %s312_s8 = smov (!%p111_p3, %s238_s8), 15  ;;  %s314_s7 = smov (!%p117_p4, %s293_s7), 7 }
   0xe   : > { %s257_s9 = sshll.u32 %s312_s8, 4  ;;  %s258_s14 = sshll.u32 %s314_s7, 3 }
   0xf   : > { %s115_s12 = scalar_lea.vmem %s309_s0, %s257_s9  ;;  %s121_s17 = scalar_lea.vmem %s310_s1, %s258_s14 }
  0x10   : > { %v124_v0 = vld [vmem:[%s115_s12 + $0x8] sm:$0x3]  ;;  %v245_v1 = vld [vmem:[%s115_s12 + $0xa] sm:$0x3]  ;;  %v249_v2 = vld [vmem:[%s115_s12 + $0x18] sm:$0x3] }
  0x11   : > { %v133_v3 = vmax.bf16 %v245_v1, %v124_v0  ;;  %v122_v4 = vld [vmem:[%s115_s12] sm:$0x3]  ;;  %v243_v5 = vld [vmem:[%s115_s12 + $0x2] sm:$0x3]  ;;  %v253_v6 = vld [vmem:[%s115_s12 + $0x1a] sm:$0x3] }
  0x12   : > { %v131_v7 = vmax.bf16 %v243_v5, %v122_v4  ;;  %v247_v8 = vld [vmem:[%s115_s12 + $0x10] sm:$0x3]  ;;  %v125_v9 = vld [vmem:[%s115_s12 + $0xc] sm:$0x3]  ;;  %v251_v11 = vld [vmem:[%s115_s12 + $0x12] sm:$0x3] }
  0x13   : > { %v142_v10 = vmax.bf16 %v249_v2, %v133_v3  ;;  %v246_v12 = vld [vmem:[%s115_s12 + $0xe] sm:$0x3]  ;;  %v250_v13 = vld [vmem:[%s115_s12 + $0x1c] sm:$0x3]  ;;  %v123_v16 = vld [vmem:[%s115_s12 + $0x4] sm:$0x3] }
  0x14   : > { %v140_v14 = vmax.bf16 %v247_v8, %v131_v7  ;;  %v134_v15 = vmax.bf16 %v246_v12, %v125_v9  ;;  %v244_v17 = vld [vmem:[%s115_s12 + $0x6] sm:$0x3]  ;;  %v248_v18 = vld [vmem:[%s115_s12 + $0x14] sm:$0x3]  ;;  %v254_v20 = vld [vmem:[%s115_s12 + $0x1e] sm:$0x3] }
  0x15   : > { %v151_v19 = vmax.bf16 %v253_v6, %v142_v10  ;;  %v132_v21 = vmax.bf16 %v244_v17, %v123_v16  ;;  %v252_v24 = vld [vmem:[%s115_s12 + $0x16] sm:$0x3] }
  0x16   : > { %v149_v22 = vmax.bf16 %v251_v11, %v140_v14  ;;  %v143_v23 = vmax.bf16 %v250_v13, %v134_v15 }
  0x17   : > { %161 = vrot.lane.b32.xlu1 %v151_v19, %s276_s13  ;;  %v141_v25 = vmax.bf16 %v248_v18, %v132_v21 }
  0x18   : > { %157 = vrot.lane.b32.xlu0 %v149_v22, %s276_s13  ;;  %v152_v26 = vmax.bf16 %v254_v20, %v143_v23 }
  0x19   : > { %v150_v27 = vmax.bf16 %v252_v24, %v141_v25 }
  0x1b   : > { %163 = vrot.lane.b32.xlu1 %v152_v26, %s276_s13 }
  0x1c   : > { %159 = vrot.lane.b32.xlu0 %v150_v27, %s276_s13 }
  0x89   : > { %v162_v28 = vpop.permute.xlu1 %161 }
  0x8a   : > { %v171_v29 = vmax.bf16 %v162_v28, %v151_v19  ;;  %v158_v30 = vpop.permute.xlu0 %157 }
  0x8b   : > { %v169_v31 = vmax.bf16 %v158_v30, %v149_v22 }
  0x8c   : > { %176 = vst.msk [vmem:[%s121_s17 + $0x4] sm:$0x3] %vm173_vm0, %v171_v29 }
  0x8d   : > { %174 = vst.msk [vmem:[%s121_s17] sm:$0x3] %vm173_vm0, %v169_v31  ;;  %v164_v32 = vpop.permute.xlu1 %163 }
  0x8e   : > { %v172_v33 = vmax.bf16 %v164_v32, %v152_v26  ;;  %v160_v34 = vpop.permute.xlu0 %159 }
  0x8f   : > { %v170_v35 = vmax.bf16 %v160_v34, %v150_v27 }
  0x90   : > { %177 = vst.msk [vmem:[%s121_s17 + $0x6] sm:$0x3] %vm173_vm0, %v172_v33 }
  0x91   : > { %175 = vst.msk [vmem:[%s121_s17 + $0x2] sm:$0x3] %vm173_vm0, %v170_v35 }
  0x92 PF: > { %s11_s6 = sadd.s32 1, %s274_s6  }
  0x93   : > { %p8_p5 = scmp.ge.s32.totalorder %s11_s6, 10  }
  0x95   :  { %10 = sbr.rel (!%p8_p5) target bundleno = 1 (0x1), region = 57 }

// kernel: physnet_forward.18
= control target key start
LH: loop header
LB: loop body
LE: loop exit
PB: predicated region body
PF: predicated region fallthrough
CT: control target
= control target key end

     0   :  { %s2722_s15 = smov 0   ;;  %s2724_s16 = smov 0   ;;  %s3386_s0 = inlined_call_operand.vmem [shape: bf16[2,10,82,32], index: 0, kind: input, shape index: {}]   ;;  %s3387_s1 = inlined_call_operand.vmem [shape: bf16[3,288,64], index: 1, kind: input, shape index: {}]   ;;  %s3388_s2 = inlined_call_operand.vmem [shape: f32[1,64], index: 2, kind: input, shape index: {}]   ;;  %s3389_s3 = inlined_call_operand.vmem [shape: f32[1,64], index: 3, kind: input, shape index: {}]   ;;  %s3390_s4 = inlined_call_operand.vmem [shape: bf16[2,8,64,64], index: 4, kind: output, shape index: {}]  }
   0x1   :  { %s2726_s17 = smov 0   ;;  %s2728_s18 = smov 0  }
   0x2   :  { %s2730_s19 = smov 0   ;;  %s2732_s20 = smov 0  }
   0x3   :  { %s2734_s21 = smov 0  }
   0x4 LB: > { %s26_s22 = sadd.s32 1, %s2681_s18  ;;  %s29_s23 = sadd.s32 1, %s2685_s19  ;;  %s2693_s21 = sphi %s2734_s21, %s14_s21   ;;  %s2689_s20 = sphi %s2732_s20, %s3462_s20   ;;  %s2685_s19 = sphi %s2730_s19, %s3461_s19   ;;  %s2681_s18 = sphi %s2728_s18, %s3460_s18   ;;  %s2677_s17 = sphi %s2726_s17, %s3459_s17   ;;  %s2673_s16 = sphi %s2724_s16, %s3458_s16   ;;  %s2669_s15 = sphi %s2722_s15, %s3457_s15  }
   0x5   : > { %p27_p0 = scmp.ge.s32.totalorder %s26_s22, 3  ;;  %p2255_p1 = scmp.ge.s32.totalorder %s2693_s21, 1 }
   0x6   : > { %p203_p2 = scmp.lt.s32.totalorder %s2693_s21, 49  ;;  %s33_s24 = sadd.s32 1, %s2689_s20 }
   0x7   : > { %s3464_s22 = smov (%p27_p0, %s26_s22), 0  ;;  %s3466_s23 = smov (!%p27_p0, %s29_s23), %s2685_s19 }
   0x8   : > { %p204_p3 = pnand %p2255_p1, %p203_p2  ;;  %p31_p4 = scmp.ge.s32.totalorder %s3466_s23, 8 }
   0x9   : > { %s243_s25 = sadd.s32 (!%p204_p3), %s2669_s15, %s2673_s16  ;;  %p244_p6 = scmp.lt.s32.totalorder (!%p204_p3), %s2677_s17, 1 }
   0xa   : > { %s3468_s23 = smov (%p31_p4, %s3466_s23), 0  ;;  %s3470_s24 = smov (!%p31_p4, %s33_s24), %s2689_s20 }
   0xb   : > { %p35_p5 = scmp.ge.s32.totalorder %s3470_s24, 2  ;;  %207 = sbr.rel (%p204_p3) target bundleno = 376 (0x178), region = 36 }
   0xc   : > { %p246_p7 = scmp.lt.s32.totalorder (!%p204_p3), %s243_s25, 9  ;;  %p254_p8 = scmp.lt.s32.totalorder (!%p204_p3), %s2669_s15, 2 }
   0xd   : > { %s3472_s24 = smov (%p35_p5, %s3470_s24), 0  ;;  %p261_p9 = scmp.lt.s32.totalorder (!%p204_p3), %s2673_s16, 7 }
   0xe   : > { %3397 = sst [smem:[#allocation3_spill]] %s3472_s24  ;;  %p2261_p10 = scmp.ne.s32.totalorder (!%p204_p3), %s2669_s15, 0 }
  0x12   : > { %s3474_s17 = smov (!%p244_p6, %s2677_s17), 1  ;;  %s3476_s25 = smov (!%p246_p7, %s243_s25), 9 }
  0x13   : > { %s2546_s26 = smul.u32 110, %s3474_s17  ;;  %s2259_s12 = sshll.u32 %s3474_s17, 6  ;;  %vm275_vm0 = vcmask (!%p2261_p10), 523264   ;;  %v2695_v0 = vmov (!%p2261_p10), 0.0  }
  0x14   : > { %s2545_s27 = smul.u32 11, %s3476_s25  ;;  %s3478_s16 = smov (!%p261_p9, %s2673_s16), 7  ;;  %276 = vst.msk [vmem:[#allocation2] sm:$0xff] (!%p2261_p10), %vm275_vm0, %v2695_v0  ;;  %277 = vst.msk [vmem:[#allocation2 + $0x8] sm:$0xff] (!%p2261_p10), %vm275_vm0, %v2695_v0 }
  0x15   : > { %s255_s28 = scalar_select %p254_p8, %s2669_s15, 2 }
  0x16   : > { %s250_s29 = sadd.s32 %s2546_s26, %s2545_s27  ;;  %s2258_s13 = sshll.u32 %s3478_s16, 3  ;;  %278 = vst.msk [vmem:[#allocation2 + $0x10] sm:$0xff] (!%p2261_p10), %vm275_vm0, %v2695_v0  ;;  %279 = vst.msk [vmem:[#allocation2 + $0x18] sm:$0xff] (!%p2261_p10), %vm275_vm0, %v2695_v0 }
  0x17   : > { %s2256_s30 = sshll.u32 %s250_s29, 2  ;;  %s2547_s5 = smul.u32 144, %s255_s28  ;;  %280 = vst.msk [vmem:[#allocation2 + $0x20] sm:$0xff] (!%p2261_p10), %vm275_vm0, %v2695_v0  ;;  %281 = vst.msk [vmem:[#allocation2 + $0x28] sm:$0xff] (!%p2261_p10), %vm275_vm0, %v2695_v0 }
  0x18   : > { %s2776_s8 = scalar_lea.vmem %s3386_s0, %s2256_s30  ;;  %s265_s14 = sadd.s32 %s2259_s12, %s2258_s13  ;;  %282 = vst.msk [vmem:[#allocation2 + $0x30] sm:$0xff] (!%p2261_p10), %vm275_vm0, %v2695_v0  ;;  %283 = vst.msk [vmem:[#allocation2 + $0x38] sm:$0xff] (!%p2261_p10), %vm275_vm0, %v2695_v0 }
  0x19   : > { %s2781_s11 = scalar_lea.vmem %s3387_s1, %s2547_s5  ;;  %s2260_s25 = sshll.u32 %s265_s14, 2 }
  0x1a   : > { %s2787_s27 = scalar_lea.vmem %s3390_s4, %s2260_s25  ;;  %274 = sbr.rel (%p2261_p10) target bundleno = 33 (0x21), region = 40 }
  0x21 PF: > { %v2606_v1 = vld [vmem:[%s2781_s11] sm:$0xff]   ;;  %v284_v2 = vlaneseq  ;;  %v2607_v3 = vld [vmem:[%s2781_s11 + $0x8] sm:$0xff]   ;;  %v2799_v9 = vld [vmem:[%s2781_s11 + $0x10] sm:$0xff]   ;;  %vm497_vm8 = vcmask 261120   ;;  %v2696_v21 = vmov 0   ;;  %p2358_p11 = scmp.ne.s32.totalorder %s2669_s15, 2 }
  0x22   : > { %2541 = vmatprep.subr.bf16.mxu1 %v2606_v1  ;;  %2433 = vmatprep.subr.bf16.mxu0 %v2606_v1  ;;  %v389_v10 = vld [vmem:[%s2776_s8] sm:$0xf]  ;;  %v390_v14 = vld [vmem:[%s2776_s8 + $0x4] sm:$0xf]  ;;  %v393_v17 = vld [vmem:[%s2776_s8 + $0x10] sm:$0xf] }
  0x23   : > { %v2792_v4 = vshrl.u32 %v284_v2, 7  ;;  %2543 = vmatpush3.bf16.msra.mxu1 %v2606_v1  ;;  %2434 = vmatpush3.bf16.msra.mxu0 %v2606_v1  ;;  %v2835_v24 = vld [vmem:[%s2776_s8 + $0x4] sm:$0xf]  ;;  %v394_v25 = vld [vmem:[%s2776_s8 + $0x14] sm:$0xf]  ;;  %v2611_v63 = vld [vmem:[%s2776_s8 + $0x8] sm:$0xff]  }
  0x24   : > { %2542 = vmatprep.subr.bf16.mxu1 %v2607_v3  ;;  %2435 = vmatprep.subr.bf16.mxu0 %v2607_v3  ;;  %v2841_v29 = vld [vmem:[%s2776_s8 + $0x8] sm:$0xf]  ;;  %v2867_v37 = vld [vmem:[%s2776_s8 + $0x14] sm:$0xf]  ;;  %v392_v52 = vld [vmem:[%s2776_s8 + $0xc] sm:$0xf] }
  0x25   : > { %v286_v5 = vadd.s32 8, %v2792_v4  ;;  %v297_v6 = vand.u32 7, %v2792_v4  ;;  %v289_v7 = vadd.s32 32, %v2792_v4  ;;  %v290_v8 = vadd.s32 40, %v2792_v4  ;;  %v391_v49 = vld [vmem:[%s2776_s8 + $0x8] sm:$0xf] }
  0x26   : > { %v287_v26 = vadd.s32 16, %v2792_v4  ;;  %v288_v41 = vadd.s32 24, %v2792_v4  ;;  %v291_v45 = vadd.s32 48, %v2792_v4  ;;  %v292_v50 = vadd.s32 56, %v2792_v4  ;;  %v395_v58 = vld [vmem:[%s2776_s8 + $0x18] sm:$0xf] }
  0x27   : > { %v304_v11 = vand.u32 7, %v286_v5  ;;  %vm397_vm1 = vcmp.ge.s32.totalorder %v297_v6, 1  ;;  %vm2802_vm2 = vcmp.lt.s32.totalorder %v297_v6, 7  ;;  %v325_v13 = vand.u32 7, %v289_v7  ;;  %2544 = vmatpush3.bf16.msra.mxu1 %v2607_v3  ;;  %2436 = vmatpush3.bf16.msra.mxu0 %v2607_v3  ;;  %v2610_v59 = vld [vmem:[%s2776_s8] sm:$0xff]   ;;  %v2613_v31 = vld [vmem:[%s2776_s8 + $0x10] sm:$0xff]  }
  0x28   : > { %vm2807_vm3 = vmpackc.low %vm397_vm1, %vm397_vm1  ;;  %v332_v16 = vand.u32 7, %v290_v8  ;;  %2445 = vmatprep.subr.bf16.mxu1 %v2799_v9  ;;  %v311_v44 = vand.u32 7, %v287_v26  ;;  %v318_v48 = vand.u32 7, %v288_v41  ;;  %v339_v54 = vand.u32 7, %v291_v45  ;;  %v396_v1 = vld [vmem:[%s2776_s8 + $0x1c] sm:$0xf] }
  0x29   : > { %vm398_vm4 = vcmp.ge.s32.totalorder %v304_v11, 1  ;;  %v445_v18 = vsel %vm2807_vm3, %v389_v10, 0  ;;  %vm2814_vm5 = vcmp.lt.s32.totalorder %v304_v11, 7  ;;  %vm827_vm6 = vmpackc.low %vm2802_vm2, %vm2802_vm2  ;;  %vm401_vm9 = vcmp.ge.s32.totalorder %v325_v13, 1  ;;  %v780_v56 = vld [vmem:[%s2776_s8 + $0x8] sm:$0xf] }
  0x2a   : > { %vm2822_vm7 = vmpackc.low %vm398_vm4, %vm398_vm4  ;;  %v2827_v22 = vsel %vm827_vm6, 65537, %v2696_v21  ;;  %vm402_vm10 = vcmp.ge.s32.totalorder %v332_v16, 1  ;;  %vm799_vm13 = vcmp.lt.s32.totalorder %v325_v13, 7  ;;  %vm2847_vm14 = vcmp.lt.s32.totalorder %v332_v16, 7  ;;  %v2609_v13 = vld [vmem:[%s2781_s11 + $0x18] sm:$0xff]  }
  0x2b   : > { %v446_v23 = vsel %vm2822_vm7, %v390_v14, 0  ;;  %vm828_vm11 = vmpackc.low %vm2814_vm5, %vm2814_vm5  ;;  %v846_v28 = vrot.slane %v2827_v22, 7  ;;  %v1045_v35 = vsel %vm2807_vm3, %v2835_v24, 0  ;;  %v1046_v38 = vsel %vm2822_vm7, %v2841_v29, 0  ;;  %v781_v22 = vld [vmem:[%s2776_s8 + $0xc] sm:$0xf] }
  0x2c   : > { %v2262_v27 = vcombine.low %v445_v18, %v446_v23  ;;  %vm2843_vm12 = vmpackc.low %vm401_vm9, %vm401_vm9  ;;  %v2852_v32 = vsel %vm828_vm11, 65537, %v2696_v21  ;;  %vm399_vm2 = vcmp.ge.s32.totalorder %v311_v44, 1  ;;  %vm2896_vm4 = vcmp.lt.s32.totalorder %v311_v44, 7  ;;  %v782_v8 = vld [vmem:[%s2776_s8 + $0x10] sm:$0xf] }
  0x2d   : > { %vm2854_vm15 = vmpackc.low %vm402_vm10, %vm402_vm10  ;;  %v449_v34 = vsel %vm2843_vm12, %v393_v17, 0  ;;  %v2881_v42 = vrot.slane %v846_v28, 4  ;;  %v848_v43 = vrot.slane %v2852_v32, 7  ;;  %v1049_v47 = vsel %vm2843_vm12, %v2867_v37, 0  ;;  %v2612_v17 = vld [vmem:[%s2781_s11 + $0x20] sm:$0xff]  }
  0x2e   : > { %2437 = vmatprep.mubr.msk.bf16.mxu0 %vm497_vm8, %v2262_v27  ;;  %v450_v36 = vsel %vm2854_vm15, %v394_v25, 0  ;;  %vm831_vm0 = vmpackc.low %vm799_vm13, %vm799_vm13  ;;  %vm400_vm5 = vcmp.ge.s32.totalorder %v318_v48, 1  ;;  %vm2904_vm9 = vcmp.lt.s32.totalorder %v318_v48, 7  ;;  %v346_v57 = vand.u32 7, %v292_v50  ;;  %2457 = vmatprep.subr.bf16.mxu0 %v2612_v17  ;;  %v778_v50 = vld [vmem:[%s2776_s8] sm:$0xe] }
  0x2f   : > { %v2264_v39 = vcombine.low %v449_v34, %v450_v36  ;;  %vm832_vm1 = vmpackc.low %vm2847_vm14, %vm2847_vm14  ;;  %v2876_v40 = vsel %vm831_vm0, 65537, %v2696_v21  ;;  %vm403_vm11 = vcmp.ge.s32.totalorder %v339_v54, 1  ;;  %v850_v2 = vrot.slane %v848_v43, 4  ;;  %v2614_v36 = vld [vmem:[%s2781_s11 + $0x28] sm:$0xff]   ;;  %v1545_v20 = vld [vmem:[%s2776_s8 + $0x14] sm:$0xf] }
  0x30   : > { %v2887_v46 = vsel %vm832_vm1, 65537, %v2696_v21  ;;  %v857_v51 = vrot.slane %v2876_v40, 7  ;;  %vm2900_vm6 = vmpackc.low %vm399_vm2, %vm399_vm2  ;;  %vm404_vm14 = vcmp.ge.s32.totalorder %v346_v57, 1  ;;  %vm2941_vm2 = vcmp.lt.s32.totalorder %v339_v54, 7  ;;  %v779_v54 = vld [vmem:[%s2776_s8 + $0x4] sm:$0xf] }
  0x31   : > { %2441 = vmatprep.mubr.msk.bf16.mxu1 %vm497_vm8, %v2264_v39  ;;  %v860_v60 = vrot.slane %v2887_v46, 7  ;;  %vm2911_vm10 = vmpackc.low %vm400_vm5, %vm400_vm5  ;;  %v447_v62 = vsel %vm2900_vm6, %v391_v49, 0  ;;  %vm2945_vm5 = vcmp.lt.s32.totalorder %v346_v57, 7  ;;  %v638_v10 = vshrl.u32 %v2610_v59, 16  ;;  %v2615_v49 = vld [vmem:[%s2781_s11 + $0x30] sm:$0xff]  }
  0x32   : > { %v448_v0 = vsel %vm2911_vm10, %v392_v52, 0  ;;  %vm829_vm13 = vmpackc.low %vm2896_vm4, %vm2896_vm4  ;;  %v2928_v3 = vrot.slane %v857_v51, 4  ;;  %v640_v14 = vshll.u32 %v2610_v59, 16  ;;  %v645_v16 = vshll.u32 %v2611_v63, 16  ;;  %v2623_v59 = vld [vmem:[%s2776_s8 + $0xc] sm:$0xff]  }
  0x33   : > { %v2263_v4 = vcombine.low %v447_v62, %v448_v0  ;;  %v2935_v5 = vrot.slane %v860_v60, 4  ;;  %vm2937_vm1 = vmpackc.low %vm403_vm11, %vm403_vm11  ;;  %v649_v19 = vshrl.u32 %v2611_v63, 16  ;;  %v837_v23 = vsel %vm829_vm13, 65537, %v2696_v21  ;;  %v2616_v63 = vld [vmem:[%s2776_s8 + $0x18] sm:$0xff]  }
  0x34   : > { %vm2950_vm0 = vmpackc.low %vm404_vm14, %vm404_vm14  ;;  %v451_v12 = vsel %vm2937_vm1, %v395_v58, 0  ;;  %v642_v26 = vrot.slane %v640_v14, 1  ;;  %v647_v27 = vrot.slane %v645_v16, 1  ;;  %v653_v45 = vshll.u32 %v2613_v31, 16 }
  0x35   : > { %2438 = vmatmul.mubr.msk.bf16.vlgmr.msra.gmra.mrb[0].mxu0 %vm497_vm8, %v2263_v4  ;;  %v452_v18 = vsel %vm2950_vm0, %v396_v1, 0  ;;  %vm833_vm14 = vmpackc.low %vm2941_vm2, %vm2941_vm2  ;;  %vm3429_vm4 = vsmask.f32 7424  ;;  %vm844_vm13 = vcmask 1044484   ;;  %v657_v0 = vshrl.u32 %v2613_v31, 16 }
  0x36   : > { %v2265_v25 = vcombine.low %v451_v12, %v452_v18  ;;  %vm834_vm11 = vmpackc.low %vm2945_vm5, %vm2945_vm5  ;;  %2458 = vmatpush3.bf16.msra.mxu0 %v2612_v17  ;;  %v2982_v39 = vsel %vm833_vm14, 65537, %v2696_v21  ;;  %v643_v41 = vor.u32 %v642_v26, %v638_v10  ;;  %v651_v44 = vor.u32 %v649_v19, %v647_v27  ;;  %v783_v12 = vld [vmem:[%s2776_s8 + $0x14] sm:$0xf]  ;;  %v2617_v16 = vld [vmem:[%s2776_s8 + $0x20] ss:$0 sps:$4 sm:$0x11]  }
  0x37   : > { %vm3428_vm2 = vmpackc.low %vm2904_vm9, %vm2904_vm9  ;;  %v2985_v48 = vsel %vm834_vm11, 65537, %v2696_v21  ;;  %2459 = vmatprep.subr.bf16.mxu0 %v2614_v36  ;;  %v655_v53 = vrot.slane %v653_v45, 1  ;;  %vm843_vm9 = vcmask 1040384   ;;  %vm2996_vm5 = vcmp.ne.s16.totalorder %v846_v28, 0  ;;  %v3041_v17 = vld [vmem:[%s2781_s11 + $0x40] sm:$0xff]  }
  0x38   : > { %v838_v34 = vsel %vm3428_vm2, 65537, %v2696_v21  ;;  %2442 = vmatmul.mubr.msk.bf16.vlgmr.msra.gmra.mrb[0].mxu1 %vm497_vm8, %v2265_v25  ;;  %v648_v52 = vsel %vm3429_vm4, %v643_v41, %v647_v27  ;;  %v851_v21 = vrot.slane %v837_v23, 7  ;;  %vm3432_vm11 = vmmov %vm3429_vm4  ;;  %v878_v62 = vsel %vm2996_vm5, %v778_v50, 0  ;;  %v1039_v25 = vld [vmem:[%s2776_s8 + $0xc] sm:$0xf] }
  0x39   : > { %2446 = vmatpush3.bf16.msra.mxu1 %v2799_v9  ;;  %2449 = vmatprep.mubr.msk.bf16.mxu1 %vm497_vm8, %v648_v52  ;;  %v854_v57 = vrot.slane %v838_v34, 7  ;;  %v656_v58 = vsel %vm3432_vm11, %v651_v44, %v655_v53  ;;  %vm3001_vm14 = vmor %vm843_vm9, %vm844_vm13  ;;  %vm922_vm2 = vcmask 1046528   ;;  %v659_v32 = vor.u32 %v657_v0, %v655_v53  ;;  %v1040_v27 = vld [vmem:[%s2776_s8 + $0x10] sm:$0xf]  ;;  %v784_v41 = vld [vmem:[%s2776_s8 + $0x18] sm:$0xf] }
  0x3a   : > { %2447 = vmatprep.subr.bf16.mxu1 %v2609_v13  ;;  %2460 = vmatpush3.bf16.msra.mxu0 %v2614_v36  ;;  %v3014_v28 = vsel %vm3001_vm14, %v2881_v42, %v848_v43  ;;  %v3018_v1 = vsel %vm3001_vm14, %v850_v2, %v851_v21  ;;  %v853_v4 = vrot.slane %v851_v21, 4  ;;  %v661_v10 = vshll.u32 %v2616_v63, 16  ;;  %v1042_v45 = vld [vmem:[%s2776_s8 + $0x18] sm:$0xf]  ;;  %v785_v52 = vld [vmem:[%s2776_s8 + $0x1c] sm:$0xf] }
  0x3b   : > { %v856_v7 = vrot.slane %v854_v57, 4  ;;  %vm3392_vm4 = vcmp.ne.s16.totalorder %v3014_v28, 0  ;;  %vm3391_vm9 = vcmp.ne.s16.totalorder %v3018_v1, 0  ;;  %v3050_v40 = vsel %vm3001_vm14, %v2928_v3, %v860_v60  ;;  %2481 = vmatprep.subr.bf16.mxu0 %v3041_v17  ;;  %v3101_v0 = vld [vmem:[%s2776_s8 + $0x1c] sm:$0xf] }
  0x3c   : > { %v3027_v42 = vsel %vm3001_vm14, %v853_v4, %v854_v57  ;;  %v879_v43 = vsel %vm3392_vm4, %v779_v54, 0  ;;  %v880_v2 = vsel %vm3391_vm9, %v780_v56, 0  ;;  %v663_v19 = vrot.slane %v661_v10, 1  ;;  %v786_v54 = vld [vmem:[%s2776_s8 + $0x20] sm:$0x1] }
  0x3d   : > { %2448 = vmatpush3.bf16.msra.mxu1 %v2609_v13  ;;  %v2618_v13 = vld [vmem:[%s2781_s11 + $0x38] sm:$0xff]   ;;  %v3037_v14 = vsel %vm3001_vm14, %v856_v7, %v857_v51  ;;  %vm3396_vm13 = vcmp.ne.s16.totalorder %v3027_v42, 0  ;;  %v2283_v18 = vcombine.low %v878_v62, %v879_v43  ;;  %vm3393_vm9 = vcmp.ne.s16.totalorder %v3050_v40, 0 }
  0x3e   : > { %2469 = vmatprep.subr.bf16.mxu1 %v2615_v49  ;;  %v881_v51 = vsel %vm3396_vm13, %v781_v22, 0  ;;  %vm873_vm11 = vcmp.ne.s16.totalorder %v3037_v14, 0  ;;  %v665_v23 = vshrl.u32 %v2616_v63, 16  ;;  %vm3435_vm4 = vsmask.f32 7424  ;;  %v2622_v22 = vld [vmem:[%s2776_s8 + $0x4] sm:$0xff]  }
  0x3f   : > { %v2284_v46 = vcombine.low %v880_v2, %v881_v51  ;;  %v923_v26 = vrot.slane %v2283_v18, 1  ;;  %v664_v60 = vsel %vm3435_vm4, %v659_v32, %v663_v19  ;;  %v882_v3 = vsel %vm873_vm11, %v782_v8, 0 }
  0x40   : > { %2450 = vmatmul.mubr.msk.bf16.vlgmr.msra.gmra.mrb[4].mxu1 %vm497_vm8, %v656_v58  ;;  %v883_v31 = vsel %vm3393_vm9, %v783_v12, 0  ;;  %v667_v34 = vor.u32 %v665_v23, %v663_v19  ;;  %v669_v36 = vshll.u32 %v2617_v16, 16  ;;  %v863_v44 = vrot.slane %v2982_v39, 7  ;;  %v2624_v16 = vld [vmem:[%s2776_s8 + $0x14] sm:$0xff]   ;;  %v1044_v19 = vld [vmem:[%s2776_s8 + $0x20] sm:$0xf] }
  0x41   : > { %2470 = vmatpush3.bf16.msra.mxu1 %v2615_v49  ;;  %2453 = vmatprep.mubr.msk.bf16.mxu1 %vm497_vm8, %v664_v60  ;;  %v924_v49 = vrot.slane %v2284_v46, 1  ;;  %v2285_v50 = vcombine.low %v882_v3, %v883_v31  ;;  %v866_v53 = vrot.slane %v2985_v48, 7  ;;  %v2294_v39 = vcombine.low %v1045_v35, %v1046_v38  ;;  %v2620_v38 = vld [vmem:[%s2781_s11 + $0x48] sm:$0xff]  }
  0x42   : > { %2471 = vmatprep.subr.bf16.mxu1 %v2618_v13  ;;  %v671_v56 = vrot.slane %v669_v36, 1  ;;  %v3074_v21 = vsel %vm3001_vm14, %v2935_v5, %v863_v44  ;;  %v865_v57 = vrot.slane %v863_v44, 4  ;;  %v2621_v5 = vld [vmem:[%s2781_s11 + $0x50] sm:$0xff]   ;;  %v1047_v63 = vsel %vm2900_vm6, %v1039_v25, 0  ;;  %v2626_v44 = vld [vmem:[%s2781_s11 + $0x60] sm:$0xff]  }
  0x43   : > { %v925_v48 = vsel %vm922_vm2, %v923_v26, %v924_v49  ;;  %v926_v58 = vrot.slane %v2285_v50, 1  ;;  %vm875_vm4 = vcmp.ne.s16.totalorder %v3074_v21, 0  ;;  %v3086_v62 = vrot.slane %v866_v53, 4  ;;  %v2628_v50 = vld [vmem:[%s2776_s8 + $0x24] ss:$0 sps:$4 sm:$0x11]  }
  0x44   : > { %2461 = vmatprep.mubr.msk.bf16.mxu0 %vm497_vm8, %v925_v48  ;;  %vm3436_vm9 = vsmask.f32 7424  ;;  %v3095_v24 = vsel %vm3001_vm14, %v865_v57, %v866_v53  ;;  %v884_v35 = vsel %vm875_vm4, %v784_v41, 0  ;;  %v1048_v4 = vsel %vm2911_vm10, %v1040_v27, 0  ;;  %v2625_v27 = vld [vmem:[%s2781_s11 + $0x58] sm:$0xff]  }
  0x45   : > { %2472 = vmatpush3.bf16.msra.mxu1 %v2618_v13  ;;  %v672_v29 = vsel %vm3436_vm9, %v667_v34, %v671_v56  ;;  %v927_v7 = vsel %vm922_vm2, %v924_v49, %v926_v58  ;;  %vm3395_vm9 = vcmp.ne.s16.totalorder %v3095_v24, 0  ;;  %vm3394_vm14 = vcmp.ne.s16.totalorder %v3086_v62, 0  ;;  %v1376_v56 = vld [vmem:[%s2776_s8 + $0x8] sm:$0xf]  ;;  %v1377_v57 = vld [vmem:[%s2776_s8 + $0xc] sm:$0xf] }
  0x46   : > { %2493 = vmatprep.subr.bf16.mxu1 %v2621_v5  ;;  %v1050_v8 = vsel %vm2854_vm15, %v1042_v45, 0  ;;  %2462 = vmatmul.mubr.msk.bf16.vlgmr.msra.gmra.mrb[4].mxu0 %vm497_vm8, %v927_v7  ;;  %v885_v32 = vsel %vm3395_vm9, %v785_v52, 0  ;;  %v886_v10 = vsel %vm3394_vm14, %v786_v54, 0  ;;  %v1235_v12 = vshrl.u32 %v2622_v22, 16  ;;  %v2627_v45 = vld [vmem:[%s2776_s8 + $0x1c] sm:$0xff]  }
  0x47   : > { %v2286_v13 = vcombine.low %v884_v35, %v885_v32  ;;  %2482 = vmatpush3.bf16.msra.mxu0 %v3041_v17  ;;  %v2287_v43 = vcombine.low %v886_v10, %v886_v10  ;;  %v1237_v2 = vshll.u32 %v2622_v22, 16  ;;  %v2295_v18 = vcombine.low %v1047_v63, %v1048_v4  ;;  %v1375_v52 = vld [vmem:[%s2776_s8 + $0x4] sm:$0xe]  ;;  %v1378_v48 = vld [vmem:[%s2776_s8 + $0x10] sm:$0xf] }
  0x48   : > { %2454 = vmatmul.mubr.msk.bf16.gmra.mrb[8].mxu1 %vm497_vm8, %v672_v29  ;;  %2483 = vmatprep.subr.bf16.mxu0 %v2620_v38  ;;  %v1051_v51 = vsel %vm2937_vm1, %v3101_v0, 0  ;;  %v1242_v23 = vshll.u32 %v2623_v59, 16  ;;  %v1250_v60 = vshll.u32 %v2624_v16, 16  ;;  %v2296_v17 = vcombine.low %v1049_v47, %v1050_v8  ;;  %v1379_v22 = vld [vmem:[%s2776_s8 + $0x14] sm:$0xf] }
  0x49   : > { %2473 = vmatprep.mubr.msk.bf16.mxu1 %vm497_vm8, %v2294_v39  ;;  %v928_v25 = vrot.slane %v2286_v13, 1  ;;  %v930_v46 = vrot.slane %v2287_v43, 1  ;;  %v1239_v26 = vrot.slane %v1237_v2, 1  ;;  %v1246_v41 = vshrl.u32 %v2623_v59, 16  ;;  %v1380_v4 = vld [vmem:[%s2776_s8 + $0x18] sm:$0xf] }
  0x4a   : > { %v1244_v3 = vrot.slane %v1242_v23, 1  ;;  %v1254_v49 = vshrl.u32 %v2624_v16, 16  ;;  %v1052_v37 = vsel %vm2950_vm0, %v1044_v19, 0  ;;  %vm3437_vm14 = vsmask.f32 7424 }
  0x4b   : > { %v929_v31 = vsel %vm922_vm2, %v926_v58, %v928_v25  ;;  %v931_v34 = vsel %vm922_vm2, %v928_v25, %v930_v46  ;;  %2484 = vmatpush3.bf16.msra.mxu0 %v2620_v38  ;;  %v1240_v36 = vor.u32 %v1239_v26, %v1235_v12  ;;  %v1252_v53 = vrot.slane %v1250_v60, 1  ;;  %v1542_v7 = vld [vmem:[%s2776_s8 + $0x8] sm:$0xf]  ;;  %v2630_v12 = vld [vmem:[%s2781_s11 + $0x70] sm:$0xff]   ;;  %v1543_v13 = vld [vmem:[%s2776_s8 + $0xc] sm:$0xf] }
  0x4c   : > { %2465 = vmatprep.mubr.msk.bf16.mxu0 %vm497_vm8, %v929_v31  ;;  %2505 = vmatprep.subr.bf16.mxu0 %v2626_v44  ;;  %v1258_v54 = vshll.u32 %v2627_v45, 16  ;;  %v1248_v39 = vor.u32 %v1246_v41, %v1244_v3  ;;  %v1384_v58 = vsel %vm2996_vm5, %v1375_v52, 0  ;;  %vm3439_vm9 = vcmp.ne.s16.totalorder %v3018_v1, 0  ;;  %v2629_v46 = vld [vmem:[%s2781_s11 + $0x68] sm:$0xff]   ;;  %v1382_v26 = vld [vmem:[%s2776_s8 + $0x20] sm:$0xf] }
  0x4d   : > { %v1245_v47 = vsel %vm3437_vm14, %v1240_v36, %v1244_v3  ;;  %vm3438_vm14 = vcmp.ne.s16.totalorder %v3014_v28, 0  ;;  %v1386_v29 = vsel %vm3439_vm9, %v1377_v57, 0  ;;  %v1256_v35 = vor.u32 %v1254_v49, %v1252_v53  ;;  %v2634_v52 = vld [vmem:[%s2776_s8 + $0x10] sm:$0xff]  }
  0x4e   : > { %2466 = vmatmul.mubr.msk.bf16.gmra.mrb[8].mxu0 %vm497_vm8, %v931_v34  ;;  %v1385_v63 = vsel %vm3438_vm14, %v1376_v56, 0  ;;  %v1260_v38 = vrot.slane %v1258_v54, 1  ;;  %v2297_v59 = vcombine.low %v1051_v51, %v1052_v37  ;;  %v1388_v32 = vsel %vm873_vm11, %v1379_v22, 0  ;;  %v1381_v51 = vld [vmem:[%s2776_s8 + $0x1c] sm:$0xf]  ;;  %v2633_v37 = vld [vmem:[%s2776_s8 + $0x8] sm:$0xff]  }
  0x4f   : > { %2485 = vmatprep.mubr.msk.bf16.mxu0 %vm497_vm8, %v1245_v47  ;;  %v2315_v0 = vcombine.low %v1384_v58, %v1385_v63  ;;  %vm3440_vm9 = vcmp.ne.s16.totalorder %v3050_v40, 0  ;;  %v1262_v43 = vshrl.u32 %v2627_v45, 16  ;;  %vm3441_vm14 = vsmask.f32 7424 }
  0x50   : > { %2474 = vmatmul.mubr.msk.bf16.vlgmr.msra.gmra.mrb[12].mxu1 %vm497_vm8, %v2295_v18  ;;  %v1389_v10 = vsel %vm3440_vm9, %v1380_v4, 0  ;;  %v1253_v18 = vsel %vm3441_vm14, %v1248_v39, %v1252_v53  ;;  %v1266_v19 = vshll.u32 %v2628_v50, 16  ;;  %v1390_v60 = vsel %vm875_vm4, %v1381_v51, 0  ;;  %v3187_v50 = vld [vmem:[%s2781_s11 + $0x80] sm:$0xff]   ;;  %v1544_v53 = vld [vmem:[%s2776_s8 + $0x10] sm:$0xf] }
  0x51   : > { %2477 = vmatprep.mubr.msk.bf16.mxu1 %vm497_vm8, %v2296_v17  ;;  %2494 = vmatpush3.bf16.msra.mxu1 %v2621_v5  ;;  %v1387_v5 = vsel %vm3396_vm13, %v1378_v48, 0  ;;  %v1428_v2 = vrot.slane %v2315_v0, 1  ;;  %v2317_v16 = vcombine.low %v1388_v32, %v1389_v10  ;;  %vm3442_vm13 = vmmov %vm3441_vm14  ;;  %v1383_v17 = vld [vmem:[%s2776_s8 + $0x24] sm:$0x1]  ;;  %vm3443_vm9 = vcmp.ne.s16.totalorder %v3095_v24, 0  ;;  %v2635_v0 = vld [vmem:[%s2776_s8 + $0x18] sm:$0xff]  }
  0x52   : > { %2495 = vmatprep.subr.bf16.mxu1 %v2625_v27  ;;  %v2316_v8 = vcombine.low %v1386_v29, %v1387_v5  ;;  %v1261_v25 = vsel %vm3442_vm13, %v1256_v35, %v1260_v38  ;;  %v1550_v31 = vsel %vm2807_vm3, %v1542_v7, 0  ;;  %v1551_v41 = vsel %vm2822_vm7, %v1543_v13, 0  ;;  %v1546_v48 = vld [vmem:[%s2776_s8 + $0x18] sm:$0xf]  ;;  %vm3445_vm3 = vmmov %vm3441_vm14  ;;  %v1547_v5 = vld [vmem:[%s2776_s8 + $0x1c] sm:$0xf] }
  0x53   : > { %v1431_v34 = vrot.slane %v2317_v16, 1  ;;  %v1264_v45 = vor.u32 %v1262_v43, %v1260_v38  ;;  %v1268_v49 = vrot.slane %v1266_v19, 1  ;;  %vm3444_vm13 = vcmp.ne.s16.totalorder %v3086_v62, 0  ;;  %v2631_v38 = vld [vmem:[%s2781_s11 + $0x78] sm:$0xff]   ;;  %v2637_v10 = vld [vmem:[%s2776_s8 + $0x20] sm:$0xff]   ;;  %v459_v62 = vld [vmem:[#allocation2 + $0x10] sm:$0xff] }
  0x54   : > { %v1429_v23 = vrot.slane %v2316_v8, 1  ;;  %v1392_v15 = vsel %vm3444_vm13, %v1383_v17, 0  ;;  %v1742_v54 = vshll.u32 %v2633_v37, 16  ;;  %v2326_v57 = vcombine.low %v1550_v31, %v1551_v41  ;;  %v1881_v13 = vld [vmem:[%s2776_s8 + $0xc] sm:$0xf] }
  0x55   : > { %2496 = vmatpush3.bf16.msra.mxu1 %v2625_v27  ;;  %v1391_v27 = vsel %vm3443_vm9, %v1382_v26, 0  ;;  %v2319_v56 = vcombine.low %v1392_v15, %v1392_v15  ;;  %v1740_v39 = vshrl.u32 %v2633_v37, 16  ;;  %v1269_v58 = vsel %vm3445_vm3, %v1264_v45, %v1268_v49  ;;  %v1882_v43 = vld [vmem:[%s2776_s8 + $0x10] sm:$0xf]  ;;  %v2636_v17 = vld [vmem:[%s2781_s11 + $0x88] sm:$0xff]  }
  0x56   : > { %2517 = vmatprep.subr.bf16.mxu1 %v2630_v12  ;;  %v1430_v3 = vsel %vm922_vm2, %v1428_v2, %v1429_v23  ;;  %2486 = vmatmul.mubr.msk.bf16.vlgmr.msra.gmra.mrb[12].mxu0 %vm497_vm8, %v1253_v18  ;;  %v2318_v36 = vcombine.low %v1390_v60, %v1391_v27  ;;  %v1744_v29 = vrot.slane %v1742_v54, 1  ;;  %v1747_v35 = vshll.u32 %v2634_v52, 16  ;;  %v1883_v2 = vld [vmem:[%s2776_s8 + $0x14] sm:$0xf]  ;;  %v1549_v60 = vld [vmem:[%s2776_s8 + $0x24] sm:$0xf] }
  0x57   : > { %2489 = vmatprep.mubr.msk.bf16.mxu0 %vm497_vm8, %v1261_v25  ;;  %2506 = vmatpush3.bf16.msra.mxu0 %v2626_v44  ;;  %v1432_v44 = vsel %vm922_vm2, %v1429_v23, %v1431_v34  ;;  %v1552_v22 = vsel %vm2900_vm6, %v1544_v53, 0  ;;  %v1553_v4 = vsel %vm2911_vm10, %v1545_v20, 0  ;;  %v1435_v7 = vrot.slane %v2319_v56, 1  ;;  %vm3449_vm6 = vmmov %vm3445_vm3  ;;  %v1886_v41 = vld [vmem:[%s2776_s8 + $0x20] sm:$0xf] }
  0x58   : > { %2478 = vmatmul.mubr.msk.bf16.gmra.mrb[16].mxu1 %vm497_vm8, %v2297_v59  ;;  %2507 = vmatprep.subr.bf16.mxu0 %v2629_v46  ;;  %v1433_v47 = vrot.slane %v2318_v36, 1  ;;  %v1880_v59 = vld [vmem:[%s2776_s8 + $0x8] sm:$0xe]  ;;  %v1745_v8 = vor.u32 %v1744_v29, %v1740_v39  ;;  %v1749_v32 = vrot.slane %v1747_v35, 1  ;;  %v1554_v55 = vsel %vm2843_vm12, %v1546_v48, 0 }
  0x59   : > { %2497 = vmatprep.mubr.msk.bf16.mxu1 %vm497_vm8, %v1430_v3  ;;  %v1555_v61 = vsel %vm2854_vm15, %v1547_v5, 0  ;;  %v2327_v16 = vcombine.low %v1552_v22, %v1553_v4  ;;  %v1889_v18 = vsel %vm2996_vm5, %v1880_v59, 0  ;;  %vm3446_vm7 = vcmp.ne.s16.totalorder %v3014_v28, 0  ;;  %v2638_v3 = vld [vmem:[%s2776_s8 + $0x28] ss:$0 sps:$4 sm:$0x11]  }
  0x5a   : > { %v1434_v63 = vsel %vm922_vm2, %v1431_v34, %v1433_v47  ;;  %v1890_v19 = vsel %vm3446_vm7, %v1881_v13, 0  ;;  %v1436_v30 = vsel %vm922_vm2, %v1433_v47, %v1435_v7  ;;  %v1751_v23 = vshrl.u32 %v2634_v52, 16  ;;  %v1885_v34 = vld [vmem:[%s2776_s8 + $0x1c] sm:$0xf]  ;;  %v1887_v45 = vld [vmem:[%s2776_s8 + $0x24] sm:$0xf] }
  0x5b   : > { %2508 = vmatpush3.bf16.msra.mxu0 %v2629_v46  ;;  %vm3447_vm12 = vcmp.ne.s16.totalorder %v3018_v1, 0  ;;  %vm3448_vm15 = vcmp.ne.s16.totalorder %v3027_v42, 0  ;;  %v2328_v25 = vcombine.low %v1554_v55, %v1555_v61  ;;  %v1548_v46 = vld [vmem:[%s2776_s8 + $0x20] sm:$0xf]  ;;  %v1750_v9 = vsel %vm3449_vm6, %v1745_v8, %v1749_v32  ;;  %v1884_v42 = vld [vmem:[%s2776_s8 + $0x18] sm:$0xf] }
  0x5c   : > { %2529 = vmatprep.subr.bf16.mxu0 %v3187_v50  ;;  %v1891_v33 = vsel %vm3447_vm12, %v1882_v43, 0  ;;  %v1892_v51 = vsel %vm3448_vm15, %v1883_v2, 0  ;;  %v1759_v28 = vshrl.u32 %v2635_v0, 16  ;;  %v1763_v26 = vshll.u32 %v2637_v10, 16  ;;  %v457_v59 = vld [vmem:[#allocation2] sm:$0xff]  ;;  %v458_v55 = vld [vmem:[#allocation2 + $0x8] sm:$0xff] }
  0x5d   : > { %v2347_v27 = vcombine.low %v1889_v18, %v1890_v19  ;;  %v2348_v1 = vcombine.low %v1891_v33, %v1892_v51  ;;  %v1753_v36 = vor.u32 %v1751_v23, %v1749_v32  ;;  %v1556_v49 = vsel %vm2937_vm1, %v1548_v46, 0  ;;  %vm3451_vm1 = vmmov %vm3443_vm9  ;;  %v460_v32 = vld [vmem:[#allocation2 + $0x18] sm:$0xff]  ;;  %v463_v61 = vld [vmem:[#allocation2 + $0x30] sm:$0xff] }
  0x5e   : > { %2490 = vmatmul.mubr.msk.bf16.gmra.mrb[16].mxu0 %vm497_vm8, %v1269_v58  ;;  %v1557_v15 = vsel %vm2950_vm0, %v1549_v60, 0  ;;  %v1765_v47 = vrot.slane %v1763_v26, 1  ;;  %v1893_v20 = vsel %vm873_vm11, %v1884_v42, 0  ;;  %vm3450_vm10 = vcmp.ne.s16.totalorder %v3050_v40, 0  ;;  %vm3452_vm0 = vmmov %vm3445_vm3  ;;  %v1888_v40 = vld [vmem:[%s2776_s8 + $0x28] sm:$0x1] }
  0x5f   : > { %2509 = vmatprep.mubr.msk.bf16.mxu0 %vm497_vm8, %v2326_v57  ;;  %v1933_v52 = vrot.slane %v2347_v27, 1  ;;  %v1934_v53 = vrot.slane %v2348_v1, 1  ;;  %v1894_v54 = vsel %vm3450_vm10, %v1885_v34, 0  ;;  %v1896_v6 = vsel %vm3451_vm1, %v1887_v45, 0  ;;  %vm3453_vm5 = vmmov %vm3452_vm0 }
  0x60   : > { %2498 = vmatmul.mubr.msk.bf16.vlgmr.msra.gmra.mrb[20].mxu1 %vm497_vm8, %v1432_v44  ;;  %v2329_v11 = vcombine.low %v1556_v49, %v1557_v15  ;;  %v1767_v56 = vshrl.u32 %v2637_v10, 16  ;;  %v1771_v57 = vshll.u32 %v2638_v3, 16  ;;  %v2349_v48 = vcombine.low %v1893_v20, %v1894_v54  ;;  %vm3454_vm11 = vmmov %vm3444_vm13 }
  0x61   : > { %2501 = vmatprep.mubr.msk.bf16.mxu1 %vm497_vm8, %v1434_v63  ;;  %2518 = vmatpush3.bf16.msra.mxu1 %v2630_v12  ;;  %v1755_v12 = vshll.u32 %v2635_v0, 16  ;;  %v1935_v14 = vsel %vm922_vm2, %v1933_v52, %v1934_v53  ;;  %v1897_v35 = vsel %vm3454_vm11, %v1888_v40, 0  ;;  %vm583_vm14 = vcmask 523264  }
  0x62   : > { %2519 = vmatprep.subr.bf16.mxu1 %v2631_v38  ;;  %v1769_v21 = vor.u32 %v1767_v56, %v1765_v47  ;;  %v1773_v24 = vrot.slane %v1771_v57, 1  ;;  %v1936_v63 = vrot.slane %v2349_v48, 1  ;;  %v2351_v0 = vcombine.low %v1897_v35, %v1897_v35 }
  0x63   : > { %v1757_v31 = vrot.slane %v1755_v12, 1 }
  0x64   : > { %v1937_v5 = vsel %vm922_vm2, %v1934_v53, %v1936_v63  ;;  %v1940_v4 = vrot.slane %v2351_v0, 1 }
  0x65   : > { %2520 = vmatpush3.bf16.msra.mxu1 %v2631_v38  ;;  %v1761_v37 = vor.u32 %v1759_v28, %v1757_v31  ;;  %v1758_v44 = vsel %vm3452_vm0, %v1753_v36, %v1757_v31 }
  0x66   : > { %2510 = vmatmul.mubr.msk.bf16.vlgmr.msra.gmra.mrb[20].mxu0 %vm497_vm8, %v2327_v16  ;;  %v461_v16 = vld [vmem:[#allocation2 + $0x20] sm:$0xff] }
  0x67   : > { %2513 = vmatprep.mubr.msk.bf16.mxu0 %vm497_vm8, %v2328_v25  ;;  %2530 = vmatpush3.bf16.msra.mxu0 %v3187_v50  ;;  %v1895_v50 = vsel %vm875_vm4, %v1886_v41, 0  ;;  %v1766_v39 = vsel %vm3453_vm5, %v1761_v37, %v1765_v47  ;;  %vm3455_vm4 = vmmov %vm3452_vm0  ;;  %v462_v25 = vld [vmem:[#allocation2 + $0x28] sm:$0xff] }
  0x68   : > { %2502 = vmatmul.mubr.msk.bf16.gmra.mrb[24].mxu1 %vm497_vm8, %v1436_v30  ;;  %2531 = vmatprep.subr.bf16.mxu0 %v2636_v17  ;;  %v2350_v58 = vcombine.low %v1895_v50, %v1896_v6  ;;  %v1774_v38 = vsel %vm3455_vm4, %v1769_v21, %v1773_v24  ;;  %v464_v30 = vld [vmem:[#allocation2 + $0x38] sm:$0xff] }
  0x69   : > { %2521 = vmatprep.mubr.msk.bf16.mxu1 %vm497_vm8, %v1750_v9 }
  0x6a   : > { %v1938_v29 = vrot.slane %v2350_v58, 1 }
  0x6b   : > { %2532 = vmatpush3.bf16.msra.mxu0 %v2636_v17 }
  0x6c   : > { %v1939_v22 = vsel %vm922_vm2, %v1936_v63, %v1938_v29  ;;  %v1941_v7 = vsel %vm922_vm2, %v1938_v29, %v1940_v4 }
  0x6e   : > { %2514 = vmatmul.mubr.msk.bf16.gmra.mrb[24].mxu0 %vm497_vm8, %v2329_v11 }
  0x6f   : > { %2533 = vmatprep.mubr.msk.bf16.mxu0 %vm497_vm8, %v1935_v14 }
  0x70   : > { %2522 = vmatmul.mubr.msk.bf16.vlgmr.msra.gmra.mrb[28].mxu1 %vm497_vm8, %v1758_v44 }
  0x71   : > { %2525 = vmatprep.mubr.msk.bf16.mxu1 %vm497_vm8, %v1766_v39 }
  0x76   : > { %2534 = vmatmul.mubr.msk.bf16.vlgmr.msra.gmra.mrb[28].mxu0 %vm497_vm8, %v1937_v5 }
  0x77   : > { %2537 = vmatprep.mubr.msk.bf16.mxu0 %vm497_vm8, %v1939_v22 }
  0x78   : > { %2526 = vmatmul.mubr.msk.bf16.gmra.mrb[32].mxu1 %vm497_vm8, %v1774_v38 }
  0x7e   : > { %2538 = vmatmul.mubr.msk.bf16.gmra.mrb[32].mxu0 %vm497_vm8, %v1941_v7  ;;  %vm2129_vm8 = vcmask (!%p2358_p11), 519168  }
 0x108   : > { %v2439_v8 = vpop.f32.mrb[0].mxu0 }
 0x109   : > { %v577_v10 = vadd.f32 %v2439_v8, %v459_v62  ;;  %v544_v13 = vpop.f32.mrb[1].mxu0 }
 0x10a   : > { %v575_v43 = vadd.f32 %v544_v13, %v457_v59  ;;  %v2440_v2 = vpop.f32.mrb[2].mxu0 }
 0x10b   : > { %586 = vst.msk [vmem:[#allocation2 + $0x10] sm:$0xff] %vm583_vm14, %v577_v10  ;;  %v578_v12 = vadd.f32 %v2440_v2, %v460_v32  ;;  %v547_v18 = vpop.f32.mrb[3].mxu0  ;;  %v2443_v19 = vpop.f32.mrb[0].mxu1 }
 0x10c   : > { %584 = vst.msk [vmem:[#allocation2] sm:$0xff] %vm583_vm14, %v575_v43  ;;  %v576_v23 = vadd.f32 %v547_v18, %v458_v55  ;;  %v581_v33 = vadd.f32 %v2443_v19, %v463_v61  ;;  %v560_v51 = vpop.f32.mrb[1].mxu1 }
 0x10d   : > { %587 = vst.msk [vmem:[#allocation2 + $0x18] sm:$0xff] %vm583_vm14, %v578_v12  ;;  %v579_v46 = vadd.f32 %v560_v51, %v461_v16  ;;  %v2444_v9 = vpop.f32.mrb[2].mxu1 }
 0x10e   : > { %585 = vst.msk [vmem:[#allocation2 + $0x8] sm:$0xff] %vm583_vm14, %v576_v23  ;;  %590 = vst.msk [vmem:[#allocation2 + $0x30] sm:$0xff] %vm583_vm14, %v581_v33  ;;  %v582_v28 = vadd.f32 %v2444_v9, %v464_v30  ;;  %v563_v26 = vpop.f32.mrb[3].mxu1 }
 0x10f   : > { %588 = vst.msk [vmem:[#allocation2 + $0x20] sm:$0xff] %vm583_vm14, %v579_v46  ;;  %v580_v60 = vadd.f32 %v563_v26, %v462_v25 }
 0x110   : > { %591 = vst.msk [vmem:[#allocation2 + $0x38] sm:$0xff] %vm583_vm14, %v582_v28 }
 0x111   : > { %589 = vst.msk [vmem:[#allocation2 + $0x28] sm:$0xff] %vm583_vm14, %v580_v60 }
 0x112   : > { %v607_v17 = vld [vmem:[#allocation2 + $0x10] sm:$0xff] }
 0x113   : > { %v605_v3 = vld [vmem:[#allocation2] sm:$0xff]  ;;  %v2451_v27 = vpop.f32.mrb[4].mxu1 }
 0x114   : > { %v608_v1 = vld [vmem:[#allocation2 + $0x18] sm:$0xff]  ;;  %v764_v31 = vadd.f32 %v2451_v27, %v607_v17  ;;  %v731_v42 = vpop.f32.mrb[5].mxu1 }
 0x115   : > { %v606_v34 = vld [vmem:[#allocation2 + $0x8] sm:$0xff]  ;;  %v762_v36 = vadd.f32 %v731_v42, %v605_v3  ;;  %v2452_v41 = vpop.f32.mrb[6].mxu1  ;;  %v611_v37 = vld [vmem:[#allocation2 + $0x30] sm:$0xff] }
 0x116   : > { %772 = vst.msk [vmem:[#allocation2 + $0x10] sm:$0xff] %vm583_vm14, %v764_v31  ;;  %v765_v45 = vadd.f32 %v2452_v41, %v608_v1  ;;  %v734_v49 = vpop.f32.mrb[7].mxu1  ;;  %v609_v20 = vld [vmem:[#allocation2 + $0x20] sm:$0xff] }
 0x117   : > { %770 = vst.msk [vmem:[#allocation2] sm:$0xff] %vm583_vm14, %v762_v36  ;;  %v763_v15 = vadd.f32 %v734_v49, %v606_v34  ;;  %v612_v44 = vld [vmem:[#allocation2 + $0x38] sm:$0xff] }
 0x118   : > { %773 = vst.msk [vmem:[#allocation2 + $0x18] sm:$0xff] %vm583_vm14, %v765_v45  ;;  %v610_v58 = vld [vmem:[#allocation2 + $0x28] sm:$0xff] }
 0x119   : > { %771 = vst.msk [vmem:[#allocation2 + $0x8] sm:$0xff] %vm583_vm14, %v763_v15  ;;  %v2463_v52 = vpop.f32.mrb[4].mxu0 }
 0x11a   : > { %v990_v6 = vpop.f32.mrb[5].mxu0 }
 0x11b   : > { %v2455_v47 = vpop.f32.mrb[8].mxu1  ;;  %v2464_v48 = vpop.f32.mrb[6].mxu0 }
 0x11c   : > { %v768_v53 = vadd.f32 %v2455_v47, %v611_v37  ;;  %v747_v54 = vpop.f32.mrb[9].mxu1  ;;  %v993_v63 = vpop.f32.mrb[7].mxu0 }
 0x11d   : > { %v893_v50 = vld [vmem:[#allocation2 + $0x10] sm:$0xff]  ;;  %v766_v11 = vadd.f32 %v747_v54, %v609_v20  ;;  %v2456_v56 = vpop.f32.mrb[10].mxu1 }
 0x11e   : > { %v1023_v57 = vadd.f32 %v2463_v52, %v893_v50  ;;  %776 = vst.msk [vmem:[#allocation2 + $0x30] sm:$0xff] %vm583_vm14, %v768_v53  ;;  %v891_v39 = vld [vmem:[#allocation2] sm:$0xff]  ;;  %v769_v14 = vadd.f32 %v2456_v56, %v612_v44  ;;  %v750_v40 = vpop.f32.mrb[11].mxu1 }
 0x11f   : > { %v1021_v21 = vadd.f32 %v990_v6, %v891_v39  ;;  %774 = vst.msk [vmem:[#allocation2 + $0x20] sm:$0xff] %vm583_vm14, %v766_v11  ;;  %v894_v24 = vld [vmem:[#allocation2 + $0x18] sm:$0xff]  ;;  %v767_v29 = vadd.f32 %v750_v40, %v610_v58 }
 0x120   : > { %1031 = vst.msk [vmem:[#allocation2 + $0x10] sm:$0xff] %vm583_vm14, %v1023_v57  ;;  %v1024_v35 = vadd.f32 %v2464_v48, %v894_v24  ;;  %777 = vst.msk [vmem:[#allocation2 + $0x38] sm:$0xff] %vm583_vm14, %v769_v14  ;;  %v892_v38 = vld [vmem:[#allocation2 + $0x8] sm:$0xff] }
 0x121   : > { %1029 = vst.msk [vmem:[#allocation2] sm:$0xff] %vm583_vm14, %v1021_v21  ;;  %v1022_v5 = vadd.f32 %v993_v63, %v892_v38  ;;  %775 = vst.msk [vmem:[#allocation2 + $0x28] sm:$0xff] %vm583_vm14, %v767_v29  ;;  %v2467_v22 = vpop.f32.mrb[8].mxu0 }
 0x122   : > { %1032 = vst.msk [vmem:[#allocation2 + $0x18] sm:$0xff] %vm583_vm14, %v1024_v35  ;;  %v1006_v62 = vpop.f32.mrb[9].mxu0 }
 0x123   : > { %1030 = vst.msk [vmem:[#allocation2 + $0x8] sm:$0xff] %vm583_vm14, %v1022_v5  ;;  %v2475_v0 = vpop.f32.mrb[12].mxu1  ;;  %v2468_v10 = vpop.f32.mrb[10].mxu0 }
 0x124   : > { %v1143_v4 = vpop.f32.mrb[13].mxu1  ;;  %v1009_v2 = vpop.f32.mrb[11].mxu0 }
 0x125   : > { %v897_v7 = vld [vmem:[#allocation2 + $0x30] sm:$0xff]  ;;  %v2476_v59 = vpop.f32.mrb[14].mxu1 }
 0x126   : > { %v1027_v8 = vadd.f32 %v2467_v22, %v897_v7  ;;  %v895_v32 = vld [vmem:[#allocation2 + $0x20] sm:$0xff]  ;;  %v1146_v13 = vpop.f32.mrb[15].mxu1 }
 0x127   : > { %v1025_v55 = vadd.f32 %v1006_v62, %v895_v32  ;;  %v898_v61 = vld [vmem:[#allocation2 + $0x38] sm:$0xff]  ;;  %v1059_v43 = vld [vmem:[#allocation2 + $0x10] sm:$0xff] }
 0x128   : > { %1035 = vst.msk [vmem:[#allocation2 + $0x30] sm:$0xff] %vm583_vm14, %v1027_v8  ;;  %v1028_v16 = vadd.f32 %v2468_v10, %v898_v61  ;;  %v1176_v12 = vadd.f32 %v2475_v0, %v1059_v43  ;;  %v896_v18 = vld [vmem:[#allocation2 + $0x28] sm:$0xff]  ;;  %v1057_v19 = vld [vmem:[#allocation2] sm:$0xff] }
 0x129   : > { %1033 = vst.msk [vmem:[#allocation2 + $0x20] sm:$0xff] %vm583_vm14, %v1025_v55  ;;  %v1026_v30 = vadd.f32 %v1009_v2, %v896_v18  ;;  %v1174_v23 = vadd.f32 %v1143_v4, %v1057_v19  ;;  %v1060_v33 = vld [vmem:[#allocation2 + $0x18] sm:$0xff]  ;;  %v2487_v26 = vpop.f32.mrb[12].mxu0 }
 0x12a   : > { %1036 = vst.msk [vmem:[#allocation2 + $0x38] sm:$0xff] %vm583_vm14, %v1028_v16  ;;  %1184 = vst.msk [vmem:[#allocation2 + $0x10] sm:$0xff] %vm583_vm14, %v1176_v12  ;;  %v1177_v51 = vadd.f32 %v2476_v59, %v1060_v33  ;;  %v1058_v25 = vld [vmem:[#allocation2 + $0x8] sm:$0xff]  ;;  %v1328_v17 = vpop.f32.mrb[13].mxu0 }
 0x12b   : > { %1034 = vst.msk [vmem:[#allocation2 + $0x28] sm:$0xff] %vm583_vm14, %v1026_v30  ;;  %1182 = vst.msk [vmem:[#allocation2] sm:$0xff] %vm583_vm14, %v1174_v23  ;;  %v1175_v46 = vadd.f32 %v1146_v13, %v1058_v25  ;;  %v2479_v9 = vpop.f32.mrb[16].mxu1  ;;  %v2488_v27 = vpop.f32.mrb[14].mxu0 }
 0x12c   : > { %1185 = vst.msk [vmem:[#allocation2 + $0x18] sm:$0xff] %vm583_vm14, %v1177_v51  ;;  %v1159_v28 = vpop.f32.mrb[17].mxu1  ;;  %v1331_v31 = vpop.f32.mrb[15].mxu0 }
 0x12d   : > { %1183 = vst.msk [vmem:[#allocation2 + $0x8] sm:$0xff] %vm583_vm14, %v1175_v46  ;;  %v2480_v60 = vpop.f32.mrb[18].mxu1 }
 0x12e   : > { %v1162_v3 = vpop.f32.mrb[19].mxu1 }
 0x12f   : > { %v1063_v1 = vld [vmem:[#allocation2 + $0x30] sm:$0xff] }
 0x130   : > { %v1180_v42 = vadd.f32 %v2479_v9, %v1063_v1  ;;  %v1061_v34 = vld [vmem:[#allocation2 + $0x20] sm:$0xff] }
 0x131   : > { %v1178_v36 = vadd.f32 %v1159_v28, %v1061_v34  ;;  %v1064_v41 = vld [vmem:[#allocation2 + $0x38] sm:$0xff]  ;;  %v1205_v45 = vld [vmem:[#allocation2 + $0x10] sm:$0xff]  ;;  %v2491_v11 = vpop.f32.mrb[16].mxu0 }
 0x132   : > { %1188 = vst.msk [vmem:[#allocation2 + $0x30] sm:$0xff] %vm583_vm14, %v1180_v42  ;;  %v1181_v49 = vadd.f32 %v2480_v60, %v1064_v41  ;;  %v1361_v15 = vadd.f32 %v2487_v26, %v1205_v45  ;;  %v1062_v37 = vld [vmem:[#allocation2 + $0x28] sm:$0xff]  ;;  %v1203_v47 = vld [vmem:[#allocation2] sm:$0xff]  ;;  %v1344_v57 = vpop.f32.mrb[17].mxu0 }
 0x133   : > { %1186 = vst.msk [vmem:[#allocation2 + $0x20] sm:$0xff] %vm583_vm14, %v1178_v36  ;;  %v1179_v52 = vadd.f32 %v1162_v3, %v1062_v37  ;;  %v1359_v53 = vadd.f32 %v1328_v17, %v1203_v47  ;;  %v1206_v20 = vld [vmem:[#allocation2 + $0x18] sm:$0xff]  ;;  %v2499_v54 = vpop.f32.mrb[20].mxu1  ;;  %v2492_v48 = vpop.f32.mrb[18].mxu0 }
 0x134   : > { %1189 = vst.msk [vmem:[#allocation2 + $0x38] sm:$0xff] %vm583_vm14, %v1181_v49  ;;  %1369 = vst.msk [vmem:[#allocation2 + $0x10] sm:$0xff] %vm583_vm14, %v1361_v15  ;;  %v1362_v50 = vadd.f32 %v2488_v27, %v1206_v20  ;;  %v1204_v6 = vld [vmem:[#allocation2 + $0x8] sm:$0xff]  ;;  %v1495_v44 = vpop.f32.mrb[21].mxu1  ;;  %v1347_v58 = vpop.f32.mrb[19].mxu0 }
 0x135   : > { %1187 = vst.msk [vmem:[#allocation2 + $0x28] sm:$0xff] %vm583_vm14, %v1179_v52  ;;  %1367 = vst.msk [vmem:[#allocation2] sm:$0xff] %vm583_vm14, %v1359_v53  ;;  %v1360_v56 = vadd.f32 %v1331_v31, %v1204_v6  ;;  %v2500_v39 = vpop.f32.mrb[22].mxu1 }
 0x136   : > { %1370 = vst.msk [vmem:[#allocation2 + $0x18] sm:$0xff] %vm583_vm14, %v1362_v50  ;;  %v1498_v14 = vpop.f32.mrb[23].mxu1 }
 0x137   : > { %1368 = vst.msk [vmem:[#allocation2 + $0x8] sm:$0xff] %vm583_vm14, %v1360_v56 }
 0x139   : > { %v1209_v40 = vld [vmem:[#allocation2 + $0x30] sm:$0xff]  ;;  %v2511_v62 = vpop.f32.mrb[20].mxu0 }
 0x13a   : > { %v1365_v21 = vadd.f32 %v2491_v11, %v1209_v40  ;;  %v1207_v24 = vld [vmem:[#allocation2 + $0x20] sm:$0xff]  ;;  %v1648_v13 = vpop.f32.mrb[21].mxu0 }
 0x13b   : > { %v1363_v63 = vadd.f32 %v1344_v57, %v1207_v24  ;;  %v1210_v29 = vld [vmem:[#allocation2 + $0x38] sm:$0xff]  ;;  %v1399_v35 = vld [vmem:[#allocation2 + $0x10] sm:$0xff]  ;;  %v2503_v38 = vpop.f32.mrb[24].mxu1  ;;  %v2512_v2 = vpop.f32.mrb[22].mxu0 }
 0x13c   : > { %1373 = vst.msk [vmem:[#allocation2 + $0x30] sm:$0xff] %vm583_vm14, %v1365_v21  ;;  %v1366_v5 = vadd.f32 %v2492_v48, %v1210_v29  ;;  %v1528_v0 = vadd.f32 %v2499_v54, %v1399_v35  ;;  %v1208_v22 = vld [vmem:[#allocation2 + $0x28] sm:$0xff]  ;;  %v1397_v4 = vld [vmem:[#allocation2] sm:$0xff]  ;;  %v1511_v7 = vpop.f32.mrb[25].mxu1  ;;  %v1651_v12 = vpop.f32.mrb[23].mxu0 }
 0x13d   : > { %1371 = vst.msk [vmem:[#allocation2 + $0x20] sm:$0xff] %vm583_vm14, %v1363_v63  ;;  %v1364_v59 = vadd.f32 %v1347_v58, %v1208_v22  ;;  %v1526_v8 = vadd.f32 %v1495_v44, %v1397_v4  ;;  %v1400_v32 = vld [vmem:[#allocation2 + $0x18] sm:$0xff]  ;;  %v2504_v10 = vpop.f32.mrb[26].mxu1 }
 0x13e   : > { %1374 = vst.msk [vmem:[#allocation2 + $0x38] sm:$0xff] %vm583_vm14, %v1366_v5  ;;  %1536 = vst.msk [vmem:[#allocation2 + $0x10] sm:$0xff] %vm583_vm14, %v1528_v0  ;;  %v1529_v55 = vadd.f32 %v2500_v39, %v1400_v32  ;;  %v1398_v61 = vld [vmem:[#allocation2 + $0x8] sm:$0xff]  ;;  %v1514_v43 = vpop.f32.mrb[27].mxu1 }
 0x13f   : > { %1372 = vst.msk [vmem:[#allocation2 + $0x28] sm:$0xff] %vm583_vm14, %v1364_v59  ;;  %1534 = vst.msk [vmem:[#allocation2] sm:$0xff] %vm583_vm14, %v1526_v8  ;;  %v1527_v16 = vadd.f32 %v1498_v14, %v1398_v61 }
 0x140   : > { %1537 = vst.msk [vmem:[#allocation2 + $0x18] sm:$0xff] %vm583_vm14, %v1529_v55 }
 0x141   : > { %1535 = vst.msk [vmem:[#allocation2 + $0x8] sm:$0xff] %vm583_vm14, %v1527_v16  ;;  %v2515_v33 = vpop.f32.mrb[24].mxu0 }
 0x142   : > { %v1664_v28 = vpop.f32.mrb[25].mxu0 }
 0x143   : > { %v1403_v18 = vld [vmem:[#allocation2 + $0x30] sm:$0xff]  ;;  %v2523_v19 = vpop.f32.mrb[28].mxu1  ;;  %v2516_v1 = vpop.f32.mrb[26].mxu0 }
 0x144   : > { %v1532_v30 = vadd.f32 %v2503_v38, %v1403_v18  ;;  %v1401_v23 = vld [vmem:[#allocation2 + $0x20] sm:$0xff]  ;;  %v1833_v51 = vpop.f32.mrb[29].mxu1  ;;  %v1667_v41 = vpop.f32.mrb[27].mxu0 }
 0x145   : > { %v1530_v25 = vadd.f32 %v1511_v7, %v1401_v23  ;;  %v1404_v46 = vld [vmem:[#allocation2 + $0x38] sm:$0xff]  ;;  %v1564_v9 = vld [vmem:[#allocation2 + $0x10] sm:$0xff]  ;;  %v2524_v26 = vpop.f32.mrb[30].mxu1 }
 0x146   : > { %1540 = vst.msk [vmem:[#allocation2 + $0x30] sm:$0xff] %vm583_vm14, %v1532_v30  ;;  %v1533_v60 = vadd.f32 %v2504_v10, %v1404_v46  ;;  %v1681_v17 = vadd.f32 %v2511_v62, %v1564_v9  ;;  %v1402_v3 = vld [vmem:[#allocation2 + $0x28] sm:$0xff]  ;;  %v1562_v27 = vld [vmem:[#allocation2] sm:$0xff]  ;;  %v1836_v31 = vpop.f32.mrb[31].mxu1 }
 0x147   : > { %1538 = vst.msk [vmem:[#allocation2 + $0x20] sm:$0xff] %vm583_vm14, %v1530_v25  ;;  %v1531_v42 = vadd.f32 %v1514_v43, %v1402_v3  ;;  %v1679_v34 = vadd.f32 %v1648_v13, %v1562_v27  ;;  %v1565_v36 = vld [vmem:[#allocation2 + $0x18] sm:$0xff]  ;;  %v2359_v3 = vld [vmem:[%s3388_s2] ss:$0 sm:$0xff] (!%p2358_p11) }
 0x148   : > { %1541 = vst.msk [vmem:[#allocation2 + $0x38] sm:$0xff] %vm583_vm14, %v1533_v60  ;;  %1689 = vst.msk [vmem:[#allocation2 + $0x10] sm:$0xff] %vm583_vm14, %v1681_v17  ;;  %v1682_v45 = vadd.f32 %v2512_v2, %v1565_v36  ;;  %v1563_v49 = vld [vmem:[#allocation2 + $0x8] sm:$0xff]  ;;  %v2360_v27 = vld [vmem:[%s3389_s3] ss:$0 sm:$0xff] (!%p2358_p11) }
 0x149   : > { %1539 = vst.msk [vmem:[#allocation2 + $0x28] sm:$0xff] %vm583_vm14, %v1531_v42  ;;  %1687 = vst.msk [vmem:[#allocation2] sm:$0xff] %vm583_vm14, %v1679_v34  ;;  %v1680_v15 = vadd.f32 %v1651_v12, %v1563_v49  ;;  %v2535_v52 = vpop.f32.mrb[28].mxu0 }
 0x14a   : > { %1690 = vst.msk [vmem:[#allocation2 + $0x18] sm:$0xff] %vm583_vm14, %v1682_v45  ;;  %v2000_v54 = vpop.f32.mrb[29].mxu0 }
 0x14b   : > { %1688 = vst.msk [vmem:[#allocation2 + $0x8] sm:$0xff] %vm583_vm14, %v1680_v15  ;;  %v2527_v37 = vpop.f32.mrb[32].mxu1  ;;  %v2536_v44 = vpop.f32.mrb[30].mxu0 }
 0x14c   : > { %v1849_v47 = vpop.f32.mrb[33].mxu1  ;;  %v2003_v48 = vpop.f32.mrb[31].mxu0 }
 0x14d   : > { %v1568_v53 = vld [vmem:[#allocation2 + $0x30] sm:$0xff]  ;;  %v2528_v20 = vpop.f32.mrb[34].mxu1 }
 0x14e   : > { %v1685_v50 = vadd.f32 %v2515_v33, %v1568_v53  ;;  %v1566_v6 = vld [vmem:[#allocation2 + $0x20] sm:$0xff]  ;;  %v1852_v11 = vpop.f32.mrb[35].mxu1 }
 0x14f   : > { %v1683_v56 = vadd.f32 %v1664_v28, %v1566_v6  ;;  %v1569_v57 = vld [vmem:[#allocation2 + $0x38] sm:$0xff]  ;;  %v1710_v39 = vld [vmem:[#allocation2 + $0x10] sm:$0xff] }
 0x150   : > { %1693 = vst.msk [vmem:[#allocation2 + $0x30] sm:$0xff] %vm583_vm14, %v1685_v50  ;;  %v1686_v14 = vadd.f32 %v2516_v1, %v1569_v57  ;;  %v1866_v58 = vadd.f32 %v2523_v19, %v1710_v39  ;;  %v1567_v40 = vld [vmem:[#allocation2 + $0x28] sm:$0xff]  ;;  %v1708_v21 = vld [vmem:[#allocation2] sm:$0xff] }
 0x151   : > { %1691 = vst.msk [vmem:[#allocation2 + $0x20] sm:$0xff] %vm583_vm14, %v1683_v56  ;;  %v1684_v24 = vadd.f32 %v1667_v41, %v1567_v40  ;;  %v1864_v63 = vadd.f32 %v1833_v51, %v1708_v21  ;;  %v1711_v29 = vld [vmem:[#allocation2 + $0x18] sm:$0xff]  ;;  %v2539_v0 = vpop.f32.mrb[32].mxu0 }
 0x152   : > { %1694 = vst.msk [vmem:[#allocation2 + $0x38] sm:$0xff] %vm583_vm14, %v1686_v14  ;;  %1874 = vst.msk [vmem:[#allocation2 + $0x10] sm:$0xff] %vm583_vm14, %v1866_v58  ;;  %v1867_v35 = vadd.f32 %v2524_v26, %v1711_v29  ;;  %v1709_v38 = vld [vmem:[#allocation2 + $0x8] sm:$0xff]  ;;  %v2016_v22 = vpop.f32.mrb[33].mxu0 }
 0x153   : > { %1692 = vst.msk [vmem:[#allocation2 + $0x28] sm:$0xff] %vm583_vm14, %v1684_v24  ;;  %1872 = vst.msk [vmem:[#allocation2] sm:$0xff] %vm583_vm14, %v1864_v63  ;;  %v1865_v5 = vadd.f32 %v1836_v31, %v1709_v38  ;;  %v2540_v4 = vpop.f32.mrb[34].mxu0 }
 0x154   : > { %1875 = vst.msk [vmem:[#allocation2 + $0x18] sm:$0xff] %vm583_vm14, %v1867_v35  ;;  %v2019_v62 = vpop.f32.mrb[35].mxu0 }
 0x155   : > { %1873 = vst.msk [vmem:[#allocation2 + $0x8] sm:$0xff] %vm583_vm14, %v1865_v5 }
 0x157   : > { %v1714_v7 = vld [vmem:[#allocation2 + $0x30] sm:$0xff] }
 0x158   : > { %v1870_v59 = vadd.f32 %v2527_v37, %v1714_v7  ;;  %v1712_v8 = vld [vmem:[#allocation2 + $0x20] sm:$0xff] }
 0x159   : > { %v1868_v32 = vadd.f32 %v1849_v47, %v1712_v8  ;;  %v1715_v10 = vld [vmem:[#allocation2 + $0x38] sm:$0xff]  ;;  %v1904_v13 = vld [vmem:[#allocation2 + $0x10] sm:$0xff] }
 0x15a   : > { %1878 = vst.msk [vmem:[#allocation2 + $0x30] sm:$0xff] %vm583_vm14, %v1870_v59  ;;  %v1871_v55 = vadd.f32 %v2528_v20, %v1715_v10  ;;  %v2033_v61 = vadd.f32 %v2535_v52, %v1904_v13  ;;  %v1713_v43 = vld [vmem:[#allocation2 + $0x28] sm:$0xff]  ;;  %v1902_v2 = vld [vmem:[#allocation2] sm:$0xff] }
 0x15b   : > { %1876 = vst.msk [vmem:[#allocation2 + $0x20] sm:$0xff] %vm583_vm14, %v1868_v32  ;;  %v1869_v16 = vadd.f32 %v1852_v11, %v1713_v43  ;;  %v2031_v12 = vadd.f32 %v2000_v54, %v1902_v2  ;;  %v1905_v18 = vld [vmem:[#allocation2 + $0x18] sm:$0xff] }
 0x15c   : > { %1879 = vst.msk [vmem:[#allocation2 + $0x38] sm:$0xff] %vm583_vm14, %v1871_v55  ;;  %2041 = vst.msk [vmem:[#allocation2 + $0x10] sm:$0xff] %vm583_vm14, %v2033_v61  ;;  %v2034_v19 = vadd.f32 %v2536_v44, %v1905_v18  ;;  %v1903_v30 = vld [vmem:[#allocation2 + $0x8] sm:$0xff] }
 0x15d   : > { %1877 = vst.msk [vmem:[#allocation2 + $0x28] sm:$0xff] %vm583_vm14, %v1869_v16  ;;  %2039 = vst.msk [vmem:[#allocation2] sm:$0xff] %vm583_vm14, %v2031_v12  ;;  %v2032_v23 = vadd.f32 %v2003_v48, %v1903_v30 }
 0x15e   : > { %2042 = vst.msk [vmem:[#allocation2 + $0x18] sm:$0xff] %vm583_vm14, %v2034_v19 }
 0x15f   : > { %2040 = vst.msk [vmem:[#allocation2 + $0x8] sm:$0xff] %vm583_vm14, %v2032_v23 }
 0x161   : > { %v1908_v33 = vld [vmem:[#allocation2 + $0x30] sm:$0xff]  ;;  %2050 = sbr.rel (%p2358_p11) target bundleno = 376 (0x178), region = 44 }
 0x162   : > { %v2037_v51 = vadd.f32 %v2539_v0, %v1908_v33  ;;  %v1906_v25 = vld [vmem:[#allocation2 + $0x20] sm:$0xff] }
 0x163   : > { %v2035_v46 = vadd.f32 %v2016_v22, %v1906_v25  ;;  %v1909_v9 = vld [vmem:[#allocation2 + $0x38] sm:$0xff]  ;;  %v2053_v42 = vld [vmem:[#allocation2 + $0x10] sm:$0xff] (!%p2358_p11) }
 0x164   : > { %2045 = vst.msk [vmem:[#allocation2 + $0x30] sm:$0xff] %vm583_vm14, %v2037_v51  ;;  %v2038_v28 = vadd.f32 %v2540_v4, %v1909_v9  ;;  %v1907_v26 = vld [vmem:[#allocation2 + $0x28] sm:$0xff]  ;;  %v2051_v17 = vld [vmem:[#allocation2] sm:$0xff] (!%p2358_p11)  ;;  %v2068_v41 = vmul.f32 (!%p2358_p11), %v2359_v3, %v2053_v42 }
 0x165   : > { %2043 = vst.msk [vmem:[#allocation2 + $0x20] sm:$0xff] %vm583_vm14, %v2035_v46  ;;  %v2036_v60 = vadd.f32 %v2019_v62, %v1907_v26  ;;  %v2066_v1 = vmul.f32 (!%p2358_p11), %v2359_v3, %v2051_v17  ;;  %v2054_v34 = vld [vmem:[#allocation2 + $0x18] sm:$0xff] (!%p2358_p11) }
 0x166   : > { %2046 = vst.msk [vmem:[#allocation2 + $0x38] sm:$0xff] %vm583_vm14, %v2038_v28  ;;  %v2052_v31 = vld [vmem:[#allocation2 + $0x8] sm:$0xff] (!%p2358_p11)  ;;  %v2069_v45 = vmul.f32 (!%p2358_p11), %v2359_v3, %v2054_v34  ;;  %v2083_v6 = vadd.f32 (!%p2358_p11), %v2360_v27, %v2068_v41 }
 0x167   : > { %2044 = vst.msk [vmem:[#allocation2 + $0x28] sm:$0xff] %vm583_vm14, %v2036_v60  ;;  %v2067_v36 = vmul.f32 (!%p2358_p11), %v2359_v3, %v2052_v31  ;;  %v2081_v47 = vadd.f32 (!%p2358_p11), %v2360_v27, %v2066_v1 }
 0x168   : > { %v2084_v11 = vadd.f32 %v2360_v27, %v2069_v45  ;;  %v2091_v58 = vmax.f32 %v2083_v6, 0.0 }
 0x169   : > { %v2082_v50 = vadd.f32 %v2360_v27, %v2067_v36  ;;  %v2089_v56 = vmax.f32 %v2081_v47, 0.0 }
 0x16a   : > { %v2092_v40 = vmax.f32 %v2084_v11, 0.0  ;;  %v2373_v5 = vpack.c.bf16 %v2091_v58, %v2091_v58 }
 0x16b   : > { %v2057_v37 = vld [vmem:[#allocation2 + $0x30] sm:$0xff]  ;;  %v2090_v14 = vmax.f32 %v2082_v50, 0.0  ;;  %v2371_v24 = vpack.c.bf16 %v2089_v56, %v2089_v56 }
 0x16c   : > { %v2055_v49 = vld [vmem:[#allocation2 + $0x20] sm:$0xff]  ;;  %v2072_v20 = vmul.f32 %v2359_v3, %v2057_v37  ;;  %v2374_v0 = vpack.c.bf16 %v2092_v40, %v2092_v40  ;;  %2132 = vst.msk [vmem:[%s2787_s27 + $0x8] sm:$0xf] %vm2129_vm8, %v2373_v5 }
 0x16d   : > { %v2070_v52 = vmul.f32 %v2359_v3, %v2055_v49  ;;  %v2058_v54 = vld [vmem:[#allocation2 + $0x38] sm:$0xff]  ;;  %v2372_v38 = vpack.c.bf16 %v2090_v14, %v2090_v14  ;;  %2130 = vst.msk [vmem:[%s2787_s27] sm:$0xf] %vm2129_vm8, %v2371_v24 }
 0x16e   : > { %v2056_v15 = vld [vmem:[#allocation2 + $0x28] sm:$0xff]  ;;  %v2073_v44 = vmul.f32 %v2359_v3, %v2058_v54  ;;  %v2087_v48 = vadd.f32 %v2360_v27, %v2072_v20  ;;  %2133 = vst.msk [vmem:[%s2787_s27 + $0xc] sm:$0xf] %vm2129_vm8, %v2374_v0 }
 0x16f   : > { %v2071_v53 = vmul.f32 %v2359_v3, %v2056_v15  ;;  %v2085_v57 = vadd.f32 %v2360_v27, %v2070_v52  ;;  %2131 = vst.msk [vmem:[%s2787_s27 + $0x4] sm:$0xf] %vm2129_vm8, %v2372_v38 }
 0x170   : > { %v2088_v21 = vadd.f32 %v2360_v27, %v2073_v44  ;;  %v2095_v35 = vmax.f32 %v2087_v48, 0.0 }
 0x171   : > { %v2086_v39 = vadd.f32 %v2360_v27, %v2071_v53  ;;  %v2093_v63 = vmax.f32 %v2085_v57, 0.0 }
 0x172   : > { %v2096_v22 = vmax.f32 %v2088_v21, 0.0  ;;  %v2377_v62 = vpack.c.bf16 %v2095_v35, %v2095_v35 }
 0x173   : > { %v2094_v29 = vmax.f32 %v2086_v39, 0.0  ;;  %v2375_v4 = vpack.c.bf16 %v2093_v63, %v2093_v63 }
 0x174   : > { %v2378_v59 = vpack.c.bf16 %v2096_v22, %v2096_v22  ;;  %2136 = vst.msk [vmem:[%s2787_s27 + $0x18] sm:$0xf] %vm2129_vm8, %v2377_v62 }
 0x175   : > { %v2376_v7 = vpack.c.bf16 %v2094_v29, %v2094_v29  ;;  %2134 = vst.msk [vmem:[%s2787_s27 + $0x10] sm:$0xf] %vm2129_vm8, %v2375_v4 }
 0x176   : > { %2137 = vst.msk [vmem:[%s2787_s27 + $0x1c] sm:$0xf] %vm2129_vm8, %v2378_v59 }
 0x177   : > { %2135 = vst.msk [vmem:[%s2787_s27 + $0x14] sm:$0xf] %vm2129_vm8, %v2376_v7 }
 0x178 PF: > { %s14_s21 = sadd.s32 1, %s2693_s21   ;;  %s3456_s29 = sld [smem:[#allocation3_spill]] }
 0x179   : > { %p11_p12 = scmp.ge.s32.totalorder %s14_s21, 50   ;;  %s3457_s15 = smov %s2681_s18 }
 0x17a   : > { %s3458_s16 = smov %s2685_s19  ;;  %s3459_s17 = smov %s2689_s20 }
 0x17b   : > { %s3460_s18 = smov %s3464_s22  ;;  %s3461_s19 = smov %s3468_s23 }
 0x17c   :  { %13 = sbr.rel (!%p11_p12) target bundleno = 4 (0x4), region = 77 }
 0x17e   : > { %s3462_s20 = smov %s3456_s29 }

// kernel: physnet_forward.22
= control target key start
LH: loop header
LB: loop body
LE: loop exit
PB: predicated region body
PF: predicated region fallthrough
CT: control target
= control target key end

     0   :  { %s244_s6 = smov 0   ;;  %s261_s0 = inlined_call_operand.vmem [shape: bf16[8,2,2,2,128], index: 0, kind: input, shape index: {}]   ;;  %s262_s1 = inlined_call_operand.vmem [shape: bf16[4,2,2,64], index: 1, kind: output, shape index: {}]  }
   0x1 LB: > { %s200_s7 = sadd.s32 4294967295, %s231_s6   ;;  %p204_p0 = scmp.ge.s32.totalorder %s231_s6, 1  ;;  %s231_s6 = sphi %s244_s6, %s11_s6  }
   0x2   : > { %p88_p1 = scmp.lt.s32.totalorder %s231_s6, 5 }
   0x4   : > { %p89_p2 = pnand %p204_p0, %p88_p1 }
   0x5   : > { %s205_s8 = sshll.u32 (!%p89_p2), %s200_s7, 1  ;;  %s233_s13 = smov (!%p89_p2), 64   ;;  %vm144_vm0 = vcmask (!%p89_p2), 516096  }
   0x6   : > { %92 = sbr.rel (%p89_p2) target bundleno = 145 (0x91), region = 24  ;;  %p108_p3 = scmp.lt.s32.totalorder (!%p89_p2), %s205_s8, 7 }
   0x7   : > { %p113_p4 = scmp.lt.s32.totalorder (!%p89_p2), %s200_s7, 3 }
   0xd   : > { %s264_s8 = smov (!%p108_p3, %s205_s8), 7  ;;  %s266_s7 = smov (!%p113_p4, %s200_s7), 3 }
   0xe   : > { %s206_s9 = sshll.u32 %s264_s8, 2  ;;  %s207_s14 = sshll.u32 %s266_s7, 1 }
   0xf   : > { %s111_s12 = scalar_lea.vmem %s261_s0, %s206_s9  ;;  %s116_s17 = scalar_lea.vmem %s262_s1, %s207_s14 }
  0x10   : > { %v117_v0 = vld [vmem:[%s111_s12] sm:$0x1]  ;;  %v208_v1 = vld [vmem:[%s111_s12 + $0x1] sm:$0x1]  ;;  %v210_v2 = vld [vmem:[%s111_s12 + $0x4] sm:$0x1] }
  0x11   : > { %v122_v3 = vmax.bf16 %v208_v1, %v117_v0  ;;  %v118_v4 = vld [vmem:[%s111_s12 + $0x2] sm:$0x1]  ;;  %v209_v5 = vld [vmem:[%s111_s12 + $0x3] sm:$0x1]  ;;  %v212_v6 = vld [vmem:[%s111_s12 + $0x5] sm:$0x1] }
  0x12   : > { %v123_v7 = vmax.bf16 %v209_v5, %v118_v4  ;;  %v211_v8 = vld [vmem:[%s111_s12 + $0x6] sm:$0x1]  ;;  %v213_v11 = vld [vmem:[%s111_s12 + $0x7] sm:$0x1] }
  0x13   : > { %v127_v9 = vmax.bf16 %v210_v2, %v122_v3 }
  0x14   : > { %v128_v10 = vmax.bf16 %v211_v8, %v123_v7 }
  0x15   : > { %v132_v12 = vmax.bf16 %v212_v6, %v127_v9 }
  0x16   : > { %v133_v13 = vmax.bf16 %v213_v11, %v128_v10 }
  0x17   : > { %136 = vrot.lane.b32.xlu0 %v132_v12, %s233_s13 }
  0x1b   : > { %138 = vrot.lane.b32.xlu0 %v133_v13, %s233_s13 }
  0x89   : > { %v137_v14 = vpop.permute.xlu0 %136 }
  0x8a   : > { %v142_v15 = vmax.bf16 %v137_v14, %v132_v12 }
  0x8c   : > { %145 = vst.msk [vmem:[%s116_s17] sm:$0x1] %vm144_vm0, %v142_v15 }
  0x8d   : > { %v139_v16 = vpop.permute.xlu0 %138 }
  0x8e   : > { %v143_v17 = vmax.bf16 %v139_v16, %v133_v13 }
  0x90   : > { %146 = vst.msk [vmem:[%s116_s17 + $0x1] sm:$0x1] %vm144_vm0, %v143_v17 }
  0x91 PF: > { %s11_s6 = sadd.s32 1, %s231_s6  }
  0x92   : > { %p8_p5 = scmp.ge.s32.totalorder %s11_s6, 6  }
  0x94   :  { %10 = sbr.rel (!%p8_p5) target bundleno = 1 (0x1), region = 57 }

// kernel: physnet_forward.20
= control target key start
LH: loop header
LB: loop body
LE: loop exit
PB: predicated region body
PF: predicated region fallthrough
CT: control target
= control target key end

     0   :  { %s1844_s15 = smov 0   ;;  %s1846_s16 = smov 0   ;;  %s2176_s0 = inlined_call_operand.vmem [shape: bf16[2,6,26,64], index: 0, kind: input, shape index: {}]   ;;  %s2177_s1 = inlined_call_operand.vmem [shape: bf16[3,576,64], index: 1, kind: input, shape index: {}]   ;;  %s2178_s2 = inlined_call_operand.vmem [shape: f32[1,64], index: 2, kind: input, shape index: {}]   ;;  %s2179_s3 = inlined_call_operand.vmem [shape: f32[1,64], index: 3, kind: input, shape index: {}]   ;;  %s2180_s4 = inlined_call_operand.vmem [shape: bf16[2,4,16,64], index: 4, kind: output, shape index: {}]  }
   0x1   :  { %s1848_s17 = smov 0   ;;  %s1850_s18 = smov 0  }
   0x2   :  { %s1852_s19 = smov 0   ;;  %s1854_s20 = smov 0  }
   0x3   :  { %s1856_s21 = smov 0  }
   0x4 LB: > { %s26_s22 = sadd.s32 1, %s1801_s18  ;;  %s29_s23 = sadd.s32 1, %s1805_s19  ;;  %s1813_s21 = sphi %s1856_s21, %s14_s21   ;;  %s1809_s20 = sphi %s1854_s20, %s2200_s20   ;;  %s1805_s19 = sphi %s1852_s19, %s2199_s19   ;;  %s1801_s18 = sphi %s1850_s18, %s2198_s18   ;;  %s1797_s17 = sphi %s1848_s17, %s2197_s17   ;;  %s1793_s16 = sphi %s1846_s16, %s2196_s16   ;;  %s1789_s15 = sphi %s1844_s15, %s2195_s15  }
   0x5   : > { %p27_p0 = scmp.ge.s32.totalorder %s26_s22, 3  ;;  %p1424_p1 = scmp.ge.s32.totalorder %s1813_s21, 1 }
   0x6   : > { %p203_p2 = scmp.lt.s32.totalorder %s1813_s21, 25  ;;  %s33_s24 = sadd.s32 1, %s1809_s20 }
   0x7   : > { %s2202_s22 = smov (%p27_p0, %s26_s22), 0  ;;  %s2204_s23 = smov (!%p27_p0, %s29_s23), %s1805_s19 }
   0x8   : > { %p204_p3 = pnand %p1424_p1, %p203_p2  ;;  %p31_p4 = scmp.ge.s32.totalorder %s2204_s23, 4 }
   0x9   : > { %s243_s25 = sadd.s32 (!%p204_p3), %s1789_s15, %s1793_s16  ;;  %p244_p6 = scmp.lt.s32.totalorder (!%p204_p3), %s1797_s17, 1 }
   0xa   : > { %s2206_s23 = smov (%p31_p4, %s2204_s23), 0  ;;  %s2208_s24 = smov (!%p31_p4, %s33_s24), %s1809_s20 }
   0xb   : > { %p35_p5 = scmp.ge.s32.totalorder %s2208_s24, 2  ;;  %207 = sbr.rel (%p204_p3) target bundleno = 362 (0x16a), region = 36 }
   0xc   : > { %p246_p7 = scmp.lt.s32.totalorder (!%p204_p3), %s243_s25, 5  ;;  %p254_p8 = scmp.lt.s32.totalorder (!%p204_p3), %s1789_s15, 2 }
   0xd   : > { %s2210_s24 = smov (%p35_p5, %s2208_s24), 0  ;;  %p261_p9 = scmp.lt.s32.totalorder (!%p204_p3), %s1793_s16, 3 }
   0xe   : > { %p1431_p10 = scmp.ne.s32.totalorder (!%p204_p3), %s1789_s15, 0 }
  0x12   : > { %s2212_s17 = smov (!%p244_p6, %s1797_s17), 1  ;;  %s2214_s25 = smov (!%p246_p7, %s243_s25), 5 }
  0x13   : > { %s1655_s26 = smul.u32 24, %s2212_s17  ;;  %s1425_s27 = sshll.u32 %s2214_s25, 2  ;;  %vm275_vm0 = vcmask (!%p1431_p10), 523264   ;;  %v1815_v0 = vmov (!%p1431_p10), 0.0  }
  0x14   : > { %s1429_s7 = sshll.u32 %s2212_s17, 3  ;;  %s2216_s16 = smov (!%p261_p9, %s1793_s16), 3  ;;  %276 = vst.msk [vmem:[#allocation2] sm:$0xff] (!%p1431_p10), %vm275_vm0, %v1815_v0  ;;  %277 = vst.msk [vmem:[#allocation2 + $0x8] sm:$0xff] (!%p1431_p10), %vm275_vm0, %v1815_v0 }
  0x15   : > { %s250_s28 = sadd.s32 %s1655_s26, %s1425_s27  ;;  %s1428_s10 = sshll.u32 %s2216_s16, 1 }
  0x16   : > { %s1426_s29 = sshll.u32 %s250_s28, 2  ;;  %s265_s14 = sadd.s32 %s1429_s7, %s1428_s10 }
  0x17   : > { %s1897_s6 = scalar_lea.vmem %s2176_s0, %s1426_s29  ;;  %s1430_s25 = sshll.u32 %s265_s14, 2 }
  0x18   : > { %s255_s8 = scalar_select %p254_p8, %s1789_s15, 2 }
  0x19   : > { %s1909_s28 = scalar_lea.vmem %s2180_s4, %s1430_s25  ;;  %274 = sbr.rel (%p1431_p10) target bundleno = 32 (0x20), region = 40 }
  0x1a   : > { %s1656_s9 = smul.u32 288, %s255_s8 }
  0x1c   : > { %s1904_s13 = scalar_lea.vmem %s2177_s1, %s1656_s9 }
  0x20 PF: > { %v1717_v1 = vld [vmem:[%s1904_s13] sm:$0xff]   ;;  %v278_v2 = vlaneseq  ;;  %v1816_v3 = vmov 0.0   ;;  %v1718_v4 = vld [vmem:[%s1904_s13 + $0x8] sm:$0xff]   ;;  %vm1817_vm1 = vmmov 0   ;;  %v1720_v10 = vld [vmem:[%s1904_s13 + $0x10] sm:$0xff]   ;;  %vm360_vm7 = vcmask 523264  }
  0x21   : > { %1547 = vmatprep.subr.bf16.mxu0 %v1816_v3  ;;  %1559 = vmatprep.subr.bf16.mxu1 %v1816_v3  ;;  %v1719_v5 = vld [vmem:[%s1904_s13 + $0x20] sm:$0xff]   ;;  %v1721_v7 = vld [vmem:[%s1904_s13 + $0x28] sm:$0xff]   ;;  %v1723_v16 = vld [vmem:[%s1904_s13 + $0x30] sm:$0xff]   ;;  %v1818_v22 = vmov 0   ;;  %vm532_vm10 = vcmask 1040384   ;;  %vm533_vm11 = vcmask 1044484  }
  0x22   : > { %1548 = vmatpush3.bf16.msra.mxu0 %v1717_v1  ;;  %1555 = vmatprep.mubr.msk.bf16.mxu0 %vm1817_vm1, %v1816_v3  ;;  %v279_v6 = vshrl.u32 %v278_v2, 7  ;;  %v305_v12 = vld [vmem:[%s1897_s6] sm:$0xf]  ;;  %v306_v13 = vld [vmem:[%s1897_s6 + $0x4] sm:$0xf]  ;;  %v1722_v17 = vld [vmem:[%s1904_s13 + $0x18] sm:$0xff]  }
  0x23   : > { %1549 = vmatprep.subr.bf16.mxu0 %v1816_v3  ;;  %1567 = vmatprep.mubr.msk.bf16.mxu1 %vm1817_vm1, %v1816_v3  ;;  %v1724_v24 = vld [vmem:[%s1904_s13 + $0x40] sm:$0xff]   ;;  %v1725_v25 = vld [vmem:[%s1904_s13 + $0x38] sm:$0xff]   ;;  %v1728_v30 = vld [vmem:[%s1897_s6 + $0x8] ss:$0 sps:$4 sm:$0x11]   ;;  %p1493_p11 = scmp.ne.s32.totalorder %s1789_s15, 2 }
  0x24   : > { %1560 = vmatpush3.bf16.msra.mxu1 %v1719_v5  ;;  %v280_v8 = vadd.s32 8, %v279_v6  ;;  %v285_v9 = vand.u32 3, %v279_v6  ;;  %v1727_v28 = vld [vmem:[%s1897_s6] sm:$0xff]   ;;  %vm430_vm13 = vsmask.f32 7424  ;;  %v439_v33 = vshll.u32 %v1728_v30, 16  ;;  %vm534_vm14 = vmor %vm532_vm10, %vm533_vm11 }
  0x25   : > { %1561 = vmatprep.subr.bf16.mxu1 %v1816_v3  ;;  %v432_v31 = vshrl.u32 %v1727_v28, 16  ;;  %v434_v32 = vshll.u32 %v1727_v28, 16  ;;  %v1726_v37 = vld [vmem:[%s1904_s13 + $0x48] sm:$0xff]   ;;  %v1730_v42 = vld [vmem:[%s1904_s13 + $0x60] sm:$0xff]   ;;  %v1729_v44 = vld [vmem:[%s1904_s13 + $0x50] sm:$0xff]  }
  0x26   : > { %1550 = vmatpush3.bf16.msra.mxu0 %v1718_v4  ;;  %v292_v11 = vand.u32 3, %v280_v8  ;;  %vm307_vm2 = vcmp.ge.s32.totalorder %v285_v9, 1  ;;  %vm1932_vm5 = vcmp.lt.s32.totalorder %v285_v9, 3  ;;  %v441_v38 = vrot.slane %v439_v33, 1  ;;  %v515_v43 = vld [vmem:[%s1897_s6] sm:$0xe] }
  0x27   : > { %1551 = vmatprep.subr.bf16.mxu0 %v1816_v3  ;;  %vm1928_vm4 = vmpackc.low %vm307_vm2, %vm307_vm2  ;;  %v436_v35 = vrot.slane %v434_v32, 1  ;;  %v517_v45 = vld [vmem:[%s1897_s6 + $0x8] sm:$0x1]  ;;  %v516_v53 = vld [vmem:[%s1897_s6 + $0x4] sm:$0xf]  ;;  %vm564_vm2 = vcmask 1046528  }
  0x28   : > { %1562 = vmatpush3.bf16.msra.mxu1 %v1721_v7  ;;  %vm308_vm3 = vcmp.ge.s32.totalorder %v292_v11, 1  ;;  %v319_v19 = vsel %vm1928_vm4, %v305_v12, 0  ;;  %vm1947_vm8 = vcmp.lt.s32.totalorder %v292_v11, 3  ;;  %vm528_vm9 = vmpackc.low %vm1932_vm5, %vm1932_vm5  ;;  %v1957_v23 = vsel %vm1928_vm4, 65537, %v1818_v22  ;;  %v1732_v49 = vld [vmem:[%s1904_s13 + $0x68] sm:$0xff]   ;;  %v1731_v54 = vld [vmem:[%s1904_s13 + $0x58] sm:$0xff]  }
  0x29   : > { %1563 = vmatprep.subr.bf16.mxu1 %v1816_v3  ;;  %vm1939_vm6 = vmpackc.low %vm308_vm3, %vm308_vm3  ;;  %v648_v29 = vrot.slane %v1957_v23, 6  ;;  %v1978_v34 = vsel %vm528_vm9, 65537, %v1818_v22  ;;  %v437_v41 = vor.u32 %v436_v35, %v432_v31  ;;  %v640_v58 = vld [vmem:[%s1897_s6] sm:$0xc]  ;;  %v641_v59 = vld [vmem:[%s1897_s6 + $0x4] sm:$0xf] }
  0x2a   : > { %1552 = vmatpush3.bf16.msra.mxu0 %v1720_v10  ;;  %v320_v20 = vsel %vm1939_vm6, %v306_v13, 0  ;;  %v1963_v27 = vsel %vm1939_vm6, 65537, %v1818_v22  ;;  %vm529_vm12 = vmpackc.low %vm1947_vm8, %vm1947_vm8  ;;  %v535_v46 = vrot.slane %v1978_v34, 7  ;;  %v1733_v62 = vld [vmem:[%s1904_s13 + $0x70] sm:$0xff]   ;;  %vm645_vm5 = vcmask 1041408   ;;  %v1734_v8 = vld [vmem:[%s1904_s13 + $0x80] sm:$0xff]  }
  0x2b   : > { %1553 = vmatprep.subr.bf16.mxu0 %v1816_v3  ;;  %v1432_v26 = vcombine.low %v319_v19, %v320_v20  ;;  %v1982_v36 = vsel %vm529_vm12, 65537, %v1818_v22  ;;  %v649_v39 = vrot.slane %v648_v29, 4  ;;  %v650_v40 = vrot.slane %v1963_v27, 6  ;;  %v642_v0 = vld [vmem:[%s1897_s6 + $0x8] sm:$0x3]  ;;  %v1735_v12 = vld [vmem:[%s1904_s13 + $0x78] sm:$0xff]  }
  0x2c   : > { %1564 = vmatpush3.bf16.msra.mxu1 %v1723_v16  ;;  %v537_v47 = vrot.slane %v1982_v36, 7  ;;  %v442_v48 = vsel %vm430_vm13, %v437_v41, %v441_v38  ;;  %v536_v50 = vrot.slane %v535_v46, 4  ;;  %vm2002_vm15 = vcmp.ne.s16.totalorder %v535_v46, 0  ;;  %v1741_v16 = vld [vmem:[%s1897_s6] sm:$0xfc]   ;;  %v1736_v21 = vld [vmem:[%s1904_s13 + $0x88] sm:$0xff]  }
  0x2d   : > { %1565 = vmatprep.subr.bf16.mxu1 %v1816_v3  ;;  %v543_v56 = vsel %vm2002_vm15, %v515_v43, 0  ;;  %vm646_vm8 = vcmask 1045508   ;;  %v652_v1 = vrot.slane %v650_v40, 4  ;;  %vm2027_vm10 = vcmp.ne.s16.totalorder %v648_v29, 0  ;;  %v1738_v22 = vld [vmem:[%s1904_s13 + $0xa0] sm:$0xff]   ;;  %v1737_v28 = vld [vmem:[%s1904_s13 + $0x90] sm:$0xff]  }
  0x2e   : > { %1554 = vmatpush3.bf16.msra.mxu0 %v1722_v17  ;;  %v2000_v51 = vrot.slane %v537_v47, 4  ;;  %v2010_v55 = vsel %vm534_vm14, %v536_v50, %v537_v47  ;;  %vm647_vm9 = vmor %vm645_vm5, %vm646_vm8  ;;  %v656_v6 = vsel %vm2027_vm10, %v640_v58, 0  ;;  %vm677_vm14 = vcmask 1045504   ;;  %v1742_v20 = vld [vmem:[%s1897_s6 + $0x8] ss:$0 sps:$4 sm:$0x77]  }
  0x2f   : > { %1571 = vmatprep.subr.bf16.mxu0 %v1816_v3  ;;  %vm541_vm3 = vcmp.ne.s16.totalorder %v2010_v55, 0  ;;  %v651_v5 = vsel %vm647_vm9, %v649_v39, %v650_v40  ;;  %vm655_vm12 = vcmp.ne.s16.totalorder %v652_v1, 0  ;;  %v776_v23 = vshrl.u32 %v1741_v16, 16  ;;  %v1740_v33 = vld [vmem:[%s1904_s13 + $0xa8] sm:$0xff]   ;;  %v864_v35 = vld [vmem:[%s1897_s6] sm:$0x8] }
  0x30   : > { %1566 = vmatpush3.bf16.msra.mxu1 %v1725_v25  ;;  %vm542_vm0 = vcmp.ne.s16.totalorder %v2000_v51, 0  ;;  %v544_v60 = vsel %vm541_vm3, %v516_v53, 0  ;;  %vm654_vm11 = vcmp.ne.s16.totalorder %v651_v5, 0  ;;  %v658_v10 = vsel %vm655_vm12, %v642_v0, 0  ;;  %v866_v38 = vld [vmem:[%s1897_s6 + $0x8] sm:$0x7] }
  0x31   : > { %1556 = vmatmul.mubr.msk.bf16.vlgmr.msra.gmra.mrb[0].mxu0 %vm360_vm7, %v1432_v26  ;;  %1583 = vmatprep.subr.bf16.mxu1 %v1816_v3  ;;  %v545_v57 = vsel %vm542_vm0, %v517_v45, 0  ;;  %v1445_v63 = vcombine.low %v543_v56, %v544_v60  ;;  %v657_v9 = vsel %vm654_vm11, %v641_v59, 0  ;;  %v1453_v15 = vcombine.low %v658_v10, %v658_v10  ;;  %v1743_v43 = vld [vmem:[%s1904_s13 + $0xb0] sm:$0xff]   ;;  %v865_v47 = vld [vmem:[%s1897_s6 + $0x4] sm:$0xf]  ;;  %v1745_v56 = vld [vmem:[%s1904_s13 + $0xb8] sm:$0xff]  }
  0x32   : > { %1572 = vmatpush3.bf16.msra.mxu0 %v1724_v24  ;;  %1579 = vmatprep.mubr.msk.bf16.mxu0 %vm1817_vm1, %v1816_v3  ;;  %v1446_v61 = vcombine.low %v545_v57, %v545_v57  ;;  %v1452_v13 = vcombine.low %v656_v6, %v657_v9  ;;  %v779_v24 = vshll.u32 %v1741_v16, 16  ;;  %v784_v26 = vshrl.u32 %v1742_v20, 16  ;;  %v1744_v50 = vld [vmem:[%s1904_s13 + $0xc0] sm:$0xff]   ;;  %v1746_v59 = vld [vmem:[%s1904_s13 + $0xc8] sm:$0xff]   ;;  %v1747_v0 = vld [vmem:[%s1904_s13 + $0xd0] sm:$0xff]  }
  0x33   : > { %1573 = vmatprep.subr.bf16.mxu0 %v1816_v3  ;;  %1568 = vmatmul.mubr.msk.bf16.vlgmr.msra.gmra.mrb[0].mxu1 %vm360_vm7, %v442_v48  ;;  %v565_v7 = vrot.slane %v1445_v63, 1  ;;  %v679_v19 = vrot.slane %v1453_v15, 2  ;;  %v787_v27 = vshll.u32 %v1742_v20, 16  ;;  %v778_v29 = vrot.slane %v776_v23, 2  ;;  %v1755_v63 = vld [vmem:[%s1897_s6 + $0x4] sm:$0xff]   ;;  %v1751_v10 = vld [vmem:[%s1904_s13 + $0xf0] sm:$0xff]  }
  0x34   : > { %1584 = vmatpush3.bf16.msra.mxu1 %v1730_v42  ;;  %1591 = vmatprep.mubr.msk.bf16.mxu1 %vm1817_vm1, %v1816_v3  ;;  %v566_v4 = vrot.slane %v1446_v61, 1  ;;  %v678_v17 = vrot.slane %v1452_v13, 2  ;;  %vm867_vm5 = vcmask 1042432   ;;  %v781_v30 = vrot.slane %v779_v24, 3  ;;  %v1750_v1 = vld [vmem:[%s1904_s13 + $0xe8] sm:$0xff]   ;;  %v1752_v14 = vld [vmem:[%s1904_s13 + $0x100] sm:$0xff]  }
  0x35   : > { %1585 = vmatprep.subr.bf16.mxu1 %v1816_v3  ;;  %v786_v31 = vrot.slane %v784_v26, 2  ;;  %v789_v32 = vrot.slane %v787_v27, 3  ;;  %vm868_vm8 = vcmask 1046532   ;;  %vm774_vm9 = vsmask.f32 5376  ;;  %v1753_v18 = vld [vmem:[%s1904_s13 + $0xf8] sm:$0xff]  }
  0x36   : > { %1574 = vmatpush3.bf16.msra.mxu0 %v1726_v37  ;;  %v567_v11 = vsel %vm564_vm2, %v565_v7, %v566_v4  ;;  %v680_v25 = vsel %vm677_vm14, %v678_v17, %v679_v19  ;;  %v1739_v37 = vld [vmem:[%s1904_s13 + $0x98] sm:$0xff]   ;;  %vm869_vm10 = vmor %vm867_vm5, %vm868_vm8  ;;  %v870_v39 = vrot.slane %v1978_v34, 5  ;;  %v872_v40 = vrot.slane %v1982_v36, 5  ;;  %v975_v2 = vld [vmem:[%s1897_s6 + $0x4] sm:$0xf] }
  0x37   : > { %1575 = vmatprep.subr.bf16.mxu0 %v1816_v3  ;;  %v782_v41 = vor.u32 %v781_v30, %v778_v29  ;;  %v790_v42 = vor.u32 %v789_v32, %v786_v31  ;;  %vm899_vm5 = vcmask 1044480   ;;  %v976_v4 = vld [vmem:[%s1897_s6 + $0x8] sm:$0xf]  ;;  %v1756_v5 = vld [vmem:[%s1897_s6 + $0xc] ss:$0 sps:$4 sm:$0x11]  }
  0x38   : > { %1586 = vmatpush3.bf16.msra.mxu1 %v1732_v49  ;;  %v874_v45 = vrot.slane %v872_v40, 4  ;;  %vm2062_vm11 = vcmp.ne.s16.totalorder %v870_v39, 0  ;;  %v1090_v6 = vshll.u32 %v1755_v63, 16  ;;  %v1749_v7 = vld [vmem:[%s1904_s13 + $0xd8] sm:$0xff]   ;;  %v978_v9 = vsel %vm1939_vm6, %v976_v4, 0  ;;  %v1757_v27 = vld [vmem:[%s1904_s13 + $0x110] sm:$0xff]  }
  0x39   : > { %1587 = vmatprep.subr.bf16.mxu1 %v1816_v3  ;;  %v878_v36 = vsel %vm2062_vm11, %v864_v35, 0  ;;  %v791_v49 = vsel %vm774_vm9, %v782_v41, %v790_v42  ;;  %v1095_v13 = vshll.u32 %v1756_v5, 16  ;;  %v1171_v19 = vld [vmem:[%s1897_s6 + $0x4] sm:$0xe]  ;;  %v1172_v20 = vld [vmem:[%s1897_s6 + $0x8] sm:$0xf] }
  0x3a   : > { %1576 = vmatpush3.bf16.msra.mxu0 %v1729_v44  ;;  %v871_v44 = vrot.slane %v870_v39, 4  ;;  %vm877_vm12 = vcmp.ne.s16.totalorder %v874_v45, 0  ;;  %v1174_v24 = vsel %vm2002_vm15, %v1171_v19, 0  ;;  %v1758_v30 = vld [vmem:[%s1904_s13 + $0x118] sm:$0xff]   ;;  %v329_v51 = vld [vmem:[#allocation2] sm:$0xff] }
  0x3b   : > { %1577 = vmatprep.subr.bf16.mxu0 %v1816_v3  ;;  %v880_v48 = vsel %vm877_vm12, %v866_v38, 0  ;;  %v1097_v17 = vrot.slane %v1095_v13, 1 }
  0x3c   : > { %1588 = vmatpush3.bf16.msra.mxu1 %v1733_v62  ;;  %v873_v34 = vsel %vm869_vm10, %v871_v44, %v872_v40  ;;  %v1748_v62 = vld [vmem:[%s1904_s13 + $0xe0] sm:$0xff]  }
  0x3d   : > { %1589 = vmatprep.subr.bf16.mxu1 %v1816_v3  ;;  %vm876_vm14 = vcmp.ne.s16.totalorder %v873_v34, 0 }
  0x3e   : > { %1578 = vmatpush3.bf16.msra.mxu0 %v1731_v54  ;;  %v879_v53 = vsel %vm876_vm14, %v865_v47, 0  ;;  %v1467_v54 = vcombine.low %v880_v48, %v880_v48 }
  0x3f   : > { %1595 = vmatprep.subr.bf16.mxu0 %v1816_v3  ;;  %v1466_v57 = vcombine.low %v878_v36, %v879_v53 }
  0x40   : > { %1590 = vmatpush3.bf16.msra.mxu1 %v1735_v12  ;;  %v901_v58 = vrot.slane %v1467_v54, 3  ;;  %v1092_v12 = vrot.slane %v1090_v6, 1 }
  0x41   : > { %1580 = vmatmul.mubr.msk.bf16.vlgmr.msra.gmra.mrb[4].mxu0 %vm360_vm7, %v567_v11  ;;  %1607 = vmatprep.subr.bf16.mxu1 %v1816_v3  ;;  %v900_v60 = vrot.slane %v1466_v57, 3  ;;  %v1088_v11 = vshrl.u32 %v1755_v63, 16 }
  0x42   : > { %1596 = vmatpush3.bf16.msra.mxu0 %v1734_v8  ;;  %1603 = vmatprep.mubr.msk.bf16.mxu0 %vm1817_vm1, %v1816_v3  ;;  %v977_v8 = vsel %vm1928_vm4, %v975_v2, 0 }
  0x43   : > { %1597 = vmatprep.subr.bf16.mxu0 %v1816_v3  ;;  %1592 = vmatmul.mubr.msk.bf16.vlgmr.msra.gmra.mrb[4].mxu1 %vm360_vm7, %v680_v25  ;;  %v902_v61 = vsel %vm899_vm5, %v900_v60, %v901_v58  ;;  %v1473_v15 = vcombine.low %v977_v8, %v978_v9  ;;  %v1093_v16 = vor.u32 %v1092_v12, %v1088_v11  ;;  %v1175_v25 = vsel %vm541_vm3, %v1172_v20, 0 }
  0x44   : > { %1608 = vmatpush3.bf16.msra.mxu1 %v1738_v22  ;;  %1615 = vmatprep.mubr.msk.bf16.mxu1 %vm1817_vm1, %v1816_v3  ;;  %v1754_v22 = vld [vmem:[%s1904_s13 + $0x108] sm:$0xff]  }
  0x45   : > { %1609 = vmatprep.subr.bf16.mxu1 %v1816_v3  ;;  %v1098_v23 = vsel %vm430_vm13, %v1093_v16, %v1097_v17 }
  0x46   : > { %1598 = vmatpush3.bf16.msra.mxu0 %v1736_v21  ;;  %v1173_v21 = vld [vmem:[%s1897_s6 + $0xc] sm:$0x1] }
  0x47   : > { %1599 = vmatprep.subr.bf16.mxu0 %v1816_v3  ;;  %v1176_v26 = vsel %vm542_vm0, %v1173_v21, 0 }
  0x48   : > { %1610 = vmatpush3.bf16.msra.mxu1 %v1740_v33  ;;  %v1487_v29 = vcombine.low %v1176_v26, %v1176_v26  ;;  %v330_v33 = vld [vmem:[#allocation2 + $0x8] sm:$0xff] }
  0x49   : > { %1611 = vmatprep.subr.bf16.mxu1 %v1816_v3 }
  0x4a   : > { %1600 = vmatpush3.bf16.msra.mxu0 %v1737_v28  ;;  %v1486_v28 = vcombine.low %v1174_v24, %v1175_v25  ;;  %v1196_v32 = vrot.slane %v1487_v29, 1 }
  0x4b   : > { %1601 = vmatprep.subr.bf16.mxu0 %v1816_v3 }
  0x4c   : > { %1612 = vmatpush3.bf16.msra.mxu1 %v1743_v43  ;;  %v1195_v31 = vrot.slane %v1486_v28, 1 }
  0x4d   : > { %1613 = vmatprep.subr.bf16.mxu1 %v1816_v3 }
  0x4e   : > { %1602 = vmatpush3.bf16.msra.mxu0 %v1739_v37  ;;  %v1197_v52 = vsel %vm564_vm2, %v1195_v31, %v1196_v32 }
  0x4f   : > { %1619 = vmatprep.subr.bf16.mxu0 %v1816_v3 }
  0x50   : > { %1614 = vmatpush3.bf16.msra.mxu1 %v1745_v56 }
  0x51   : > { %1604 = vmatmul.mubr.msk.bf16.vlgmr.msra.gmra.mrb[8].mxu0 %vm360_vm7, %v791_v49  ;;  %1631 = vmatprep.subr.bf16.mxu1 %v1816_v3 }
  0x52   : > { %1620 = vmatpush3.bf16.msra.mxu0 %v1744_v50  ;;  %1627 = vmatprep.mubr.msk.bf16.mxu0 %vm1817_vm1, %v1816_v3 }
  0x53   : > { %1621 = vmatprep.subr.bf16.mxu0 %v1816_v3  ;;  %1616 = vmatmul.mubr.msk.bf16.vlgmr.msra.gmra.mrb[8].mxu1 %vm360_vm7, %v902_v61 }
  0x54   : > { %1632 = vmatpush3.bf16.msra.mxu1 %v1748_v62  ;;  %1639 = vmatprep.mubr.msk.bf16.mxu1 %vm1817_vm1, %v1816_v3 }
  0x55   : > { %1633 = vmatprep.subr.bf16.mxu1 %v1816_v3 }
  0x56   : > { %1622 = vmatpush3.bf16.msra.mxu0 %v1746_v59 }
  0x57   : > { %1623 = vmatprep.subr.bf16.mxu0 %v1816_v3 }
  0x58   : > { %1634 = vmatpush3.bf16.msra.mxu1 %v1750_v1 }
  0x59   : > { %1635 = vmatprep.subr.bf16.mxu1 %v1816_v3 }
  0x5a   : > { %1624 = vmatpush3.bf16.msra.mxu0 %v1747_v0 }
  0x5b   : > { %1625 = vmatprep.subr.bf16.mxu0 %v1816_v3 }
  0x5c   : > { %1636 = vmatpush3.bf16.msra.mxu1 %v1751_v10 }
  0x5d   : > { %1637 = vmatprep.subr.bf16.mxu1 %v1816_v3 }
  0x5e   : > { %1626 = vmatpush3.bf16.msra.mxu0 %v1749_v7 }
  0x5f   : > { %1643 = vmatprep.subr.bf16.mxu0 %v1816_v3 }
  0x60   : > { %1638 = vmatpush3.bf16.msra.mxu1 %v1753_v18 }
  0x61   : > { %1628 = vmatmul.mubr.msk.bf16.vlgmr.msra.gmra.mrb[12].mxu0 %vm360_vm7, %v1473_v15 }
  0x62   : > { %1644 = vmatpush3.bf16.msra.mxu0 %v1752_v14  ;;  %1651 = vmatprep.mubr.msk.bf16.mxu0 %vm1817_vm1, %v1816_v3  ;;  %vm1304_vm1 = vcmask (!%p1493_p11), 519168  }
  0x63   : > { %1645 = vmatprep.subr.bf16.mxu0 %v1816_v3  ;;  %1640 = vmatmul.mubr.msk.bf16.vlgmr.msra.gmra.mrb[12].mxu1 %vm360_vm7, %v1098_v23 }
  0x66   : > { %1646 = vmatpush3.bf16.msra.mxu0 %v1754_v22 }
  0x67   : > { %1647 = vmatprep.subr.bf16.mxu0 %v1816_v3 }
  0x6a   : > { %1648 = vmatpush3.bf16.msra.mxu0 %v1757_v27 }
  0x6b   : > { %1649 = vmatprep.subr.bf16.mxu0 %v1816_v3 }
  0x6e   : > { %1650 = vmatpush3.bf16.msra.mxu0 %v1758_v30 }
  0x71   : > { %1652 = vmatmul.mubr.msk.bf16.vlgmr.msra.gmra.mrb[16].mxu0 %vm360_vm7, %v1197_v52 }
 0x104   : > { %v398_v55 = vpop.f32.mrb[0].mxu0 }
 0x105   : > { %v405_v35 = vadd.f32 %v398_v55, %v329_v51  ;;  %v1557_v37 = vpop.f32.mrb[1].mxu0 }
 0x106   : > { %v401_v38 = vpop.f32.mrb[2].mxu0  ;;  %v504_v41 = vpop.f32.mrb[0].mxu1 }
 0x107   : > { %407 = vst.msk [vmem:[#allocation2] sm:$0xff] %vm360_vm7, %v405_v35  ;;  %v406_v39 = vadd.f32 %v401_v38, %v330_v33  ;;  %v1558_v40 = vpop.f32.mrb[3].mxu0  ;;  %v1569_v42 = vpop.f32.mrb[1].mxu1 }
 0x108   : > { %v507_v3 = vpop.f32.mrb[2].mxu1  ;;  %v1494_v42 = vld [vmem:[%s2178_s2] ss:$0 sm:$0xff] (!%p1493_p11) }
 0x109   : > { %408 = vst.msk [vmem:[#allocation2 + $0x8] sm:$0xff] %vm360_vm7, %v406_v39  ;;  %v1570_v43 = vpop.f32.mrb[3].mxu1 }
 0x10e   : > { %v420_v44 = vld [vmem:[#allocation2] sm:$0xff] }
 0x10f   : > { %v511_v45 = vadd.f32 %v504_v41, %v420_v44 }
 0x110   : > { %v421_v46 = vld [vmem:[#allocation2 + $0x8] sm:$0xff] }
 0x111   : > { %513 = vst.msk [vmem:[#allocation2] sm:$0xff] %vm360_vm7, %v511_v45  ;;  %v512_v47 = vadd.f32 %v507_v3, %v421_v46  ;;  %v1495_v3 = vld [vmem:[%s2179_s3] ss:$0 sm:$0xff] (!%p1493_p11) }
 0x113   : > { %514 = vst.msk [vmem:[#allocation2 + $0x8] sm:$0xff] %vm360_vm7, %v512_v47 }
 0x114   : > { %v629_v34 = vpop.f32.mrb[4].mxu0 }
 0x115   : > { %v1581_v36 = vpop.f32.mrb[5].mxu0 }
 0x116   : > { %v632_v48 = vpop.f32.mrb[6].mxu0  ;;  %v742_v54 = vpop.f32.mrb[4].mxu1 }
 0x117   : > { %v1582_v49 = vpop.f32.mrb[7].mxu0  ;;  %v1593_v57 = vpop.f32.mrb[5].mxu1 }
 0x118   : > { %v554_v50 = vld [vmem:[#allocation2] sm:$0xff]  ;;  %v745_v59 = vpop.f32.mrb[6].mxu1 }
 0x119   : > { %v636_v53 = vadd.f32 %v629_v34, %v554_v50  ;;  %v1594_v60 = vpop.f32.mrb[7].mxu1 }
 0x11a   : > { %v555_v56 = vld [vmem:[#allocation2 + $0x8] sm:$0xff] }
 0x11b   : > { %638 = vst.msk [vmem:[#allocation2] sm:$0xff] %vm360_vm7, %v636_v53  ;;  %v637_v58 = vadd.f32 %v632_v48, %v555_v56 }
 0x11d   : > { %639 = vst.msk [vmem:[#allocation2 + $0x8] sm:$0xff] %vm360_vm7, %v637_v58 }
 0x122   : > { %v667_v61 = vld [vmem:[#allocation2] sm:$0xff] }
 0x123   : > { %v749_v62 = vadd.f32 %v742_v54, %v667_v61 }
 0x124   : > { %v668_v63 = vld [vmem:[#allocation2 + $0x8] sm:$0xff]  ;;  %v853_v0 = vpop.f32.mrb[8].mxu0 }
 0x125   : > { %751 = vst.msk [vmem:[#allocation2] sm:$0xff] %vm360_vm7, %v749_v62  ;;  %v750_v1 = vadd.f32 %v745_v59, %v668_v63  ;;  %v1605_v2 = vpop.f32.mrb[9].mxu0 }
 0x126   : > { %v856_v4 = vpop.f32.mrb[10].mxu0  ;;  %v964_v6 = vpop.f32.mrb[8].mxu1 }
 0x127   : > { %752 = vst.msk [vmem:[#allocation2 + $0x8] sm:$0xff] %vm360_vm7, %v750_v1  ;;  %v1606_v5 = vpop.f32.mrb[11].mxu0  ;;  %v1617_v7 = vpop.f32.mrb[9].mxu1 }
 0x128   : > { %v967_v8 = vpop.f32.mrb[10].mxu1 }
 0x129   : > { %v1618_v10 = vpop.f32.mrb[11].mxu1 }
 0x12c   : > { %v764_v9 = vld [vmem:[#allocation2] sm:$0xff] }
 0x12d   : > { %v860_v11 = vadd.f32 %v853_v0, %v764_v9 }
 0x12e   : > { %v765_v12 = vld [vmem:[#allocation2 + $0x8] sm:$0xff] }
 0x12f   : > { %862 = vst.msk [vmem:[#allocation2] sm:$0xff] %vm360_vm7, %v860_v11  ;;  %v861_v13 = vadd.f32 %v856_v4, %v765_v12 }
 0x131   : > { %863 = vst.msk [vmem:[#allocation2 + $0x8] sm:$0xff] %vm360_vm7, %v861_v13 }
 0x134   : > { %v1055_v15 = vpop.f32.mrb[12].mxu0 }
 0x135   : > { %v1629_v14 = vpop.f32.mrb[13].mxu0 }
 0x136   : > { %v889_v18 = vld [vmem:[#allocation2] sm:$0xff]  ;;  %v1058_v16 = vpop.f32.mrb[14].mxu0  ;;  %v1160_v22 = vpop.f32.mrb[12].mxu1 }
 0x137   : > { %v971_v17 = vadd.f32 %v964_v6, %v889_v18  ;;  %v1630_v19 = vpop.f32.mrb[15].mxu0  ;;  %v1641_v23 = vpop.f32.mrb[13].mxu1 }
 0x138   : > { %v890_v20 = vld [vmem:[#allocation2 + $0x8] sm:$0xff]  ;;  %v1163_v24 = vpop.f32.mrb[14].mxu1 }
 0x139   : > { %973 = vst.msk [vmem:[#allocation2] sm:$0xff] %vm360_vm7, %v971_v17  ;;  %v972_v21 = vadd.f32 %v967_v8, %v890_v20  ;;  %v1642_v25 = vpop.f32.mrb[15].mxu1 }
 0x13b   : > { %974 = vst.msk [vmem:[#allocation2 + $0x8] sm:$0xff] %vm360_vm7, %v972_v21 }
 0x140   : > { %v987_v26 = vld [vmem:[#allocation2] sm:$0xff] }
 0x141   : > { %v1062_v27 = vadd.f32 %v1055_v15, %v987_v26 }
 0x142   : > { %v988_v28 = vld [vmem:[#allocation2 + $0x8] sm:$0xff] }
 0x143   : > { %1064 = vst.msk [vmem:[#allocation2] sm:$0xff] %vm360_vm7, %v1062_v27  ;;  %v1063_v29 = vadd.f32 %v1058_v16, %v988_v28 }
 0x144   : > { %v1259_v30 = vpop.f32.mrb[16].mxu0 }
 0x145   : > { %1065 = vst.msk [vmem:[#allocation2 + $0x8] sm:$0xff] %vm360_vm7, %v1063_v29  ;;  %v1653_v31 = vpop.f32.mrb[17].mxu0 }
 0x146   : > { %v1262_v32 = vpop.f32.mrb[18].mxu0 }
 0x147   : > { %v1654_v52 = vpop.f32.mrb[19].mxu0 }
 0x14a   : > { %v1077_v51 = vld [vmem:[#allocation2] sm:$0xff] }
 0x14b   : > { %v1167_v55 = vadd.f32 %v1160_v22, %v1077_v51 }
 0x14c   : > { %v1078_v33 = vld [vmem:[#allocation2 + $0x8] sm:$0xff] }
 0x14d   : > { %1169 = vst.msk [vmem:[#allocation2] sm:$0xff] %vm360_vm7, %v1167_v55  ;;  %v1168_v35 = vadd.f32 %v1163_v24, %v1078_v33 }
 0x14f   : > { %1170 = vst.msk [vmem:[#allocation2 + $0x8] sm:$0xff] %vm360_vm7, %v1168_v35 }
 0x153   : > { %1273 = sbr.rel (%p1493_p11) target bundleno = 362 (0x16a), region = 44 }
 0x154   : > { %v1185_v37 = vld [vmem:[#allocation2] sm:$0xff] }
 0x155   : > { %v1266_v38 = vadd.f32 %v1259_v30, %v1185_v37 }
 0x156   : > { %v1186_v39 = vld [vmem:[#allocation2 + $0x8] sm:$0xff] }
 0x157   : > { %1268 = vst.msk [vmem:[#allocation2] sm:$0xff] %vm360_vm7, %v1266_v38  ;;  %v1267_v40 = vadd.f32 %v1262_v32, %v1186_v39 }
 0x159   : > { %1269 = vst.msk [vmem:[#allocation2 + $0x8] sm:$0xff] %vm360_vm7, %v1267_v40 }
 0x15e   : > { %v1274_v41 = vld [vmem:[#allocation2] sm:$0xff] }
 0x15f   : > { %v1283_v43 = vmul.f32 %v1494_v42, %v1274_v41 }
 0x160   : > { %v1275_v44 = vld [vmem:[#allocation2 + $0x8] sm:$0xff] }
 0x161   : > { %v1284_v45 = vmul.f32 %v1494_v42, %v1275_v44  ;;  %v1292_v46 = vadd.f32 %v1495_v3, %v1283_v43 }
 0x163   : > { %v1293_v47 = vadd.f32 %v1495_v3, %v1284_v45  ;;  %v1294_v34 = vmax.f32 %v1292_v46, 0.0 }
 0x165   : > { %v1295_v36 = vmax.f32 %v1293_v47, 0.0  ;;  %v1500_v48 = vpack.c.bf16 %v1294_v34, %v1294_v34 }
 0x167   : > { %v1501_v49 = vpack.c.bf16 %v1295_v36, %v1295_v36  ;;  %1305 = vst.msk [vmem:[%s1909_s28] sm:$0xf] %vm1304_vm1, %v1500_v48 }
 0x169   : > { %1306 = vst.msk [vmem:[%s1909_s28 + $0x4] sm:$0xf] %vm1304_vm1, %v1501_v49 }
 0x16a PF: > { %s14_s21 = sadd.s32 1, %s1813_s21   ;;  %s2195_s15 = smov %s1801_s18 }
 0x16b   : > { %p11_p12 = scmp.ge.s32.totalorder %s14_s21, 26   ;;  %s2196_s16 = smov %s1805_s19 }
 0x16c   : > { %s2197_s17 = smov %s1809_s20  ;;  %s2198_s18 = smov %s2202_s22 }
 0x16d   : > { %s2199_s19 = smov %s2206_s23  ;;  %s2200_s20 = smov %s2210_s24 }
 0x16e   :  { %13 = sbr.rel (!%p11_p12) target bundleno = 4 (0x4), region = 77 }

// kernel: physnet_forward.25
= control target key start
LH: loop header
LB: loop body
LE: loop exit
PB: predicated region body
PF: predicated region fallthrough
CT: control target
= control target key end

     0   :  { %s209_s6 = smov 0   ;;  %s220_s0 = inlined_call_operand.vmem [shape: bf16[4,1,2,1,128], index: 0, kind: input, shape index: {}]   ;;  %s221_s1 = inlined_call_operand.vmem [shape: bf16[4,1,1,64], index: 1, kind: output, shape index: {}]  }
   0x1 LB: > { %s172_s7 = sadd.s32 4294967295, %s196_s6   ;;  %p176_p0 = scmp.ge.s32.totalorder %s196_s6, 1  ;;  %s196_s6 = sphi %s209_s6, %s11_s6  }
   0x2   : > { %p86_p1 = scmp.lt.s32.totalorder %s196_s6, 5 }
   0x4   : > { %p87_p2 = pnand %p176_p0, %p86_p1 }
   0x5   : > { %p103_p3 = scmp.lt.s32.totalorder (!%p87_p2), %s172_s7, 3  ;;  %s198_s12 = smov (!%p87_p2), 64   ;;  %vm119_vm0 = vcmask (!%p87_p2), 516096   ;;  %vm120_vm1 = vsmask.f32 (!%p87_p2), 256 }
   0x6   : > { %90 = sbr.rel (%p87_p2) target bundleno = 138 (0x8a), region = 24  ;;  %vm121_vm2 = vmand (!%p87_p2), %vm119_vm0, %vm120_vm1 }
   0xd   : > { %s223_s7 = smov (!%p103_p3, %s172_s7), 3 }
   0xe   : > { %s177_s8 = sshll.u32 %s223_s7, 1  ;;  %s109_s15 = scalar_lea.vmem %s221_s1, %s223_s7 }
   0xf   : > { %s106_s11 = scalar_lea.vmem %s220_s0, %s177_s8  ;;  %v122_v4 = vld [vmem:[%s109_s15] sm:$0x1] }
  0x10   : > { %v110_v0 = vld [vmem:[%s106_s11] sm:$0x1]  ;;  %v178_v1 = vld [vmem:[%s106_s11 + $0x1] sm:$0x1] }
  0x11   : > { %v113_v2 = vmax.bf16 %v178_v1, %v110_v0 }
  0x13   : > { %115 = vrot.lane.b32.xlu0 %v113_v2, %s198_s12 }
  0x85   : > { %v116_v3 = vpop.permute.xlu0 %115 }
  0x86   : > { %v118_v5 = vmax.bf16 %v116_v3, %v113_v2 }
  0x88   : > { %v123_v6 = vsel %vm121_vm2, %v118_v5, %v122_v4 }
  0x89   : > { %124 = vst [vmem:[%s109_s15] sm:$0x1] %v123_v6 }
  0x8a PF: > { %s11_s6 = sadd.s32 1, %s196_s6  }
  0x8b   : > { %p8_p4 = scmp.ge.s32.totalorder %s11_s6, 6  }
  0x8d   :  { %10 = sbr.rel (!%p8_p4) target bundleno = 1 (0x1), region = 55 }

// kernel: physnet_forward.23
= control target key start
LH: loop header
LB: loop body
LE: loop exit
PB: predicated region body
PF: predicated region fallthrough
CT: control target
= control target key end

     0   :  { %s1633_s15 = smov 0   ;;  %s1635_s16 = smov 0   ;;  %s1874_s0 = inlined_call_operand.vmem [shape: bf16[2,4,10,64], index: 0, kind: input, shape index: {}]   ;;  %s1875_s1 = inlined_call_operand.vmem [shape: bf16[3,576,64], index: 1, kind: input, shape index: {}]   ;;  %s1876_s2 = inlined_call_operand.vmem [shape: f32[1,64], index: 2, kind: input, shape index: {}]   ;;  %s1877_s3 = inlined_call_operand.vmem [shape: f32[1,64], index: 3, kind: input, shape index: {}]   ;;  %s1878_s4 = inlined_call_operand.vmem [shape: bf16[2,2,4,64], index: 4, kind: output, shape index: {}]  }
   0x1   :  { %s1637_s17 = smov 0   ;;  %s1639_s18 = smov 0  }
   0x2   :  { %s1641_s19 = smov 0   ;;  %s1643_s20 = smov 0  }
   0x3   :  { %s1645_s21 = smov 0  }
   0x4 LB: > { %s26_s22 = sadd.s32 1, %s1590_s18  ;;  %s29_s23 = sadd.s32 1, %s1594_s19  ;;  %s1602_s21 = sphi %s1645_s21, %s14_s21   ;;  %s1598_s20 = sphi %s1643_s20, %s1886_s20   ;;  %s1594_s19 = sphi %s1641_s19, %s1885_s19   ;;  %s1590_s18 = sphi %s1639_s18, %s1884_s18   ;;  %s1586_s17 = sphi %s1637_s17, %s1883_s17   ;;  %s1582_s16 = sphi %s1635_s16, %s1882_s16   ;;  %s1578_s15 = sphi %s1633_s15, %s1881_s15  }
   0x5   : > { %p27_p0 = scmp.ge.s32.totalorder %s26_s22, 3  ;;  %p1229_p1 = scmp.ge.s32.totalorder %s1602_s21, 1 }
   0x6   : > { %p203_p2 = scmp.lt.s32.totalorder %s1602_s21, 13  ;;  %s33_s24 = sadd.s32 1, %s1598_s20 }
   0x7   : > { %s1888_s22 = smov (%p27_p0, %s26_s22), 0  ;;  %s1890_s23 = smov (!%p27_p0, %s29_s23), %s1594_s19 }
   0x8   : > { %p204_p3 = pnand %p1229_p1, %p203_p2  ;;  %p31_p4 = scmp.ge.s32.totalorder %s1890_s23, 2 }
   0x9   : > { %s242_s25 = sadd.s32 (!%p204_p3), %s1578_s15, %s1582_s16  ;;  %p243_p6 = scmp.lt.s32.totalorder (!%p204_p3), %s1586_s17, 1 }
   0xa   : > { %s1892_s23 = smov (%p31_p4, %s1890_s23), 0  ;;  %s1894_s24 = smov (!%p31_p4, %s33_s24), %s1598_s20 }
   0xb   : > { %p35_p5 = scmp.ge.s32.totalorder %s1894_s24, 2  ;;  %207 = sbr.rel (%p204_p3) target bundleno = 359 (0x167), region = 36 }
   0xc   : > { %p245_p7 = scmp.lt.s32.totalorder (!%p204_p3), %s242_s25, 3  ;;  %p253_p8 = scmp.lt.s32.totalorder (!%p204_p3), %s1578_s15, 2 }
   0xd   : > { %s1896_s24 = smov (%p35_p5, %s1894_s24), 0  ;;  %p260_p9 = scmp.lt.s32.totalorder (!%p204_p3), %s1582_s16, 1 }
   0xe   : > { %p1236_p10 = scmp.ne.s32.totalorder (!%p204_p3), %s1578_s15, 0 }
  0x12   : > { %s1898_s17 = smov (!%p243_p6, %s1586_s17), 1  ;;  %s1900_s25 = smov (!%p245_p7, %s242_s25), 3 }
  0x13   : > { %s1231_s26 = sshll.u32 %s1898_s17, 3  ;;  %s1230_s27 = sshll.u32 %s1900_s25, 1  ;;  %vm273_vm0 = vcmask (!%p1236_p10), 519168   ;;  %v1604_v0 = vmov (!%p1236_p10), 0.0  }
  0x14   : > { %s249_s28 = sadd.s32 %s1231_s26, %s1230_s27  ;;  %s1234_s7 = sshll.u32 %s1898_s17, 1  ;;  %274 = vst.msk [vmem:[#allocation2] sm:$0xf] (!%p1236_p10), %vm273_vm0, %v1604_v0 }
  0x15   : > { %s1232_s29 = sshll.u32 %s249_s28, 2  ;;  %s1902_s16 = smov (!%p260_p9, %s1582_s16), 1 }
  0x16   : > { %s1686_s6 = scalar_lea.vmem %s1874_s0, %s1232_s29  ;;  %s263_s10 = sadd.s32 %s1234_s7, %s1902_s16 }
  0x17   : > { %s254_s8 = scalar_select %p253_p8, %s1578_s15, 2 }
  0x18   : > { %s1235_s14 = sshll.u32 %s263_s10, 1  ;;  %272 = sbr.rel (%p1236_p10) target bundleno = 31 (0x1f), region = 40 }
  0x19   : > { %s1448_s9 = smul.u32 288, %s254_s8  ;;  %s1698_s27 = scalar_lea.vmem %s1878_s4, %s1235_s14 }
  0x1b   : > { %s1693_s13 = scalar_lea.vmem %s1875_s1, %s1448_s9 }
  0x1f PF: > { %v1509_v1 = vld [vmem:[%s1693_s13] sm:$0xff]   ;;  %v275_v2 = vlaneseq  ;;  %v1605_v3 = vmov 0.0   ;;  %v1510_v4 = vld [vmem:[%s1693_s13 + $0x8] sm:$0xff]   ;;  %vm1606_vm1 = vmmov 0   ;;  %v1512_v9 = vld [vmem:[%s1693_s13 + $0x10] sm:$0xff]   ;;  %v1607_v14 = vmov 0  }
  0x20   : > { %1340 = vmatprep.subr.bf16.mxu0 %v1605_v3  ;;  %1352 = vmatprep.subr.bf16.mxu1 %v1605_v3  ;;  %v1511_v5 = vld [vmem:[%s1693_s13 + $0x20] sm:$0xff]   ;;  %v1513_v7 = vld [vmem:[%s1693_s13 + $0x28] sm:$0xff]   ;;  %v1515_v11 = vld [vmem:[%s1693_s13 + $0x30] sm:$0xff]   ;;  %vm330_vm6 = vcmask 523264   ;;  %vm375_vm13 = vcmask 519168   ;;  %p1290_p11 = scmp.ne.s32.totalorder %s1578_s15, 2 }
  0x21   : > { %1341 = vmatpush3.bf16.msra.mxu0 %v1509_v1  ;;  %1348 = vmatprep.mubr.msk.bf16.mxu0 %vm1606_vm1, %v1605_v3  ;;  %v276_v6 = vshrl.u32 %v275_v2, 7  ;;  %v1514_v12 = vld [vmem:[%s1693_s13 + $0x18] sm:$0xff]   ;;  %v289_v13 = vld [vmem:[%s1686_s6] sm:$0x3]  ;;  %v1518_v23 = vld [vmem:[%s1693_s13 + $0x48] sm:$0xff]   ;;  %vm1116_vm14 = vcmask (!%p1290_p11), 517120  }
  0x22   : > { %1342 = vmatprep.subr.bf16.mxu0 %v1605_v3  ;;  %1360 = vmatprep.mubr.msk.bf16.mxu1 %vm1606_vm1, %v1605_v3  ;;  %v1516_v17 = vld [vmem:[%s1693_s13 + $0x40] sm:$0xff]   ;;  %v1517_v18 = vld [vmem:[%s1693_s13 + $0x38] sm:$0xff]   ;;  %v1520_v31 = vld [vmem:[%s1693_s13 + $0x50] sm:$0xff]  }
  0x23   : > { %1353 = vmatpush3.bf16.msra.mxu1 %v1511_v5  ;;  %v281_v8 = vand.u32 1, %v276_v6  ;;  %v1519_v20 = vld [vmem:[%s1686_s6] ss:$0 sps:$4 sm:$0x77]   ;;  %v466_v21 = vld [vmem:[%s1686_s6] sm:$0x6] }
  0x24   : > { %1354 = vmatprep.subr.bf16.mxu1 %v1605_v3  ;;  %v391_v24 = vshrl.u32 %v1519_v20, 16  ;;  %v393_v25 = vshll.u32 %v1519_v20, 16  ;;  %v1521_v28 = vld [vmem:[%s1693_s13 + $0x60] sm:$0xff]   ;;  %v1523_v34 = vld [vmem:[%s1693_s13 + $0x68] sm:$0xff]   ;;  %v1522_v35 = vld [vmem:[%s1693_s13 + $0x58] sm:$0xff]  }
  0x25   : > { %1343 = vmatpush3.bf16.msra.mxu0 %v1510_v4  ;;  %vm468_vm2 = vcmp.lt.s32.totalorder %v281_v8, 1  ;;  %vm1715_vm3 = vcmp.ge.s32.totalorder %v281_v8, 1  ;;  %v559_v32 = vld [vmem:[%s1686_s6] sm:$0x6]  ;;  %v1524_v38 = vld [vmem:[%s1693_s13 + $0x70] sm:$0xff]   ;;  %v1526_v40 = vld [vmem:[%s1693_s13 + $0x78] sm:$0xff]  }
  0x26   : > { %1344 = vmatprep.subr.bf16.mxu0 %v1605_v3  ;;  %vm472_vm4 = vmpackc.low %vm468_vm2, %vm468_vm2  ;;  %v395_v26 = vrot.slane %v393_v25, 1  ;;  %v1525_v39 = vld [vmem:[%s1693_s13 + $0x80] sm:$0xff]   ;;  %v1527_v42 = vld [vmem:[%s1693_s13 + $0x88] sm:$0xff]  }
  0x27   : > { %1355 = vmatpush3.bf16.msra.mxu1 %v1513_v7  ;;  %vm295_vm5 = vmpackc.low %vm1715_vm3, %vm1715_vm3  ;;  %v1727_v15 = vsel %vm472_vm4, 65537, %v1607_v14  ;;  %v1532_v43 = vld [vmem:[%s1686_s6] ss:$0 sps:$4 sm:$0xee]   ;;  %v1528_v49 = vld [vmem:[%s1693_s13 + $0x90] sm:$0xff]  }
  0x28   : > { %1356 = vmatprep.subr.bf16.mxu1 %v1605_v3  ;;  %v296_v16 = vsel %vm295_vm5, %v289_v13, 0  ;;  %v474_v19 = vrot.slane %v1727_v15, 7  ;;  %v1747_v22 = vsel %vm295_vm5, 65537, %v1607_v14  ;;  %v396_v30 = vor.u32 %v395_v26, %v391_v24  ;;  %v1529_v45 = vld [vmem:[%s1693_s13 + $0xa0] sm:$0xff]   ;;  %v1531_v51 = vld [vmem:[%s1693_s13 + $0xa8] sm:$0xff]   ;;  %v1530_v54 = vld [vmem:[%s1693_s13 + $0x98] sm:$0xff]  }
  0x29   : > { %1345 = vmatpush3.bf16.msra.mxu0 %v1512_v9  ;;  %v561_v27 = vrot.slane %v1747_v22, 7  ;;  %v660_v46 = vshrl.u32 %v1532_v43, 16  ;;  %v663_v47 = vshll.u32 %v1532_v43, 16  ;;  %v737_v48 = vrot.slane %v1727_v15, 6  ;;  %v736_v50 = vld [vmem:[%s1686_s6] sm:$0xc] }
  0x2a   : > { %1346 = vmatprep.subr.bf16.mxu0 %v1605_v3  ;;  %vm475_vm7 = vcmp.ne.s16.totalorder %v474_v19, 0  ;;  %v1533_v57 = vld [vmem:[%s1693_s13 + $0xb0] sm:$0xff]   ;;  %v1534_v58 = vld [vmem:[%s1693_s13 + $0xc0] sm:$0xff]   ;;  %v823_v59 = vrot.slane %v1747_v22, 6  ;;  %v1535_v61 = vld [vmem:[%s1693_s13 + $0xb8] sm:$0xff]   ;;  %v1003_v9 = vrot.slane %v1727_v15, 5 }
  0x2b   : > { %1357 = vmatpush3.bf16.msra.mxu1 %v1515_v11  ;;  %v476_v29 = vsel %vm475_vm7, %v466_v21, 0  ;;  %vm562_vm8 = vcmp.ne.s16.totalorder %v561_v27, 0  ;;  %v662_v52 = vrot.slane %v660_v46, 1  ;;  %v665_v53 = vrot.slane %v663_v47, 2  ;;  %v1536_v62 = vld [vmem:[%s1693_s13 + $0xc8] sm:$0xff]   ;;  %v1538_v1 = vld [vmem:[%s1693_s13 + $0xe0] sm:$0xff]  }
  0x2c   : > { %1358 = vmatprep.subr.bf16.mxu1 %v1605_v3  ;;  %v1248_v33 = vcombine.low %v476_v29, %v476_v29  ;;  %v563_v36 = vsel %vm562_vm8, %v559_v32, 0  ;;  %vm738_vm9 = vcmp.ne.s16.totalorder %v737_v48, 0  ;;  %v822_v63 = vld [vmem:[%s1686_s6] sm:$0xc]  ;;  %vm824_vm10 = vcmp.ne.s16.totalorder %v823_v59, 0  ;;  %v1537_v4 = vld [vmem:[%s1693_s13 + $0xd0] sm:$0xff]  }
  0x2d   : > { %1347 = vmatpush3.bf16.msra.mxu0 %v1514_v12  ;;  %v1254_v41 = vcombine.low %v563_v36, %v563_v36  ;;  %v739_v55 = vsel %vm738_vm9, %v736_v50, 0  ;;  %v666_v56 = vor.u32 %v665_v53, %v662_v52  ;;  %v825_v2 = vsel %vm824_vm10, %v822_v63, 0  ;;  %v1545_v5 = vld [vmem:[%s1686_s6] sm:$0x1c]   ;;  %v1540_v7 = vld [vmem:[%s1693_s13 + $0xe8] sm:$0xff]   ;;  %v1539_v8 = vld [vmem:[%s1693_s13 + $0xd8] sm:$0xff]  }
  0x2e   : > { %1364 = vmatprep.subr.bf16.mxu0 %v1605_v3  ;;  %v489_v37 = vrot.slane %v1248_v33, 1  ;;  %v1266_v60 = vcombine.low %v739_v55, %v739_v55  ;;  %v1272_v6 = vcombine.low %v825_v2, %v825_v2  ;;  %v925_v10 = vshrl.u32 %v1545_v5, 16  ;;  %v1541_v13 = vld [vmem:[%s1693_s13 + $0xf0] sm:$0xff]   ;;  %v1542_v14 = vld [vmem:[%s1693_s13 + $0x100] sm:$0xff]   ;;  %v1544_v19 = vld [vmem:[%s1693_s13 + $0x108] sm:$0xff]  }
  0x2f   : > { %1359 = vmatpush3.bf16.msra.mxu1 %v1517_v18  ;;  %v576_v44 = vrot.slane %v1254_v41, 1  ;;  %v928_v11 = vshll.u32 %v1545_v5, 16  ;;  %v1543_v18 = vld [vmem:[%s1693_s13 + $0xf8] sm:$0xff]   ;;  %v1001_v20 = vld [vmem:[%s1686_s6] sm:$0x8]  ;;  %vm1005_vm11 = vcmp.ne.s16.totalorder %v1003_v9, 0 }
  0x30   : > { %1349 = vmatmul.mubr.msk.bf16.vlgmr.msra.gmra.mrb[0].mxu0 %vm330_vm6, %v296_v16  ;;  %1376 = vmatprep.subr.bf16.mxu1 %v1605_v3  ;;  %v752_v0 = vrot.slane %v1266_v60, 2  ;;  %v838_v12 = vrot.slane %v1272_v6, 2  ;;  %v1004_v16 = vrot.slane %v1003_v9, 4  ;;  %v1002_v21 = vld [vmem:[%s1686_s6 + $0x4] sm:$0x1]  ;;  %v1546_v25 = vld [vmem:[%s1693_s13 + $0x110] sm:$0xff]  }
  0x31   : > { %1365 = vmatpush3.bf16.msra.mxu0 %v1516_v17  ;;  %1372 = vmatprep.mubr.msk.bf16.mxu0 %vm1606_vm1, %v1605_v3  ;;  %v927_v17 = vrot.slane %v925_v10, 2  ;;  %v930_v15 = vrot.slane %v928_v11, 3  ;;  %v1547_v27 = vld [vmem:[%s1693_s13 + $0x118] sm:$0xff]   ;;  %v305_v29 = vld [vmem:[#allocation2] sm:$0xf] }
  0x32   : > { %1366 = vmatprep.subr.bf16.mxu0 %v1605_v3  ;;  %1361 = vmatmul.mubr.msk.bf16.vlgmr.msra.gmra.mrb[0].mxu1 %vm330_vm6, %v396_v30  ;;  %vm1006_vm12 = vcmp.ne.s16.totalorder %v1004_v16, 0 }
  0x33   : > { %1377 = vmatpush3.bf16.msra.mxu1 %v1521_v28  ;;  %1384 = vmatprep.mubr.msk.bf16.mxu1 %vm1606_vm1, %v1605_v3  ;;  %v931_v22 = vor.u32 %v930_v15, %v927_v17  ;;  %v1008_v24 = vsel %vm1006_vm12, %v1002_v21, 0  ;;  %v1292_v21 = vld [vmem:[%s1877_s3] ss:$0 sm:$0xff] (!%p1290_p11) }
  0x34   : > { %1378 = vmatprep.subr.bf16.mxu1 %v1605_v3 }
  0x35   : > { %1367 = vmatpush3.bf16.msra.mxu0 %v1518_v23  ;;  %v1007_v23 = vsel %vm1005_vm11, %v1001_v20, 0  ;;  %v1291_v20 = vld [vmem:[%s1876_s2] ss:$0 sm:$0xff] (!%p1290_p11) }
  0x36   : > { %1368 = vmatprep.subr.bf16.mxu0 %v1605_v3  ;;  %v1284_v26 = vcombine.low %v1007_v23, %v1008_v24 }
  0x37   : > { %1379 = vmatpush3.bf16.msra.mxu1 %v1523_v34 }
  0x38   : > { %1380 = vmatprep.subr.bf16.mxu1 %v1605_v3  ;;  %v1023_v28 = vrot.slane %v1284_v26, 3 }
  0x39   : > { %1369 = vmatpush3.bf16.msra.mxu0 %v1520_v31 }
  0x3a   : > { %1370 = vmatprep.subr.bf16.mxu0 %v1605_v3 }
  0x3b   : > { %1381 = vmatpush3.bf16.msra.mxu1 %v1524_v38 }
  0x3c   : > { %1382 = vmatprep.subr.bf16.mxu1 %v1605_v3 }
  0x3d   : > { %1371 = vmatpush3.bf16.msra.mxu0 %v1522_v35 }
  0x3e   : > { %1388 = vmatprep.subr.bf16.mxu0 %v1605_v3 }
  0x3f   : > { %1383 = vmatpush3.bf16.msra.mxu1 %v1526_v40 }
  0x40   : > { %1373 = vmatmul.mubr.msk.bf16.vlgmr.msra.gmra.mrb[4].mxu0 %vm330_vm6, %v489_v37  ;;  %1400 = vmatprep.subr.bf16.mxu1 %v1605_v3 }
  0x41   : > { %1389 = vmatpush3.bf16.msra.mxu0 %v1525_v39  ;;  %1396 = vmatprep.mubr.msk.bf16.mxu0 %vm1606_vm1, %v1605_v3 }
  0x42   : > { %1390 = vmatprep.subr.bf16.mxu0 %v1605_v3  ;;  %1385 = vmatmul.mubr.msk.bf16.vlgmr.msra.gmra.mrb[4].mxu1 %vm330_vm6, %v576_v44 }
  0x43   : > { %1401 = vmatpush3.bf16.msra.mxu1 %v1529_v45  ;;  %1408 = vmatprep.mubr.msk.bf16.mxu1 %vm1606_vm1, %v1605_v3 }
  0x44   : > { %1402 = vmatprep.subr.bf16.mxu1 %v1605_v3 }
  0x45   : > { %1391 = vmatpush3.bf16.msra.mxu0 %v1527_v42 }
  0x46   : > { %1392 = vmatprep.subr.bf16.mxu0 %v1605_v3 }
  0x47   : > { %1403 = vmatpush3.bf16.msra.mxu1 %v1531_v51 }
  0x48   : > { %1404 = vmatprep.subr.bf16.mxu1 %v1605_v3 }
  0x49   : > { %1393 = vmatpush3.bf16.msra.mxu0 %v1528_v49 }
  0x4a   : > { %1394 = vmatprep.subr.bf16.mxu0 %v1605_v3 }
  0x4b   : > { %1405 = vmatpush3.bf16.msra.mxu1 %v1533_v57 }
  0x4c   : > { %1406 = vmatprep.subr.bf16.mxu1 %v1605_v3 }
  0x4d   : > { %1395 = vmatpush3.bf16.msra.mxu0 %v1530_v54 }
  0x4e   : > { %1412 = vmatprep.subr.bf16.mxu0 %v1605_v3 }
  0x4f   : > { %1407 = vmatpush3.bf16.msra.mxu1 %v1535_v61 }
  0x50   : > { %1397 = vmatmul.mubr.msk.bf16.vlgmr.msra.gmra.mrb[8].mxu0 %vm330_vm6, %v666_v56  ;;  %1424 = vmatprep.subr.bf16.mxu1 %v1605_v3 }
  0x51   : > { %1413 = vmatpush3.bf16.msra.mxu0 %v1534_v58  ;;  %1420 = vmatprep.mubr.msk.bf16.mxu0 %vm1606_vm1, %v1605_v3 }
  0x52   : > { %1414 = vmatprep.subr.bf16.mxu0 %v1605_v3  ;;  %1409 = vmatmul.mubr.msk.bf16.vlgmr.msra.gmra.mrb[8].mxu1 %vm330_vm6, %v752_v0 }
  0x53   : > { %1425 = vmatpush3.bf16.msra.mxu1 %v1538_v1  ;;  %1432 = vmatprep.mubr.msk.bf16.mxu1 %vm1606_vm1, %v1605_v3 }
  0x54   : > { %1426 = vmatprep.subr.bf16.mxu1 %v1605_v3 }
  0x55   : > { %1415 = vmatpush3.bf16.msra.mxu0 %v1536_v62 }
  0x56   : > { %1416 = vmatprep.subr.bf16.mxu0 %v1605_v3 }
  0x57   : > { %1427 = vmatpush3.bf16.msra.mxu1 %v1540_v7 }
  0x58   : > { %1428 = vmatprep.subr.bf16.mxu1 %v1605_v3 }
  0x59   : > { %1417 = vmatpush3.bf16.msra.mxu0 %v1537_v4 }
  0x5a   : > { %1418 = vmatprep.subr.bf16.mxu0 %v1605_v3 }
  0x5b   : > { %1429 = vmatpush3.bf16.msra.mxu1 %v1541_v13 }
  0x5c   : > { %1430 = vmatprep.subr.bf16.mxu1 %v1605_v3 }
  0x5d   : > { %1419 = vmatpush3.bf16.msra.mxu0 %v1539_v8 }
  0x5e   : > { %1436 = vmatprep.subr.bf16.mxu0 %v1605_v3 }
  0x5f   : > { %1431 = vmatpush3.bf16.msra.mxu1 %v1543_v18 }
  0x60   : > { %1421 = vmatmul.mubr.msk.bf16.vlgmr.msra.gmra.mrb[12].mxu0 %vm330_vm6, %v838_v12 }
  0x61   : > { %1437 = vmatpush3.bf16.msra.mxu0 %v1542_v14  ;;  %1444 = vmatprep.mubr.msk.bf16.mxu0 %vm1606_vm1, %v1605_v3 }
  0x62   : > { %1438 = vmatprep.subr.bf16.mxu0 %v1605_v3  ;;  %1433 = vmatmul.mubr.msk.bf16.vlgmr.msra.gmra.mrb[12].mxu1 %vm330_vm6, %v931_v22 }
  0x65   : > { %1439 = vmatpush3.bf16.msra.mxu0 %v1544_v19 }
  0x66   : > { %1440 = vmatprep.subr.bf16.mxu0 %v1605_v3 }
  0x69   : > { %1441 = vmatpush3.bf16.msra.mxu0 %v1546_v25 }
  0x6a   : > { %1442 = vmatprep.subr.bf16.mxu0 %v1605_v3 }
  0x6d   : > { %1443 = vmatpush3.bf16.msra.mxu0 %v1547_v27 }
  0x70   : > { %1445 = vmatmul.mubr.msk.bf16.vlgmr.msra.gmra.mrb[16].mxu0 %vm330_vm6, %v1023_v28 }
 0x103   : > { %v368_v30 = vpop.f32.mrb[0].mxu0 }
 0x104   : > { %v374_v31 = vadd.f32 %v368_v30, %v305_v29  ;;  %v1350_v32 = vpop.f32.mrb[1].mxu0 }
 0x105   : > { %v371_v33 = vpop.f32.mrb[2].mxu0  ;;  %v458_v35 = vpop.f32.mrb[0].mxu1 }
 0x106   : > { %376 = vst.msk [vmem:[#allocation2] sm:$0xf] %vm375_vm13, %v374_v31  ;;  %v1351_v34 = vpop.f32.mrb[3].mxu0  ;;  %v1362_v36 = vpop.f32.mrb[1].mxu1 }
 0x107   : > { %v461_v37 = vpop.f32.mrb[2].mxu1 }
 0x108   : > { %v1363_v39 = vpop.f32.mrb[3].mxu1 }
 0x10d   : > { %v386_v38 = vld [vmem:[#allocation2] sm:$0xf] }
 0x10e   : > { %v464_v40 = vadd.f32 %v458_v35, %v386_v38 }
 0x110   : > { %465 = vst.msk [vmem:[#allocation2] sm:$0xf] %vm375_vm13, %v464_v40 }
 0x113   : > { %v551_v3 = vpop.f32.mrb[4].mxu0 }
 0x114   : > { %v1374_v41 = vpop.f32.mrb[5].mxu0 }
 0x115   : > { %v554_v42 = vpop.f32.mrb[6].mxu0  ;;  %v638_v46 = vpop.f32.mrb[4].mxu1 }
 0x116   : > { %v1375_v43 = vpop.f32.mrb[7].mxu0  ;;  %v1386_v47 = vpop.f32.mrb[5].mxu1 }
 0x117   : > { %v485_v44 = vld [vmem:[#allocation2] sm:$0xf]  ;;  %v641_v48 = vpop.f32.mrb[6].mxu1 }
 0x118   : > { %v557_v45 = vadd.f32 %v551_v3, %v485_v44  ;;  %v1387_v49 = vpop.f32.mrb[7].mxu1 }
 0x11a   : > { %558 = vst.msk [vmem:[#allocation2] sm:$0xf] %vm375_vm13, %v557_v45 }
 0x121   : > { %v572_v50 = vld [vmem:[#allocation2] sm:$0xf] }
 0x122   : > { %v644_v51 = vadd.f32 %v638_v46, %v572_v50 }
 0x123   : > { %v728_v52 = vpop.f32.mrb[8].mxu0 }
 0x124   : > { %645 = vst.msk [vmem:[#allocation2] sm:$0xf] %vm375_vm13, %v644_v51  ;;  %v1398_v53 = vpop.f32.mrb[9].mxu0 }
 0x125   : > { %v731_v54 = vpop.f32.mrb[10].mxu0  ;;  %v814_v56 = vpop.f32.mrb[8].mxu1 }
 0x126   : > { %v1399_v55 = vpop.f32.mrb[11].mxu0  ;;  %v1410_v58 = vpop.f32.mrb[9].mxu1 }
 0x127   : > { %v817_v60 = vpop.f32.mrb[10].mxu1 }
 0x128   : > { %v1411_v61 = vpop.f32.mrb[11].mxu1 }
 0x12b   : > { %v655_v57 = vld [vmem:[#allocation2] sm:$0xf] }
 0x12c   : > { %v734_v59 = vadd.f32 %v728_v52, %v655_v57 }
 0x12e   : > { %735 = vst.msk [vmem:[#allocation2] sm:$0xf] %vm375_vm13, %v734_v59 }
 0x133   : > { %v900_v62 = vpop.f32.mrb[12].mxu0 }
 0x134   : > { %v1422_v63 = vpop.f32.mrb[13].mxu0 }
 0x135   : > { %v748_v0 = vld [vmem:[#allocation2] sm:$0xf]  ;;  %v903_v1 = vpop.f32.mrb[14].mxu0  ;;  %v993_v5 = vpop.f32.mrb[12].mxu1 }
 0x136   : > { %v820_v2 = vadd.f32 %v814_v56, %v748_v0  ;;  %v1423_v4 = vpop.f32.mrb[15].mxu0  ;;  %v1434_v6 = vpop.f32.mrb[13].mxu1 }
 0x137   : > { %v996_v7 = vpop.f32.mrb[14].mxu1 }
 0x138   : > { %821 = vst.msk [vmem:[#allocation2] sm:$0xf] %vm375_vm13, %v820_v2  ;;  %v1435_v8 = vpop.f32.mrb[15].mxu1 }
 0x13f   : > { %v834_v9 = vld [vmem:[#allocation2] sm:$0xf] }
 0x140   : > { %v906_v10 = vadd.f32 %v900_v62, %v834_v9 }
 0x142   : > { %907 = vst.msk [vmem:[#allocation2] sm:$0xf] %vm375_vm13, %v906_v10 }
 0x143   : > { %v1085_v11 = vpop.f32.mrb[16].mxu0 }
 0x144   : > { %v1446_v12 = vpop.f32.mrb[17].mxu0 }
 0x145   : > { %v1088_v13 = vpop.f32.mrb[18].mxu0 }
 0x146   : > { %v1447_v14 = vpop.f32.mrb[19].mxu0 }
 0x149   : > { %v918_v16 = vld [vmem:[#allocation2] sm:$0xf] }
 0x14a   : > { %v999_v17 = vadd.f32 %v993_v5, %v918_v16 }
 0x14c   : > { %1000 = vst.msk [vmem:[#allocation2] sm:$0xf] %vm375_vm13, %v999_v17 }
 0x150   : > { %1096 = sbr.rel (%p1290_p11) target bundleno = 359 (0x167), region = 44 }
 0x153   : > { %v1017_v15 = vld [vmem:[#allocation2] sm:$0xf] }
 0x154   : > { %v1091_v18 = vadd.f32 %v1085_v11, %v1017_v15 }
 0x156   : > { %1092 = vst.msk [vmem:[#allocation2] sm:$0xf] %vm375_vm13, %v1091_v18 }
 0x15d   : > { %v1097_v19 = vld [vmem:[#allocation2] sm:$0xf] }
 0x15e   : > { %v1105_v22 = vmul.f32 %v1291_v20, %v1097_v19 }
 0x160   : > { %v1113_v23 = vadd.f32 %v1292_v21, %v1105_v22 }
 0x162   : > { %v1114_v24 = vmax.f32 %v1113_v23, 0.0 }
 0x164   : > { %v1115_v25 = vpack.c.bf16 %v1114_v24, %v1114_v24 }
 0x166   : > { %1117 = vst.msk [vmem:[%s1698_s27] sm:$0x3] %vm1116_vm14, %v1115_v25 }
 0x167 PF: > { %s14_s21 = sadd.s32 1, %s1602_s21   ;;  %s1881_s15 = smov %s1590_s18 }
 0x168   : > { %p11_p12 = scmp.ge.s32.totalorder %s14_s21, 14   ;;  %s1882_s16 = smov %s1594_s19 }
 0x169   : > { %s1883_s17 = smov %s1598_s20  ;;  %s1884_s18 = smov %s1888_s22 }
 0x16a   : > { %s1885_s19 = smov %s1892_s23  ;;  %s1886_s20 = smov %s1896_s24 }
 0x16b   :  { %13 = sbr.rel (!%p11_p12) target bundleno = 4 (0x4), region = 77 }

// kernel: physnet_forward.26
= control target key start
LH: loop header
LB: loop body
LE: loop exit
PB: predicated region body
PF: predicated region fallthrough
CT: control target
= control target key end

     0   :  { %s880_s15 = smov 0   ;;  %s882_s16 = smov 0   ;;  %s1003_s0 = inlined_call_operand.vmem [shape: bf16[2,4,5,64], index: 0, kind: input, shape index: {}]   ;;  %s1004_s1 = inlined_call_operand.vmem [shape: bf16[3,576,64], index: 1, kind: input, shape index: {}]   ;;  %s1005_s2 = inlined_call_operand.vmem [shape: f32[1,64], index: 2, kind: input, shape index: {}]   ;;  %s1006_s3 = inlined_call_operand.vmem [shape: f32[1,64], index: 3, kind: input, shape index: {}]   ;;  %s1007_s4 = inlined_call_operand.vmem [shape: bf16[2,2,1,64], index: 4, kind: output, shape index: {}]  }
   0x1   :  { %s884_s17 = smov 0   ;;  %s886_s18 = smov 0  }
   0x2   :  { %s888_s19 = smov 0   ;;  %s890_s20 = smov 0  }
   0x3   :  { %s892_s21 = smov 0  }
   0x4 LB: > { %s26_s22 = sadd.s32 1, %s838_s18  ;;  %s29_s23 = sadd.s32 1, %s842_s19  ;;  %s850_s21 = sphi %s892_s21, %s14_s21   ;;  %s846_s20 = sphi %s890_s20, %s1013_s20   ;;  %s842_s19 = sphi %s888_s19, %s1012_s19   ;;  %s838_s18 = sphi %s886_s18, %s1011_s18   ;;  %s834_s17 = sphi %s884_s17, %s1010_s17   ;;  %s830_s16 = sphi %s882_s16, %s1009_s16   ;;  %s826_s15 = sphi %s880_s15, %s1008_s15  }
   0x5   : > { %p27_p0 = scmp.ge.s32.totalorder %s26_s22, 3  ;;  %p643_p1 = scmp.ge.s32.totalorder %s850_s21, 1 }
   0x6   : > { %p202_p2 = scmp.lt.s32.totalorder %s850_s21, 13  ;;  %s33_s24 = sadd.s32 1, %s846_s20 }
   0x7   : > { %s1015_s22 = smov (%p27_p0, %s26_s22), 0  ;;  %s1017_s23 = smov (!%p27_p0, %s29_s23), %s842_s19 }
   0x8   : > { %p203_p3 = pnand %p643_p1, %p202_p2  ;;  %p31_p4 = scmp.ge.s32.totalorder %s1017_s23, 2 }
   0x9   : > { %s239_s25 = sadd.s32 (!%p203_p3), %s826_s15, %s830_s16  ;;  %p240_p6 = scmp.lt.s32.totalorder (!%p203_p3), %s834_s17, 1 }
   0xa   : > { %s1019_s23 = smov (%p31_p4, %s1017_s23), 0  ;;  %s1021_s24 = smov (!%p31_p4, %s33_s24), %s846_s20 }
   0xb   : > { %p35_p5 = scmp.ge.s32.totalorder %s1021_s24, 2  ;;  %206 = sbr.rel (%p203_p3) target bundleno = 300 (0x12c), region = 36 }
   0xc   : > { %p242_p7 = scmp.lt.s32.totalorder (!%p203_p3), %s239_s25, 3  ;;  %p249_p8 = scmp.lt.s32.totalorder (!%p203_p3), %s826_s15, 2 }
   0xd   : > { %s1023_s24 = smov (%p35_p5, %s1021_s24), 0  ;;  %p256_p9 = scmp.lt.s32.totalorder (!%p203_p3), %s830_s16, 1 }
   0xe   : > { %p648_p10 = scmp.ne.s32.totalorder (!%p203_p3), %s826_s15, 0 }
  0x12   : > { %s1025_s17 = smov (!%p240_p6, %s834_s17), 1  ;;  %s1027_s25 = smov (!%p242_p7, %s239_s25), 3 }
  0x13   : > { %s644_s26 = sshll.u32 %s1025_s17, 2  ;;  %s647_s6 = sshll.u32 %s1025_s17, 1  ;;  %vm266_vm0 = vcmask (!%p648_p10), 516096   ;;  %v852_v0 = vmov (!%p648_p10), 0.0  }
  0x14   : > { %s245_s27 = sadd.s32 %s644_s26, %s1027_s25  ;;  %s1029_s16 = smov (!%p256_p9, %s830_s16), 1  ;;  %267 = vst.msk [vmem:[#allocation2] sm:$0x1] (!%p648_p10), %vm266_vm0, %v852_v0 }
  0x15   : > { %s645_s28 = sshll.u32 %s245_s27, 2  ;;  %s259_s9 = sadd.s32 %s647_s6, %s1029_s16 }
  0x16   : > { %s933_s5 = scalar_lea.vmem %s1003_s0, %s645_s28  ;;  %s945_s25 = scalar_lea.vmem %s1007_s4, %s259_s9 }
  0x17   : > { %s250_s7 = scalar_select %p249_p8, %s826_s15, 2 }
  0x18   : > { %265 = sbr.rel (%p648_p10) target bundleno = 31 (0x1f), region = 40 }
  0x19   : > { %s721_s8 = smul.u32 288, %s250_s7 }
  0x1b   : > { %s940_s12 = scalar_lea.vmem %s1004_s1, %s721_s8 }
  0x1f PF: > { %v781_v1 = vld [vmem:[%s940_s12 + $0x20] sm:$0xff]   ;;  %v853_v2 = vmov 0.0   ;;  %v782_v3 = vld [vmem:[%s940_s12 + $0x28] sm:$0xff]   ;;  %vm854_vm1 = vmmov 0   ;;  %v784_v6 = vld [vmem:[%s940_s12 + $0x30] sm:$0xff]   ;;  %vm308_vm2 = vcmask 523264  }
  0x20   : > { %685 = vmatprep.subr.bf16.mxu0 %v853_v2  ;;  %697 = vmatprep.subr.bf16.mxu1 %v853_v2  ;;  %v783_v4 = vld [vmem:[%s940_s12 + $0x80] sm:$0xff]   ;;  %v785_v5 = vld [vmem:[%s940_s12 + $0x88] sm:$0xff]   ;;  %v788_v8 = vld [vmem:[%s940_s12 + $0x90] sm:$0xff]   ;;  %vm353_vm3 = vcmask 516096   ;;  %p667_p11 = scmp.ne.s32.totalorder %s826_s15, 2 }
  0x21   : > { %686 = vmatpush3.bf16.msra.mxu0 %v781_v1  ;;  %693 = vmatprep.mubr.msk.bf16.mxu0 %vm854_vm1, %v853_v2  ;;  %v787_v7 = vld [vmem:[%s933_s5] ss:$0 sps:$4 sm:$0x11]   ;;  %v786_v9 = vld [vmem:[%s940_s12 + $0x38] sm:$0xff]   ;;  %v791_v15 = vld [vmem:[%s940_s12 + $0xe8] sm:$0xff]  }
  0x22   : > { %687 = vmatprep.subr.bf16.mxu0 %v853_v2  ;;  %705 = vmatprep.mubr.msk.bf16.mxu1 %vm854_vm1, %v853_v2  ;;  %v790_v10 = vld [vmem:[%s940_s12 + $0x98] sm:$0xff]   ;;  %v792_v11 = vld [vmem:[%s933_s5] ss:$0 sps:$4 sm:$0x22]   ;;  %v282_v12 = vshrl.u32 %v787_v7, 16  ;;  %v793_v17 = vld [vmem:[%s940_s12 + $0xf0] sm:$0xff]  }
  0x23   : > { %698 = vmatpush3.bf16.msra.mxu1 %v783_v4  ;;  %v789_v13 = vld [vmem:[%s940_s12 + $0xe0] sm:$0xff]   ;;  %v368_v14 = vrot.slane %v792_v11, 1  ;;  %v794_v19 = vld [vmem:[%s940_s12 + $0xf8] sm:$0xff]   ;;  %vm536_vm4 = vsmask.f32 (!%p667_p11), 256 }
  0x24   : > { %699 = vmatprep.subr.bf16.mxu1 %v853_v2  ;;  %v795_v16 = vld [vmem:[%s933_s5] ss:$0 sps:$4 sm:$0x22]   ;;  %vm537_vm5 = vmand (!%p667_p11), %vm353_vm3, %vm536_vm4 }
  0x25   : > { %688 = vmatpush3.bf16.msra.mxu0 %v782_v3  ;;  %v452_v18 = vshrl.u32 %v795_v16, 16  ;;  %v277_v21 = vld [vmem:[#allocation2] sm:$0x1] }
  0x26   : > { %689 = vmatprep.subr.bf16.mxu0 %v853_v2  ;;  %v529_v40 = vld [vmem:[%s1005_s2] sm:$0x1] (!%p667_p11) }
  0x27   : > { %700 = vmatpush3.bf16.msra.mxu1 %v785_v5  ;;  %v454_v20 = vrot.slane %v452_v18, 1  ;;  %v531_v41 = vld [vmem:[%s1006_s3] sm:$0x1] (!%p667_p11) }
  0x28   : > { %701 = vmatprep.subr.bf16.mxu1 %v853_v2  ;;  %v538_v45 = vld [vmem:[%s945_s25] sm:$0x1] (!%p667_p11) }
  0x29   : > { %690 = vmatpush3.bf16.msra.mxu0 %v784_v6 }
  0x2a   : > { %691 = vmatprep.subr.bf16.mxu0 %v853_v2 }
  0x2b   : > { %702 = vmatpush3.bf16.msra.mxu1 %v788_v8 }
  0x2c   : > { %703 = vmatprep.subr.bf16.mxu1 %v853_v2 }
  0x2d   : > { %692 = vmatpush3.bf16.msra.mxu0 %v786_v9 }
  0x2e   : > { %709 = vmatprep.subr.bf16.mxu0 %v853_v2 }
  0x2f   : > { %704 = vmatpush3.bf16.msra.mxu1 %v790_v10 }
  0x30   : > { %694 = vmatmul.mubr.msk.bf16.vlgmr.msra.gmra.mrb[0].mxu0 %vm308_vm2, %v282_v12 }
  0x31   : > { %710 = vmatpush3.bf16.msra.mxu0 %v789_v13  ;;  %717 = vmatprep.mubr.msk.bf16.mxu0 %vm854_vm1, %v853_v2 }
  0x32   : > { %711 = vmatprep.subr.bf16.mxu0 %v853_v2  ;;  %706 = vmatmul.mubr.msk.bf16.vlgmr.msra.gmra.mrb[0].mxu1 %vm308_vm2, %v368_v14 }
  0x35   : > { %712 = vmatpush3.bf16.msra.mxu0 %v791_v15 }
  0x36   : > { %713 = vmatprep.subr.bf16.mxu0 %v853_v2 }
  0x39   : > { %714 = vmatpush3.bf16.msra.mxu0 %v793_v17 }
  0x3a   : > { %715 = vmatprep.subr.bf16.mxu0 %v853_v2 }
  0x3d   : > { %716 = vmatpush3.bf16.msra.mxu0 %v794_v19 }
  0x40   : > { %718 = vmatmul.mubr.msk.bf16.vlgmr.msra.gmra.mrb[4].mxu0 %vm308_vm2, %v454_v20 }
 0x103   : > { %v346_v22 = vpop.f32.mrb[0].mxu0 }
 0x104   : > { %v352_v23 = vadd.f32 %v346_v22, %v277_v21  ;;  %v695_v24 = vpop.f32.mrb[1].mxu0 }
 0x105   : > { %v349_v25 = vpop.f32.mrb[2].mxu0  ;;  %v430_v26 = vpop.f32.mrb[0].mxu1 }
 0x106   : > { %354 = vst.msk [vmem:[#allocation2] sm:$0x1] %vm353_vm3, %v352_v23  ;;  %v696_v27 = vpop.f32.mrb[3].mxu0  ;;  %v707_v28 = vpop.f32.mrb[1].mxu1 }
 0x107   : > { %v433_v29 = vpop.f32.mrb[2].mxu1 }
 0x108   : > { %v708_v30 = vpop.f32.mrb[3].mxu1 }
 0x10d   : > { %v364_v31 = vld [vmem:[#allocation2] sm:$0x1] }
 0x10e   : > { %v436_v32 = vadd.f32 %v430_v26, %v364_v31 }
 0x110   : > { %437 = vst.msk [vmem:[#allocation2] sm:$0x1] %vm353_vm3, %v436_v32 }
 0x113   : > { %v516_v33 = vpop.f32.mrb[4].mxu0 }
 0x114   : > { %v719_v34 = vpop.f32.mrb[5].mxu0  ;;  %527 = sbr.rel (%p667_p11) target bundleno = 300 (0x12c), region = 44 }
 0x115   : > { %v519_v35 = vpop.f32.mrb[6].mxu0 }
 0x116   : > { %v720_v36 = vpop.f32.mrb[7].mxu0 }
 0x117   : > { %v447_v37 = vld [vmem:[#allocation2] sm:$0x1] }
 0x118   : > { %v522_v38 = vadd.f32 %v516_v33, %v447_v37 }
 0x11a   : > { %523 = vst.msk [vmem:[#allocation2] sm:$0x1] %vm353_vm3, %v522_v38 }
 0x121   : > { %v528_v39 = vld [vmem:[#allocation2] sm:$0x1] }
 0x122   : > { %v530_v42 = vmul.f32 %v529_v40, %v528_v39 }
 0x124   : > { %v532_v43 = vadd.f32 %v531_v41, %v530_v42 }
 0x126   : > { %v533_v44 = vmax.f32 %v532_v43, 0.0 }
 0x128   : > { %v534_v46 = vpack.c.bf16 %v533_v44, %v533_v44 }
 0x12a   : > { %v539_v47 = vsel %vm537_vm5, %v534_v46, %v538_v45 }
 0x12b   : > { %540 = vst [vmem:[%s945_s25] sm:$0x1] %v539_v47 }
 0x12c PF: > { %s14_s21 = sadd.s32 1, %s850_s21   ;;  %s1008_s15 = smov %s838_s18 }
 0x12d   : > { %p11_p12 = scmp.ge.s32.totalorder %s14_s21, 14   ;;  %s1009_s16 = smov %s842_s19 }
 0x12e   : > { %s1010_s17 = smov %s846_s20  ;;  %s1011_s18 = smov %s1015_s22 }
 0x12f   : > { %s1012_s19 = smov %s1019_s23  ;;  %s1013_s20 = smov %s1023_s24 }
 0x130   :  { %13 = sbr.rel (!%p11_p12) target bundleno = 4 (0x4), region = 77 }

// kernel: physnet_forward.28
= control target key start
LH: loop header
LB: loop body
LE: loop exit
PB: predicated region body
PF: predicated region fallthrough
CT: control target
= control target key end

     0   :  { %s600_s15 = smov 0   ;;  %s602_s16 = smov 0   ;;  %s646_s0 = inlined_call_operand.vmem [shape: bf16[2,8,128], index: 0, kind: input, shape index: {}]   ;;  %s647_s1 = inlined_call_operand.vmem [shape: bf16[2,128,64], index: 1, kind: input, shape index: {}]   ;;  %s648_s2 = inlined_call_operand.vmem [shape: f32[1,64], index: 2, kind: input, shape index: {}]   ;;  %s649_s3 = inlined_call_operand.vmem [shape: f32[1,64], index: 3, kind: input, shape index: {}]   ;;  %s650_s4 = inlined_call_operand.vmem [shape: bf16[2,8,64], index: 4, kind: output, shape index: {}]  }
   0x1   :  { %s604_s17 = smov 0  }
   0x2 LB: > { %s26_s18 = sadd.s32 1, %s567_s16  ;;  %p465_p0 = scmp.ge.s32.totalorder %s571_s17, 1  ;;  %s571_s17 = sphi %s604_s17, %s14_s17   ;;  %s567_s16 = sphi %s602_s16, %s652_s16   ;;  %s563_s15 = sphi %s600_s15, %s651_s15  }
   0x3   : > { %p28_p1 = scmp.ge.s32.totalorder %s26_s18, 2  ;;  %p190_p2 = scmp.lt.s32.totalorder %s571_s17, 3 }
   0x5   : > { %s654_s18 = smov (%p28_p1, %s26_s18), 0  ;;  %p191_p3 = pnand %p465_p0, %p190_p2 }
   0x6   : > { %p225_p4 = scmp.lt.s32.totalorder (!%p191_p3), %s563_s15, 1  ;;  %v573_v0 = vmov (!%p191_p3), 0.0   ;;  %vm574_vm0 = vmmov (!%p191_p3), 0   ;;  %v478_v10 = vld [vmem:[%s648_s2] ss:$0 sm:$0xff] (!%p191_p3)  ;;  %vm373_vm2 = vcmask (!%p191_p3), 519168  }
   0x7   : > { %194 = sbr.rel (%p191_p3) target bundleno = 286 (0x11e), region = 36  ;;  %493 = vmatprep.subr.bf16.mxu0 (!%p191_p3), %v573_v0  ;;  %509 = vmatprep.mubr.msk.bf16.mxu0 (!%p191_p3), %vm574_vm0, %v573_v0  ;;  %v479_v12 = vld [vmem:[%s649_s3] ss:$0 sm:$0xff] (!%p191_p3) }
   0xe   : > { %s656_s15 = smov (!%p225_p4, %s563_s15), 1 }
   0xf   : > { %s483_s19 = sshll.u32 %s656_s15, 6  ;;  %s466_s23 = sshll.u32 %s656_s15, 2 }
  0x10   : > { %s236_s22 = scalar_lea.vmem %s647_s1, %s483_s19  ;;  %s231_s26 = scalar_lea.vmem %s646_s0, %s466_s23 }
  0x11   : > { %v539_v1 = vld [vmem:[%s236_s22] sm:$0xff]   ;;  %v540_v2 = vld [vmem:[%s236_s22 + $0x8] sm:$0xff]   ;;  %v541_v3 = vld [vmem:[%s236_s22 + $0x10] sm:$0xff]   ;;  %s243_s7 = scalar_lea.vmem %s650_s4, %s466_s23 }
  0x12   : > { %494 = vmatpush3.bf16.msra.mxu0 %v539_v1  ;;  %v542_v4 = vld [vmem:[%s236_s22 + $0x18] sm:$0xff]   ;;  %v543_v5 = vld [vmem:[%s236_s22 + $0x20] sm:$0xff]   ;;  %v544_v6 = vld [vmem:[%s236_s22 + $0x28] sm:$0xff]  }
  0x13   : > { %495 = vmatprep.subr.bf16.mxu0 %v573_v0  ;;  %v545_v7 = vld [vmem:[%s236_s22 + $0x30] sm:$0xff]   ;;  %v546_v8 = vld [vmem:[%s236_s22 + $0x38] sm:$0xff]   ;;  %v245_v9 = vld [vmem:[%s231_s26] sm:$0xf] }
  0x16   : > { %496 = vmatpush3.bf16.msra.mxu0 %v540_v2 }
  0x17   : > { %497 = vmatprep.subr.bf16.mxu0 %v573_v0 }
  0x1a   : > { %498 = vmatpush3.bf16.msra.mxu0 %v541_v3 }
  0x1b   : > { %499 = vmatprep.subr.bf16.mxu0 %v573_v0 }
  0x1e   : > { %500 = vmatpush3.bf16.msra.mxu0 %v542_v4 }
  0x1f   : > { %501 = vmatprep.subr.bf16.mxu0 %v573_v0 }
  0x22   : > { %502 = vmatpush3.bf16.msra.mxu0 %v543_v5 }
  0x23   : > { %503 = vmatprep.subr.bf16.mxu0 %v573_v0 }
  0x26   : > { %504 = vmatpush3.bf16.msra.mxu0 %v544_v6 }
  0x27   : > { %505 = vmatprep.subr.bf16.mxu0 %v573_v0 }
  0x2a   : > { %506 = vmatpush3.bf16.msra.mxu0 %v545_v7 }
  0x2b   : > { %507 = vmatprep.subr.bf16.mxu0 %v573_v0 }
  0x2e   : > { %508 = vmatpush3.bf16.msra.mxu0 %v546_v8 }
  0x31   : > { %510 = vmatmul.mubr.bf16.vlgmr.msra.gmra.mrb[0].mxu0 %v245_v9 }
 0x104   : > { %v344_v11 = vpop.f32.mrb[0].mxu0 }
 0x105   : > { %v357_v13 = vmul.f32 %v478_v10, %v344_v11  ;;  %v511_v14 = vpop.f32.mrb[1].mxu0 }
 0x106   : > { %v347_v15 = vpop.f32.mrb[2].mxu0 }
 0x107   : > { %v365_v16 = vadd.f32 %v479_v12, %v357_v13  ;;  %v512_v17 = vpop.f32.mrb[3].mxu0 }
 0x109   : > { %v367_v18 = vmin.f32 %v365_v16, 0.0  ;;  %vm366_vm1 = vcmp.gt.f32.partialorder %v365_v16, 0.0 }
 0x10b   : > { %v368_v19 = vmul.f32 1.442695, %v367_v18 }
 0x10d   : > { %547 = vpow2.f32 %v368_v19 }
 0x117   : > { %v548_v20 = vpop.eup %547 }
 0x118   : > { %v480_v21 = vadd.f32 -1.0, %v548_v20 }
 0x11a   : > { %v371_v22 = vsel %vm366_vm1, %v365_v16, %v480_v21 }
 0x11b   : > { %v372_v23 = vpack.c.bf16 %v371_v22, %v371_v22 }
 0x11d   : > { %374 = vst.msk [vmem:[%s243_s7] sm:$0xf] %vm373_vm2, %v372_v23 }
 0x11e PF: > { %s14_s17 = sadd.s32 1, %s571_s17   ;;  %s651_s15 = smov %s567_s16 }
 0x11f   : > { %p11_p5 = scmp.ge.s32.totalorder %s14_s17, 4   ;;  %s652_s16 = smov %s654_s18 }
 0x121   :  { %13 = sbr.rel (!%p11_p5) target bundleno = 2 (0x2), region = 69 }

</bundles_post_ra>
